<compile_context>
chip_gen: v6e
topology: v6e:2x2x1
jax: 0.10.0
libtpu: 0.0.40
codegen_flags: <defaults>
</compile_context>

<pallas_src>
import functools

import jax
import jax.numpy as jnp
from jax.experimental import pallas as pl
from jax.experimental.pallas import tpu as pltpu


_VMEM_SPEC = pl.BlockSpec(memory_space=pltpu.MemorySpace.VMEM)


# ----------------------------------------------------------------------------
# Pallas kernel 1: fused conv-as-GEMM  (lane-dense:  out = tanh(W @ P^T + b)*s + t)
#   w_ref: (OC, C*KH*KW)   p_ref: (C*KH*KW, B*OH*OW)   b/s/t: (OC, 1)
# ----------------------------------------------------------------------------
def _conv_gemm_kernel(w_ref, p_ref, b_ref, s_ref, t_ref, o_ref):
    y = jnp.dot(w_ref[...], p_ref[...], preferred_element_type=jnp.float32)
    y = jnp.tanh(y + b_ref[...])
    o_ref[...] = y * s_ref[...] + t_ref[...]


# ----------------------------------------------------------------------------
# Pallas kernel 2: the whole FC chain (encoder_fc + decoder_fc) in one call.
# bf16 weights, f32 accumulation; intermediates never leave VMEM.
# ----------------------------------------------------------------------------
def _fc_chain_kernel(x_ref,
                     w1_ref, b1_ref,
                     w2_ref, b2_ref, s2_ref, t2_ref,
                     w3_ref, b3_ref,
                     w4_ref, b4_ref, s4_ref, t4_ref,
                     w5_ref, b5_ref, s5_ref, t5_ref,
                     w6_ref, b6_ref,
                     lat_ref, out_ref):
    def mm(a, w_ref):
        return jnp.dot(a.astype(jnp.bfloat16), w_ref[...],
                       preferred_element_type=jnp.float32)

    def leaky(v):  # nn.LeakyReLU(0.2) — slope from the reference module
        return jnp.where(v >= 0.0, v, 0.2 * v)

    x = x_ref[...]
    # encoder_fc: Linear -> BN1d (folded into w1/b1)
    h = mm(x, w1_ref) + b1_ref[...]
    # Linear -> Tanh -> BN1d
    h = jnp.tanh(mm(h, w2_ref) + b2_ref[...]) * s2_ref[...] + t2_ref[...]
    # Linear -> Tanh   (latent)
    z = jnp.tanh(mm(h, w3_ref) + b3_ref[...])
    lat_ref[...] = z
    # decoder_fc: Linear -> LeakyReLU(0.2) -> BN1d
    d = leaky(mm(z, w4_ref) + b4_ref[...]) * s4_ref[...] + t4_ref[...]
    d = leaky(mm(d, w5_ref) + b5_ref[...]) * s5_ref[...] + t5_ref[...]
    # Linear -> LeakyReLU(0.2)
    out_ref[...] = leaky(mm(d, w6_ref) + b6_ref[...])


def fc_chain(x, p):
    B = x.shape[0]
    latent_dim = p["fc3_w"].shape[1]
    out_dim = p["dfc3_w"].shape[1]
    lat, out = pl.pallas_call(
        _fc_chain_kernel,
        out_shape=(jax.ShapeDtypeStruct((B, latent_dim), jnp.float32),
                   jax.ShapeDtypeStruct((B, out_dim), jnp.float32)),
        in_specs=[_VMEM_SPEC] * 19,
        out_specs=(_VMEM_SPEC, _VMEM_SPEC),
        compiler_params=pltpu.CompilerParams(vmem_limit_bytes=32 << 20),
    )(x,
      p["fc1_w"], p["fc1_b"],
      p["fc2_w"], p["fc2_b"], p["bn2_s"], p["bn2_t"],
      p["fc3_w"], p["fc3_b"],
      p["dfc1_w"], p["dfc1_b"], p["dbn1_s"], p["dbn1_t"],
      p["dfc2_w"], p["dfc2_b"], p["dbn2_s"], p["dbn2_t"],
      p["dfc3_w"], p["dfc3_b"])
    return lat, out


# ----------------------------------------------------------------------------
# Conv2d(k=5, stride=1, padding=1) -> Tanh -> BN2d  as one lane-dense GEMM call
# ----------------------------------------------------------------------------
def _im2col_T(x, kh, kw, pad):
    # x: (B, C, H, W)  ->  P^T: (C*KH*KW, B*OH*OW), single gather (no tap loop)
    B, C, H, W = x.shape
    xp = jnp.pad(x, ((0, 0), (0, 0), (pad, pad), (pad, pad)))
    HP, WP = H + 2 * pad, W + 2 * pad
    OH, OW = HP - kh + 1, WP - kw + 1
    oh = jnp.arange(OH)
    ow = jnp.arange(OW)
    di = jnp.arange(kh)
    dj = jnp.arange(kw)
    rows = (oh[:, None, None, None] + di[None, None, :, None]) * WP
    cols = ow[None, :, None, None] + dj[None, None, None, :]
    idx = (rows + cols).reshape(OH * OW, kh * kw)          # (OH*OW, KK), const
    xf = xp.reshape(B, C, HP * WP)
    patches = jnp.take(xf, idx, axis=2)                    # (B, C, OH*OW, KK)
    pT = jnp.transpose(patches, (1, 3, 0, 2)).reshape(C * kh * kw, B * OH * OW)
    return pT, OH, OW


def conv2d_tanh_bn(x, w_mat, b, bn_s, bn_t):
    # x: (B, C, H, W); w_mat: (OC, C*25); b/bn_s/bn_t: (OC, 1)
    B = x.shape[0]
    OC = w_mat.shape[0]
    pT, OH, OW = _im2col_T(x, 5, 5, 1)
    out = pl.pallas_call(
        _conv_gemm_kernel,
        out_shape=jax.ShapeDtypeStruct((OC, B * OH * OW), jnp.float32),
        in_specs=[_VMEM_SPEC] * 5,
        out_specs=_VMEM_SPEC,
        compiler_params=pltpu.CompilerParams(vmem_limit_bytes=32 << 20),
    )(w_mat, pT, b, bn_s, bn_t)
    # lane-dense (OC, B*OH*OW) -> NCHW
    return out.reshape(OC, B, OH, OW).transpose(1, 0, 2, 3)


# ----------------------------------------------------------------------------
# Plain-JAX glue (layout / sampling only, no heavy compute)
# ----------------------------------------------------------------------------
def cyclic_shift_and_concat(x):
    # x: (B, k) -> (B, 1, k, k); column i is x rolled by i along the row axis.
    B, k = x.shape
    r = jnp.arange(k)[:, None]
    c = jnp.arange(k)[None, :]
    idx = (r - c) % k  # result[b, r, i] = x[b, (r - i) % k]  (torch.roll semantics)
    return x[:, idx][:, None, :, :]


def maxpool2x2(x):
    # nn.MaxPool2d(kernel_size=2, stride=2), ceil_mode=False -> crop odd edge.
    B, C, H, W = x.shape
    Hc, Wc = (H // 2) * 2, (W // 2) * 2
    x = x[:, :, :Hc, :Wc].reshape(B, C, Hc // 2, 2, Wc // 2, 2)
    return x.max(axis=(3, 5))


def bilinear_resize(x, out_h, out_w):
    # F.interpolate(..., mode='bilinear', align_corners=False), NCHW input.
    B, C, H, W = x.shape

    def prep(out_size, in_size):
        scale = in_size / out_size
        src = (jnp.arange(out_size, dtype=jnp.float32) + 0.5) * scale - 0.5
        src = jnp.maximum(src, 0.0)  # PyTorch clamps negative source coords to 0
        lo = jnp.floor(src).astype(jnp.int32)
        hi = jnp.minimum(lo + 1, in_size - 1)
        frac = src - lo.astype(jnp.float32)
        return lo, hi, frac

    hl, hh, hw = prep(out_h, H)
    wl, wh, ww = prep(out_w, W)

    top = jnp.take(x, hl, axis=2)
    bot = jnp.take(x, hh, axis=2)
    xh = top * (1.0 - hw)[None, None, :, None] + bot * hw[None, None, :, None]
    left = jnp.take(xh, wl, axis=3)
    right = jnp.take(xh, wh, axis=3)
    return left * (1.0 - ww)[None, None, None, :] + right * ww[None, None, None, :]


# ----------------------------------------------------------------------------
# Deterministic parameter initialization (eval-mode BN folded where possible)
# ----------------------------------------------------------------------------
def _dense_init(key, fan_in, fan_out):
    kw, kb = jax.random.split(key)
    bound = 1.0 / (fan_in ** 0.5)
    w = jax.random.uniform(kw, (fan_in, fan_out), jnp.float32, -bound, bound)
    b = jax.random.uniform(kb, (fan_out,), jnp.float32, -bound, bound)
    return w, b


def _conv_init(key, oc, ic, kh, kw_):
    k1, k2 = jax.random.split(key)
    fan_in = ic * kh * kw_
    bound = 1.0 / (fan_in ** 0.5)
    w = jax.random.uniform(k1, (oc, ic, kh, kw_), jnp.float32, -bound, bound)
    b = jax.random.uniform(k2, (oc,), jnp.float32, -bound, bound)
    return w, b


def _bn_fold(key, n, eps=1e-5):
    # eval-mode BatchNorm folded into y = x * s + t
    k1, k2, k3 = jax.random.split(key, 3)
    gamma = 1.0 + 0.1 * jax.random.normal(k1, (n,), jnp.float32)
    beta = 0.1 * jax.random.normal(k2, (n,), jnp.float32)
    mean = 0.1 * jax.random.normal(k3, (n,), jnp.float32)
    var = jnp.ones((n,), jnp.float32)
    s = gamma / jnp.sqrt(var + eps)
    t = beta - mean * s
    return s, t


def init_params(key, input_dim, latent_dim):
    assert input_dim == 25, "this synthetic setup uses input_dim=25 (temp_linear=384)"
    temp_linear = 384
    ks = jax.random.split(key, 16)
    p = {}

    # ---- conv layers: weights reshaped for lane-dense transposed GEMM -------
    c1_w, c1_b = _conv_init(ks[0], 6, 1, 5, 5)
    c1_s, c1_t = _bn_fold(ks[1], 6)
    p["c1_wmat"] = c1_w.reshape(6, -1)          # (OC, IC*KH*KW)
    p["c1_b"] = c1_b.reshape(6, 1)
    p["c1_s"] = c1_s.reshape(6, 1)
    p["c1_t"] = c1_t.reshape(6, 1)

    c2_w, c2_b = _conv_init(ks[2], 16, 7, 5, 5)
    c2_s, c2_t = _bn_fold(ks[3], 16)
    p["c2_wmat"] = c2_w.reshape(16, -1)
    p["c2_b"] = c2_b.reshape(16, 1)
    p["c2_s"] = c2_s.reshape(16, 1)
    p["c2_t"] = c2_t.reshape(16, 1)

    # ---- encoder_fc ----------------------------------------------------------
    fc1_w, fc1_b = _dense_init(ks[4], temp_linear, 4096)
    bn1_s, bn1_t = _bn_fold(ks[5], 4096)
    # Linear -> BN1d with no activation in between: fold BN into w/b, bf16 weight
    p["fc1_w"] = (fc1_w * bn1_s[None, :]).astype(jnp.bfloat16)
    p["fc1_b"] = (fc1_b * bn1_s + bn1_t).reshape(1, -1)

    fc2_w, fc2_b = _dense_init(ks[6], 4096, 512)
    bn2_s, bn2_t = _bn_fold(ks[7], 512)
    p["fc2_w"] = fc2_w.astype(jnp.bfloat16)
    p["fc2_b"] = fc2_b.reshape(1, -1)
    p["bn2_s"] = bn2_s.reshape(1, -1)
    p["bn2_t"] = bn2_t.reshape(1, -1)

    fc3_w, fc3_b = _dense_init(ks[8], 512, latent_dim)
    p["fc3_w"] = fc3_w.astype(jnp.bfloat16)
    p["fc3_b"] = fc3_b.reshape(1, -1)

    # ---- decoder_fc ----------------------------------------------------------
    dfc1_w, dfc1_b = _dense_init(ks[9], latent_dim, 64)
    dbn1_s, dbn1_t = _bn_fold(ks[10], 64)
    p["dfc1_w"] = dfc1_w.astype(jnp.bfloat16)
    p["dfc1_b"] = dfc1_b.reshape(1, -1)
    p["dbn1_s"] = dbn1_s.reshape(1, -1)
    p["dbn1_t"] = dbn1_t.reshape(1, -1)

    dfc2_w, dfc2_b = _dense_init(ks[11], 64, 128)
    dbn2_s, dbn2_t = _bn_fold(ks[12], 128)
    p["dfc2_w"] = dfc2_w.astype(jnp.bfloat16)
    p["dfc2_b"] = dfc2_b.reshape(1, -1)
    p["dbn2_s"] = dbn2_s.reshape(1, -1)
    p["dbn2_t"] = dbn2_t.reshape(1, -1)

    dfc3_w, dfc3_b = _dense_init(ks[13], 128, input_dim)
    p["dfc3_w"] = dfc3_w.astype(jnp.bfloat16)
    p["dfc3_b"] = dfc3_b.reshape(1, -1)
    return p


# ----------------------------------------------------------------------------
# Forward pass (semantics of AutoEncoder.forward, eval-mode BN)
# ----------------------------------------------------------------------------
def autoencoder_forward(params, X, latent=False):
    X = cyclic_shift_and_concat(X)                    # (B, 1, k, k)
    X_cyc = X

    # encoder_conv1: Conv(1->6, k=5, p=1) -> Tanh -> BN2d -> MaxPool(2,2)
    X = conv2d_tanh_bn(X, params["c1_wmat"], params["c1_b"],
                       params["c1_s"], params["c1_t"])
    X = maxpool2x2(X)
    _, _, H, W = X.shape
    X = jnp.concatenate([X, bilinear_resize(X_cyc, H, W)], axis=1)   # (B, 7, H, W)
    X_after1 = X

    # encoder_conv2: Conv(7->16, k=5, p=1) -> Tanh -> BN2d -> MaxPool(2,2)
    X = conv2d_tanh_bn(X, params["c2_wmat"], params["c2_b"],
                       params["c2_s"], params["c2_t"])
    X = maxpool2x2(X)
    B, _, H, W = X.shape
    X = jnp.concatenate(
        [X, bilinear_resize(X_after1, H, W), bilinear_resize(X_cyc, H, W)], axis=1)
    X = X.reshape(B, -1)                               # (B, 384)

    # encoder_fc + decoder_fc: single fused Pallas kernel
    lat, out = fc_chain(X, params)
    return lat if latent else out


if __name__ == "__main__":
    input_dim = 25     # -> temp_linear = 384 branch of the PyTorch module
    latent_dim = 32
    batch = 4

    key = jax.random.PRNGKey(0)
    k_param, k_data = jax.random.split(key)
    params = init_params(k_param, input_dim, latent_dim)
    x = jax.random.normal(k_data, (batch, input_dim), jnp.float32)

    fwd = jax.jit(autoencoder_forward, static_argnames="latent")
    out = fwd(params, x)
    out = jax.block_until_ready(out)
    assert out.shape == (batch, input_dim)
    assert bool(jnp.all(jnp.isfinite(out)))
    print("KERNEL_OK")
</pallas_src>

<mosaic_0001>
module attributes {stable_mosaic.version = 11 : i64} {
  func.func @_conv_gemm_kernel(%arg0: memref<6x25xf32, #tpu.memory_space<vmem>>, %arg1: memref<25x2116xf32, #tpu.memory_space<vmem>>, %arg2: memref<6x1xf32, #tpu.memory_space<vmem>>, %arg3: memref<6x1xf32, #tpu.memory_space<vmem>>, %arg4: memref<6x1xf32, #tpu.memory_space<vmem>>, %arg5: memref<6x2116xf32, #tpu.memory_space<vmem>>) attributes {dimension_semantics = [], scalar_prefetch = 0 : i64, scratch_operands = 0 : i64, tpu.core_type = #tpu.core_type<tc>} {
    %c0 = arith.constant 0 : index
    %c0_0 = arith.constant 0 : index
    %0 = vector.load %arg0[%c0, %c0_0] : memref<6x25xf32, #tpu.memory_space<vmem>>, vector<6x25xf32>
    %c0_1 = arith.constant 0 : index
    %c0_2 = arith.constant 0 : index
    %1 = vector.load %arg1[%c0_1, %c0_2] : memref<25x2116xf32, #tpu.memory_space<vmem>>, vector<25x2116xf32>
    %cst = arith.constant dense<0.000000e+00> : vector<6x2116xf32>
    %2 = tpu.matmul %0, %1, %cst {dimension_numbers = #tpu.dot_dimension_numbers<[1], [0], [0], [1], [0, 0, 1, 1], [], []>} : vector<6x25xf32>, vector<25x2116xf32>, vector<6x2116xf32> -> vector<6x2116xf32>
    %c0_3 = arith.constant 0 : index
    %c0_4 = arith.constant 0 : index
    %3 = vector.load %arg2[%c0_3, %c0_4] : memref<6x1xf32, #tpu.memory_space<vmem>>, vector<6x1xf32>
    %4 = vector.broadcast %3 : vector<6x1xf32> to vector<6x2116xf32>
    %5 = arith.addf %2, %4 : vector<6x2116xf32>
    %6 = math.tanh %5 : vector<6x2116xf32>
    %c0_5 = arith.constant 0 : index
    %c0_6 = arith.constant 0 : index
    %7 = vector.load %arg3[%c0_5, %c0_6] : memref<6x1xf32, #tpu.memory_space<vmem>>, vector<6x1xf32>
    %8 = vector.broadcast %7 : vector<6x1xf32> to vector<6x2116xf32>
    %9 = arith.mulf %6, %8 : vector<6x2116xf32>
    %c0_7 = arith.constant 0 : index
    %c0_8 = arith.constant 0 : index
    %10 = vector.load %arg4[%c0_7, %c0_8] : memref<6x1xf32, #tpu.memory_space<vmem>>, vector<6x1xf32>
    %11 = vector.broadcast %10 : vector<6x1xf32> to vector<6x2116xf32>
    %12 = arith.addf %9, %11 : vector<6x2116xf32>
    %c0_9 = arith.constant 0 : index
    %c0_10 = arith.constant 0 : index
    %13 = vector.load %arg5[%c0_9, %c0_10] : memref<6x2116xf32, #tpu.memory_space<vmem>>, vector<6x2116xf32>
    tpu.vector_store %arg5[%c0_9, %c0_10], %12 {strides = array<i32>} : memref<6x2116xf32, #tpu.memory_space<vmem>>, vector<6x2116xf32>,
    return
  }
}

module attributes {stable_mosaic.version = 11 : i64} {
  func.func @_conv_gemm_kernel(%arg0: memref<16x175xf32, #tpu.memory_space<vmem>>, %arg1: memref<175x324xf32, #tpu.memory_space<vmem>>, %arg2: memref<16x1xf32, #tpu.memory_space<vmem>>, %arg3: memref<16x1xf32, #tpu.memory_space<vmem>>, %arg4: memref<16x1xf32, #tpu.memory_space<vmem>>, %arg5: memref<16x324xf32, #tpu.memory_space<vmem>>) attributes {dimension_semantics = [], scalar_prefetch = 0 : i64, scratch_operands = 0 : i64, tpu.core_type = #tpu.core_type<tc>} {
    %c0 = arith.constant 0 : index
    %c0_0 = arith.constant 0 : index
    %0 = vector.load %arg0[%c0, %c0_0] : memref<16x175xf32, #tpu.memory_space<vmem>>, vector<16x175xf32>
    %c0_1 = arith.constant 0 : index
    %c0_2 = arith.constant 0 : index
    %1 = vector.load %arg1[%c0_1, %c0_2] : memref<175x324xf32, #tpu.memory_space<vmem>>, vector<175x324xf32>
    %cst = arith.constant dense<0.000000e+00> : vector<16x324xf32>
    %2 = tpu.matmul %0, %1, %cst {dimension_numbers = #tpu.dot_dimension_numbers<[1], [0], [0], [1], [0, 0, 1, 1], [], []>} : vector<16x175xf32>, vector<175x324xf32>, vector<16x324xf32> -> vector<16x324xf32>
    %c0_3 = arith.constant 0 : index
    %c0_4 = arith.constant 0 : index
    %3 = vector.load %arg2[%c0_3, %c0_4] : memref<16x1xf32, #tpu.memory_space<vmem>>, vector<16x1xf32>
    %4 = vector.broadcast %3 : vector<16x1xf32> to vector<16x324xf32>
    %5 = arith.addf %2, %4 : vector<16x324xf32>
    %6 = math.tanh %5 : vector<16x324xf32>
    %c0_5 = arith.constant 0 : index
    %c0_6 = arith.constant 0 : index
    %7 = vector.load %arg3[%c0_5, %c0_6] : memref<16x1xf32, #tpu.memory_space<vmem>>, vector<16x1xf32>
    %8 = vector.broadcast %7 : vector<16x1xf32> to vector<16x324xf32>
    %9 = arith.mulf %6, %8 : vector<16x324xf32>
    %c0_7 = arith.constant 0 : index
    %c0_8 = arith.constant 0 : index
    %10 = vector.load %arg4[%c0_7, %c0_8] : memref<16x1xf32, #tpu.memory_space<vmem>>, vector<16x1xf32>
    %11 = vector.broadcast %10 : vector<16x1xf32> to vector<16x324xf32>
    %12 = arith.addf %9, %11 : vector<16x324xf32>
    %c0_9 = arith.constant 0 : index
    %c0_10 = arith.constant 0 : index
    %13 = vector.load %arg5[%c0_9, %c0_10] : memref<16x324xf32, #tpu.memory_space<vmem>>, vector<16x324xf32>
    tpu.vector_store %arg5[%c0_9, %c0_10], %12 {strides = array<i32>} : memref<16x324xf32, #tpu.memory_space<vmem>>, vector<16x324xf32>,
    return
  }
}

module attributes {stable_mosaic.version = 11 : i64} {
  func.func @_fc_chain_kernel(%arg0: memref<4x384xf32, #tpu.memory_space<vmem>>, %arg1: memref<384x4096xbf16, #tpu.memory_space<vmem>>, %arg2: memref<1x4096xf32, #tpu.memory_space<vmem>>, %arg3: memref<4096x512xbf16, #tpu.memory_space<vmem>>, %arg4: memref<1x512xf32, #tpu.memory_space<vmem>>, %arg5: memref<1x512xf32, #tpu.memory_space<vmem>>, %arg6: memref<1x512xf32, #tpu.memory_space<vmem>>, %arg7: memref<512x32xbf16, #tpu.memory_space<vmem>>, %arg8: memref<1x32xf32, #tpu.memory_space<vmem>>, %arg9: memref<32x64xbf16, #tpu.memory_space<vmem>>, %arg10: memref<1x64xf32, #tpu.memory_space<vmem>>, %arg11: memref<1x64xf32, #tpu.memory_space<vmem>>, %arg12: memref<1x64xf32, #tpu.memory_space<vmem>>, %arg13: memref<64x128xbf16, #tpu.memory_space<vmem>>, %arg14: memref<1x128xf32, #tpu.memory_space<vmem>>, %arg15: memref<1x128xf32, #tpu.memory_space<vmem>>, %arg16: memref<1x128xf32, #tpu.memory_space<vmem>>, %arg17: memref<128x25xbf16, #tpu.memory_space<vmem>>, %arg18: memref<1x25xf32, #tpu.memory_space<vmem>>, %arg19: memref<4x32xf32, #tpu.memory_space<vmem>>, %arg20: memref<4x25xf32, #tpu.memory_space<vmem>>) attributes {dimension_semantics = [], scalar_prefetch = 0 : i64, scratch_operands = 0 : i64, tpu.core_type = #tpu.core_type<tc>} {
    %c0 = arith.constant 0 : index
    %c0_0 = arith.constant 0 : index
    %0 = vector.load %arg0[%c0, %c0_0] : memref<4x384xf32, #tpu.memory_space<vmem>>, vector<4x384xf32>
    %1 = arith.truncf %0 : vector<4x384xf32> to vector<4x384xbf16>
    %c0_1 = arith.constant 0 : index
    %c0_2 = arith.constant 0 : index
    %2 = vector.load %arg1[%c0_1, %c0_2] : memref<384x4096xbf16, #tpu.memory_space<vmem>>, vector<384x4096xbf16>
    %cst = arith.constant dense<0.000000e+00> : vector<4x4096xf32>
    %3 = tpu.matmul %1, %2, %cst {dimension_numbers = #tpu.dot_dimension_numbers<[1], [0], [0], [1], [0, 0, 1, 1], [], []>} : vector<4x384xbf16>, vector<384x4096xbf16>, vector<4x4096xf32> -> vector<4x4096xf32>
    %c0_3 = arith.constant 0 : index
    %c0_4 = arith.constant 0 : index
    %4 = vector.load %arg2[%c0_3, %c0_4] : memref<1x4096xf32, #tpu.memory_space<vmem>>, vector<1x4096xf32>
    %5 = vector.broadcast %4 : vector<1x4096xf32> to vector<4x4096xf32>
    %6 = arith.addf %3, %5 : vector<4x4096xf32>
    %7 = arith.truncf %6 : vector<4x4096xf32> to vector<4x4096xbf16>
    %c0_5 = arith.constant 0 : index
    %c0_6 = arith.constant 0 : index
    %8 = vector.load %arg3[%c0_5, %c0_6] : memref<4096x512xbf16, #tpu.memory_space<vmem>>, vector<4096x512xbf16>
    %cst_7 = arith.constant dense<0.000000e+00> : vector<4x512xf32>
    %9 = tpu.matmul %7, %8, %cst_7 {dimension_numbers = #tpu.dot_dimension_numbers<[1], [0], [0], [1], [0, 0, 1, 1], [], []>} : vector<4x4096xbf16>, vector<4096x512xbf16>, vector<4x512xf32> -> vector<4x512xf32>
    %c0_8 = arith.constant 0 : index
    %c0_9 = arith.constant 0 : index
    %10 = vector.load %arg4[%c0_8, %c0_9] : memref<1x512xf32, #tpu.memory_space<vmem>>, vector<1x512xf32>
    %11 = vector.broadcast %10 : vector<1x512xf32> to vector<4x512xf32>
    %12 = arith.addf %9, %11 : vector<4x512xf32>
    %13 = math.tanh %12 : vector<4x512xf32>
    %c0_10 = arith.constant 0 : index
    %c0_11 = arith.constant 0 : index
    %14 = vector.load %arg5[%c0_10, %c0_11] : memref<1x512xf32, #tpu.memory_space<vmem>>, vector<1x512xf32>
    %15 = vector.broadcast %14 : vector<1x512xf32> to vector<4x512xf32>
    %16 = arith.mulf %13, %15 : vector<4x512xf32>
    %c0_12 = arith.constant 0 : index
    %c0_13 = arith.constant 0 : index
    %17 = vector.load %arg6[%c0_12, %c0_13] : memref<1x512xf32, #tpu.memory_space<vmem>>, vector<1x512xf32>
    %18 = vector.broadcast %17 : vector<1x512xf32> to vector<4x512xf32>
    %19 = arith.addf %16, %18 : vector<4x512xf32>
    %20 = arith.truncf %19 : vector<4x512xf32> to vector<4x512xbf16>
    %c0_14 = arith.constant 0 : index
    %c0_15 = arith.constant 0 : index
    %21 = vector.load %arg7[%c0_14, %c0_15] : memref<512x32xbf16, #tpu.memory_space<vmem>>, vector<512x32xbf16>
    %cst_16 = arith.constant dense<0.000000e+00> : vector<4x32xf32>
    %22 = tpu.matmul %20, %21, %cst_16 {dimension_numbers = #tpu.dot_dimension_numbers<[1], [0], [0], [1], [0, 0, 1, 1], [], []>} : vector<4x512xbf16>, vector<512x32xbf16>, vector<4x32xf32> -> vector<4x32xf32>
    %c0_17 = arith.constant 0 : index
    %c0_18 = arith.constant 0 : index
    %23 = vector.load %arg8[%c0_17, %c0_18] : memref<1x32xf32, #tpu.memory_space<vmem>>, vector<1x32xf32>
    %24 = vector.broadcast %23 : vector<1x32xf32> to vector<4x32xf32>
    %25 = arith.addf %22, %24 : vector<4x32xf32>
    %26 = math.tanh %25 : vector<4x32xf32>
    %c0_19 = arith.constant 0 : index
    %c0_20 = arith.constant 0 : index
    %27 = vector.load %arg19[%c0_19, %c0_20] : memref<4x32xf32, #tpu.memory_space<vmem>>, vector<4x32xf32>
    tpu.vector_store %arg19[%c0_19, %c0_20], %26 {strides = array<i32>} : memref<4x32xf32, #tpu.memory_space<vmem>>, vector<4x32xf32>,
    %28 = arith.truncf %26 : vector<4x32xf32> to vector<4x32xbf16>
    %c0_21 = arith.constant 0 : index
    %c0_22 = arith.constant 0 : index
    %29 = vector.load %arg9[%c0_21, %c0_22] : memref<32x64xbf16, #tpu.memory_space<vmem>>, vector<32x64xbf16>
    %cst_23 = arith.constant dense<0.000000e+00> : vector<4x64xf32>
    %30 = tpu.matmul %28, %29, %cst_23 {dimension_numbers = #tpu.dot_dimension_numbers<[1], [0], [0], [1], [0, 0, 1, 1], [], []>} : vector<4x32xbf16>, vector<32x64xbf16>, vector<4x64xf32> -> vector<4x64xf32>
    %c0_24 = arith.constant 0 : index
    %c0_25 = arith.constant 0 : index
    %31 = vector.load %arg10[%c0_24, %c0_25] : memref<1x64xf32, #tpu.memory_space<vmem>>, vector<1x64xf32>
    %32 = vector.broadcast %31 : vector<1x64xf32> to vector<4x64xf32>
    %33 = arith.addf %30, %32 : vector<4x64xf32>
    %cst_26 = arith.constant 0.000000e+00 : f32
    %34 = vector.broadcast %cst_26 : f32 to vector<4x64xf32>
    %35 = arith.cmpf oge, %33, %34 : vector<4x64xf32>
    %cst_27 = arith.constant 2.000000e-01 : f32
    %36 = vector.broadcast %cst_27 : f32 to vector<4x64xf32>
    %37 = arith.mulf %36, %33 : vector<4x64xf32>
    %38 = arith.select %35, %33, %37 : vector<4x64xi1>, vector<4x64xf32>
    %c0_28 = arith.constant 0 : index
    %c0_29 = arith.constant 0 : index
    %39 = vector.load %arg11[%c0_28, %c0_29] : memref<1x64xf32, #tpu.memory_space<vmem>>, vector<1x64xf32>
    %40 = vector.broadcast %39 : vector<1x64xf32> to vector<4x64xf32>
    %41 = arith.mulf %38, %40 : vector<4x64xf32>
    %c0_30 = arith.constant 0 : index
    %c0_31 = arith.constant 0 : index
    %42 = vector.load %arg12[%c0_30, %c0_31] : memref<1x64xf32, #tpu.memory_space<vmem>>, vector<1x64xf32>
    %43 = vector.broadcast %42 : vector<1x64xf32> to vector<4x64xf32>
    %44 = arith.addf %41, %43 : vector<4x64xf32>
    %45 = arith.truncf %44 : vector<4x64xf32> to vector<4x64xbf16>
    %c0_32 = arith.constant 0 : index
    %c0_33 = arith.constant 0 : index
    %46 = vector.load %arg13[%c0_32, %c0_33] : memref<64x128xbf16, #tpu.memory_space<vmem>>, vector<64x128xbf16>
    %cst_34 = arith.constant dense<0.000000e+00> : vector<4x128xf32>
    %47 = tpu.matmul %45, %46, %cst_34 {dimension_numbers = #tpu.dot_dimension_numbers<[1], [0], [0], [1], [0, 0, 1, 1], [], []>} : vector<4x64xbf16>, vector<64x128xbf16>, vector<4x128xf32> -> vector<4x128xf32>
    %c0_35 = arith.constant 0 : index
    %c0_36 = arith.constant 0 : index
    %48 = vector.load %arg14[%c0_35, %c0_36] : memref<1x128xf32, #tpu.memory_space<vmem>>, vector<1x128xf32>
    %49 = vector.broadcast %48 : vector<1x128xf32> to vector<4x128xf32>
    %50 = arith.addf %47, %49 : vector<4x128xf32>
    %cst_37 = arith.constant 0.000000e+00 : f32
    %51 = vector.broadcast %cst_37 : f32 to vector<4x128xf32>
    %52 = arith.cmpf oge, %50, %51 : vector<4x128xf32>
    %cst_38 = arith.constant 2.000000e-01 : f32
    %53 = vector.broadcast %cst_38 : f32 to vector<4x128xf32>
    %54 = arith.mulf %53, %50 : vector<4x128xf32>
    %55 = arith.select %52, %50, %54 : vector<4x128xi1>, vector<4x128xf32>
    %c0_39 = arith.constant 0 : index
    %c0_40 = arith.constant 0 : index
    %56 = vector.load %arg15[%c0_39, %c0_40] : memref<1x128xf32, #tpu.memory_space<vmem>>, vector<1x128xf32>
    %57 = vector.broadcast %56 : vector<1x128xf32> to vector<4x128xf32>
    %58 = arith.mulf %55, %57 : vector<4x128xf32>
    %c0_41 = arith.constant 0 : index
    %c0_42 = arith.constant 0 : index
    %59 = vector.load %arg16[%c0_41, %c0_42] : memref<1x128xf32, #tpu.memory_space<vmem>>, vector<1x128xf32>
    %60 = vector.broadcast %59 : vector<1x128xf32> to vector<4x128xf32>
    %61 = arith.addf %58, %60 : vector<4x128xf32>
    %62 = arith.truncf %61 : vector<4x128xf32> to vector<4x128xbf16>
    %c0_43 = arith.constant 0 : index
    %c0_44 = arith.constant 0 : index
    %63 = vector.load %arg17[%c0_43, %c0_44] : memref<128x25xbf16, #tpu.memory_space<vmem>>, vector<128x25xbf16>
    %cst_45 = arith.constant dense<0.000000e+00> : vector<4x25xf32>
    %64 = tpu.matmul %62, %63, %cst_45 {dimension_numbers = #tpu.dot_dimension_numbers<[1], [0], [0], [1], [0, 0, 1, 1], [], []>} : vector<4x128xbf16>, vector<128x25xbf16>, vector<4x25xf32> -> vector<4x25xf32>
    %c0_46 = arith.constant 0 : index
    %c0_47 = arith.constant 0 : index
    %65 = vector.load %arg18[%c0_46, %c0_47] : memref<1x25xf32, #tpu.memory_space<vmem>>, vector<1x25xf32>
    %66 = vector.broadcast %65 : vector<1x25xf32> to vector<4x25xf32>
    %67 = arith.addf %64, %66 : vector<4x25xf32>
    %cst_48 = arith.constant 0.000000e+00 : f32
    %68 = vector.broadcast %cst_48 : f32 to vector<4x25xf32>
    %69 = arith.cmpf oge, %67, %68 : vector<4x25xf32>
    %cst_49 = arith.constant 2.000000e-01 : f32
    %70 = vector.broadcast %cst_49 : f32 to vector<4x25xf32>
    %71 = arith.mulf %70, %67 : vector<4x25xf32>
    %72 = arith.select %69, %67, %71 : vector<4x25xi1>, vector<4x25xf32>
    %c0_50 = arith.constant 0 : index
    %c0_51 = arith.constant 0 : index
    %73 = vector.load %arg20[%c0_50, %c0_51] : memref<4x25xf32, #tpu.memory_space<vmem>>, vector<4x25xf32>
    tpu.vector_store %arg20[%c0_50, %c0_51], %72 {strides = array<i32>} : memref<4x25xf32, #tpu.memory_space<vmem>>, vector<4x25xf32>,
    return
  }
}

</mosaic_0001>

<bundles_post_ra>
// kernel: autoencoder_forward.3
= control target key start
LH: loop header
LB: loop body
LE: loop exit
PB: predicated region body
PF: predicated region fallthrough
CT: control target
= control target key end

     0   :  { %vm99_vm0 = vcmask 1040384   ;;  %v955_v3 = vmov 0.0   ;;  %vm95_vm1 = vcmask 203776   ;;  %vm956_vm2 = vmmov 0   ;;  %s1362_s1 = inlined_call_operand.vmem [shape: f32[25,2116], index: 1, kind: input, shape index: {}]   ;;  %s1363_s0 = inlined_call_operand.vmem [shape: f32[6,25], index: 0, kind: input, shape index: {}]   ;;  %s1364_s2 = inlined_call_operand.vmem [shape: f32[6,1], index: 2, kind: input, shape index: {}]   ;;  %s1365_s4 = inlined_call_operand.vmem [shape: f32[6,1], index: 4, kind: input, shape index: {}]   ;;  %s1366_s3 = inlined_call_operand.vmem [shape: f32[6,1], index: 3, kind: input, shape index: {}]   ;;  %s1367_s5 = inlined_call_operand.vmem [shape: f32[6,2116], index: 5, kind: output, shape index: {}]  }
   0x1   :  { %v73_v0 = vld [vmem:[%s1362_s1 + $0x1a0] sm:$0x1]  ;;  %v75_v1 = vld [vmem:[%s1362_s1 + $0x1b0] sm:$0x1]  ;;  %v72_v2 = vld [vmem:[%s1362_s1 + $0x198] sm:$0x1]  ;;  %215 = vmatprep.mubr.f32.mxu0 %v955_v3  ;;  %286 = vmatprep.mubr.f32.mxu1 %v955_v3 }
   0x2   :  { %874 = vmatprep.subr.msk.mxu0 %vm99_vm0, %v73_v0  ;;  %877 = vmatprep.subr.msk.mxu1 %vm99_vm0, %v75_v1  ;;  %v74_v4 = vld [vmem:[%s1362_s1 + $0x1a8] sm:$0x1]  ;;  %v56_v5 = vld [vmem:[%s1362_s1 + $0x118] sm:$0xff]  ;;  %v55_v7 = vld [vmem:[%s1362_s1 + $0x110] sm:$0xff]  ;;  %vm868_vm3 = vcmask 553984  }
   0x3   :  { %v58_v6 = vld [vmem:[%s1362_s1 + $0x128] sm:$0xff]  ;;  %875 = vmatpush1.msk.msra.mxu0 %vm99_vm0, %v72_v2  ;;  %878 = vmatpush1.msk.msra.mxu1 %vm99_vm0, %v74_v4  ;;  %v57_v8 = vld [vmem:[%s1362_s1 + $0x120] sm:$0xff]  ;;  %v39_v9 = vld [vmem:[%s1362_s1 + $0x90] sm:$0xff] }
   0x4   :  { %177 = vmatprep.subr.mxu0 %v56_v5  ;;  %248 = vmatprep.subr.mxu1 %v58_v6  ;;  %v41_v10 = vld [vmem:[%s1362_s1 + $0xa0] sm:$0xff]  ;;  %v38_v11 = vld [vmem:[%s1362_s1 + $0x88] sm:$0xff]  ;;  %v40_v12 = vld [vmem:[%s1362_s1 + $0x98] sm:$0xff]  ;;  %v957_v6 = vmov 0  }
   0x5   :  { %178 = vmatpush1.msra.mxu0 %v55_v7  ;;  %249 = vmatpush1.msra.mxu1 %v57_v8  ;;  %v22_v13 = vld [vmem:[%s1362_s1 + $0x8] sm:$0xff]  ;;  %v24_v14 = vld [vmem:[%s1362_s1 + $0x18] sm:$0xff]  ;;  %v21_v15 = vld [vmem:[%s1362_s1] sm:$0xff] }
   0x6   :  { %179 = vmatprep.subr.mxu0 %v39_v9  ;;  %250 = vmatprep.subr.mxu1 %v41_v10  ;;  %v23_v16 = vld [vmem:[%s1362_s1 + $0x10] sm:$0xff]  ;;  %v1045_v17 = vld [vmem:[%s1363_s0] sm:$0x3f]  ;;  %v76_v20 = vld [vmem:[%s1362_s1 + $0x1b8] sm:$0x1] }
   0x7   :  { %180 = vmatpush1.msra.mxu0 %v38_v11  ;;  %251 = vmatpush1.msra.mxu1 %v40_v12  ;;  %v77_v18 = vld [vmem:[%s1362_s1 + $0x1c0] sm:$0x1]  ;;  %v79_v19 = vld [vmem:[%s1362_s1 + $0x1d0] sm:$0x1]  ;;  %v78_v21 = vld [vmem:[%s1362_s1 + $0x1c8] sm:$0x1] }
   0x8   :  { %181 = vmatprep.subr.mxu0 %v22_v13  ;;  %252 = vmatprep.subr.mxu1 %v24_v14  ;;  %v60_v22 = vld [vmem:[%s1362_s1 + $0x138] sm:$0xff]  ;;  %v62_v23 = vld [vmem:[%s1362_s1 + $0x148] sm:$0xff]  ;;  %v59_v24 = vld [vmem:[%s1362_s1 + $0x130] sm:$0xff] }
   0x9   :  { %182 = vmatpush1.msra.mxu0 %v21_v15  ;;  %253 = vmatpush1.msra.mxu1 %v23_v16  ;;  %v61_v25 = vld [vmem:[%s1362_s1 + $0x140] sm:$0xff]  ;;  %v43_v26 = vld [vmem:[%s1362_s1 + $0xb0] sm:$0xff]  ;;  %v42_v28 = vld [vmem:[%s1362_s1 + $0xa8] sm:$0xff] }
   0xa   :  { %876 = vmatmul.mubr.msk.f32.vlgmr.msra.gmra.mxu0 %vm95_vm1, %v1045_v17  ;;  %880 = vmatprep.subr.msk.mxu0 %vm99_vm0, %v77_v18  ;;  %v45_v27 = vld [vmem:[%s1362_s1 + $0xc0] sm:$0xff]  ;;  %v44_v29 = vld [vmem:[%s1362_s1 + $0xb8] sm:$0xff]  ;;  %v26_v30 = vld [vmem:[%s1362_s1 + $0x28] sm:$0xff] }
   0xb   :  { %883 = vmatprep.subr.msk.mxu1 %vm99_vm0, %v79_v19  ;;  %879 = vmatmul.mubr.msk.f32.vlgmr.msra.gmra.mxu1 %vm95_vm1, %v1045_v17  ;;  %v28_v31 = vld [vmem:[%s1362_s1 + $0x38] sm:$0xff]  ;;  %v25_v32 = vld [vmem:[%s1362_s1 + $0x20] sm:$0xff]  ;;  %v27_v33 = vld [vmem:[%s1362_s1 + $0x30] sm:$0xff] }
   0xc   :  { %881 = vmatpush1.msk.msra.mxu0 %vm99_vm0, %v76_v20  ;;  %884 = vmatpush1.msk.msra.mxu1 %vm99_vm0, %v78_v21  ;;  %v81_v34 = vld [vmem:[%s1362_s1 + $0x1e0] sm:$0x1]  ;;  %v83_v35 = vld [vmem:[%s1362_s1 + $0x1f0] sm:$0x1]  ;;  %v80_v36 = vld [vmem:[%s1362_s1 + $0x1d8] sm:$0x1] }
   0xd   :  { %319 = vmatprep.subr.mxu0 %v60_v22  ;;  %390 = vmatprep.subr.mxu1 %v62_v23  ;;  %v82_v37 = vld [vmem:[%s1362_s1 + $0x1e8] sm:$0x1]  ;;  %v64_v38 = vld [vmem:[%s1362_s1 + $0x158] sm:$0xff]  ;;  %v63_v40 = vld [vmem:[%s1362_s1 + $0x150] sm:$0xff] }
   0xe   :  { %320 = vmatpush1.msra.mxu0 %v59_v24  ;;  %391 = vmatpush1.msra.mxu1 %v61_v25  ;;  %v66_v39 = vld [vmem:[%s1362_s1 + $0x168] sm:$0xff]  ;;  %v65_v41 = vld [vmem:[%s1362_s1 + $0x160] sm:$0xff]  ;;  %v47_v42 = vld [vmem:[%s1362_s1 + $0xd0] sm:$0xff] }
   0xf   :  { %321 = vmatprep.subr.mxu0 %v43_v26  ;;  %392 = vmatprep.subr.mxu1 %v45_v27  ;;  %v49_v43 = vld [vmem:[%s1362_s1 + $0xe0] sm:$0xff]  ;;  %v46_v44 = vld [vmem:[%s1362_s1 + $0xc8] sm:$0xff]  ;;  %v48_v45 = vld [vmem:[%s1362_s1 + $0xd8] sm:$0xff] }
  0x10   :  { %322 = vmatpush1.msra.mxu0 %v42_v28  ;;  %393 = vmatpush1.msra.mxu1 %v44_v29  ;;  %v30_v46 = vld [vmem:[%s1362_s1 + $0x48] sm:$0xff]  ;;  %v32_v47 = vld [vmem:[%s1362_s1 + $0x58] sm:$0xff]  ;;  %v29_v48 = vld [vmem:[%s1362_s1 + $0x40] sm:$0xff] }
  0x11   :  { %323 = vmatprep.subr.mxu0 %v26_v30  ;;  %394 = vmatprep.subr.mxu1 %v28_v31  ;;  %v31_v49 = vld [vmem:[%s1362_s1 + $0x50] sm:$0xff]  ;;  %v85_v50 = vld [vmem:[%s1362_s1 + $0x200] sm:$0x1]  ;;  %v84_v52 = vld [vmem:[%s1362_s1 + $0x1f8] sm:$0x1] }
  0x12   :  { %324 = vmatpush1.msra.mxu0 %v25_v32  ;;  %357 = vmatprep.mubr.f32.mxu0 %v955_v3  ;;  %v87_v51 = vld [vmem:[%s1362_s1 + $0x210] sm:$0x1]  ;;  %v86_v53 = vld [vmem:[%s1362_s1 + $0x208] sm:$0x1]  ;;  %v68_v54 = vld [vmem:[%s1362_s1 + $0x178] sm:$0xff] }
  0x13   :  { %395 = vmatpush1.msra.mxu1 %v27_v33  ;;  %882 = vmatmul.mubr.msk.f32.vlgmr.msra.gmra.mxu0 %vm95_vm1, %v1045_v17  ;;  %v70_v55 = vld [vmem:[%s1362_s1 + $0x188] sm:$0xff]  ;;  %v67_v56 = vld [vmem:[%s1362_s1 + $0x170] sm:$0xff]  ;;  %v69_v57 = vld [vmem:[%s1362_s1 + $0x180] sm:$0xff] }
  0x14   :  { %428 = vmatprep.mubr.f32.mxu1 %v955_v3  ;;  %886 = vmatprep.subr.msk.mxu0 %vm99_vm0, %v81_v34  ;;  %v51_v58 = vld [vmem:[%s1362_s1 + $0xf0] sm:$0xff]  ;;  %v53_v59 = vld [vmem:[%s1362_s1 + $0x100] sm:$0xff]  ;;  %v50_v60 = vld [vmem:[%s1362_s1 + $0xe8] sm:$0xff] }
  0x15   :  { %889 = vmatprep.subr.msk.mxu1 %vm99_vm0, %v83_v35  ;;  %885 = vmatmul.mubr.msk.f32.vlgmr.msra.gmra.mxu1 %vm95_vm1, %v1045_v17  ;;  %v52_v61 = vld [vmem:[%s1362_s1 + $0xf8] sm:$0xff]  ;;  %v34_v62 = vld [vmem:[%s1362_s1 + $0x68] sm:$0xff]  ;;  %v33_v0 = vld [vmem:[%s1362_s1 + $0x60] sm:$0xff] }
  0x16   :  { %887 = vmatpush1.msk.msra.mxu0 %vm99_vm0, %v80_v36  ;;  %890 = vmatpush1.msk.msra.mxu1 %vm99_vm0, %v82_v37  ;;  %v36_v63 = vld [vmem:[%s1362_s1 + $0x78] sm:$0xff]  ;;  %v35_v1 = vld [vmem:[%s1362_s1 + $0x70] sm:$0xff]  ;;  %v89_v4 = vld [vmem:[%s1364_s2] sm:$0x3f] }
  0x17   :  { %461 = vmatprep.subr.mxu0 %v64_v38  ;;  %532 = vmatprep.subr.mxu1 %v66_v39  ;;  %v88_v2 = vld [vmem:[%s1362_s1 + $0x218] sm:$0x1]  ;;  %v71_v5 = vld [vmem:[%s1362_s1 + $0x190] sm:$0xff]  ;;  %v829_v7 = vld [vmem:[%s1365_s4] sm:$0x3f] }
  0x18   :  { %462 = vmatpush1.msra.mxu0 %v63_v40  ;;  %533 = vmatpush1.msra.mxu1 %v65_v41  ;;  %v54_v8 = vld [vmem:[%s1362_s1 + $0x108] sm:$0xff]  ;;  %v806_v9 = vld [vmem:[%s1366_s3] sm:$0x3f] }
  0x19   :  { %463 = vmatprep.subr.mxu0 %v47_v42  ;;  %534 = vmatprep.subr.mxu1 %v49_v43  ;;  %v37_v10 = vld [vmem:[%s1362_s1 + $0x80] sm:$0xff] }
  0x1a   :  { %464 = vmatpush1.msra.mxu0 %v46_v44  ;;  %535 = vmatpush1.msra.mxu1 %v48_v45 }
  0x1b   :  { %465 = vmatprep.subr.mxu0 %v30_v46  ;;  %536 = vmatprep.subr.mxu1 %v32_v47 }
  0x1c   :  { %466 = vmatpush1.msra.mxu0 %v29_v48  ;;  %499 = vmatprep.mubr.f32.mxu0 %v955_v3 }
  0x1d   :  { %537 = vmatpush1.msra.mxu1 %v31_v49  ;;  %570 = vmatprep.mubr.f32.mxu1 %v955_v3 }
  0x1e   :  { %888 = vmatmul.mubr.msk.f32.vlgmr.msra.gmra.mxu0 %vm95_vm1, %v1045_v17  ;;  %891 = vmatmul.mubr.msk.f32.vlgmr.msra.gmra.mxu1 %vm95_vm1, %v1045_v17 }
  0x1f   :  { %892 = vmatprep.subr.msk.mxu0 %vm99_vm0, %v85_v50  ;;  %895 = vmatprep.subr.msk.mxu1 %vm99_vm0, %v87_v51 }
  0x20   :  { %893 = vmatpush1.msk.msra.mxu0 %vm99_vm0, %v84_v52  ;;  %896 = vmatpush1.msk.msra.mxu1 %vm99_vm0, %v86_v53 }
  0x21   :  { %603 = vmatprep.subr.mxu0 %v68_v54  ;;  %674 = vmatprep.subr.mxu1 %v70_v55 }
  0x22   :  { %604 = vmatpush1.msra.mxu0 %v67_v56  ;;  %675 = vmatpush1.msra.mxu1 %v69_v57 }
  0x23   :  { %605 = vmatprep.subr.mxu0 %v51_v58  ;;  %676 = vmatprep.subr.mxu1 %v53_v59 }
  0x24   :  { %606 = vmatpush1.msra.mxu0 %v50_v60  ;;  %677 = vmatpush1.msra.mxu1 %v52_v61 }
  0x25   :  { %607 = vmatprep.subr.mxu0 %v34_v62  ;;  %678 = vmatprep.subr.mxu1 %v36_v63 }
  0x26   :  { %608 = vmatpush1.msra.mxu0 %v33_v0  ;;  %641 = vmatprep.mubr.f32.mxu0 %v955_v3 }
  0x27   :  { %679 = vmatpush1.msra.mxu1 %v35_v1  ;;  %712 = vmatprep.mubr.f32.mxu1 %v955_v3 }
  0x28   :  { %894 = vmatmul.mubr.msk.f32.vlgmr.msra.gmra.mxu0 %vm95_vm1, %v1045_v17  ;;  %897 = vmatmul.mubr.msk.f32.vlgmr.msra.gmra.mxu1 %vm95_vm1, %v1045_v17 }
  0x29   :  { %905 = vmatprep.subr.mxu0 %v955_v3  ;;  %913 = vmatprep.mubr.msk.f32.mxu0 %vm956_vm2, %v955_v3 }
  0x2a   :  { %906 = vmatpush3.msk.msra.mxu0 %vm99_vm0, %v88_v2  ;;  %919 = vset.pattern.permute.xlu0 %v957_v6 }
  0x2b   :  { %907 = vmatprep.subr.mxu0 %v955_v3  ;;  %92 = vperm.xlu0 %919, %v89_v4  }
  0x2c   :  { %908 = vmatpush3.msra.mxu0 %v71_v5  ;;  %920 = vset.pattern.permute.xlu1 %v957_v6 }
  0x2d   :  { %909 = vmatprep.subr.mxu0 %v955_v3  ;;  %832 = vperm.xlu1 %920, %v829_v7  }
  0x2e   :  { %910 = vmatpush3.msra.mxu0 %v54_v8 }
  0x2f   :  { %911 = vmatprep.subr.mxu0 %v955_v3  ;;  %809 = vperm.xlu0 %919, %v806_v9  }
  0x30   :  { %912 = vmatpush3.msra.mxu0 %v37_v10 }
  0x31   :  { %914 = vmatmul.mubr.msk.f32.vlgmr.msra.gmra.mxu0 %vm95_vm1, %v1045_v17 }
  0xa6   :  { %v1254_v11 = vpop.permute.xlu0 %92 }
  0xa8   :  { %v1266_v29 = vpop.permute.xlu1 %832 }
  0xaa   :  { %v1264_v27 = vpop.permute.xlu0 %809 }
  0xca   :  { %v217_v12 = vpop.f32.mrf.mxu0 }
  0xcb   :  { %v218_v13 = vadd.f32 %v217_v12, %v1254_v11  ;;  %v288_v14 = vpop.f32.mrf.mxu1 }
  0xcc   :  { %v219_v15 = vpop.f32.mrf.mxu0  ;;  %v289_v16 = vadd.f32 %v288_v14, %v1254_v11 }
  0xcd   :  { %921 = vtanh.f32 %v218_v13  ;;  %v220_v18 = vadd.f32 %v219_v15, %v1254_v11  ;;  %v290_v19 = vpop.f32.mrf.mxu1 }
  0xce   :  { %923 = vtanh.f32 %v289_v16  ;;  %v291_v3 = vadd.f32 %v290_v19, %v1254_v11 }
  0xcf   :  { %925 = vtanh.f32 %v220_v18 }
  0xd0   :  { %927 = vtanh.f32 %v291_v3 }
  0xd3   :  { %v359_v20 = vpop.f32.mrf.mxu0 }
  0xd4   :  { %v360_v17 = vadd.f32 %v359_v20, %v1254_v11 }
  0xd5   :  { %v361_v21 = vpop.f32.mrf.mxu0  ;;  %v430_v22 = vpop.f32.mrf.mxu1 }
  0xd6   :  { %929 = vtanh.f32 %v360_v17  ;;  %v362_v23 = vadd.f32 %v361_v21, %v1254_v11  ;;  %v431_v24 = vadd.f32 %v430_v22, %v1254_v11 }
  0xd7   :  { %v432_v25 = vpop.f32.mrf.mxu1 }
  0xd8   :  { %931 = vtanh.f32 %v362_v23  ;;  %v433_v26 = vadd.f32 %v432_v25, %v1254_v11 }
  0xd9   :  { %933 = vtanh.f32 %v431_v24 }
  0xda   :  { %v922_v28 = vpop.eup %921  ;;  %935 = vtanh.f32 %v433_v26 }
  0xdb   :  { %v924_v30 = vpop.eup %923  ;;  %v812_v31 = vmul.f32 %v922_v28, %v1264_v27 }
  0xdc   :  { %v926_v32 = vpop.eup %925  ;;  %v814_v33 = vmul.f32 %v924_v30, %v1264_v27 }
  0xdd   :  { %v928_v34 = vpop.eup %927  ;;  %v813_v35 = vmul.f32 %v926_v32, %v1264_v27  ;;  %v835_v36 = vadd.f32 %v1266_v29, %v812_v31 }
  0xde   :  { %v501_v37 = vpop.f32.mrf.mxu0  ;;  %v572_v38 = vpop.f32.mrf.mxu1  ;;  %v815_v39 = vmul.f32 %v928_v34, %v1264_v27  ;;  %v837_v40 = vadd.f32 %v1266_v29, %v814_v33 }
  0xdf   :  { %v502_v41 = vadd.f32 %v501_v37, %v1254_v11  ;;  %v573_v42 = vadd.f32 %v572_v38, %v1254_v11  ;;  %v836_v43 = vadd.f32 %v1266_v29, %v813_v35  ;;  %852 = vst [vmem:[%s1367_s5] sm:$0x3f] %v835_v36 }
  0xe0   :  { %v503_v44 = vpop.f32.mrf.mxu0  ;;  %v574_v45 = vpop.f32.mrf.mxu1  ;;  %v838_v46 = vadd.f32 %v1266_v29, %v815_v39  ;;  %854 = vst [vmem:[%s1367_s5 + $0x10] sm:$0x3f] %v837_v40 }
  0xe1   :  { %937 = vtanh.f32 %v502_v41  ;;  %v504_v47 = vadd.f32 %v503_v44, %v1254_v11  ;;  %v575_v48 = vadd.f32 %v574_v45, %v1254_v11  ;;  %853 = vst [vmem:[%s1367_s5 + $0x8] sm:$0x3f] %v836_v43 }
  0xe2   :  { %939 = vtanh.f32 %v573_v42  ;;  %855 = vst [vmem:[%s1367_s5 + $0x18] sm:$0x3f] %v838_v46 }
  0xe3   :  { %v930_v49 = vpop.eup %929  ;;  %941 = vtanh.f32 %v504_v47 }
  0xe4   :  { %v816_v50 = vmul.f32 %v930_v49, %v1264_v27  ;;  %943 = vtanh.f32 %v575_v48 }
  0xe5   :  { %v932_v51 = vpop.eup %931 }
  0xe6   :  { %v934_v52 = vpop.eup %933  ;;  %v817_v53 = vmul.f32 %v932_v51, %v1264_v27  ;;  %v839_v54 = vadd.f32 %v1266_v29, %v816_v50 }
  0xe7   :  { %v936_v55 = vpop.eup %935  ;;  %v818_v56 = vmul.f32 %v934_v52, %v1264_v27 }
  0xe8   :  { %v819_v57 = vmul.f32 %v936_v55, %v1264_v27  ;;  %v840_v58 = vadd.f32 %v1266_v29, %v817_v53  ;;  %856 = vst [vmem:[%s1367_s5 + $0x20] sm:$0x3f] %v839_v54  ;;  %v643_v59 = vpop.f32.mrf.mxu0  ;;  %v714_v60 = vpop.f32.mrf.mxu1 }
  0xe9   :  { %v841_v61 = vadd.f32 %v1266_v29, %v818_v56  ;;  %v644_v62 = vadd.f32 %v643_v59, %v1254_v11  ;;  %v715_v63 = vadd.f32 %v714_v60, %v1254_v11 }
  0xea   :  { %v842_v0 = vadd.f32 %v1266_v29, %v819_v57  ;;  %857 = vst [vmem:[%s1367_s5 + $0x28] sm:$0x3f] %v840_v58  ;;  %v645_v1 = vpop.f32.mrf.mxu0  ;;  %v716_v2 = vpop.f32.mrf.mxu1 }
  0xeb   :  { %858 = vst [vmem:[%s1367_s5 + $0x30] sm:$0x3f] %v841_v61  ;;  %945 = vtanh.f32 %v644_v62  ;;  %v646_v4 = vadd.f32 %v645_v1, %v1254_v11  ;;  %v717_v5 = vadd.f32 %v716_v2, %v1254_v11 }
  0xec   :  { %859 = vst [vmem:[%s1367_s5 + $0x38] sm:$0x3f] %v842_v0  ;;  %947 = vtanh.f32 %v715_v63 }
  0xed   :  { %949 = vtanh.f32 %v646_v4 }
  0xee   :  { %v938_v6 = vpop.eup %937  ;;  %951 = vtanh.f32 %v717_v5 }
  0xef   :  { %v940_v7 = vpop.eup %939  ;;  %v820_v8 = vmul.f32 %v938_v6, %v1264_v27 }
  0xf0   :  { %v942_v9 = vpop.eup %941  ;;  %v822_v10 = vmul.f32 %v940_v7, %v1264_v27 }
  0xf1   :  { %v944_v12 = vpop.eup %943  ;;  %v821_v13 = vmul.f32 %v942_v9, %v1264_v27  ;;  %v843_v14 = vadd.f32 %v1266_v29, %v820_v8  ;;  %v785_v15 = vpop.f32.mrf.mxu0 }
  0xf2   :  { %v823_v16 = vmul.f32 %v944_v12, %v1264_v27  ;;  %v845_v18 = vadd.f32 %v1266_v29, %v822_v10  ;;  %v786_v19 = vadd.f32 %v785_v15, %v1254_v11 }
  0xf3   :  { %v844_v3 = vadd.f32 %v1266_v29, %v821_v13  ;;  %860 = vst [vmem:[%s1367_s5 + $0x40] sm:$0x3f] %v843_v14  ;;  %v915_v20 = vpop.f32.mrf.mxu0 }
  0xf4   :  { %v846_v17 = vadd.f32 %v1266_v29, %v823_v16  ;;  %862 = vst [vmem:[%s1367_s5 + $0x50] sm:$0x3f] %v845_v18  ;;  %953 = vtanh.f32 %v786_v19 }
  0xf5   :  { %861 = vst [vmem:[%s1367_s5 + $0x48] sm:$0x3f] %v844_v3 }
  0xf6   :  { %863 = vst [vmem:[%s1367_s5 + $0x58] sm:$0x3f] %v846_v17 }
  0xf8   :  { %v946_v11 = vpop.eup %945 }
  0xf9   :  { %v948_v21 = vpop.eup %947  ;;  %v824_v22 = vmul.f32 %v946_v11, %v1264_v27 }
  0xfa   :  { %v950_v23 = vpop.eup %949  ;;  %v826_v24 = vmul.f32 %v948_v21, %v1264_v27 }
  0xfb   :  { %v952_v25 = vpop.eup %951  ;;  %v847_v26 = vadd.f32 %v1266_v29, %v824_v22  ;;  %v825_v28 = vmul.f32 %v950_v23, %v1264_v27 }
  0xfc   :  { %v849_v30 = vadd.f32 %v1266_v29, %v826_v24  ;;  %v827_v31 = vmul.f32 %v952_v25, %v1264_v27 }
  0xfd   :  { %864 = vst [vmem:[%s1367_s5 + $0x60] sm:$0x3f] %v847_v26  ;;  %v848_v32 = vadd.f32 %v1266_v29, %v825_v28 }
  0xfe   :  { %866 = vst [vmem:[%s1367_s5 + $0x70] sm:$0x3f] %v849_v30  ;;  %v850_v33 = vadd.f32 %v1266_v29, %v827_v31 }
  0xff   :  { %865 = vst [vmem:[%s1367_s5 + $0x68] sm:$0x3f] %v848_v32 }
 0x100   :  { %867 = vst [vmem:[%s1367_s5 + $0x78] sm:$0x3f] %v850_v33 }
 0x101   :  { %v954_v34 = vpop.eup %953 }
 0x102   :  { %v828_v35 = vmul.f32 %v954_v34, %v1264_v27 }
 0x104   :  { %v851_v36 = vadd.f32 %v1266_v29, %v828_v35 }
 0x106   :  { %869 = vst.msk [vmem:[%s1367_s5 + $0x80] sm:$0x3f] %vm868_vm3, %v851_v36 }

// kernel: autoencoder_forward.4
= control target key start
LH: loop header
LB: loop body
LE: loop exit
PB: predicated region body
PF: predicated region fallthrough
CT: control target
= control target key end

     0   :  { %v347_v0 = vmov 0.0   ;;  %v348_v4 = vmov 0   ;;  %vm109_vm0 = vcmask 1046528   ;;  %vm102_vm1 = vcmask 384000   ;;  %s655_s1 = inlined_call_operand.vmem [shape: f32[175,324], index: 1, kind: input, shape index: {}]   ;;  %s656_s0 = inlined_call_operand.vmem [shape: f32[16,175], index: 0, kind: input, shape index: {}]   ;;  %s657_s2 = inlined_call_operand.vmem [shape: f32[16,1], index: 2, kind: input, shape index: {}]   ;;  %s658_s3 = inlined_call_operand.vmem [shape: f32[16,1], index: 3, kind: input, shape index: {}]   ;;  %s659_s4 = inlined_call_operand.vmem [shape: f32[16,1], index: 4, kind: input, shape index: {}]   ;;  %s660_s5 = inlined_call_operand.vmem [shape: f32[16,324], index: 5, kind: output, shape index: {}]  }
   0x1   :  { %196 = vmatprep.subr.mxu1 %v347_v0  ;;  %v70_v1 = vld [vmem:[%s655_s1 + $0x170] sm:$0xff]  ;;  %v71_v2 = vld [vmem:[%s655_s1 + $0x178] sm:$0xff]  ;;  %v69_v3 = vld [vmem:[%s655_s1 + $0x168] sm:$0xff]  ;;  %333 = vset.pattern.permute.xlu0 %v348_v4  ;;  %vm315_vm2 = vcmask 556032  }
   0x2   :  { %119 = vmatprep.subr.mxu0 %v70_v1  ;;  %197 = vmatpush1.msra.mxu1 %v71_v2  ;;  %v67_v5 = vld [vmem:[%s655_s1 + $0x158] sm:$0xff]  ;;  %v68_v6 = vld [vmem:[%s655_s1 + $0x160] sm:$0xff]  ;;  %v66_v7 = vld [vmem:[%s655_s1 + $0x150] sm:$0xff] }
   0x3   :  { %120 = vmatpush1.msra.mxu0 %v69_v3  ;;  %198 = vmatprep.subr.mxu1 %v347_v0  ;;  %v64_v8 = vld [vmem:[%s655_s1 + $0x140] sm:$0xff]  ;;  %v65_v9 = vld [vmem:[%s655_s1 + $0x148] sm:$0xff]  ;;  %v63_v10 = vld [vmem:[%s655_s1 + $0x138] sm:$0xff] }
   0x4   :  { %121 = vmatprep.subr.mxu0 %v67_v5  ;;  %199 = vmatpush1.msra.mxu1 %v68_v6  ;;  %v61_v11 = vld [vmem:[%s655_s1 + $0x128] sm:$0xff]  ;;  %v62_v12 = vld [vmem:[%s655_s1 + $0x130] sm:$0xff]  ;;  %v60_v13 = vld [vmem:[%s655_s1 + $0x120] sm:$0xff] }
   0x5   :  { %122 = vmatpush1.msra.mxu0 %v66_v7  ;;  %200 = vmatprep.subr.mxu1 %v347_v0  ;;  %v58_v14 = vld [vmem:[%s655_s1 + $0x110] sm:$0xff]  ;;  %v59_v15 = vld [vmem:[%s655_s1 + $0x118] sm:$0xff]  ;;  %v57_v16 = vld [vmem:[%s655_s1 + $0x108] sm:$0xff] }
   0x6   :  { %123 = vmatprep.subr.mxu0 %v64_v8  ;;  %201 = vmatpush1.msra.mxu1 %v65_v9  ;;  %v55_v17 = vld [vmem:[%s655_s1 + $0xf8] sm:$0xff]  ;;  %v56_v18 = vld [vmem:[%s655_s1 + $0x100] sm:$0xff]  ;;  %v54_v19 = vld [vmem:[%s655_s1 + $0xf0] sm:$0xff] }
   0x7   :  { %124 = vmatpush1.msra.mxu0 %v63_v10  ;;  %202 = vmatprep.subr.mxu1 %v347_v0  ;;  %v52_v20 = vld [vmem:[%s655_s1 + $0xe0] sm:$0xff]  ;;  %v53_v21 = vld [vmem:[%s655_s1 + $0xe8] sm:$0xff]  ;;  %v51_v22 = vld [vmem:[%s655_s1 + $0xd8] sm:$0xff] }
   0x8   :  { %125 = vmatprep.subr.mxu0 %v61_v11  ;;  %203 = vmatpush1.msra.mxu1 %v62_v12  ;;  %v49_v23 = vld [vmem:[%s655_s1 + $0xc8] sm:$0xff]  ;;  %v50_v24 = vld [vmem:[%s655_s1 + $0xd0] sm:$0xff]  ;;  %v48_v25 = vld [vmem:[%s655_s1 + $0xc0] sm:$0xff] }
   0x9   :  { %126 = vmatpush1.msra.mxu0 %v60_v13  ;;  %204 = vmatprep.subr.mxu1 %v347_v0  ;;  %v46_v26 = vld [vmem:[%s655_s1 + $0xb0] sm:$0xff]  ;;  %v47_v27 = vld [vmem:[%s655_s1 + $0xb8] sm:$0xff]  ;;  %v45_v28 = vld [vmem:[%s655_s1 + $0xa8] sm:$0xff] }
   0xa   :  { %127 = vmatprep.subr.mxu0 %v58_v14  ;;  %205 = vmatpush1.msra.mxu1 %v59_v15  ;;  %v43_v29 = vld [vmem:[%s655_s1 + $0x98] sm:$0xff]  ;;  %v44_v30 = vld [vmem:[%s655_s1 + $0xa0] sm:$0xff]  ;;  %v42_v31 = vld [vmem:[%s655_s1 + $0x90] sm:$0xff] }
   0xb   :  { %128 = vmatpush1.msra.mxu0 %v57_v16  ;;  %206 = vmatprep.subr.mxu1 %v347_v0  ;;  %v40_v32 = vld [vmem:[%s655_s1 + $0x80] sm:$0xff]  ;;  %v41_v33 = vld [vmem:[%s655_s1 + $0x88] sm:$0xff]  ;;  %v39_v34 = vld [vmem:[%s655_s1 + $0x78] sm:$0xff] }
   0xc   :  { %129 = vmatprep.subr.mxu0 %v55_v17  ;;  %207 = vmatpush1.msra.mxu1 %v56_v18  ;;  %v37_v35 = vld [vmem:[%s655_s1 + $0x68] sm:$0xff]  ;;  %v38_v36 = vld [vmem:[%s655_s1 + $0x70] sm:$0xff]  ;;  %v36_v37 = vld [vmem:[%s655_s1 + $0x60] sm:$0xff] }
   0xd   :  { %130 = vmatpush1.msra.mxu0 %v54_v19  ;;  %208 = vmatprep.subr.mxu1 %v347_v0  ;;  %v34_v38 = vld [vmem:[%s655_s1 + $0x50] sm:$0xff]  ;;  %v35_v39 = vld [vmem:[%s655_s1 + $0x58] sm:$0xff]  ;;  %v33_v40 = vld [vmem:[%s655_s1 + $0x48] sm:$0xff] }
   0xe   :  { %131 = vmatprep.subr.mxu0 %v52_v20  ;;  %209 = vmatpush1.msra.mxu1 %v53_v21  ;;  %v31_v41 = vld [vmem:[%s655_s1 + $0x38] sm:$0xff]  ;;  %v32_v42 = vld [vmem:[%s655_s1 + $0x40] sm:$0xff]  ;;  %v30_v43 = vld [vmem:[%s655_s1 + $0x30] sm:$0xff] }
   0xf   :  { %132 = vmatpush1.msra.mxu0 %v51_v22  ;;  %210 = vmatprep.subr.mxu1 %v347_v0  ;;  %v28_v44 = vld [vmem:[%s655_s1 + $0x20] sm:$0xff]  ;;  %v29_v45 = vld [vmem:[%s655_s1 + $0x28] sm:$0xff]  ;;  %v27_v46 = vld [vmem:[%s655_s1 + $0x18] sm:$0xff] }
  0x10   :  { %133 = vmatprep.subr.mxu0 %v49_v23  ;;  %211 = vmatpush1.msra.mxu1 %v50_v24  ;;  %v25_v47 = vld [vmem:[%s655_s1 + $0x8] sm:$0xff]  ;;  %v26_v48 = vld [vmem:[%s655_s1 + $0x10] sm:$0xff]  ;;  %v24_v49 = vld [vmem:[%s655_s1] sm:$0xff] }
  0x11   :  { %134 = vmatpush1.msra.mxu0 %v48_v25  ;;  %212 = vmatprep.subr.mxu1 %v347_v0  ;;  %v88_v50 = vld [vmem:[%s655_s1 + $0x200] sm:$0x7f]  ;;  %v89_v51 = vld [vmem:[%s655_s1 + $0x208] sm:$0x7f]  ;;  %v87_v52 = vld [vmem:[%s655_s1 + $0x1f8] sm:$0x7f] }
  0x12   :  { %135 = vmatprep.subr.mxu0 %v46_v26  ;;  %213 = vmatpush1.msra.mxu1 %v47_v27  ;;  %v85_v53 = vld [vmem:[%s655_s1 + $0x1e8] sm:$0xff]  ;;  %v86_v54 = vld [vmem:[%s655_s1 + $0x1f0] sm:$0xff]  ;;  %v84_v55 = vld [vmem:[%s655_s1 + $0x1e0] sm:$0xff] }
  0x13   :  { %136 = vmatpush1.msra.mxu0 %v45_v28  ;;  %214 = vmatprep.subr.mxu1 %v347_v0  ;;  %v82_v56 = vld [vmem:[%s655_s1 + $0x1d0] sm:$0xff]  ;;  %v83_v57 = vld [vmem:[%s655_s1 + $0x1d8] sm:$0xff]  ;;  %v81_v58 = vld [vmem:[%s655_s1 + $0x1c8] sm:$0xff] }
  0x14   :  { %137 = vmatprep.subr.mxu0 %v43_v29  ;;  %215 = vmatpush1.msra.mxu1 %v44_v30  ;;  %v79_v59 = vld [vmem:[%s655_s1 + $0x1b8] sm:$0xff]  ;;  %v80_v60 = vld [vmem:[%s655_s1 + $0x1c0] sm:$0xff]  ;;  %v78_v61 = vld [vmem:[%s655_s1 + $0x1b0] sm:$0xff] }
  0x15   :  { %138 = vmatpush1.msra.mxu0 %v42_v31  ;;  %216 = vmatprep.subr.mxu1 %v347_v0  ;;  %v76_v62 = vld [vmem:[%s655_s1 + $0x1a0] sm:$0xff]  ;;  %v77_v63 = vld [vmem:[%s655_s1 + $0x1a8] sm:$0xff]  ;;  %v75_v1 = vld [vmem:[%s655_s1 + $0x198] sm:$0xff] }
  0x16   :  { %139 = vmatprep.subr.mxu0 %v40_v32  ;;  %217 = vmatpush1.msra.mxu1 %v41_v33  ;;  %v73_v2 = vld [vmem:[%s655_s1 + $0x188] sm:$0xff]  ;;  %v74_v3 = vld [vmem:[%s655_s1 + $0x190] sm:$0xff]  ;;  %v72_v6 = vld [vmem:[%s655_s1 + $0x180] sm:$0xff] }
  0x17   :  { %140 = vmatpush1.msra.mxu0 %v39_v34  ;;  %218 = vmatprep.subr.mxu1 %v347_v0  ;;  %v21_v5 = vld [vmem:[%s656_s0 + $0x8] sm:$0xff]  ;;  %v20_v7 = vld [vmem:[%s656_s0] sm:$0xff]  ;;  %v23_v8 = vld [vmem:[%s656_s0 + $0x18] sm:$0xff] }
  0x18   :  { %141 = vmatprep.subr.mxu0 %v37_v35  ;;  %219 = vmatpush1.msra.mxu1 %v38_v36  ;;  %v90_v9 = vld [vmem:[%s657_s2] sm:$0xff]  ;;  %v91_v11 = vld [vmem:[%s657_s2 + $0x8] sm:$0xff] }
  0x19   :  { %142 = vmatpush1.msra.mxu0 %v36_v37  ;;  %220 = vmatprep.subr.mxu1 %v347_v0  ;;  %v277_v10 = vld [vmem:[%s658_s3] sm:$0xff]  ;;  %v278_v12 = vld [vmem:[%s658_s3 + $0x8] sm:$0xff] }
  0x1a   :  { %143 = vmatprep.subr.mxu0 %v34_v38  ;;  %221 = vmatpush1.msra.mxu1 %v35_v39  ;;  %v295_v13 = vld [vmem:[%s659_s4] sm:$0xff]  ;;  %v296_v14 = vld [vmem:[%s659_s4 + $0x8] sm:$0xff] }
  0x1b   :  { %144 = vmatpush1.msra.mxu0 %v33_v40  ;;  %222 = vmatprep.subr.mxu1 %v347_v0 }
  0x1c   :  { %145 = vmatprep.subr.mxu0 %v31_v41  ;;  %223 = vmatpush1.msra.mxu1 %v32_v42 }
  0x1d   :  { %146 = vmatpush1.msra.mxu0 %v30_v43  ;;  %224 = vmatprep.subr.mxu1 %v347_v0 }
  0x1e   :  { %147 = vmatprep.subr.mxu0 %v28_v44  ;;  %225 = vmatpush1.msra.mxu1 %v29_v45 }
  0x1f   :  { %148 = vmatpush1.msra.mxu0 %v27_v46  ;;  %226 = vmatprep.subr.mxu1 %v347_v0 }
  0x20   :  { %149 = vmatprep.subr.mxu0 %v25_v47  ;;  %227 = vmatpush1.msra.mxu1 %v26_v48 }
  0x21   :  { %150 = vmatpush1.msra.mxu0 %v24_v49  ;;  %248 = vmatprep.subr.mxu1 %v347_v0 }
  0x22   :  { %324 = vmatprep.subr.msk.mxu0 %vm109_vm0, %v88_v50  ;;  %328 = vmatpush2.msk.msra.mxu1 %vm109_vm0, %v89_v51 }
  0x23   :  { %325 = vmatpush2.msk.msra.mxu0 %vm109_vm0, %v87_v52  ;;  %250 = vmatprep.subr.mxu1 %v347_v0 }
  0x24   :  { %173 = vmatprep.subr.mxu0 %v85_v53  ;;  %251 = vmatpush2.msra.mxu1 %v86_v54 }
  0x25   :  { %174 = vmatpush2.msra.mxu0 %v84_v55  ;;  %252 = vmatprep.subr.mxu1 %v347_v0 }
  0x26   :  { %175 = vmatprep.subr.mxu0 %v82_v56  ;;  %253 = vmatpush2.msra.mxu1 %v83_v57 }
  0x27   :  { %176 = vmatpush2.msra.mxu0 %v81_v58  ;;  %254 = vmatprep.subr.mxu1 %v347_v0 }
  0x28   :  { %177 = vmatprep.subr.mxu0 %v79_v59  ;;  %255 = vmatpush2.msra.mxu1 %v80_v60 }
  0x29   :  { %178 = vmatpush2.msra.mxu0 %v78_v61  ;;  %256 = vmatprep.subr.mxu1 %v347_v0 }
  0x2a   :  { %179 = vmatprep.subr.mxu0 %v76_v62  ;;  %257 = vmatpush2.msra.mxu1 %v77_v63 }
  0x2b   :  { %180 = vmatpush2.msra.mxu0 %v75_v1  ;;  %258 = vmatprep.subr.mxu1 %v347_v0  ;;  %v22_v0 = vld [vmem:[%s656_s0 + $0x10] sm:$0xff] }
  0x2c   :  { %181 = vmatprep.subr.mxu0 %v73_v2  ;;  %259 = vmatpush2.msra.mxu1 %v74_v3 }
  0x2d   :  { %329 = vmatprep.mubr.msk.f32.mxu1 %vm102_vm1, %v21_v5  ;;  %182 = vmatpush2.msra.mxu0 %v72_v6 }
  0x2e   :  { %326 = vmatprep.mubr.msk.f32.mxu0 %vm102_vm1, %v21_v5  ;;  %261 = vmatmul.mubr.f32.vlgmr.msra.gmra.mxu1 %v20_v7 }
  0x2f   :  { %184 = vmatmul.mubr.f32.vlgmr.msra.gmra.mxu0 %v20_v7  ;;  %330 = vmatprep.mubr.msk.f32.mxu1 %vm102_vm1, %v23_v8 }
  0x30   :  { %327 = vmatprep.mubr.msk.f32.mxu0 %vm102_vm1, %v23_v8  ;;  %94 = vperm.xlu0 %333, %v90_v9  }
  0x31   :  { %334 = vset.pattern.permute.xlu1 %v348_v4 }
  0x32   :  { %266 = vmatmul.mubr.f32.gmra.mxu1 %v22_v0  ;;  %281 = vperm.xlu1 %334, %v277_v10  }
  0x33   :  { %190 = vmatmul.mubr.f32.gmra.mxu0 %v22_v0 }
  0x34   :  { %99 = vperm.xlu0 %333, %v91_v11  }
  0x36   :  { %286 = vperm.xlu1 %334, %v278_v12  }
  0x38   :  { %299 = vperm.xlu0 %333, %v295_v13  }
  0x3a   :  { %304 = vperm.xlu1 %334, %v296_v14  }
  0xab   :  { %v95_v4 = vpop.permute.xlu0 %94 }
  0xad   :  { %v282_v30 = vpop.permute.xlu1 %281 }
  0xaf   :  { %v100_v21 = vpop.permute.xlu0 %99 }
  0xb1   :  { %v287_v32 = vpop.permute.xlu1 %286 }
  0xb3   :  { %v300_v35 = vpop.permute.xlu0 %299 }
  0xb5   :  { %v305_v46 = vpop.permute.xlu1 %304 }
  0xee   :  { %v262_v15 = vpop.f32.mrf.mxu1 }
  0xef   :  { %v263_v16 = vadd.f32 %v262_v15, %v95_v4  ;;  %v185_v17 = vpop.f32.mrf.mxu0 }
  0xf0   :  { %v186_v18 = vadd.f32 %v185_v17, %v95_v4  ;;  %v264_v19 = vpop.f32.mrf.mxu1 }
  0xf1   :  { %335 = vtanh.f32 %v263_v16  ;;  %v187_v20 = vpop.f32.mrf.mxu0 }
  0xf2   :  { %337 = vtanh.f32 %v186_v18  ;;  %v188_v22 = vadd.f32 %v187_v20, %v95_v4  ;;  %v267_v23 = vpop.f32.mrf.mxu1 }
  0xf3   :  { %v268_v24 = vadd.f32 %v267_v23, %v100_v21  ;;  %v191_v25 = vpop.f32.mrf.mxu0 }
  0xf4   :  { %339 = vtanh.f32 %v188_v22  ;;  %v192_v26 = vadd.f32 %v191_v25, %v100_v21  ;;  %v269_v27 = vpop.f32.mrf.mxu1 }
  0xf5   :  { %341 = vtanh.f32 %v268_v24  ;;  %v193_v28 = vpop.f32.mrf.mxu0 }
  0xf6   :  { %343 = vtanh.f32 %v192_v26  ;;  %v194_v29 = vadd.f32 %v193_v28, %v100_v21 }
  0xf8   :  { %345 = vtanh.f32 %v194_v29 }
  0xfe   :  { %v336_v31 = vpop.eup %335 }
  0xff   :  { %v338_v33 = vpop.eup %337  ;;  %v291_v34 = vmul.f32 %v336_v31, %v282_v30 }
 0x100   :  { %v289_v36 = vmul.f32 %v338_v33, %v282_v30 }
 0x101   :  { %v340_v37 = vpop.eup %339  ;;  %v309_v38 = vadd.f32 %v300_v35, %v291_v34 }
 0x102   :  { %v342_v39 = vpop.eup %341  ;;  %v290_v40 = vmul.f32 %v340_v37, %v282_v30  ;;  %v307_v41 = vadd.f32 %v300_v35, %v289_v36 }
 0x103   :  { %v344_v42 = vpop.eup %343  ;;  %v294_v43 = vmul.f32 %v342_v39, %v287_v32  ;;  %316 = vst.msk [vmem:[%s660_s5 + $0x10] sm:$0xff] %vm315_vm2, %v309_v38 }
 0x104   :  { %v308_v44 = vadd.f32 %v300_v35, %v290_v40  ;;  %313 = vst [vmem:[%s660_s5] sm:$0xff] %v307_v41  ;;  %v292_v45 = vmul.f32 %v344_v42, %v287_v32 }
 0x105   :  { %v346_v47 = vpop.eup %345  ;;  %v312_v48 = vadd.f32 %v305_v46, %v294_v43 }
 0x106   :  { %314 = vst [vmem:[%s660_s5 + $0x8] sm:$0xff] %v308_v44  ;;  %v293_v49 = vmul.f32 %v346_v47, %v287_v32  ;;  %v310_v50 = vadd.f32 %v305_v46, %v292_v45 }
 0x107   :  { %319 = vst.msk [vmem:[%s660_s5 + $0x28] sm:$0xff] %vm315_vm2, %v312_v48 }
 0x108   :  { %v311_v51 = vadd.f32 %v305_v46, %v293_v49  ;;  %317 = vst [vmem:[%s660_s5 + $0x18] sm:$0xff] %v310_v50 }
 0x10a   :  { %318 = vst [vmem:[%s660_s5 + $0x20] sm:$0xff] %v311_v51 }

// kernel: autoencoder_forward.5
= control target key start
LH: loop header
LB: loop body
LE: loop exit
PB: predicated region body
PF: predicated region fallthrough
CT: control target
= control target key end

     0   :  { %s24296_s0 = inlined_call_operand.vmem [shape: f32[4,384], index: 0, kind: input, shape index: {}]   ;;  %s24297_s1 = inlined_call_operand.vmem [shape: bf16[384,4096], index: 1, kind: input, shape index: {}]   ;;  %s24298_s2 = inlined_call_operand.vmem [shape: f32[1,4096], index: 2, kind: input, shape index: {}]   ;;  %s24299_s3 = inlined_call_operand.vmem [shape: bf16[4096,512], index: 3, kind: input, shape index: {}]   ;;  %s24300_s4 = inlined_call_operand.vmem [shape: f32[1,512], index: 4, kind: input, shape index: {}]   ;;  %s24301_s5 = inlined_call_operand.vmem [shape: f32[1,512], index: 5, kind: input, shape index: {}]   ;;  %s24302_s6 = inlined_call_operand.vmem [shape: f32[1,512], index: 6, kind: input, shape index: {}]   ;;  %s24303_s7 = inlined_call_operand.vmem [shape: bf16[512,32], index: 7, kind: input, shape index: {}]   ;;  %s24304_s8 = inlined_call_operand.vmem [shape: f32[1,32], index: 8, kind: input, shape index: {}]   ;;  %s24305_s9 = inlined_call_operand.vmem [shape: bf16[32,64], index: 9, kind: input, shape index: {}]   ;;  %s24306_s10 = inlined_call_operand.vmem [shape: f32[1,64], index: 10, kind: input, shape index: {}]   ;;  %s24307_s11 = inlined_call_operand.vmem [shape: f32[1,64], index: 11, kind: input, shape index: {}]   ;;  %s24308_s12 = inlined_call_operand.vmem [shape: f32[1,64], index: 12, kind: input, shape index: {}]   ;;  %s24309_s13 = inlined_call_operand.vmem [shape: bf16[64,128], index: 13, kind: input, shape index: {}]   ;;  %s24310_s14 = inlined_call_operand.vmem [shape: f32[1,128], index: 14, kind: input, shape index: {}]   ;;  %s24311_s15 = inlined_call_operand.vmem [shape: f32[1,128], index: 15, kind: input, shape index: {}]   ;;  %s24312_s16 = inlined_call_operand.vmem [shape: f32[1,128], index: 16, kind: input, shape index: {}]   ;;  %s24313_s17 = inlined_call_operand.vmem [shape: bf16[128,25], index: 17, kind: input, shape index: {}]   ;;  %s24314_s18 = inlined_call_operand.vmem [shape: f32[1,25], index: 18, kind: input, shape index: {}]   ;;  %s24315_s19 = inlined_call_operand.hbm [shape: f32[4,32], index: 19, kind: output, shape index: {0}]   ;;  %s24316_s20 = inlined_call_operand.hbm [shape: f32[4,25], index: 20, kind: output, shape index: {1}]  }
   0x1   :  { %24322 = sst [smem:[#allocation8_spill]] %s24296_s0 }
   0x2   :  { %24323 = sst [smem:[#allocation9_spill]] %s24297_s1 }
   0x3   :  { %24324 = sst [smem:[#allocation10_spill]] %s24298_s2 }
   0x4   :  { %24325 = sst [smem:[#allocation11_spill]] %s24299_s3 }
   0x5   :  { %24326 = sst [smem:[#allocation12_spill]] %s24300_s4 }
   0x6   :  { %26 = vsyncpa [#allocation3], 0  ;;  %s24327_s23 = sld [smem:[#allocation9_spill]]  ;;  %v18008_v8 = vmov 0  }
   0x7   :  { %4924 = vmatprep.mubr.bf16.mxu1 %v18008_v8  ;;  %s24328_s24 = sld [smem:[#allocation8_spill]] }
   0x8   :  { %s24329_s29 = sld [smem:[#allocation10_spill]] }
   0xc   :  { %v299_v0 = vld [vmem:[%s24327_s23 + $0x700] sm:$0xff] }
   0xd   :  { %v315_v1 = vld [vmem:[%s24327_s23 + $0x780] sm:$0xff] }
   0xe   :  { %v811_v2 = vld [vmem:[%s24327_s23 + $0x1700] sm:$0xff]  ;;  %v14639_v3 = vcombine.high %v299_v0, %v315_v1  ;;  %v14638_v5 = vcombine.low %v299_v0, %v315_v1 }
   0xf   :  { %v827_v4 = vld [vmem:[%s24327_s23 + $0x1780] sm:$0xff] }
  0x10   :  { %v267_v6 = vld [vmem:[%s24327_s23 + $0x600] sm:$0xff]  ;;  %v15151_v9 = vcombine.high %v811_v2, %v827_v4  ;;  %v15150_v10 = vcombine.low %v811_v2, %v827_v4  ;;  %4851 = vmatprep.subr.bf16.mxu0 %v14639_v3  ;;  %v300_v4 = vld [vmem:[%s24327_s23 + $0x708] sm:$0xff] }
  0x11   :  { %v283_v7 = vld [vmem:[%s24327_s23 + $0x680] sm:$0xff]  ;;  %4852 = vmatpush1.bf16.msra.mxu0 %v14638_v5  ;;  %v316_v5 = vld [vmem:[%s24327_s23 + $0x788] sm:$0xff] }
  0x12   :  { %v14607_v11 = vcombine.high %v267_v6, %v283_v7  ;;  %v779_v12 = vld [vmem:[%s24327_s23 + $0x1600] sm:$0xff]  ;;  %4892 = vmatprep.subr.bf16.mxu1 %v15151_v9  ;;  %v14606_v19 = vcombine.low %v267_v6, %v283_v7 }
  0x13   :  { %v795_v13 = vld [vmem:[%s24327_s23 + $0x1680] sm:$0xff]  ;;  %4893 = vmatpush1.bf16.msra.mxu1 %v15150_v10  ;;  %v68_v10 = vld [vmem:[%s24328_s24 + $0x8] sm:$0xf] }
  0x14   :  { %v235_v14 = vld [vmem:[%s24327_s23 + $0x500] sm:$0xff]  ;;  %v15119_v15 = vcombine.high %v779_v12, %v795_v13  ;;  %4853 = vmatprep.subr.bf16.mxu0 %v14607_v11  ;;  %v15118_v20 = vcombine.low %v779_v12, %v795_v13  ;;  %v14641_v11 = vcombine.high %v300_v4, %v316_v5 }
  0x15   :  { %v251_v16 = vld [vmem:[%s24327_s23 + $0x580] sm:$0xff]  ;;  %4854 = vmatpush1.bf16.msra.mxu0 %v14606_v19 }
  0x16   :  { %v747_v17 = vld [vmem:[%s24327_s23 + $0x1500] sm:$0xff]  ;;  %v14575_v21 = vcombine.high %v235_v14, %v251_v16  ;;  %4894 = vmatprep.subr.bf16.mxu1 %v15119_v15  ;;  %v14574_v27 = vcombine.low %v235_v14, %v251_v16  ;;  %v268_v14 = vld [vmem:[%s24327_s23 + $0x608] sm:$0xff]  ;;  %v18252_v16 = vpack.c.bf16 %v68_v10, %v68_v10 }
  0x17   :  { %v763_v18 = vld [vmem:[%s24327_s23 + $0x1580] sm:$0xff]  ;;  %4895 = vmatpush1.bf16.msra.mxu1 %v15118_v20  ;;  %v284_v15 = vld [vmem:[%s24327_s23 + $0x688] sm:$0xff] }
  0x18   :  { %v15087_v22 = vcombine.high %v747_v17, %v763_v18  ;;  %v203_v23 = vld [vmem:[%s24327_s23 + $0x400] sm:$0xff]  ;;  %4855 = vmatprep.subr.bf16.mxu0 %v14575_v21  ;;  %v15086_v28 = vcombine.low %v747_v17, %v763_v18  ;;  %v14640_v18 = vcombine.low %v300_v4, %v316_v5  ;;  %v14609_v20 = vcombine.high %v268_v14, %v284_v15  ;;  %v556_v10 = vld [vmem:[%s24327_s23 + $0xf08] sm:$0xff] }
  0x19   :  { %v219_v24 = vld [vmem:[%s24327_s23 + $0x480] sm:$0xff]  ;;  %4856 = vmatpush1.bf16.msra.mxu0 %v14574_v27 }
  0x1a   :  { %v715_v25 = vld [vmem:[%s24327_s23 + $0x1400] sm:$0xff]  ;;  %v14543_v29 = vcombine.high %v203_v23, %v219_v24  ;;  %4896 = vmatprep.subr.bf16.mxu1 %v15087_v22  ;;  %v14542_v35 = vcombine.low %v203_v23, %v219_v24  ;;  %v236_v23 = vld [vmem:[%s24327_s23 + $0x508] sm:$0xff] }
  0x1b   :  { %v731_v26 = vld [vmem:[%s24327_s23 + $0x1480] sm:$0xff]  ;;  %4897 = vmatpush1.bf16.msra.mxu1 %v15086_v28  ;;  %v252_v24 = vld [vmem:[%s24327_s23 + $0x588] sm:$0xff] }
  0x1c   :  { %v15055_v30 = vcombine.high %v715_v25, %v731_v26  ;;  %v171_v31 = vld [vmem:[%s24327_s23 + $0x300] sm:$0xff]  ;;  %4857 = vmatprep.subr.bf16.mxu0 %v14543_v29  ;;  %v15054_v36 = vcombine.low %v715_v25, %v731_v26  ;;  %v14608_v26 = vcombine.low %v268_v14, %v284_v15  ;;  %v14577_v28 = vcombine.high %v236_v23, %v252_v24 }
  0x1d   :  { %v187_v32 = vld [vmem:[%s24327_s23 + $0x380] sm:$0xff]  ;;  %4858 = vmatpush1.bf16.msra.mxu0 %v14542_v35 }
  0x1e   :  { %v683_v33 = vld [vmem:[%s24327_s23 + $0x1300] sm:$0xff]  ;;  %v14511_v37 = vcombine.high %v171_v31, %v187_v32  ;;  %4898 = vmatprep.subr.bf16.mxu1 %v15055_v30  ;;  %v14510_v43 = vcombine.low %v171_v31, %v187_v32  ;;  %v204_v31 = vld [vmem:[%s24327_s23 + $0x408] sm:$0xff] }
  0x1f   :  { %v699_v34 = vld [vmem:[%s24327_s23 + $0x1380] sm:$0xff]  ;;  %4899 = vmatpush1.bf16.msra.mxu1 %v15054_v36  ;;  %v220_v32 = vld [vmem:[%s24327_s23 + $0x488] sm:$0xff] }
  0x20   :  { %v15023_v38 = vcombine.high %v683_v33, %v699_v34  ;;  %v139_v39 = vld [vmem:[%s24327_s23 + $0x200] sm:$0xff]  ;;  %4859 = vmatprep.subr.bf16.mxu0 %v14511_v37  ;;  %v15022_v44 = vcombine.low %v683_v33, %v699_v34  ;;  %v14576_v34 = vcombine.low %v236_v23, %v252_v24  ;;  %v14545_v36 = vcombine.high %v204_v31, %v220_v32 }
  0x21   :  { %v155_v40 = vld [vmem:[%s24327_s23 + $0x280] sm:$0xff]  ;;  %4860 = vmatpush1.bf16.msra.mxu0 %v14510_v43 }
  0x22   :  { %v651_v41 = vld [vmem:[%s24327_s23 + $0x1200] sm:$0xff]  ;;  %v14479_v45 = vcombine.high %v139_v39, %v155_v40  ;;  %4900 = vmatprep.subr.bf16.mxu1 %v15023_v38  ;;  %v14478_v51 = vcombine.low %v139_v39, %v155_v40  ;;  %v172_v39 = vld [vmem:[%s24327_s23 + $0x308] sm:$0xff] }
  0x23   :  { %v667_v42 = vld [vmem:[%s24327_s23 + $0x1280] sm:$0xff]  ;;  %4901 = vmatpush1.bf16.msra.mxu1 %v15022_v44  ;;  %v188_v40 = vld [vmem:[%s24327_s23 + $0x388] sm:$0xff] }
  0x24   :  { %v14991_v46 = vcombine.high %v651_v41, %v667_v42  ;;  %v107_v47 = vld [vmem:[%s24327_s23 + $0x100] sm:$0xff]  ;;  %4861 = vmatprep.subr.bf16.mxu0 %v14479_v45  ;;  %v14990_v52 = vcombine.low %v651_v41, %v667_v42  ;;  %v14544_v42 = vcombine.low %v204_v31, %v220_v32  ;;  %v14513_v44 = vcombine.high %v172_v39, %v188_v40  ;;  %v460_v32 = vld [vmem:[%s24327_s23 + $0xc08] sm:$0xff] }
  0x25   :  { %v123_v48 = vld [vmem:[%s24327_s23 + $0x180] sm:$0xff]  ;;  %4862 = vmatpush1.bf16.msra.mxu0 %v14478_v51 }
  0x26   :  { %v619_v49 = vld [vmem:[%s24327_s23 + $0x1100] sm:$0xff]  ;;  %v14447_v53 = vcombine.high %v107_v47, %v123_v48  ;;  %4902 = vmatprep.subr.bf16.mxu1 %v14991_v46  ;;  %v14446_v61 = vcombine.low %v107_v47, %v123_v48  ;;  %v140_v47 = vld [vmem:[%s24327_s23 + $0x208] sm:$0xff] }
  0x27   :  { %v635_v50 = vld [vmem:[%s24327_s23 + $0x1180] sm:$0xff]  ;;  %4903 = vmatpush1.bf16.msra.mxu1 %v14990_v52  ;;  %v156_v48 = vld [vmem:[%s24327_s23 + $0x288] sm:$0xff] }
  0x28   :  { %v18206_v54 = vld [vmem:[%s24328_s24] sm:$0xff]  ;;  %v14959_v55 = vcombine.high %v619_v49, %v635_v50  ;;  %4863 = vmatprep.subr.bf16.mxu0 %v14447_v53  ;;  %v14958_v63 = vcombine.low %v619_v49, %v635_v50  ;;  %v14512_v50 = vcombine.low %v172_v39, %v188_v40  ;;  %v14481_v52 = vcombine.high %v140_v47, %v156_v48  ;;  %v428_v40 = vld [vmem:[%s24327_s23 + $0xb08] sm:$0xff] }
  0x29   :  { %v75_v56 = vld [vmem:[%s24327_s23] sm:$0xff]  ;;  %v70_v58 = vcombine.high %v18206_v54, %v18206_v54  ;;  %4864 = vmatpush1.bf16.msra.mxu0 %v14446_v61 }
  0x2a   :  { %v91_v57 = vld [vmem:[%s24327_s23 + $0x80] sm:$0xff]  ;;  %4904 = vmatprep.subr.bf16.mxu1 %v14959_v55 }
  0x2b   :  { %v587_v59 = vld [vmem:[%s24327_s23 + $0x1000] sm:$0xff]  ;;  %v18222_v62 = vpack.c.bf16 %v70_v58, %v70_v58  ;;  %v14415_v0 = vcombine.high %v75_v56, %v91_v57  ;;  %v14414_v6 = vcombine.low %v75_v56, %v91_v57  ;;  %4905 = vmatpush1.bf16.msra.mxu1 %v14958_v63  ;;  %v108_v56 = vld [vmem:[%s24327_s23 + $0x108] sm:$0xff] }
  0x2c   :  { %v603_v60 = vld [vmem:[%s24327_s23 + $0x1080] sm:$0xff]  ;;  %v124_v57 = vld [vmem:[%s24327_s23 + $0x188] sm:$0xff] }
  0x2d   :  { %v14927_v1 = vcombine.high %v587_v59, %v603_v60  ;;  %v555_v2 = vld [vmem:[%s24327_s23 + $0xf00] sm:$0xff]  ;;  %4883 = vmatprep.mubr.bf16.mxu0 %v18222_v62  ;;  %4865 = vmatprep.subr.bf16.mxu0 %v14415_v0  ;;  %v14926_v7 = vcombine.low %v587_v59, %v603_v60  ;;  %v14480_v59 = vcombine.low %v140_v47, %v156_v48  ;;  %v396_v48 = vld [vmem:[%s24327_s23 + $0xa08] sm:$0xff] }
  0x2e   :  { %v571_v3 = vld [vmem:[%s24327_s23 + $0xf80] sm:$0xff]  ;;  %4866 = vmatpush1.bf16.msra.mxu0 %v14414_v6  ;;  %v14449_v61 = vcombine.high %v108_v56, %v124_v57  ;;  %v14448_v4 = vcombine.low %v108_v56, %v124_v57  ;;  %v364_v57 = vld [vmem:[%s24327_s23 + $0x908] sm:$0xff] }
  0x2f   :  { %v14895_v9 = vcombine.high %v555_v2, %v571_v3  ;;  %4906 = vmatprep.subr.bf16.mxu1 %v14927_v1  ;;  %v523_v12 = vld [vmem:[%s24327_s23 + $0xe00] sm:$0xff]  ;;  %v14894_v17 = vcombine.low %v555_v2, %v571_v3  ;;  %v76_v1 = vld [vmem:[%s24327_s23 + $0x8] sm:$0xff] }
  0x30   :  { %v539_v13 = vld [vmem:[%s24327_s23 + $0xe80] sm:$0xff]  ;;  %4907 = vmatpush1.bf16.msra.mxu1 %v14926_v7  ;;  %v92_v2 = vld [vmem:[%s24327_s23 + $0x88] sm:$0xff] }
  0x31   :  { %4867 = vmatprep.subr.bf16.mxu0 %v14895_v9  ;;  %v14863_v19 = vcombine.high %v523_v12, %v539_v13  ;;  %4933 = vmatprep.subr.bf16.mxu1 %v14641_v11  ;;  %v491_v21 = vld [vmem:[%s24327_s23 + $0xd00] sm:$0xff]  ;;  %v14862_v25 = vcombine.low %v523_v12, %v539_v13  ;;  %v14417_v6 = vcombine.high %v76_v1, %v92_v2  ;;  %v812_v7 = vld [vmem:[%s24327_s23 + $0x1708] sm:$0xff] }
  0x32   :  { %v507_v22 = vld [vmem:[%s24327_s23 + $0xd80] sm:$0xff]  ;;  %4868 = vmatpush2.bf16.msra.mxu0 %v14894_v17  ;;  %v828_v9 = vld [vmem:[%s24327_s23 + $0x1788] sm:$0xff]  ;;  %v14416_v13 = vcombine.low %v76_v1, %v92_v2 }
  0x33   :  { %4925 = vmatmul.mubr.bf16.vlgmr.msra.gmra.mxu1 %v18252_v16  ;;  %4869 = vmatprep.subr.bf16.mxu0 %v14863_v19  ;;  %v14831_v27 = vcombine.high %v491_v21, %v507_v22  ;;  %v459_v29 = vld [vmem:[%s24327_s23 + $0xc00] sm:$0xff]  ;;  %v14830_v33 = vcombine.low %v491_v21, %v507_v22  ;;  %v572_v11 = vld [vmem:[%s24327_s23 + $0xf88] sm:$0xff]  ;;  %v15153_v14 = vcombine.high %v812_v7, %v828_v9 }
  0x34   :  { %4934 = vmatpush1.bf16.msra.mxu1 %v14640_v18  ;;  %v475_v30 = vld [vmem:[%s24327_s23 + $0xc80] sm:$0xff]  ;;  %4965 = vmatprep.mubr.bf16.mxu1 %v18222_v62  ;;  %v14897_v15 = vcombine.high %v556_v10, %v572_v11  ;;  %v780_v17 = vld [vmem:[%s24327_s23 + $0x1608] sm:$0xff]  ;;  %v18348_v19 = vpack.c.bf16 %v18206_v54, %v18206_v54  ;;  %v15152_v22 = vcombine.low %v812_v7, %v828_v9 }
  0x35   :  { %4935 = vmatprep.subr.bf16.mxu1 %v14609_v20  ;;  %v14799_v35 = vcombine.high %v459_v29, %v475_v30  ;;  %v427_v37 = vld [vmem:[%s24327_s23 + $0xb00] sm:$0xff]  ;;  %v14798_v41 = vcombine.low %v459_v29, %v475_v30  ;;  %v796_v18 = vld [vmem:[%s24327_s23 + $0x1688] sm:$0xff]  ;;  %v14896_v23 = vcombine.low %v556_v10, %v572_v11  ;;  %v301_v11 = vld [vmem:[%s24327_s23 + $0x710] sm:$0xff] }
  0x36   :  { %4870 = vmatpush2.bf16.msra.mxu0 %v14862_v25  ;;  %v443_v38 = vld [vmem:[%s24327_s23 + $0xb80] sm:$0xff]  ;;  %v524_v20 = vld [vmem:[%s24327_s23 + $0xe08] sm:$0xff]  ;;  %v15121_v24 = vcombine.high %v780_v17, %v796_v18  ;;  %v15120_v29 = vcombine.low %v780_v17, %v796_v18 }
  0x37   :  { %4871 = vmatprep.subr.bf16.mxu0 %v14831_v27  ;;  %v14767_v43 = vcombine.high %v427_v37, %v443_v38  ;;  %v395_v45 = vld [vmem:[%s24327_s23 + $0xa00] sm:$0xff]  ;;  %v14766_v49 = vcombine.low %v427_v37, %v443_v38  ;;  %v540_v21 = vld [vmem:[%s24327_s23 + $0xe88] sm:$0xff] }
  0x38   :  { %4936 = vmatpush1.bf16.msra.mxu1 %v14608_v26  ;;  %v411_v46 = vld [vmem:[%s24327_s23 + $0xa80] sm:$0xff]  ;;  %v492_v25 = vld [vmem:[%s24327_s23 + $0xd08] sm:$0xff]  ;;  %v14865_v27 = vcombine.high %v524_v20, %v540_v21  ;;  %v14864_v30 = vcombine.low %v524_v20, %v540_v21  ;;  %v269_v21 = vld [vmem:[%s24327_s23 + $0x610] sm:$0xff] }
  0x39   :  { %4937 = vmatprep.subr.bf16.mxu1 %v14577_v28  ;;  %v14735_v51 = vcombine.high %v395_v45, %v411_v46  ;;  %v363_v53 = vld [vmem:[%s24327_s23 + $0x900] sm:$0xff]  ;;  %v14734_v58 = vcombine.low %v395_v45, %v411_v46  ;;  %v508_v54 = vld [vmem:[%s24327_s23 + $0xd88] sm:$0xff] }
  0x3a   :  { %4872 = vmatpush2.bf16.msra.mxu0 %v14830_v33  ;;  %v379_v55 = vld [vmem:[%s24327_s23 + $0x980] sm:$0xff]  ;;  %v748_v26 = vld [vmem:[%s24327_s23 + $0x1508] sm:$0xff]  ;;  %v14832_v38 = vcombine.low %v492_v25, %v508_v54 }
  0x3b   :  { %4873 = vmatprep.subr.bf16.mxu0 %v14799_v35  ;;  %v14703_v60 = vcombine.high %v363_v53, %v379_v55  ;;  %v331_v63 = vld [vmem:[%s24327_s23 + $0x800] sm:$0xff]  ;;  %v14702_v3 = vcombine.low %v363_v53, %v379_v55  ;;  %v764_v28 = vld [vmem:[%s24327_s23 + $0x1588] sm:$0xff]  ;;  %v14833_v35 = vcombine.high %v492_v25, %v508_v54  ;;  %v797_v25 = vld [vmem:[%s24327_s23 + $0x1690] sm:$0xff] }
  0x3c   :  { %4938 = vmatpush1.bf16.msra.mxu1 %v14576_v34  ;;  %v347_v0 = vld [vmem:[%s24327_s23 + $0x880] sm:$0xff]  ;;  %v15089_v31 = vcombine.high %v748_v26, %v764_v28  ;;  %v476_v33 = vld [vmem:[%s24327_s23 + $0xc88] sm:$0xff]  ;;  %v15088_v37 = vcombine.low %v748_v26, %v764_v28  ;;  %v237_v28 = vld [vmem:[%s24327_s23 + $0x510] sm:$0xff] }
  0x3d   :  { %4939 = vmatprep.subr.bf16.mxu1 %v14545_v36  ;;  %v14671_v5 = vcombine.high %v331_v63, %v347_v0  ;;  %v14670_v12 = vcombine.low %v331_v63, %v347_v0  ;;  %v716_v34 = vld [vmem:[%s24327_s23 + $0x1408] sm:$0xff]  ;;  %v14800_v46 = vcombine.low %v460_v32, %v476_v33 }
  0x3e   :  { %4874 = vmatpush2.bf16.msra.mxu0 %v14798_v41  ;;  %v732_v36 = vld [vmem:[%s24327_s23 + $0x1488] sm:$0xff] }
  0x3f   :  { %4875 = vmatprep.subr.bf16.mxu0 %v14767_v43  ;;  %v15057_v39 = vcombine.high %v716_v34, %v732_v36  ;;  %v444_v41 = vld [vmem:[%s24327_s23 + $0xb88] sm:$0xff]  ;;  %v14801_v43 = vcombine.high %v460_v32, %v476_v33  ;;  %v15056_v45 = vcombine.low %v716_v34, %v732_v36  ;;  %v765_v32 = vld [vmem:[%s24327_s23 + $0x1590] sm:$0xff] }
  0x40   :  { %4940 = vmatpush1.bf16.msra.mxu1 %v14544_v42  ;;  %v684_v42 = vld [vmem:[%s24327_s23 + $0x1308] sm:$0xff]  ;;  %v14768_v55 = vcombine.low %v428_v40, %v444_v41  ;;  %v205_v36 = vld [vmem:[%s24327_s23 + $0x410] sm:$0xff] }
  0x41   :  { %4941 = vmatprep.subr.bf16.mxu1 %v14513_v44  ;;  %v700_v44 = vld [vmem:[%s24327_s23 + $0x1388] sm:$0xff] }
  0x42   :  { %4876 = vmatpush2.bf16.msra.mxu0 %v14766_v49  ;;  %v15025_v47 = vcombine.high %v684_v42, %v700_v44  ;;  %v412_v49 = vld [vmem:[%s24327_s23 + $0xa88] sm:$0xff]  ;;  %v15024_v53 = vcombine.low %v684_v42, %v700_v44  ;;  %v173_v44 = vld [vmem:[%s24327_s23 + $0x310] sm:$0xff] }
  0x43   :  { %4877 = vmatprep.subr.bf16.mxu0 %v14735_v51  ;;  %v14769_v51 = vcombine.high %v428_v40, %v444_v41  ;;  %v14736_v0 = vcombine.low %v396_v48, %v412_v49  ;;  %v332_v2 = vld [vmem:[%s24327_s23 + $0x808] sm:$0xff]  ;;  %v733_v40 = vld [vmem:[%s24327_s23 + $0x1490] sm:$0xff] }
  0x44   :  { %4942 = vmatpush1.bf16.msra.mxu1 %v14512_v50  ;;  %v652_v50 = vld [vmem:[%s24327_s23 + $0x1208] sm:$0xff] }
  0x45   :  { %4943 = vmatprep.subr.bf16.mxu1 %v14481_v52  ;;  %v668_v52 = vld [vmem:[%s24327_s23 + $0x1288] sm:$0xff] }
  0x46   :  { %4878 = vmatpush2.bf16.msra.mxu0 %v14734_v58  ;;  %v14993_v56 = vcombine.high %v652_v50, %v668_v52  ;;  %v380_v58 = vld [vmem:[%s24327_s23 + $0x988] sm:$0xff]  ;;  %v14992_v63 = vcombine.low %v652_v50, %v668_v52  ;;  %v141_v52 = vld [vmem:[%s24327_s23 + $0x210] sm:$0xff] }
  0x47   :  { %4879 = vmatprep.subr.bf16.mxu0 %v14703_v60  ;;  %v14737_v60 = vcombine.high %v396_v48, %v412_v49  ;;  %v14704_v9 = vcombine.low %v364_v57, %v380_v58  ;;  %v701_v48 = vld [vmem:[%s24327_s23 + $0x1390] sm:$0xff] }
  0x48   :  { %4944 = vmatpush1.bf16.msra.mxu1 %v14480_v59  ;;  %v620_v59 = vld [vmem:[%s24327_s23 + $0x1108] sm:$0xff] }
  0x49   :  { %4945 = vmatprep.subr.bf16.mxu1 %v14449_v61  ;;  %v636_v61 = vld [vmem:[%s24327_s23 + $0x1188] sm:$0xff] }
  0x4a   :  { %4880 = vmatpush2.bf16.msra.mxu0 %v14702_v3  ;;  %v14961_v1 = vcombine.high %v620_v59, %v636_v61  ;;  %v348_v3 = vld [vmem:[%s24327_s23 + $0x888] sm:$0xff]  ;;  %v14960_v7 = vcombine.low %v620_v59, %v636_v61  ;;  %v109_v61 = vld [vmem:[%s24327_s23 + $0x110] sm:$0xff] }
  0x4b   :  { %4881 = vmatprep.subr.bf16.mxu0 %v14671_v5  ;;  %v14705_v5 = vcombine.high %v364_v57, %v380_v58  ;;  %v14672_v18 = vcombine.low %v332_v2, %v348_v3  ;;  %v669_v57 = vld [vmem:[%s24327_s23 + $0x1290] sm:$0xff] }
  0x4c   :  { %4946 = vmatpush1.bf16.msra.mxu1 %v14448_v4  ;;  %v588_v4 = vld [vmem:[%s24327_s23 + $0x1008] sm:$0xff] }
  0x4d   :  { %4947 = vmatprep.subr.bf16.mxu1 %v14417_v6  ;;  %v604_v6 = vld [vmem:[%s24327_s23 + $0x1088] sm:$0xff] }
  0x4e   :  { %4882 = vmatpush2.bf16.msra.mxu0 %v14670_v12  ;;  %v14929_v10 = vcombine.high %v588_v4, %v604_v6  ;;  %v317_v12 = vld [vmem:[%s24327_s23 + $0x790] sm:$0xff]  ;;  %v14928_v17 = vcombine.low %v588_v4, %v604_v6 }
  0x4f   :  { %4974 = vmatprep.subr.bf16.mxu0 %v15153_v14  ;;  %v14673_v14 = vcombine.high %v332_v2, %v348_v3  ;;  %v14643_v20 = vcombine.high %v301_v11, %v317_v12  ;;  %v14642_v54 = vcombine.low %v301_v11, %v317_v12  ;;  %v637_v2 = vld [vmem:[%s24327_s23 + $0x1190] sm:$0xff] }
  0x50   :  { %4948 = vmatpush1.bf16.msra.mxu1 %v14416_v13  ;;  %v813_v13 = vld [vmem:[%s24327_s23 + $0x1710] sm:$0xff] }
  0x51   :  { %4949 = vmatprep.subr.bf16.mxu1 %v14897_v15  ;;  %4884 = vmatmul.mubr.bf16.vlgmr.msra.gmra.mxu0 %v18348_v19  ;;  %v829_v15 = vld [vmem:[%s24327_s23 + $0x1790] sm:$0xff] }
  0x52   :  { %4975 = vmatpush1.bf16.msra.mxu0 %v15152_v22  ;;  %5006 = vmatprep.mubr.bf16.mxu0 %v18008_v8  ;;  %v285_v22 = vld [vmem:[%s24327_s23 + $0x690] sm:$0xff]  ;;  %v15154_v26 = vcombine.low %v813_v13, %v829_v15 }
  0x53   :  { %4976 = vmatprep.subr.bf16.mxu0 %v15121_v24  ;;  %v15155_v24 = vcombine.high %v813_v13, %v829_v15  ;;  %v14610_v33 = vcombine.low %v269_v21, %v285_v22  ;;  %v77_v6 = vld [vmem:[%s24327_s23 + $0x10] sm:$0xff] }
  0x54   :  { %4950 = vmatpush2.bf16.msra.mxu1 %v14896_v23  ;;  %v781_v23 = vld [vmem:[%s24327_s23 + $0x1610] sm:$0xff] }
  0x55   :  { %4951 = vmatprep.subr.bf16.mxu1 %v14865_v27  ;;  %v14611_v27 = vcombine.high %v269_v21, %v285_v22  ;;  %v15122_v34 = vcombine.low %v781_v23, %v797_v25  ;;  %v605_v11 = vld [vmem:[%s24327_s23 + $0x1090] sm:$0xff]  ;;  %v318_v21 = vld [vmem:[%s24327_s23 + $0x798] sm:$0xff] }
  0x56   :  { %4977 = vmatpush1.bf16.msra.mxu0 %v15120_v29  ;;  %v253_v29 = vld [vmem:[%s24327_s23 + $0x590] sm:$0xff] }
  0x57   :  { %4978 = vmatprep.subr.bf16.mxu0 %v15089_v31  ;;  %v15123_v31 = vcombine.high %v781_v23, %v797_v25  ;;  %v14578_v41 = vcombine.low %v237_v28, %v253_v29  ;;  %v557_v15 = vld [vmem:[%s24327_s23 + $0xf10] sm:$0xff] }
  0x58   :  { %4952 = vmatpush2.bf16.msra.mxu1 %v14864_v30  ;;  %v749_v30 = vld [vmem:[%s24327_s23 + $0x1510] sm:$0xff] }
  0x59   :  { %4953 = vmatprep.subr.bf16.mxu1 %v14833_v35  ;;  %v14579_v35 = vcombine.high %v237_v28, %v253_v29  ;;  %v15090_v42 = vcombine.low %v749_v30, %v765_v32  ;;  %v525_v25 = vld [vmem:[%s24327_s23 + $0xe10] sm:$0xff]  ;;  %v286_v28 = vld [vmem:[%s24327_s23 + $0x698] sm:$0xff] }
  0x5a   :  { %4979 = vmatpush1.bf16.msra.mxu0 %v15088_v37  ;;  %v221_v37 = vld [vmem:[%s24327_s23 + $0x490] sm:$0xff] }
  0x5b   :  { %4980 = vmatprep.subr.bf16.mxu0 %v15057_v39  ;;  %v15091_v39 = vcombine.high %v749_v30, %v765_v32  ;;  %v14546_v49 = vcombine.low %v205_v36, %v221_v37  ;;  %v493_v32 = vld [vmem:[%s24327_s23 + $0xd10] sm:$0xff] }
  0x5c   :  { %4954 = vmatpush2.bf16.msra.mxu1 %v14832_v38  ;;  %v717_v38 = vld [vmem:[%s24327_s23 + $0x1410] sm:$0xff] }
  0x5d   :  { %4955 = vmatprep.subr.bf16.mxu1 %v14801_v43  ;;  %v14547_v43 = vcombine.high %v205_v36, %v221_v37  ;;  %v15058_v50 = vcombine.low %v717_v38, %v733_v40  ;;  %v254_v36 = vld [vmem:[%s24327_s23 + $0x598] sm:$0xff] }
  0x5e   :  { %4981 = vmatpush1.bf16.msra.mxu0 %v15056_v45  ;;  %v189_v45 = vld [vmem:[%s24327_s23 + $0x390] sm:$0xff] }
  0x5f   :  { %4982 = vmatprep.subr.bf16.mxu0 %v15025_v47  ;;  %v15059_v47 = vcombine.high %v717_v38, %v733_v40  ;;  %v14514_v58 = vcombine.low %v173_v44, %v189_v45  ;;  %v461_v40 = vld [vmem:[%s24327_s23 + $0xc10] sm:$0xff] }
  0x60   :  { %4956 = vmatpush2.bf16.msra.mxu1 %v14800_v46  ;;  %v685_v46 = vld [vmem:[%s24327_s23 + $0x1310] sm:$0xff] }
  0x61   :  { %4957 = vmatprep.subr.bf16.mxu1 %v14769_v51  ;;  %v14515_v51 = vcombine.high %v173_v44, %v189_v45  ;;  %v15026_v59 = vcombine.low %v685_v46, %v701_v48  ;;  %v222_v44 = vld [vmem:[%s24327_s23 + $0x498] sm:$0xff] }
  0x62   :  { %4983 = vmatpush1.bf16.msra.mxu0 %v15024_v53  ;;  %v157_v53 = vld [vmem:[%s24327_s23 + $0x290] sm:$0xff] }
  0x63   :  { %4984 = vmatprep.subr.bf16.mxu0 %v14993_v56  ;;  %v15027_v56 = vcombine.high %v685_v46, %v701_v48  ;;  %v14482_v3 = vcombine.low %v141_v52, %v157_v53  ;;  %v429_v48 = vld [vmem:[%s24327_s23 + $0xb10] sm:$0xff] }
  0x64   :  { %4958 = vmatpush2.bf16.msra.mxu1 %v14768_v55  ;;  %v653_v55 = vld [vmem:[%s24327_s23 + $0x1210] sm:$0xff] }
  0x65   :  { %4959 = vmatprep.subr.bf16.mxu1 %v14737_v60  ;;  %v14483_v60 = vcombine.high %v141_v52, %v157_v53  ;;  %v14994_v4 = vcombine.low %v653_v55, %v669_v57  ;;  %v190_v52 = vld [vmem:[%s24327_s23 + $0x398] sm:$0xff] }
  0x66   :  { %4985 = vmatpush1.bf16.msra.mxu0 %v14992_v63  ;;  %v125_v63 = vld [vmem:[%s24327_s23 + $0x190] sm:$0xff] }
  0x67   :  { %4986 = vmatprep.subr.bf16.mxu0 %v14961_v1  ;;  %v14995_v1 = vcombine.high %v653_v55, %v669_v57  ;;  %v14450_v12 = vcombine.low %v109_v61, %v125_v63  ;;  %v397_v57 = vld [vmem:[%s24327_s23 + $0xa10] sm:$0xff] }
  0x68   :  { %4960 = vmatpush2.bf16.msra.mxu1 %v14736_v0  ;;  %v621_v0 = vld [vmem:[%s24327_s23 + $0x1110] sm:$0xff] }
  0x69   :  { %4961 = vmatprep.subr.bf16.mxu1 %v14705_v5  ;;  %v14451_v5 = vcombine.high %v109_v61, %v125_v63  ;;  %v14962_v13 = vcombine.low %v621_v0, %v637_v2  ;;  %v158_v61 = vld [vmem:[%s24327_s23 + $0x298] sm:$0xff] }
  0x6a   :  { %4987 = vmatpush1.bf16.msra.mxu0 %v14960_v7  ;;  %v93_v7 = vld [vmem:[%s24327_s23 + $0x90] sm:$0xff] }
  0x6b   :  { %4988 = vmatprep.subr.bf16.mxu0 %v14929_v10  ;;  %v14963_v10 = vcombine.high %v621_v0, %v637_v2  ;;  %v14418_v22 = vcombine.low %v77_v6, %v93_v7  ;;  %v365_v2 = vld [vmem:[%s24327_s23 + $0x910] sm:$0xff] }
  0x6c   :  { %4962 = vmatpush2.bf16.msra.mxu1 %v14704_v9  ;;  %v589_v9 = vld [vmem:[%s24327_s23 + $0x1010] sm:$0xff] }
  0x6d   :  { %4963 = vmatprep.subr.bf16.mxu1 %v14673_v14  ;;  %v14419_v14 = vcombine.high %v77_v6, %v93_v7  ;;  %v14930_v23 = vcombine.low %v589_v9, %v605_v11  ;;  %v126_v6 = vld [vmem:[%s24327_s23 + $0x198] sm:$0xff] }
  0x6e   :  { %4989 = vmatpush1.bf16.msra.mxu0 %v14928_v17  ;;  %v573_v17 = vld [vmem:[%s24327_s23 + $0xf90] sm:$0xff] }
  0x6f   :  { %5015 = vmatprep.subr.bf16.mxu0 %v14643_v20  ;;  %v14931_v20 = vcombine.high %v589_v9, %v605_v11  ;;  %v14898_v29 = vcombine.low %v557_v15, %v573_v17  ;;  %v333_v11 = vld [vmem:[%s24327_s23 + $0x810] sm:$0xff] }
  0x70   :  { %4964 = vmatpush2.bf16.msra.mxu1 %v14672_v18  ;;  %v302_v18 = vld [vmem:[%s24327_s23 + $0x718] sm:$0xff] }
  0x71   :  { %5056 = vmatprep.subr.bf16.mxu1 %v15155_v24  ;;  %5007 = vmatmul.mubr.bf16.vlgmr.msra.gmra.mxu0 %v18252_v16  ;;  %v14899_v24 = vcombine.high %v557_v15, %v573_v17  ;;  %v14644_v30 = vcombine.low %v302_v18, %v318_v21  ;;  %v94_v15 = vld [vmem:[%s24327_s23 + $0x98] sm:$0xff] }
  0x72   :  { %5016 = vmatpush1.bf16.msra.mxu0 %v14642_v54  ;;  %5047 = vmatprep.mubr.bf16.mxu0 %v18222_v62  ;;  %v541_v54 = vld [vmem:[%s24327_s23 + $0xe90] sm:$0xff] }
  0x73   :  { %4966 = vmatmul.mubr.bf16.vlgmr.msra.gmra.mxu1 %v18348_v19  ;;  %5017 = vmatprep.subr.bf16.mxu0 %v14611_v27  ;;  %v14645_v27 = vcombine.high %v302_v18, %v318_v21  ;;  %v14866_v37 = vcombine.low %v525_v25, %v541_v54  ;;  %v558_v21 = vld [vmem:[%s24327_s23 + $0xf18] sm:$0xff] }
  0x74   :  { %5057 = vmatpush1.bf16.msra.mxu1 %v15154_v26  ;;  %5088 = vmatprep.mubr.bf16.mxu1 %v18008_v8  ;;  %v270_v26 = vld [vmem:[%s24327_s23 + $0x618] sm:$0xff] }
  0x75   :  { %5058 = vmatprep.subr.bf16.mxu1 %v15123_v31  ;;  %v14867_v31 = vcombine.high %v525_v25, %v541_v54  ;;  %v14612_v38 = vcombine.low %v270_v26, %v286_v28  ;;  %v830_v25 = vld [vmem:[%s24327_s23 + $0x1798] sm:$0xff] }
  0x76   :  { %5018 = vmatpush1.bf16.msra.mxu0 %v14610_v33  ;;  %v509_v33 = vld [vmem:[%s24327_s23 + $0xd90] sm:$0xff] }
  0x77   :  { %5019 = vmatprep.subr.bf16.mxu0 %v14579_v35  ;;  %v238_v35 = vld [vmem:[%s24327_s23 + $0x518] sm:$0xff]  ;;  %v14834_v45 = vcombine.low %v493_v32, %v509_v33 }
  0x78   :  { %5059 = vmatpush1.bf16.msra.mxu1 %v15122_v34  ;;  %v14613_v34 = vcombine.high %v270_v26, %v286_v28  ;;  %v14580_v46 = vcombine.low %v238_v35, %v254_v36  ;;  %v526_v28 = vld [vmem:[%s24327_s23 + $0xe18] sm:$0xff] }
  0x79   :  { %5060 = vmatprep.subr.bf16.mxu1 %v15091_v39  ;;  %v14835_v39 = vcombine.high %v493_v32, %v509_v33  ;;  %v798_v32 = vld [vmem:[%s24327_s23 + $0x1698] sm:$0xff] }
  0x7a   :  { %5020 = vmatpush1.bf16.msra.mxu0 %v14578_v41  ;;  %v477_v41 = vld [vmem:[%s24327_s23 + $0xc90] sm:$0xff] }
  0x7b   :  { %5021 = vmatprep.subr.bf16.mxu0 %v14547_v43  ;;  %v14581_v43 = vcombine.high %v238_v35, %v254_v36  ;;  %v14802_v53 = vcombine.low %v461_v40, %v477_v41  ;;  %v494_v36 = vld [vmem:[%s24327_s23 + $0xd18] sm:$0xff] }
  0x7c   :  { %5061 = vmatpush1.bf16.msra.mxu1 %v15090_v42  ;;  %v206_v42 = vld [vmem:[%s24327_s23 + $0x418] sm:$0xff] }
  0x7d   :  { %5062 = vmatprep.subr.bf16.mxu1 %v15059_v47  ;;  %v14803_v47 = vcombine.high %v461_v40, %v477_v41  ;;  %v14548_v55 = vcombine.low %v206_v42, %v222_v44  ;;  %v766_v40 = vld [vmem:[%s24327_s23 + $0x1598] sm:$0xff] }
  0x7e   :  { %5022 = vmatpush1.bf16.msra.mxu0 %v14546_v49  ;;  %v445_v49 = vld [vmem:[%s24327_s23 + $0xb90] sm:$0xff] }
  0x7f   :  { %5023 = vmatprep.subr.bf16.mxu0 %v14515_v51  ;;  %v14549_v51 = vcombine.high %v206_v42, %v222_v44  ;;  %v14770_v63 = vcombine.low %v429_v48, %v445_v49  ;;  %v462_v44 = vld [vmem:[%s24327_s23 + $0xc18] sm:$0xff] }
  0x80   :  { %5063 = vmatpush1.bf16.msra.mxu1 %v15058_v50  ;;  %v174_v50 = vld [vmem:[%s24327_s23 + $0x318] sm:$0xff] }
  0x81   :  { %5064 = vmatprep.subr.bf16.mxu1 %v15027_v56  ;;  %v14771_v56 = vcombine.high %v429_v48, %v445_v49  ;;  %v14516_v0 = vcombine.low %v174_v50, %v190_v52  ;;  %v734_v48 = vld [vmem:[%s24327_s23 + $0x1498] sm:$0xff] }
  0x82   :  { %5024 = vmatpush1.bf16.msra.mxu0 %v14514_v58  ;;  %v413_v58 = vld [vmem:[%s24327_s23 + $0xa90] sm:$0xff] }
  0x83   :  { %5025 = vmatprep.subr.bf16.mxu0 %v14483_v60  ;;  %v14517_v60 = vcombine.high %v174_v50, %v190_v52  ;;  %v14738_v7 = vcombine.low %v397_v57, %v413_v58  ;;  %v430_v52 = vld [vmem:[%s24327_s23 + $0xb18] sm:$0xff] }
  0x84   :  { %5065 = vmatpush1.bf16.msra.mxu1 %v15026_v59  ;;  %v142_v59 = vld [vmem:[%s24327_s23 + $0x218] sm:$0xff] }
  0x85   :  { %5066 = vmatprep.subr.bf16.mxu1 %v14995_v1  ;;  %v14739_v1 = vcombine.high %v397_v57, %v413_v58  ;;  %v14484_v9 = vcombine.low %v142_v59, %v158_v61  ;;  %v702_v57 = vld [vmem:[%s24327_s23 + $0x1398] sm:$0xff] }
  0x86   :  { %5026 = vmatpush1.bf16.msra.mxu0 %v14482_v3  ;;  %v381_v3 = vld [vmem:[%s24327_s23 + $0x990] sm:$0xff] }
  0x87   :  { %5027 = vmatprep.subr.bf16.mxu0 %v14451_v5  ;;  %v14485_v5 = vcombine.high %v142_v59, %v158_v61  ;;  %v14706_v17 = vcombine.low %v365_v2, %v381_v3  ;;  %v398_v61 = vld [vmem:[%s24327_s23 + $0xa18] sm:$0xff] }
  0x88   :  { %5067 = vmatpush1.bf16.msra.mxu1 %v14994_v4  ;;  %v110_v4 = vld [vmem:[%s24327_s23 + $0x118] sm:$0xff] }
  0x89   :  { %5068 = vmatprep.subr.bf16.mxu1 %v14963_v10  ;;  %v14707_v10 = vcombine.high %v365_v2, %v381_v3  ;;  %v14452_v18 = vcombine.low %v110_v4, %v126_v6  ;;  %v670_v2 = vld [vmem:[%s24327_s23 + $0x1298] sm:$0xff] }
  0x8a   :  { %5028 = vmatpush1.bf16.msra.mxu0 %v14450_v12  ;;  %v349_v12 = vld [vmem:[%s24327_s23 + $0x890] sm:$0xff] }
  0x8b   :  { %5029 = vmatprep.subr.bf16.mxu0 %v14419_v14  ;;  %v14453_v14 = vcombine.high %v110_v4, %v126_v6  ;;  %v14674_v54 = vcombine.low %v333_v11, %v349_v12  ;;  %v366_v6 = vld [vmem:[%s24327_s23 + $0x918] sm:$0xff] }
  0x8c   :  { %5069 = vmatpush1.bf16.msra.mxu1 %v14962_v13  ;;  %v78_v13 = vld [vmem:[%s24327_s23 + $0x18] sm:$0xff] }
  0x8d   :  { %5070 = vmatprep.subr.bf16.mxu1 %v14931_v20  ;;  %v14675_v20 = vcombine.high %v333_v11, %v349_v12  ;;  %v14420_v26 = vcombine.low %v78_v13, %v94_v15  ;;  %v638_v11 = vld [vmem:[%s24327_s23 + $0x1198] sm:$0xff] }
  0x8e   :  { %5030 = vmatpush1.bf16.msra.mxu0 %v14418_v22  ;;  %v574_v22 = vld [vmem:[%s24327_s23 + $0xf98] sm:$0xff] }
  0x8f   :  { %5031 = vmatprep.subr.bf16.mxu0 %v14899_v24  ;;  %v14421_v24 = vcombine.high %v78_v13, %v94_v15  ;;  %v334_v15 = vld [vmem:[%s24327_s23 + $0x818] sm:$0xff] }
  0x90   :  { %5071 = vmatpush1.bf16.msra.mxu1 %v14930_v23  ;;  %v814_v23 = vld [vmem:[%s24327_s23 + $0x1718] sm:$0xff] }
  0x91   :  { %5097 = vmatprep.subr.bf16.mxu1 %v14645_v27  ;;  %v15157_v27 = vcombine.high %v814_v23, %v830_v25  ;;  %v15156_v33 = vcombine.low %v814_v23, %v830_v25  ;;  %v303_v25 = vld [vmem:[%s24327_s23 + $0x720] sm:$0xff] }
  0x92   :  { %5032 = vmatpush2.bf16.msra.mxu0 %v14898_v29  ;;  %v542_v29 = vld [vmem:[%s24327_s23 + $0xe98] sm:$0xff] }
  0x93   :  { %5089 = vmatmul.mubr.bf16.vlgmr.msra.gmra.mxu1 %v18252_v16  ;;  %5033 = vmatprep.subr.bf16.mxu0 %v14867_v31  ;;  %v14901_v31 = vcombine.high %v558_v21, %v574_v22  ;;  %v14868_v42 = vcombine.low %v526_v28, %v542_v29 }
  0x94   :  { %5098 = vmatpush1.bf16.msra.mxu1 %v14644_v30  ;;  %5129 = vmatprep.mubr.bf16.mxu1 %v18222_v62  ;;  %v782_v30 = vld [vmem:[%s24327_s23 + $0x1618] sm:$0xff] }
  0x95   :  { %5099 = vmatprep.subr.bf16.mxu1 %v14613_v34  ;;  %v14900_v34 = vcombine.low %v558_v21, %v574_v22  ;;  %v15125_v35 = vcombine.high %v782_v30, %v798_v32  ;;  %v15124_v41 = vcombine.low %v782_v30, %v798_v32  ;;  %v606_v21 = vld [vmem:[%s24327_s23 + $0x1098] sm:$0xff]  ;;  %v271_v32 = vld [vmem:[%s24327_s23 + $0x620] sm:$0xff] }
  0x96   :  { %5034 = vmatpush2.bf16.msra.mxu0 %v14866_v37  ;;  %v510_v37 = vld [vmem:[%s24327_s23 + $0xd98] sm:$0xff] }
  0x97   :  { %5035 = vmatprep.subr.bf16.mxu0 %v14835_v39  ;;  %v14869_v39 = vcombine.high %v526_v28, %v542_v29  ;;  %v14836_v50 = vcombine.low %v494_v36, %v510_v37  ;;  %v831_v28 = vld [vmem:[%s24327_s23 + $0x17a0] sm:$0xff] }
  0x98   :  { %5100 = vmatpush1.bf16.msra.mxu1 %v14612_v38  ;;  %v750_v38 = vld [vmem:[%s24327_s23 + $0x1518] sm:$0xff] }
  0x99   :  { %5101 = vmatprep.subr.bf16.mxu1 %v14581_v43  ;;  %v15093_v43 = vcombine.high %v750_v38, %v766_v40  ;;  %v15092_v49 = vcombine.low %v750_v38, %v766_v40  ;;  %v239_v40 = vld [vmem:[%s24327_s23 + $0x520] sm:$0xff] }
  0x9a   :  { %5036 = vmatpush2.bf16.msra.mxu0 %v14834_v45  ;;  %v478_v45 = vld [vmem:[%s24327_s23 + $0xc98] sm:$0xff] }
  0x9b   :  { %5037 = vmatprep.subr.bf16.mxu0 %v14803_v47  ;;  %v14837_v47 = vcombine.high %v494_v36, %v510_v37  ;;  %v14804_v59 = vcombine.low %v462_v44, %v478_v45  ;;  %v799_v36 = vld [vmem:[%s24327_s23 + $0x16a0] sm:$0xff] }
  0x9c   :  { %5102 = vmatpush1.bf16.msra.mxu1 %v14580_v46  ;;  %v718_v46 = vld [vmem:[%s24327_s23 + $0x1418] sm:$0xff] }
  0x9d   :  { %5103 = vmatprep.subr.bf16.mxu1 %v14549_v51  ;;  %v15061_v51 = vcombine.high %v718_v46, %v734_v48  ;;  %v15060_v58 = vcombine.low %v718_v46, %v734_v48  ;;  %v207_v48 = vld [vmem:[%s24327_s23 + $0x420] sm:$0xff] }
  0x9e   :  { %5038 = vmatpush2.bf16.msra.mxu0 %v14802_v53  ;;  %v446_v53 = vld [vmem:[%s24327_s23 + $0xb98] sm:$0xff] }
  0x9f   :  { %5039 = vmatprep.subr.bf16.mxu0 %v14771_v56  ;;  %v14805_v56 = vcombine.high %v462_v44, %v478_v45  ;;  %v14772_v4 = vcombine.low %v430_v52, %v446_v53  ;;  %v767_v44 = vld [vmem:[%s24327_s23 + $0x15a0] sm:$0xff] }
  0xa0   :  { %5104 = vmatpush1.bf16.msra.mxu1 %v14548_v55  ;;  %v686_v55 = vld [vmem:[%s24327_s23 + $0x1318] sm:$0xff] }
  0xa1   :  { %5105 = vmatprep.subr.bf16.mxu1 %v14517_v60  ;;  %v15029_v60 = vcombine.high %v686_v55, %v702_v57  ;;  %v15028_v3 = vcombine.low %v686_v55, %v702_v57  ;;  %v175_v57 = vld [vmem:[%s24327_s23 + $0x320] sm:$0xff] }
  0xa2   :  { %5040 = vmatpush2.bf16.msra.mxu0 %v14770_v63  ;;  %v414_v63 = vld [vmem:[%s24327_s23 + $0xa98] sm:$0xff] }
  0xa3   :  { %5041 = vmatprep.subr.bf16.mxu0 %v14739_v1  ;;  %v14773_v1 = vcombine.high %v430_v52, %v446_v53  ;;  %v14740_v13 = vcombine.low %v398_v61, %v414_v63  ;;  %v735_v52 = vld [vmem:[%s24327_s23 + $0x14a0] sm:$0xff] }
  0xa4   :  { %5106 = vmatpush1.bf16.msra.mxu1 %v14516_v0  ;;  %v654_v0 = vld [vmem:[%s24327_s23 + $0x1218] sm:$0xff] }
  0xa5   :  { %5107 = vmatprep.subr.bf16.mxu1 %v14485_v5  ;;  %v14997_v5 = vcombine.high %v654_v0, %v670_v2  ;;  %v14996_v12 = vcombine.low %v654_v0, %v670_v2  ;;  %v143_v2 = vld [vmem:[%s24327_s23 + $0x220] sm:$0xff] }
  0xa6   :  { %5042 = vmatpush2.bf16.msra.mxu0 %v14738_v7  ;;  %v382_v7 = vld [vmem:[%s24327_s23 + $0x998] sm:$0xff] }
  0xa7   :  { %5043 = vmatprep.subr.bf16.mxu0 %v14707_v10  ;;  %v14741_v10 = vcombine.high %v398_v61, %v414_v63  ;;  %v14708_v23 = vcombine.low %v366_v6, %v382_v7  ;;  %v703_v61 = vld [vmem:[%s24327_s23 + $0x13a0] sm:$0xff] }
  0xa8   :  { %5108 = vmatpush1.bf16.msra.mxu1 %v14484_v9  ;;  %v622_v9 = vld [vmem:[%s24327_s23 + $0x1118] sm:$0xff] }
  0xa9   :  { %5109 = vmatprep.subr.bf16.mxu1 %v14453_v14  ;;  %v14965_v14 = vcombine.high %v622_v9, %v638_v11  ;;  %v14964_v22 = vcombine.low %v622_v9, %v638_v11  ;;  %v111_v11 = vld [vmem:[%s24327_s23 + $0x120] sm:$0xff] }
  0xaa   :  { %5044 = vmatpush2.bf16.msra.mxu0 %v14706_v17  ;;  %v350_v17 = vld [vmem:[%s24327_s23 + $0x898] sm:$0xff] }
  0xab   :  { %5045 = vmatprep.subr.bf16.mxu0 %v14675_v20  ;;  %v14709_v20 = vcombine.high %v366_v6, %v382_v7  ;;  %v14676_v30 = vcombine.low %v334_v15, %v350_v17  ;;  %v671_v6 = vld [vmem:[%s24327_s23 + $0x12a0] sm:$0xff] }
  0xac   :  { %5110 = vmatpush1.bf16.msra.mxu1 %v14452_v18  ;;  %v590_v18 = vld [vmem:[%s24327_s23 + $0x1018] sm:$0xff] }
  0xad   :  { %5111 = vmatprep.subr.bf16.mxu1 %v14421_v24  ;;  %v14933_v24 = vcombine.high %v590_v18, %v606_v21  ;;  %v14932_v29 = vcombine.low %v590_v18, %v606_v21  ;;  %v79_v21 = vld [vmem:[%s24327_s23 + $0x20] sm:$0xff] }
  0xae   :  { %5046 = vmatpush2.bf16.msra.mxu0 %v14674_v54  ;;  %v319_v54 = vld [vmem:[%s24327_s23 + $0x7a0] sm:$0xff] }
  0xaf   :  { %5138 = vmatprep.subr.bf16.mxu0 %v15157_v27  ;;  %v14677_v27 = vcombine.high %v334_v15, %v350_v17  ;;  %v14646_v37 = vcombine.low %v303_v25, %v319_v54  ;;  %v639_v15 = vld [vmem:[%s24327_s23 + $0x11a0] sm:$0xff] }
  0xb0   :  { %5112 = vmatpush1.bf16.msra.mxu1 %v14420_v26  ;;  %v815_v26 = vld [vmem:[%s24327_s23 + $0x1720] sm:$0xff] }
  0xb1   :  { %5113 = vmatprep.subr.bf16.mxu1 %v14901_v31  ;;  %5048 = vmatmul.mubr.bf16.vlgmr.msra.gmra.mxu0 %v18348_v19  ;;  %v14647_v31 = vcombine.high %v303_v25, %v319_v54  ;;  %v15158_v38 = vcombine.low %v815_v26, %v831_v28  ;;  %v607_v25 = vld [vmem:[%s24327_s23 + $0x10a0] sm:$0xff] }
  0xb2   :  { %5139 = vmatpush1.bf16.msra.mxu0 %v15156_v33  ;;  %5170 = vmatprep.mubr.bf16.mxu0 %v18008_v8  ;;  %v287_v33 = vld [vmem:[%s24327_s23 + $0x6a0] sm:$0xff] }
  0xb3   :  { %5140 = vmatprep.subr.bf16.mxu0 %v15125_v35  ;;  %v15159_v35 = vcombine.high %v815_v26, %v831_v28  ;;  %v14614_v45 = vcombine.low %v271_v32, %v287_v33  ;;  %v559_v28 = vld [vmem:[%s24327_s23 + $0xf20] sm:$0xff] }
  0xb4   :  { %5114 = vmatpush2.bf16.msra.mxu1 %v14900_v34  ;;  %v783_v34 = vld [vmem:[%s24327_s23 + $0x1620] sm:$0xff] }
  0xb5   :  { %5115 = vmatprep.subr.bf16.mxu1 %v14869_v39  ;;  %v14615_v39 = vcombine.high %v271_v32, %v287_v33  ;;  %v15126_v46 = vcombine.low %v783_v34, %v799_v36  ;;  %v320_v32 = vld [vmem:[%s24327_s23 + $0x7a8] sm:$0xff] }
  0xb6   :  { %5141 = vmatpush1.bf16.msra.mxu0 %v15124_v41  ;;  %v255_v41 = vld [vmem:[%s24327_s23 + $0x5a0] sm:$0xff] }
  0xb7   :  { %5142 = vmatprep.subr.bf16.mxu0 %v15093_v43  ;;  %v15127_v43 = vcombine.high %v783_v34, %v799_v36  ;;  %v14582_v53 = vcombine.low %v239_v40, %v255_v41  ;;  %v527_v36 = vld [vmem:[%s24327_s23 + $0xe20] sm:$0xff] }
  0xb8   :  { %5116 = vmatpush2.bf16.msra.mxu1 %v14868_v42  ;;  %v751_v42 = vld [vmem:[%s24327_s23 + $0x1520] sm:$0xff] }
  0xb9   :  { %5117 = vmatprep.subr.bf16.mxu1 %v14837_v47  ;;  %v14583_v47 = vcombine.high %v239_v40, %v255_v41  ;;  %v15094_v55 = vcombine.low %v751_v42, %v767_v44  ;;  %v288_v40 = vld [vmem:[%s24327_s23 + $0x6a8] sm:$0xff] }
  0xba   :  { %5143 = vmatpush1.bf16.msra.mxu0 %v15092_v49  ;;  %v223_v49 = vld [vmem:[%s24327_s23 + $0x4a0] sm:$0xff] }
  0xbb   :  { %5144 = vmatprep.subr.bf16.mxu0 %v15061_v51  ;;  %v15095_v51 = vcombine.high %v751_v42, %v767_v44  ;;  %v14550_v63 = vcombine.low %v207_v48, %v223_v49  ;;  %v495_v44 = vld [vmem:[%s24327_s23 + $0xd20] sm:$0xff] }
  0xbc   :  { %5118 = vmatpush2.bf16.msra.mxu1 %v14836_v50  ;;  %v719_v50 = vld [vmem:[%s24327_s23 + $0x1420] sm:$0xff] }
  0xbd   :  { %5119 = vmatprep.subr.bf16.mxu1 %v14805_v56  ;;  %v14551_v56 = vcombine.high %v207_v48, %v223_v49  ;;  %v15062_v0 = vcombine.low %v719_v50, %v735_v52  ;;  %v256_v48 = vld [vmem:[%s24327_s23 + $0x5a8] sm:$0xff] }
  0xbe   :  { %5145 = vmatpush1.bf16.msra.mxu0 %v15060_v58  ;;  %v191_v58 = vld [vmem:[%s24327_s23 + $0x3a0] sm:$0xff] }
  0xbf   :  { %5146 = vmatprep.subr.bf16.mxu0 %v15029_v60  ;;  %v15063_v60 = vcombine.high %v719_v50, %v735_v52  ;;  %v14518_v7 = vcombine.low %v175_v57, %v191_v58 }
  0xc0   :  { %5120 = vmatpush2.bf16.msra.mxu1 %v14804_v59  ;;  %v687_v59 = vld [vmem:[%s24327_s23 + $0x1320] sm:$0xff] }
  0xc1   :  { %5121 = vmatprep.subr.bf16.mxu1 %v14773_v1  ;;  %v14519_v1 = vcombine.high %v175_v57, %v191_v58  ;;  %v15030_v9 = vcombine.low %v687_v59, %v703_v61 }
  0xc2   :  { %5147 = vmatpush1.bf16.msra.mxu0 %v15028_v3  ;;  %v159_v3 = vld [vmem:[%s24327_s23 + $0x2a0] sm:$0xff] }
  0xc3   :  { %5148 = vmatprep.subr.bf16.mxu0 %v14997_v5  ;;  %v15031_v5 = vcombine.high %v687_v59, %v703_v61  ;;  %v14486_v17 = vcombine.low %v143_v2, %v159_v3  ;;  %v224_v59 = vld [vmem:[%s24327_s23 + $0x4a8] sm:$0xff] }
  0xc4   :  { %5122 = vmatpush2.bf16.msra.mxu1 %v14772_v4  ;;  %v655_v4 = vld [vmem:[%s24327_s23 + $0x1220] sm:$0xff] }
  0xc5   :  { %5123 = vmatprep.subr.bf16.mxu1 %v14741_v10  ;;  %v14487_v10 = vcombine.high %v143_v2, %v159_v3  ;;  %v14998_v18 = vcombine.low %v655_v4, %v671_v6  ;;  %v447_v2 = vld [vmem:[%s24327_s23 + $0xba0] sm:$0xff]  ;;  %v176_v3 = vld [vmem:[%s24327_s23 + $0x328] sm:$0xff] }
  0xc6   :  { %5149 = vmatpush1.bf16.msra.mxu0 %v14996_v12  ;;  %v127_v12 = vld [vmem:[%s24327_s23 + $0x1a0] sm:$0xff] }
  0xc7   :  { %5150 = vmatprep.subr.bf16.mxu0 %v14965_v14  ;;  %v14999_v14 = vcombine.high %v655_v4, %v671_v6  ;;  %v14454_v54 = vcombine.low %v111_v11, %v127_v12  ;;  %v192_v6 = vld [vmem:[%s24327_s23 + $0x3a8] sm:$0xff] }
  0xc8   :  { %5124 = vmatpush2.bf16.msra.mxu1 %v14740_v13  ;;  %v623_v13 = vld [vmem:[%s24327_s23 + $0x1120] sm:$0xff] }
  0xc9   :  { %5125 = vmatprep.subr.bf16.mxu1 %v14709_v20  ;;  %v14455_v20 = vcombine.high %v111_v11, %v127_v12  ;;  %v14966_v26 = vcombine.low %v623_v13, %v639_v15  ;;  %v399_v11 = vld [vmem:[%s24327_s23 + $0xa20] sm:$0xff] }
  0xca   :  { %5151 = vmatpush1.bf16.msra.mxu0 %v14964_v22  ;;  %v95_v22 = vld [vmem:[%s24327_s23 + $0xa0] sm:$0xff] }
  0xcb   :  { %5152 = vmatprep.subr.bf16.mxu0 %v14933_v24  ;;  %v14967_v24 = vcombine.high %v623_v13, %v639_v15  ;;  %v14422_v33 = vcombine.low %v79_v21, %v95_v22  ;;  %v415_v12 = vld [vmem:[%s24327_s23 + $0xaa0] sm:$0xff]  ;;  %v144_v13 = vld [vmem:[%s24327_s23 + $0x228] sm:$0xff] }
  0xcc   :  { %5126 = vmatpush2.bf16.msra.mxu1 %v14708_v23  ;;  %v591_v23 = vld [vmem:[%s24327_s23 + $0x1020] sm:$0xff]  ;;  %v160_v15 = vld [vmem:[%s24327_s23 + $0x2a8] sm:$0xff] }
  0xcd   :  { %5127 = vmatprep.subr.bf16.mxu1 %v14677_v27  ;;  %v14423_v27 = vcombine.high %v79_v21, %v95_v22  ;;  %v14934_v34 = vcombine.low %v591_v23, %v607_v25  ;;  %v367_v21 = vld [vmem:[%s24327_s23 + $0x920] sm:$0xff] }
  0xce   :  { %5153 = vmatpush1.bf16.msra.mxu0 %v14932_v29  ;;  %v575_v29 = vld [vmem:[%s24327_s23 + $0xfa0] sm:$0xff] }
  0xcf   :  { %5179 = vmatprep.subr.bf16.mxu0 %v14647_v31  ;;  %v14935_v31 = vcombine.high %v591_v23, %v607_v25  ;;  %v14902_v41 = vcombine.low %v559_v28, %v575_v29  ;;  %v383_v22 = vld [vmem:[%s24327_s23 + $0x9a0] sm:$0xff]  ;;  %v112_v23 = vld [vmem:[%s24327_s23 + $0x128] sm:$0xff] }
  0xd0   :  { %5128 = vmatpush2.bf16.msra.mxu1 %v14676_v30  ;;  %v304_v30 = vld [vmem:[%s24327_s23 + $0x728] sm:$0xff] }
  0xd1   :  { %5220 = vmatprep.subr.bf16.mxu1 %v15159_v35  ;;  %5171 = vmatmul.mubr.bf16.vlgmr.msra.gmra.mxu0 %v18252_v16  ;;  %v14903_v35 = vcombine.high %v559_v28, %v575_v29  ;;  %v14648_v42 = vcombine.low %v304_v30, %v320_v32  ;;  %v128_v25 = vld [vmem:[%s24327_s23 + $0x1a8] sm:$0xff]  ;;  %v14711_v28 = vcombine.high %v367_v21, %v383_v22  ;;  %v335_v29 = vld [vmem:[%s24327_s23 + $0x820] sm:$0xff] }
  0xd2   :  { %5180 = vmatpush1.bf16.msra.mxu0 %v14646_v37  ;;  %5211 = vmatprep.mubr.bf16.mxu0 %v18222_v62  ;;  %v543_v37 = vld [vmem:[%s24327_s23 + $0xea0] sm:$0xff] }
  0xd3   :  { %5130 = vmatmul.mubr.bf16.vlgmr.msra.gmra.mxu1 %v18348_v19  ;;  %5181 = vmatprep.subr.bf16.mxu0 %v14615_v39  ;;  %v14649_v39 = vcombine.high %v304_v30, %v320_v32  ;;  %v14870_v50 = vcombine.low %v527_v36, %v543_v37  ;;  %v351_v30 = vld [vmem:[%s24327_s23 + $0x8a0] sm:$0xff]  ;;  %v14457_v32 = vcombine.high %v112_v23, %v128_v25 }
  0xd4   :  { %5221 = vmatpush1.bf16.msra.mxu1 %v15158_v38  ;;  %5252 = vmatprep.mubr.bf16.mxu1 %v18008_v8  ;;  %v272_v38 = vld [vmem:[%s24327_s23 + $0x628] sm:$0xff] }
  0xd5   :  { %5222 = vmatprep.subr.bf16.mxu1 %v15127_v43  ;;  %v14871_v43 = vcombine.high %v527_v36, %v543_v37  ;;  %v14456_v36 = vcombine.low %v112_v23, %v128_v25  ;;  %v14679_v37 = vcombine.high %v335_v29, %v351_v30 }
  0xd6   :  { %5182 = vmatpush1.bf16.msra.mxu0 %v14614_v45  ;;  %v511_v45 = vld [vmem:[%s24327_s23 + $0xda0] sm:$0xff] }
  0xd7   :  { %5183 = vmatprep.subr.bf16.mxu0 %v14583_v47  ;;  %v14617_v47 = vcombine.high %v272_v38, %v288_v40  ;;  %v14839_v52 = vcombine.high %v495_v44, %v511_v45  ;;  %v14838_v61 = vcombine.low %v495_v44, %v511_v45  ;;  %v14678_v44 = vcombine.low %v335_v29, %v351_v30 }
  0xd8   :  { %5223 = vmatpush1.bf16.msra.mxu1 %v15126_v46  ;;  %v240_v46 = vld [vmem:[%s24327_s23 + $0x528] sm:$0xff] }
  0xd9   :  { %5224 = vmatprep.subr.bf16.mxu1 %v15095_v51  ;;  %v14616_v51 = vcombine.low %v272_v38, %v288_v40  ;;  %v14585_v58 = vcombine.high %v240_v46, %v256_v48  ;;  %v560_v38 = vld [vmem:[%s24327_s23 + $0xf28] sm:$0xff] }
  0xda   :  { %5184 = vmatpush1.bf16.msra.mxu0 %v14582_v53  ;;  %v463_v53 = vld [vmem:[%s24327_s23 + $0xc20] sm:$0xff]  ;;  %v816_v40 = vld [vmem:[%s24327_s23 + $0x1728] sm:$0xff] }
  0xdb   :  { %5185 = vmatprep.subr.bf16.mxu0 %v14551_v56  ;;  %v208_v56 = vld [vmem:[%s24327_s23 + $0x428] sm:$0xff] }
  0xdc   :  { %5225 = vmatpush1.bf16.msra.mxu1 %v15094_v55  ;;  %v479_v55 = vld [vmem:[%s24327_s23 + $0xca0] sm:$0xff] }
  0xdd   :  { %5226 = vmatprep.subr.bf16.mxu1 %v15063_v60 }
  0xde   :  { %5186 = vmatpush1.bf16.msra.mxu0 %v14550_v63  ;;  %v14584_v63 = vcombine.low %v240_v46, %v256_v48  ;;  %v528_v48 = vld [vmem:[%s24327_s23 + $0xe28] sm:$0xff] }
  0xdf   :  { %5187 = vmatprep.subr.bf16.mxu0 %v14519_v1  ;;  %v431_v1 = vld [vmem:[%s24327_s23 + $0xb20] sm:$0xff] }
  0xe0   :  { %5227 = vmatpush1.bf16.msra.mxu1 %v15062_v0  ;;  %v14807_v0 = vcombine.high %v463_v53, %v479_v55 }
  0xe1   :  { %5228 = vmatprep.subr.bf16.mxu1 %v15031_v5  ;;  %v14553_v5 = vcombine.high %v208_v56, %v224_v59 }
  0xe2   :  { %5188 = vmatpush1.bf16.msra.mxu0 %v14518_v7  ;;  %v14806_v7 = vcombine.low %v463_v53, %v479_v55  ;;  %v800_v55 = vld [vmem:[%s24327_s23 + $0x16a8] sm:$0xff] }
  0xe3   :  { %5189 = vmatprep.subr.bf16.mxu0 %v14487_v10  ;;  %v14775_v10 = vcombine.high %v431_v1, %v447_v2 }
  0xe4   :  { %5229 = vmatpush1.bf16.msra.mxu1 %v15030_v9  ;;  %v14552_v9 = vcombine.low %v208_v56, %v224_v59 }
  0xe5   :  { %5230 = vmatprep.subr.bf16.mxu1 %v14999_v14  ;;  %v14521_v14 = vcombine.high %v176_v3, %v192_v6 }
  0xe6   :  { %5190 = vmatpush1.bf16.msra.mxu0 %v14486_v17  ;;  %v14774_v17 = vcombine.low %v431_v1, %v447_v2 }
  0xe7   :  { %5191 = vmatprep.subr.bf16.mxu0 %v14455_v20  ;;  %v14743_v20 = vcombine.high %v399_v11, %v415_v12 }
  0xe8   :  { %5231 = vmatpush1.bf16.msra.mxu1 %v14998_v18  ;;  %v14520_v18 = vcombine.low %v176_v3, %v192_v6  ;;  %v768_v3 = vld [vmem:[%s24327_s23 + $0x15a8] sm:$0xff] }
  0xe9   :  { %5232 = vmatprep.subr.bf16.mxu1 %v14967_v24  ;;  %v14489_v24 = vcombine.high %v144_v13, %v160_v15 }
  0xea   :  { %5192 = vmatpush1.bf16.msra.mxu0 %v14454_v54  ;;  %v14742_v54 = vcombine.low %v399_v11, %v415_v12  ;;  %v464_v11 = vld [vmem:[%s24327_s23 + $0xc28] sm:$0xff] }
  0xeb   :  { %5193 = vmatprep.subr.bf16.mxu0 %v14423_v27  ;;  %v14488_v27 = vcombine.low %v144_v13, %v160_v15  ;;  %v480_v12 = vld [vmem:[%s24327_s23 + $0xca8] sm:$0xff] }
  0xec   :  { %5233 = vmatpush1.bf16.msra.mxu1 %v14966_v26  ;;  %v851_v26 = vlaneseq  ;;  %v720_v13 = vld [vmem:[%s24327_s23 + $0x1428] sm:$0xff]  ;;  %v14808_v29 = vcombine.low %v464_v11, %v480_v12 }
  0xed   :  { %5234 = vmatprep.subr.bf16.mxu1 %v14935_v31  ;;  %v80_v31 = vld [vmem:[%s24327_s23 + $0x28] sm:$0xff] }
  0xee   :  { %5194 = vmatpush1.bf16.msra.mxu0 %v14422_v33  ;;  %v96_v33 = vld [vmem:[%s24327_s23 + $0xa8] sm:$0xff] }
  0xef   :  { %5195 = vmatprep.subr.bf16.mxu0 %v14903_v35  ;;  %v18928_v35 = vshrl.u32 %v851_v26, 7  ;;  %v14424_v46 = vcombine.low %v80_v31, %v96_v33  ;;  %v14809_v26 = vcombine.high %v464_v11, %v480_v12  ;;  %v785_v11 = vld [vmem:[%s24327_s23 + $0x1630] sm:$0xff] }
  0xf0   :  { %5235 = vmatpush1.bf16.msra.mxu1 %v14934_v34  ;;  %v14710_v34 = vcombine.low %v367_v21, %v383_v22 }
  0xf1   :  { %5261 = vmatprep.subr.bf16.mxu1 %v14649_v39  ;;  %v576_v39 = vld [vmem:[%s24327_s23 + $0xfa8] sm:$0xff]  ;;  %v18948_v45 = vsub.s32 0, %v18928_v35  ;;  %v18960_v53 = vsub.s32 1, %v18928_v35 }
  0xf2   :  { %5196 = vmatpush2.bf16.msra.mxu0 %v14902_v41  ;;  %v14425_v41 = vcombine.high %v80_v31, %v96_v33  ;;  %v14904_v59 = vcombine.low %v560_v38, %v576_v39  ;;  %v400_v31 = vld [vmem:[%s24327_s23 + $0xa28] sm:$0xff] }
  0xf3   :  { %v18862_v49 = vpop.f32.mrf.mxu1  ;;  %5253 = vmatmul.mubr.bf16.vlgmr.msra.gmra.mxu1 %v18252_v16  ;;  %5197 = vmatprep.subr.bf16.mxu0 %v14871_v43  ;;  %v18945_v43 = vld [vmem:[%s24329_s29] sm:$0xff]  ;;  %v656_v33 = vld [vmem:[%s24327_s23 + $0x1228] sm:$0xff] }
  0xf4   :  { %5262 = vmatpush1.bf16.msra.mxu1 %v14648_v42  ;;  %5293 = vmatprep.mubr.bf16.mxu1 %v18222_v62  ;;  %v832_v42 = vld [vmem:[%s24327_s23 + $0x17a8] sm:$0xff]  ;;  %v854_v56 = vrot.slane %v18945_v43, %v18948_v45  ;;  %v858_v1 = vrot.slane %v18945_v43, %v18960_v53 }
  0xf5   :  { %v18874_v57 = vpop.f32.mrf.mxu1  ;;  %5263 = vmatprep.subr.bf16.mxu1 %v14617_v47  ;;  %v15161_v47 = vcombine.high %v816_v40, %v832_v42 }
  0xf6   :  { %5198 = vmatpush2.bf16.msra.mxu0 %v14870_v50  ;;  %v544_v50 = vld [vmem:[%s24327_s23 + $0xea8] sm:$0xff] }
  0xf7   :  { %v4930_v60 = vpop.f32.mrf.mxu1  ;;  %5199 = vmatprep.subr.bf16.mxu0 %v14839_v52  ;;  %v14905_v52 = vcombine.high %v560_v38, %v576_v39  ;;  %v14873_v2 = vcombine.high %v528_v48, %v544_v50 }
  0xf8   :  { %5264 = vmatpush1.bf16.msra.mxu1 %v14616_v51  ;;  %v784_v51 = vld [vmem:[%s24327_s23 + $0x1628] sm:$0xff] }
  0xf9   :  { %v4931_v4 = vpop.f32.mrf.mxu1  ;;  %5265 = vmatprep.subr.bf16.mxu1 %v14585_v58  ;;  %v15160_v58 = vcombine.low %v816_v40, %v832_v42  ;;  %v15129_v60 = vcombine.high %v784_v51, %v800_v55  ;;  %v15128_v6 = vcombine.low %v784_v51, %v800_v55  ;;  %v368_v40 = vld [vmem:[%s24327_s23 + $0x928] sm:$0xff] }
  0xfa   :  { %5200 = vmatpush2.bf16.msra.mxu0 %v14838_v61  ;;  %v496_v61 = vld [vmem:[%s24327_s23 + $0xd28] sm:$0xff] }
  0xfb   :  { %5201 = vmatprep.subr.bf16.mxu0 %v14807_v0  ;;  %v752_v0 = vld [vmem:[%s24327_s23 + $0x1528] sm:$0xff] }
  0xfc   :  { %5266 = vmatpush1.bf16.msra.mxu1 %v14584_v63  ;;  %v512_v63 = vld [vmem:[%s24327_s23 + $0xda8] sm:$0xff]  ;;  %v15096_v22 = vcombine.low %v752_v0, %v768_v3 }
  0xfd   :  { %5267 = vmatprep.subr.bf16.mxu1 %v14553_v5  ;;  %v624_v42 = vld [vmem:[%s24327_s23 + $0x1128] sm:$0xff] }
  0xfe   :  { %5202 = vmatpush2.bf16.msra.mxu0 %v14806_v7  ;;  %v336_v51 = vld [vmem:[%s24327_s23 + $0x828] sm:$0xff] }
  0xff   :  { %5203 = vmatprep.subr.bf16.mxu0 %v14775_v10  ;;  %v15097_v10 = vcombine.high %v752_v0, %v768_v3  ;;  %v592_v55 = vld [vmem:[%s24327_s23 + $0x1028] sm:$0xff]  ;;  %v321_v0 = vld [vmem:[%s24327_s23 + $0x7b0] sm:$0xff] }
 0x100   :  { %5268 = vmatpush1.bf16.msra.mxu1 %v14552_v9  ;;  %v14872_v9 = vcombine.low %v528_v48, %v544_v50  ;;  %v833_v3 = vld [vmem:[%s24327_s23 + $0x17b0] sm:$0xff] }
 0x101   :  { %5269 = vmatprep.subr.bf16.mxu1 %v14521_v14 }
 0x102   :  { %5204 = vmatpush2.bf16.msra.mxu0 %v14774_v17  ;;  %v14841_v17 = vcombine.high %v496_v61, %v512_v63 }
 0x103   :  { %5205 = vmatprep.subr.bf16.mxu0 %v14743_v20 }
 0x104   :  { %5270 = vmatpush1.bf16.msra.mxu1 %v14520_v18  ;;  %v736_v18 = vld [vmem:[%s24327_s23 + $0x14a8] sm:$0xff] }
 0x105   :  { %5271 = vmatprep.subr.bf16.mxu1 %v14489_v24  ;;  %v14840_v24 = vcombine.low %v496_v61, %v512_v63  ;;  %v15065_v25 = vcombine.high %v720_v13, %v736_v18  ;;  %v305_v63 = vld [vmem:[%s24327_s23 + $0x730] sm:$0xff] }
 0x106   :  { %5206 = vmatpush2.bf16.msra.mxu0 %v14742_v54  ;;  %v448_v54 = vld [vmem:[%s24327_s23 + $0xba8] sm:$0xff] }
 0x107   :  { %5207 = vmatprep.subr.bf16.mxu0 %v14711_v28  ;;  %v15064_v28 = vcombine.low %v720_v13, %v736_v18  ;;  %v801_v13 = vld [vmem:[%s24327_s23 + $0x16b0] sm:$0xff] }
 0x108   :  { %5272 = vmatpush1.bf16.msra.mxu1 %v14488_v27  ;;  %v704_v27 = vld [vmem:[%s24327_s23 + $0x13a8] sm:$0xff] }
 0x109   :  { %5273 = vmatprep.subr.bf16.mxu1 %v14457_v32  ;;  %v416_v32 = vld [vmem:[%s24327_s23 + $0xaa8] sm:$0xff] }
 0x10a   :  { %5208 = vmatpush2.bf16.msra.mxu0 %v14710_v34  ;;  %v14744_v48 = vcombine.low %v400_v31, %v416_v32 }
 0x10b   :  { %5209 = vmatprep.subr.bf16.mxu0 %v14679_v37 }
 0x10c   :  { %5274 = vmatpush1.bf16.msra.mxu1 %v14456_v36  ;;  %v672_v36 = vld [vmem:[%s24327_s23 + $0x12a8] sm:$0xff] }
 0x10d   :  { %5275 = vmatprep.subr.bf16.mxu1 %v14425_v41  ;;  %v15001_v39 = vcombine.high %v656_v33, %v672_v36  ;;  %v384_v41 = vld [vmem:[%s24327_s23 + $0x9a8] sm:$0xff] }
 0x10e   :  { %5210 = vmatpush2.bf16.msra.mxu0 %v14678_v44  ;;  %v14745_v44 = vcombine.high %v400_v31, %v416_v32  ;;  %v15130_v31 = vcombine.low %v785_v11, %v801_v13 }
 0x10f   :  { %5302 = vmatprep.subr.bf16.mxu0 %v15161_v47  ;;  %v15000_v47 = vcombine.low %v656_v33, %v672_v36  ;;  %v209_v33 = vld [vmem:[%s24327_s23 + $0x430] sm:$0xff] }
 0x110   :  { %5276 = vmatpush1.bf16.msra.mxu1 %v14424_v46  ;;  %v640_v46 = vld [vmem:[%s24327_s23 + $0x11a8] sm:$0xff] }
 0x111   :  { %5277 = vmatprep.subr.bf16.mxu1 %v14905_v52  ;;  %v4885_v4 = vpop.f32.mrf.mxu0  ;;  %5212 = vmatmul.mubr.bf16.vlgmr.msra.gmra.mxu0 %v18348_v19  ;;  %v14969_v50 = vcombine.high %v624_v42, %v640_v46  ;;  %v352_v52 = vld [vmem:[%s24327_s23 + $0x8a8] sm:$0xff] }
 0x112   :  { %v4886_v5 = vadd.f32 %v4885_v4, %v854_v56  ;;  %5303 = vmatpush1.bf16.msra.mxu0 %v15160_v58  ;;  %5334 = vmatprep.mubr.bf16.mxu0 %v18008_v8  ;;  %v14713_v56 = vcombine.high %v368_v40, %v384_v41  ;;  %v608_v58 = vld [vmem:[%s24327_s23 + $0x10a8] sm:$0xff] }
 0x113   :  { %v4887_v7 = vpop.f32.mrf.mxu0  ;;  %5304 = vmatprep.subr.bf16.mxu0 %v15129_v60  ;;  %v14712_v60 = vcombine.low %v368_v40, %v384_v41  ;;  %v14937_v61 = vcombine.high %v592_v55, %v608_v58  ;;  %v14936_v4 = vcombine.low %v592_v55, %v608_v58  ;;  %v689_v55 = vld [vmem:[%s24327_s23 + $0x1330] sm:$0xff] }
 0x114   :  { %5278 = vmatpush2.bf16.msra.mxu1 %v14904_v59  ;;  %v18993_v14 = vadd.f32 %v18862_v49, %v4886_v5  ;;  %v4888_v15 = vadd.f32 %v4887_v7, %v858_v1  ;;  %v432_v49 = vld [vmem:[%s24327_s23 + $0xb28] sm:$0xff]  ;;  %v14968_v59 = vcombine.low %v624_v42, %v640_v46  ;;  %v817_v1 = vld [vmem:[%s24327_s23 + $0x1730] sm:$0xff]  ;;  %v14680_v5 = vcombine.low %v336_v51, %v352_v52 }
 0x115   :  { %5279 = vmatprep.subr.bf16.mxu1 %v14873_v2  ;;  %v4889_v20 = vpop.f32.mrf.mxu0  ;;  %v14777_v34 = vcombine.high %v432_v49, %v448_v54  ;;  %v14776_v38 = vcombine.low %v432_v49, %v448_v54  ;;  %v14681_v2 = vcombine.high %v336_v51, %v352_v52  ;;  %v14651_v7 = vcombine.high %v305_v63, %v321_v0  ;;  %v769_v54 = vld [vmem:[%s24327_s23 + $0x15b0] sm:$0xff] }
 0x116   :  { %v18999_v21 = vadd.f32 %v18874_v57, %v4888_v15  ;;  %5305 = vmatpush1.bf16.msra.mxu0 %v15128_v6  ;;  %v688_v57 = vld [vmem:[%s24327_s23 + $0x1328] sm:$0xff]  ;;  %v19062_v6 = vsub.s32 2, %v18928_v35  ;;  %v15163_v12 = vcombine.high %v817_v1, %v833_v3  ;;  %v19077_v15 = vsub.s32 3, %v18928_v35  ;;  %v177_v51 = vld [vmem:[%s24327_s23 + $0x330] sm:$0xff] }
 0x117   :  { %v4890_v23 = vpop.f32.mrf.mxu0  ;;  %5306 = vmatprep.subr.bf16.mxu0 %v15097_v10  ;;  %v15033_v30 = vcombine.high %v688_v57, %v704_v27  ;;  %v15032_v37 = vcombine.low %v688_v57, %v704_v27  ;;  %v289_v10 = vld [vmem:[%s24327_s23 + $0x6b0] sm:$0xff]  ;;  %v15162_v20 = vcombine.low %v817_v1, %v833_v3  ;;  %v15131_v49 = vcombine.high %v785_v11, %v801_v13 }
 0x118   :  { %5280 = vmatpush2.bf16.msra.mxu1 %v14872_v9  ;;  %v273_v9 = vld [vmem:[%s24327_s23 + $0x630] sm:$0xff]  ;;  %v862_v18 = vrot.slane %v18945_v43, %v19062_v6 }
 0x119   :  { %5281 = vmatprep.subr.bf16.mxu1 %v14841_v17  ;;  %v14650_v17 = vcombine.low %v305_v63, %v321_v0  ;;  %v241_v23 = vld [vmem:[%s24327_s23 + $0x530] sm:$0xff] }
 0x11a   :  { %5307 = vmatpush1.bf16.msra.mxu0 %v15096_v22  ;;  %v14619_v22 = vcombine.high %v273_v9, %v289_v10  ;;  %v193_v52 = vld [vmem:[%s24327_s23 + $0x3b0] sm:$0xff] }
 0x11b   :  { %5308 = vmatprep.subr.bf16.mxu0 %v15065_v25  ;;  %v753_v25 = vld [vmem:[%s24327_s23 + $0x1530] sm:$0xff]  ;;  %v14523_v63 = vcombine.high %v177_v51, %v193_v52 }
 0x11c   :  { %5282 = vmatpush2.bf16.msra.mxu1 %v14840_v24  ;;  %v257_v24 = vld [vmem:[%s24327_s23 + $0x5b0] sm:$0xff] }
 0x11d   :  { %5283 = vmatprep.subr.bf16.mxu1 %v14809_v26  ;;  %v866_v26 = vrot.slane %v18945_v43, %v19077_v15  ;;  %v14587_v32 = vcombine.high %v241_v23, %v257_v24  ;;  %v721_v43 = vld [vmem:[%s24327_s23 + $0x1430] sm:$0xff] }
 0x11e   :  { %5309 = vmatpush1.bf16.msra.mxu0 %v15064_v28  ;;  %v14618_v28 = vcombine.low %v273_v9, %v289_v10  ;;  %v145_v0 = vld [vmem:[%s24327_s23 + $0x230] sm:$0xff] }
 0x11f   :  { %5310 = vmatprep.subr.bf16.mxu0 %v15033_v30  ;;  %v161_v1 = vld [vmem:[%s24327_s23 + $0x2b0] sm:$0xff] }
 0x120   :  { %5284 = vmatpush2.bf16.msra.mxu1 %v14808_v29  ;;  %v14491_v9 = vcombine.high %v145_v0, %v161_v1  ;;  %v113_v10 = vld [vmem:[%s24327_s23 + $0x130] sm:$0xff] }
 0x121   :  { %5285 = vmatprep.subr.bf16.mxu1 %v14777_v34  ;;  %v225_v34 = vld [vmem:[%s24327_s23 + $0x4b0] sm:$0xff] }
 0x122   :  { %5311 = vmatpush1.bf16.msra.mxu0 %v15032_v37  ;;  %v15099_v37 = vcombine.high %v753_v25, %v769_v54  ;;  %v129_v11 = vld [vmem:[%s24327_s23 + $0x1b0] sm:$0xff] }
 0x123   :  { %5312 = vmatprep.subr.bf16.mxu0 %v15001_v39 }
 0x124   :  { %5286 = vmatpush2.bf16.msra.mxu1 %v14776_v38  ;;  %v737_v38 = vld [vmem:[%s24327_s23 + $0x14b0] sm:$0xff] }
 0x125   :  { %5287 = vmatprep.subr.bf16.mxu1 %v14745_v44  ;;  %v14586_v44 = vcombine.low %v241_v23, %v257_v24  ;;  %v15067_v58 = vcombine.high %v721_v43, %v737_v38  ;;  %v81_v23 = vld [vmem:[%s24327_s23 + $0x30] sm:$0xff] }
 0x126   :  { %5313 = vmatpush1.bf16.msra.mxu0 %v15000_v47  ;;  %v97_v24 = vld [vmem:[%s24327_s23 + $0xb0] sm:$0xff] }
 0x127   :  { %5314 = vmatprep.subr.bf16.mxu0 %v14969_v50  ;;  %v14555_v50 = vcombine.high %v209_v33, %v225_v34 }
 0x128   :  { %5288 = vmatpush2.bf16.msra.mxu1 %v14744_v48  ;;  %v15098_v48 = vcombine.low %v753_v25, %v769_v54  ;;  %v593_v25 = vld [vmem:[%s24327_s23 + $0x1030] sm:$0xff] }
 0x129   :  { %5289 = vmatprep.subr.bf16.mxu1 %v14713_v56  ;;  %v609_v54 = vld [vmem:[%s24327_s23 + $0x10b0] sm:$0xff] }
 0x12a   :  { %5315 = vmatpush1.bf16.msra.mxu0 %v14968_v59  ;;  %v705_v59 = vld [vmem:[%s24327_s23 + $0x13b0] sm:$0xff] }
 0x12b   :  { %5316 = vmatprep.subr.bf16.mxu0 %v14937_v61  ;;  %v15066_v61 = vcombine.low %v721_v43, %v737_v38  ;;  %v15035_v3 = vcombine.high %v689_v55, %v705_v59  ;;  %v274_v38 = vld [vmem:[%s24327_s23 + $0x638] sm:$0xff] }
 0x12c   :  { %5290 = vmatpush2.bf16.msra.mxu1 %v14712_v60  ;;  %v14554_v60 = vcombine.low %v209_v33, %v225_v34  ;;  %v14426_v33 = vcombine.low %v81_v23, %v97_v24  ;;  %v14938_v34 = vcombine.low %v593_v25, %v609_v54 }
 0x12d   :  { %5291 = vmatprep.subr.bf16.mxu1 %v14681_v2  ;;  %v657_v2 = vld [vmem:[%s24327_s23 + $0x1230] sm:$0xff] }
 0x12e   :  { %5317 = vmatpush1.bf16.msra.mxu0 %v14936_v4  ;;  %v673_v4 = vld [vmem:[%s24327_s23 + $0x12b0] sm:$0xff] }
 0x12f   :  { %5343 = vmatprep.subr.bf16.mxu0 %v14651_v7  ;;  %v15034_v7 = vcombine.low %v689_v55, %v705_v59  ;;  %v15003_v13 = vcombine.high %v657_v2, %v673_v4  ;;  %v258_v55 = vld [vmem:[%s24327_s23 + $0x5b8] sm:$0xff] }
 0x130   :  { %5292 = vmatpush2.bf16.msra.mxu1 %v14680_v5  ;;  %v14522_v5 = vcombine.low %v177_v51, %v193_v52  ;;  %v242_v52 = vld [vmem:[%s24327_s23 + $0x538] sm:$0xff] }
 0x131   :  { %5384 = vmatprep.subr.bf16.mxu1 %v15163_v12  ;;  %v5008_v57 = vpop.f32.mrf.mxu0  ;;  %5335 = vmatmul.mubr.bf16.vlgmr.msra.gmra.mxu0 %v18252_v16  ;;  %v625_v12 = vld [vmem:[%s24327_s23 + $0x1130] sm:$0xff] }
 0x132   :  { %5344 = vmatpush1.bf16.msra.mxu0 %v14650_v17  ;;  %5375 = vmatprep.mubr.bf16.mxu0 %v18222_v62  ;;  %v641_v17 = vld [vmem:[%s24327_s23 + $0x11b0] sm:$0xff] }
 0x133   :  { %v4967_v27 = vpop.f32.mrf.mxu1  ;;  %5294 = vmatmul.mubr.bf16.vlgmr.msra.gmra.mxu1 %v18348_v19  ;;  %v5010_v30 = vpop.f32.mrf.mxu0  ;;  %5345 = vmatprep.subr.bf16.mxu0 %v14619_v22  ;;  %v14459_v22 = vcombine.high %v113_v10, %v129_v11 }
 0x134   :  { %v4968_v29 = vadd.f32 %v4967_v27, %v862_v18  ;;  %5385 = vmatpush1.bf16.msra.mxu1 %v15162_v20  ;;  %5416 = vmatprep.mubr.bf16.mxu1 %v18008_v8  ;;  %v14490_v18 = vcombine.low %v145_v0, %v161_v1  ;;  %v15002_v20 = vcombine.low %v657_v2, %v673_v4  ;;  %v210_v0 = vld [vmem:[%s24327_s23 + $0x438] sm:$0xff] }
 0x135   :  { %v4969_v36 = vpop.f32.mrf.mxu1  ;;  %5386 = vmatprep.subr.bf16.mxu1 %v15131_v49  ;;  %v5012_v41 = vpop.f32.mrf.mxu0  ;;  %v14971_v49 = vcombine.high %v625_v12, %v641_v17  ;;  %v14427_v27 = vcombine.high %v81_v23, %v97_v24  ;;  %v14589_v2 = vcombine.high %v242_v52, %v258_v55  ;;  %v401_v24 = vld [vmem:[%s24327_s23 + $0xa30] sm:$0xff] }
 0x136   :  { %v19110_v39 = vadd.f32 %v5008_v57, %v4968_v29  ;;  %v4970_v40 = vadd.f32 %v4969_v36, %v866_v26  ;;  %5346 = vmatpush1.bf16.msra.mxu0 %v14618_v28  ;;  %v14458_v57 = vcombine.low %v113_v10, %v129_v11  ;;  %v14970_v26 = vcombine.low %v625_v12, %v641_v17  ;;  %v561_v28 = vld [vmem:[%s24327_s23 + $0xf30] sm:$0xff]  ;;  %v290_v41 = vld [vmem:[%s24327_s23 + $0x6b8] sm:$0xff] }
 0x137   :  { %v4971_v42 = vpop.f32.mrf.mxu1  ;;  %v5013_v47 = vpop.f32.mrf.mxu0  ;;  %5347 = vmatprep.subr.bf16.mxu0 %v14587_v32  ;;  %v577_v29 = vld [vmem:[%s24327_s23 + $0xfb0] sm:$0xff]  ;;  %v322_v32 = vld [vmem:[%s24327_s23 + $0x7b8] sm:$0xff]  ;;  %v14621_v51 = vcombine.high %v274_v38, %v290_v41  ;;  %v14620_v59 = vcombine.low %v274_v38, %v290_v41 }
 0x138   :  { %v19113_v46 = vadd.f32 %v5010_v30, %v4970_v40  ;;  %5387 = vmatpush1.bf16.msra.mxu1 %v15130_v31  ;;  %v306_v30 = vld [vmem:[%s24327_s23 + $0x738] sm:$0xff]  ;;  %v14939_v31 = vcombine.high %v593_v25, %v609_v54  ;;  %v14907_v43 = vcombine.high %v561_v28, %v577_v29  ;;  %v529_v36 = vld [vmem:[%s24327_s23 + $0xe30] sm:$0xff]  ;;  %v14906_v42 = vcombine.low %v561_v28, %v577_v29 }
 0x139   :  { %v4972_v56 = vpop.f32.mrf.mxu1  ;;  %5388 = vmatprep.subr.bf16.mxu1 %v15099_v37  ;;  %v545_v37 = vld [vmem:[%s24327_s23 + $0xeb0] sm:$0xff]  ;;  %v14653_v40 = vcombine.high %v306_v30, %v322_v32  ;;  %v178_v12 = vld [vmem:[%s24327_s23 + $0x338] sm:$0xff] }
 0x13a   :  { %5348 = vmatpush1.bf16.msra.mxu0 %v14586_v44  ;;  %v14652_v44 = vcombine.low %v306_v30, %v322_v32  ;;  %v14875_v47 = vcombine.high %v529_v36, %v545_v37  ;;  %v433_v10 = vld [vmem:[%s24327_s23 + $0xb30] sm:$0xff] }
 0x13b   :  { %5349 = vmatprep.subr.bf16.mxu0 %v14555_v50  ;;  %v513_v50 = vld [vmem:[%s24327_s23 + $0xdb0] sm:$0xff] }
 0x13c   :  { %5389 = vmatpush1.bf16.msra.mxu1 %v15098_v48  ;;  %v497_v48 = vld [vmem:[%s24327_s23 + $0xd30] sm:$0xff] }
 0x13d   :  { %5390 = vmatprep.subr.bf16.mxu1 %v15067_v58  ;;  %v14874_v58 = vcombine.low %v529_v36, %v545_v37  ;;  %v449_v11 = vld [vmem:[%s24327_s23 + $0xbb0] sm:$0xff] }
 0x13e   :  { %5350 = vmatpush1.bf16.msra.mxu0 %v14554_v60  ;;  %v14843_v60 = vcombine.high %v497_v48, %v513_v50  ;;  %v14779_v23 = vcombine.high %v433_v10, %v449_v11  ;;  %v417_v25 = vld [vmem:[%s24327_s23 + $0xab0] sm:$0xff] }
 0x13f   :  { %5351 = vmatprep.subr.bf16.mxu0 %v14523_v63  ;;  %v481_v63 = vld [vmem:[%s24327_s23 + $0xcb0] sm:$0xff]  ;;  %v14747_v28 = vcombine.high %v401_v24, %v417_v25 }
 0x140   :  { %5391 = vmatpush1.bf16.msra.mxu1 %v15066_v61  ;;  %v465_v61 = vld [vmem:[%s24327_s23 + $0xc30] sm:$0xff] }
 0x141   :  { %5392 = vmatprep.subr.bf16.mxu1 %v15035_v3  ;;  %v226_v3 = vld [vmem:[%s24327_s23 + $0x4b8] sm:$0xff]  ;;  %v369_v29 = vld [vmem:[%s24327_s23 + $0x930] sm:$0xff] }
 0x142   :  { %5352 = vmatpush1.bf16.msra.mxu0 %v14522_v5  ;;  %v14842_v5 = vcombine.low %v497_v48, %v513_v50  ;;  %v14557_v17 = vcombine.high %v210_v0, %v226_v3  ;;  %v385_v30 = vld [vmem:[%s24327_s23 + $0x9b0] sm:$0xff]  ;;  %v562_v50 = vld [vmem:[%s24327_s23 + $0xf38] sm:$0xff] }
 0x143   :  { %5353 = vmatprep.subr.bf16.mxu0 %v14491_v9  ;;  %v14811_v9 = vcombine.high %v465_v61, %v481_v63  ;;  %v14715_v36 = vcombine.high %v369_v29, %v385_v30  ;;  %v337_v37 = vld [vmem:[%s24327_s23 + $0x830] sm:$0xff] }
 0x144   :  { %5393 = vmatpush1.bf16.msra.mxu1 %v15034_v7  ;;  %v14588_v7 = vcombine.low %v242_v52, %v258_v55  ;;  %v353_v38 = vld [vmem:[%s24327_s23 + $0x8b0] sm:$0xff]  ;;  %v818_v52 = vld [vmem:[%s24327_s23 + $0x1738] sm:$0xff] }
 0x145   :  { %5394 = vmatprep.subr.bf16.mxu1 %v15003_v13  ;;  %v14683_v48 = vcombine.high %v337_v37, %v353_v38 }
 0x146   :  { %5354 = vmatpush1.bf16.msra.mxu0 %v14490_v18  ;;  %v194_v18 = vld [vmem:[%s24327_s23 + $0x3b8] sm:$0xff] }
 0x147   :  { %5355 = vmatprep.subr.bf16.mxu0 %v14459_v22  ;;  %v14556_v22 = vcombine.low %v210_v0, %v226_v3  ;;  %v14525_v54 = vcombine.high %v178_v12, %v194_v18  ;;  %v530_v0 = vld [vmem:[%s24327_s23 + $0xe38] sm:$0xff] }
 0x148   :  { %5395 = vmatpush1.bf16.msra.mxu1 %v15002_v20  ;;  %v14810_v20 = vcombine.low %v465_v61, %v481_v63  ;;  %v786_v3 = vld [vmem:[%s24327_s23 + $0x1638] sm:$0xff] }
 0x149   :  { %5396 = vmatprep.subr.bf16.mxu1 %v14971_v49  ;;  %v146_v49 = vld [vmem:[%s24327_s23 + $0x238] sm:$0xff] }
 0x14a   :  { %5356 = vmatpush1.bf16.msra.mxu0 %v14458_v57  ;;  %v162_v57 = vld [vmem:[%s24327_s23 + $0x2b8] sm:$0xff] }
 0x14b   :  { %5357 = vmatprep.subr.bf16.mxu0 %v14427_v27  ;;  %v14524_v27 = vcombine.low %v178_v12, %v194_v18  ;;  %v14493_v32 = vcombine.high %v146_v49, %v162_v57  ;;  %v514_v18 = vld [vmem:[%s24327_s23 + $0xdb8] sm:$0xff] }
 0x14c   :  { %5397 = vmatpush1.bf16.msra.mxu1 %v14970_v26  ;;  %v14778_v26 = vcombine.low %v433_v10, %v449_v11 }
 0x14d   :  { %5398 = vmatprep.subr.bf16.mxu1 %v14939_v31  ;;  %v114_v31 = vld [vmem:[%s24327_s23 + $0x138] sm:$0xff] }
 0x14e   :  { %5358 = vmatpush1.bf16.msra.mxu0 %v14426_v33  ;;  %v130_v33 = vld [vmem:[%s24327_s23 + $0x1b8] sm:$0xff] }
 0x14f   :  { %5359 = vmatprep.subr.bf16.mxu0 %v14907_v43  ;;  %v14492_v43 = vcombine.low %v146_v49, %v162_v57  ;;  %v14461_v41 = vcombine.high %v114_v31, %v130_v33 }
 0x150   :  { %5399 = vmatpush1.bf16.msra.mxu1 %v14938_v34  ;;  %v14746_v34 = vcombine.low %v401_v24, %v417_v25  ;;  %v770_v24 = vld [vmem:[%s24327_s23 + $0x15b8] sm:$0xff] }
 0x151   :  { %5425 = vmatprep.subr.bf16.mxu1 %v14653_v40  ;;  %v82_v40 = vld [vmem:[%s24327_s23 + $0x38] sm:$0xff] }
 0x152   :  { %5360 = vmatpush2.bf16.msra.mxu0 %v14906_v42  ;;  %v98_v42 = vld [vmem:[%s24327_s23 + $0xb8] sm:$0xff] }
 0x153   :  { %v19199_v56 = vpop.f32.mrf.mxu1  ;;  %5417 = vmatmul.mubr.bf16.vlgmr.msra.gmra.mxu1 %v18252_v16  ;;  %5361 = vmatprep.subr.bf16.mxu0 %v14875_v47  ;;  %v14460_v47 = vcombine.low %v114_v31, %v130_v33  ;;  %v14429_v55 = vcombine.high %v82_v40, %v98_v42  ;;  %v14428_v61 = vcombine.low %v82_v40, %v98_v42  ;;  %v450_v42 = vld [vmem:[%s24327_s23 + $0xbb8] sm:$0xff] }
 0x154   :  { %5426 = vmatpush1.bf16.msra.mxu1 %v14652_v44  ;;  %5457 = vmatprep.mubr.bf16.mxu1 %v18222_v62  ;;  %v14714_v44 = vcombine.low %v369_v29, %v385_v30  ;;  %v482_v29 = vld [vmem:[%s24327_s23 + $0xcb8] sm:$0xff] }
 0x155   :  { %v19211_v1 = vpop.f32.mrf.mxu1  ;;  %5427 = vmatprep.subr.bf16.mxu1 %v14621_v51  ;;  %v578_v51 = vld [vmem:[%s24327_s23 + $0xfb8] sm:$0xff] }
 0x156   :  { %5362 = vmatpush2.bf16.msra.mxu0 %v14874_v58  ;;  %v834_v58 = vld [vmem:[%s24327_s23 + $0x17b8] sm:$0xff]  ;;  %v14908_v12 = vcombine.low %v562_v50, %v578_v51 }
 0x157   :  { %v5094_v4 = vpop.f32.mrf.mxu1  ;;  %5363 = vmatprep.subr.bf16.mxu0 %v14843_v60  ;;  %v19278_v60 = vsub.s32 4, %v18928_v35  ;;  %v15165_v63 = vcombine.high %v818_v52, %v834_v58  ;;  %v15164_v11 = vcombine.low %v818_v52, %v834_v58  ;;  %v722_v30 = vld [vmem:[%s24327_s23 + $0x1438] sm:$0xff] }
 0x158   :  { %5428 = vmatpush1.bf16.msra.mxu1 %v14620_v59  ;;  %v14682_v59 = vcombine.low %v337_v37, %v353_v38  ;;  %v14909_v4 = vcombine.high %v562_v50, %v578_v51  ;;  %v402_v52 = vld [vmem:[%s24327_s23 + $0xa38] sm:$0xff] }
 0x159   :  { %v5095_v13 = vpop.f32.mrf.mxu1  ;;  %5429 = vmatprep.subr.bf16.mxu1 %v14589_v2  ;;  %v546_v2 = vld [vmem:[%s24327_s23 + $0xeb8] sm:$0xff] }
 0x15a   :  { %5364 = vmatpush2.bf16.msra.mxu0 %v14842_v5  ;;  %v19290_v5 = vsub.s32 5, %v18928_v35  ;;  %v658_v58 = vld [vmem:[%s24327_s23 + $0x1238] sm:$0xff] }
 0x15b   :  { %5365 = vmatprep.subr.bf16.mxu0 %v14811_v9  ;;  %v19298_v9 = vld [vmem:[%s24329_s29] sm:$0xff] }
 0x15c   :  { %5430 = vmatpush1.bf16.msra.mxu1 %v14588_v7  ;;  %v802_v7 = vld [vmem:[%s24327_s23 + $0x16b8] sm:$0xff]  ;;  %v870_v10 = vrot.slane %v19298_v9, %v19278_v60 }
 0x15d   :  { %5431 = vmatprep.subr.bf16.mxu1 %v14557_v17  ;;  %v15133_v13 = vcombine.high %v786_v3, %v802_v7  ;;  %v498_v17 = vld [vmem:[%s24327_s23 + $0xd38] sm:$0xff] }
 0x15e   :  { %5366 = vmatpush2.bf16.msra.mxu0 %v14810_v20  ;;  %v754_v20 = vld [vmem:[%s24327_s23 + $0x1538] sm:$0xff]  ;;  %v14845_v33 = vcombine.high %v498_v17, %v514_v18  ;;  %v14844_v40 = vcombine.low %v498_v17, %v514_v18 }
 0x15f   :  { %5367 = vmatprep.subr.bf16.mxu0 %v14779_v23  ;;  %v14877_v23 = vcombine.high %v530_v0, %v546_v2  ;;  %v15100_v37 = vcombine.low %v754_v20, %v770_v24  ;;  %v338_v18 = vld [vmem:[%s24327_s23 + $0x838] sm:$0xff] }
 0x160   :  { %5432 = vmatpush1.bf16.msra.mxu1 %v14556_v22  ;;  %v874_v22 = vrot.slane %v19298_v9, %v19290_v5 }
 0x161   :  { %5433 = vmatprep.subr.bf16.mxu1 %v14525_v54  ;;  %v15132_v54 = vcombine.low %v786_v3, %v802_v7  ;;  %v370_v3 = vld [vmem:[%s24327_s23 + $0x938] sm:$0xff] }
 0x162   :  { %5368 = vmatpush2.bf16.msra.mxu0 %v14778_v26  ;;  %v14876_v26 = vcombine.low %v530_v0, %v546_v2  ;;  %v626_v7 = vld [vmem:[%s24327_s23 + $0x1138] sm:$0xff] }
 0x163   :  { %5369 = vmatprep.subr.bf16.mxu0 %v14747_v28  ;;  %v466_v28 = vld [vmem:[%s24327_s23 + $0xc38] sm:$0xff] }
 0x164   :  { %5434 = vmatpush1.bf16.msra.mxu1 %v14524_v27  ;;  %v15101_v27 = vcombine.high %v754_v20, %v770_v24  ;;  %v14812_v50 = vcombine.low %v466_v28, %v482_v29  ;;  %v354_v20 = vld [vmem:[%s24327_s23 + $0x8b8] sm:$0xff] }
 0x165   :  { %5435 = vmatprep.subr.bf16.mxu1 %v14493_v32  ;;  %v610_v24 = vld [vmem:[%s24327_s23 + $0x10b8] sm:$0xff] }
 0x166   :  { %5370 = vmatpush2.bf16.msra.mxu0 %v14746_v34  ;;  %v738_v34 = vld [vmem:[%s24327_s23 + $0x14b8] sm:$0xff] }
 0x167   :  { %5371 = vmatprep.subr.bf16.mxu0 %v14715_v36 }
 0x168   :  { %5436 = vmatpush1.bf16.msra.mxu1 %v14492_v43 }
 0x169   :  { %5437 = vmatprep.subr.bf16.mxu1 %v14461_v41  ;;  %v15069_v41 = vcombine.high %v722_v30, %v738_v34 }
 0x16a   :  { %5372 = vmatpush2.bf16.msra.mxu0 %v14714_v44  ;;  %v14813_v44 = vcombine.high %v466_v28, %v482_v29  ;;  %v14685_v28 = vcombine.high %v338_v18, %v354_v20  ;;  %v835_v29 = vld [vmem:[%s24327_s23 + $0x17c0] sm:$0xff] }
 0x16b   :  { %5373 = vmatprep.subr.bf16.mxu0 %v14683_v48  ;;  %v15068_v48 = vcombine.low %v722_v30, %v738_v34 }
 0x16c   :  { %5438 = vmatpush1.bf16.msra.mxu1 %v14460_v47  ;;  %v706_v47 = vld [vmem:[%s24327_s23 + $0x13b8] sm:$0xff] }
 0x16d   :  { %5439 = vmatprep.subr.bf16.mxu1 %v14429_v55  ;;  %v418_v55 = vld [vmem:[%s24327_s23 + $0xab8] sm:$0xff] }
 0x16e   :  { %5374 = vmatpush2.bf16.msra.mxu0 %v14682_v59 }
 0x16f   :  { %5466 = vmatprep.subr.bf16.mxu0 %v15165_v63 }
 0x170   :  { %5440 = vmatpush1.bf16.msra.mxu1 %v14428_v61  ;;  %v674_v61 = vld [vmem:[%s24327_s23 + $0x12b8] sm:$0xff] }
 0x171   :  { %5441 = vmatprep.subr.bf16.mxu1 %v14909_v4  ;;  %v5049_v25 = vpop.f32.mrf.mxu0  ;;  %5376 = vmatmul.mubr.bf16.vlgmr.msra.gmra.mxu0 %v18348_v19  ;;  %v15005_v2 = vcombine.high %v658_v58, %v674_v61  ;;  %v386_v4 = vld [vmem:[%s24327_s23 + $0x9b8] sm:$0xff] }
 0x172   :  { %v5050_v49 = vadd.f32 %v5049_v25, %v870_v10  ;;  %5467 = vmatpush1.bf16.msra.mxu0 %v15164_v11  ;;  %5498 = vmatprep.mubr.bf16.mxu0 %v18008_v8  ;;  %v14749_v10 = vcombine.high %v402_v52, %v418_v55  ;;  %v642_v11 = vld [vmem:[%s24327_s23 + $0x11b8] sm:$0xff] }
 0x173   :  { %v5051_v57 = vpop.f32.mrf.mxu0  ;;  %5468 = vmatprep.subr.bf16.mxu0 %v15133_v13  ;;  %v14748_v13 = vcombine.low %v402_v52, %v418_v55  ;;  %v14973_v17 = vcombine.high %v626_v7, %v642_v11  ;;  %v14972_v25 = vcombine.low %v626_v7, %v642_v11  ;;  %v771_v52 = vld [vmem:[%s24327_s23 + $0x15c0] sm:$0xff] }
 0x174   :  { %5442 = vmatpush2.bf16.msra.mxu1 %v14908_v12  ;;  %v19328_v31 = vadd.f32 %v19199_v56, %v5050_v49  ;;  %v5052_v32 = vadd.f32 %v5051_v57, %v874_v22  ;;  %v434_v56 = vld [vmem:[%s24327_s23 + $0xb38] sm:$0xff]  ;;  %v15004_v12 = vcombine.low %v658_v58, %v674_v61  ;;  %v14716_v49 = vcombine.low %v370_v3, %v386_v4  ;;  %v307_v57 = vld [vmem:[%s24327_s23 + $0x740] sm:$0xff] }
 0x175   :  { %5443 = vmatprep.subr.bf16.mxu1 %v14877_v23  ;;  %v5053_v43 = vpop.f32.mrf.mxu0  ;;  %v14781_v59 = vcombine.high %v434_v56, %v450_v42  ;;  %v14780_v0 = vcombine.low %v434_v56, %v450_v42  ;;  %v594_v22 = vld [vmem:[%s24327_s23 + $0x1038] sm:$0xff]  ;;  %v14717_v23 = vcombine.high %v370_v3, %v386_v4  ;;  %v19412_v56 = vsub.s32 7, %v18928_v35  ;;  %v211_v4 = vld [vmem:[%s24327_s23 + $0x440] sm:$0xff] }
 0x176   :  { %v19334_v36 = vadd.f32 %v19211_v1, %v5052_v32  ;;  %5469 = vmatpush1.bf16.msra.mxu0 %v15132_v54  ;;  %v690_v1 = vld [vmem:[%s24327_s23 + $0x1338] sm:$0xff]  ;;  %v14941_v54 = vcombine.high %v594_v22, %v610_v24  ;;  %v14940_v30 = vcombine.low %v594_v22, %v610_v24  ;;  %v14684_v32 = vcombine.low %v338_v18, %v354_v20  ;;  %v275_v43 = vld [vmem:[%s24327_s23 + $0x640] sm:$0xff] }
 0x177   :  { %v5054_v38 = vpop.f32.mrf.mxu0  ;;  %5470 = vmatprep.subr.bf16.mxu0 %v15101_v27  ;;  %v15037_v51 = vcombine.high %v690_v1, %v706_v47  ;;  %v15036_v63 = vcombine.low %v690_v1, %v706_v47  ;;  %v819_v27 = vld [vmem:[%s24327_s23 + $0x1740] sm:$0xff]  ;;  %v882_v58 = vrot.slane %v19298_v9, %v19412_v56 }
 0x178   :  { %5444 = vmatpush2.bf16.msra.mxu1 %v14876_v26  ;;  %v323_v26 = vld [vmem:[%s24327_s23 + $0x7c0] sm:$0xff] }
 0x179   :  { %5445 = vmatprep.subr.bf16.mxu1 %v14845_v33  ;;  %v19397_v33 = vsub.s32 6, %v18928_v35  ;;  %v14655_v34 = vcombine.high %v307_v57, %v323_v26  ;;  %v787_v38 = vld [vmem:[%s24327_s23 + $0x1640] sm:$0xff]  ;;  %v14654_v42 = vcombine.low %v307_v57, %v323_v26 }
 0x17a   :  { %5471 = vmatpush1.bf16.msra.mxu0 %v15100_v37  ;;  %v291_v37 = vld [vmem:[%s24327_s23 + $0x6c0] sm:$0xff] }
 0x17b   :  { %5472 = vmatprep.subr.bf16.mxu0 %v15069_v41  ;;  %v803_v41 = vld [vmem:[%s24327_s23 + $0x16c0] sm:$0xff]  ;;  %v878_v1 = vrot.slane %v19298_v9, %v19397_v33  ;;  %v14623_v47 = vcombine.high %v275_v43, %v291_v37  ;;  %v14622_v61 = vcombine.low %v275_v43, %v291_v37 }
 0x17c   :  { %5446 = vmatpush2.bf16.msra.mxu1 %v14844_v40  ;;  %v15167_v40 = vcombine.high %v819_v27, %v835_v29  ;;  %v755_v35 = vld [vmem:[%s24327_s23 + $0x1540] sm:$0xff] }
 0x17d   :  { %5447 = vmatprep.subr.bf16.mxu1 %v14813_v44  ;;  %v15166_v44 = vcombine.low %v819_v27, %v835_v29  ;;  %v227_v7 = vld [vmem:[%s24327_s23 + $0x4c0] sm:$0xff]  ;;  %v15103_v11 = vcombine.high %v755_v35, %v771_v52 }
 0x17e   :  { %5473 = vmatpush1.bf16.msra.mxu0 %v15068_v48  ;;  %v243_v48 = vld [vmem:[%s24327_s23 + $0x540] sm:$0xff] }
 0x17f   :  { %5474 = vmatprep.subr.bf16.mxu0 %v15037_v51  ;;  %v15135_v51 = vcombine.high %v787_v38, %v803_v41  ;;  %v723_v9 = vld [vmem:[%s24327_s23 + $0x1440] sm:$0xff] }
 0x180   :  { %5448 = vmatpush2.bf16.msra.mxu1 %v14812_v50  ;;  %v259_v50 = vld [vmem:[%s24327_s23 + $0x5c0] sm:$0xff] }
 0x181   :  { %5449 = vmatprep.subr.bf16.mxu1 %v14781_v59  ;;  %v14591_v3 = vcombine.high %v243_v48, %v259_v50  ;;  %v14590_v22 = vcombine.low %v243_v48, %v259_v50  ;;  %v195_v57 = vld [vmem:[%s24327_s23 + $0x3c0] sm:$0xff] }
 0x182   :  { %5475 = vmatpush1.bf16.msra.mxu0 %v15036_v63  ;;  %v691_v26 = vld [vmem:[%s24327_s23 + $0x1340] sm:$0xff] }
 0x183   :  { %5476 = vmatprep.subr.bf16.mxu0 %v15005_v2  ;;  %v15134_v2 = vcombine.low %v787_v38, %v803_v41  ;;  %v707_v29 = vld [vmem:[%s24327_s23 + $0x13c0] sm:$0xff] }
 0x184   :  { %5450 = vmatpush2.bf16.msra.mxu1 %v14780_v0  ;;  %v147_v43 = vld [vmem:[%s24327_s23 + $0x240] sm:$0xff] }
 0x185   :  { %5451 = vmatprep.subr.bf16.mxu1 %v14749_v10  ;;  %v163_v37 = vld [vmem:[%s24327_s23 + $0x2c0] sm:$0xff] }
 0x186   :  { %5477 = vmatpush1.bf16.msra.mxu0 %v15004_v12  ;;  %v739_v12 = vld [vmem:[%s24327_s23 + $0x14c0] sm:$0xff] }
 0x187   :  { %5478 = vmatprep.subr.bf16.mxu0 %v14973_v17  ;;  %v659_v38 = vld [vmem:[%s24327_s23 + $0x1240] sm:$0xff] }
 0x188   :  { %5452 = vmatpush2.bf16.msra.mxu1 %v14748_v13  ;;  %v675_v41 = vld [vmem:[%s24327_s23 + $0x12c0] sm:$0xff] }
 0x189   :  { %5453 = vmatprep.subr.bf16.mxu1 %v14717_v23  ;;  %v131_v48 = vld [vmem:[%s24327_s23 + $0x1c0] sm:$0xff] }
 0x18a   :  { %5479 = vmatpush1.bf16.msra.mxu0 %v14972_v25  ;;  %v15102_v25 = vcombine.low %v755_v35, %v771_v52  ;;  %v627_v50 = vld [vmem:[%s24327_s23 + $0x1140] sm:$0xff]  ;;  %v15007_v35 = vcombine.high %v659_v38, %v675_v41  ;;  %v14494_v52 = vcombine.low %v147_v43, %v163_v37 }
 0x18b   :  { %5480 = vmatprep.subr.bf16.mxu0 %v14941_v54  ;;  %v179_v54 = vld [vmem:[%s24327_s23 + $0x340] sm:$0xff] }
 0x18c   :  { %5454 = vmatpush2.bf16.msra.mxu1 %v14716_v49  ;;  %v14559_v49 = vcombine.high %v211_v4, %v227_v7 }
 0x18d   :  { %5455 = vmatprep.subr.bf16.mxu1 %v14685_v28  ;;  %v15071_v28 = vcombine.high %v723_v9, %v739_v12 }
 0x18e   :  { %5481 = vmatpush1.bf16.msra.mxu0 %v14940_v30  ;;  %v14558_v30 = vcombine.low %v211_v4, %v227_v7 }
 0x18f   :  { %5507 = vmatprep.subr.bf16.mxu0 %v14655_v34  ;;  %v14527_v34 = vcombine.high %v179_v54, %v195_v57 }
 0x190   :  { %5456 = vmatpush2.bf16.msra.mxu1 %v14684_v32  ;;  %v15070_v32 = vcombine.low %v723_v9, %v739_v12  ;;  %v563_v9 = vld [vmem:[%s24327_s23 + $0xf40] sm:$0xff] }
 0x191   :  { %5548 = vmatprep.subr.bf16.mxu1 %v15167_v40  ;;  %v5172_v55 = vpop.f32.mrf.mxu0  ;;  %5499 = vmatmul.mubr.bf16.vlgmr.msra.gmra.mxu0 %v18252_v16  ;;  %v15039_v40 = vcombine.high %v691_v26, %v707_v29 }
 0x192   :  { %5508 = vmatpush1.bf16.msra.mxu0 %v14654_v42  ;;  %5539 = vmatprep.mubr.bf16.mxu0 %v18222_v62  ;;  %v14526_v42 = vcombine.low %v179_v54, %v195_v57  ;;  %v292_v57 = vld [vmem:[%s24327_s23 + $0x6c8] sm:$0xff] }
 0x193   :  { %v5131_v59 = vpop.f32.mrf.mxu1  ;;  %5458 = vmatmul.mubr.bf16.vlgmr.msra.gmra.mxu1 %v18348_v19  ;;  %v5174_v0 = vpop.f32.mrf.mxu0  ;;  %5509 = vmatprep.subr.bf16.mxu0 %v14623_v47  ;;  %v115_v47 = vld [vmem:[%s24327_s23 + $0x140] sm:$0xff] }
 0x194   :  { %v5132_v63 = vadd.f32 %v5131_v59, %v878_v1  ;;  %5549 = vmatpush1.bf16.msra.mxu1 %v15166_v44  ;;  %5580 = vmatprep.mubr.bf16.mxu1 %v18008_v8  ;;  %v15038_v1 = vcombine.low %v691_v26, %v707_v29  ;;  %v14495_v44 = vcombine.high %v147_v43, %v163_v37  ;;  %v83_v59 = vld [vmem:[%s24327_s23 + $0x40] sm:$0xff]  ;;  %v260_v43 = vld [vmem:[%s24327_s23 + $0x5c8] sm:$0xff] }
 0x195   :  { %v5133_v10 = vpop.f32.mrf.mxu1  ;;  %5550 = vmatprep.subr.bf16.mxu1 %v15135_v51  ;;  %v5176_v18 = vpop.f32.mrf.mxu0  ;;  %v643_v51 = vld [vmem:[%s24327_s23 + $0x11c0] sm:$0xff] }
 0x196   :  { %v19445_v13 = vadd.f32 %v5172_v55, %v5132_v63  ;;  %v5134_v17 = vadd.f32 %v5133_v10, %v882_v58  ;;  %5510 = vmatpush1.bf16.msra.mxu0 %v14622_v61  ;;  %v15006_v55 = vcombine.low %v659_v38, %v675_v41  ;;  %v14463_v58 = vcombine.high %v115_v47, %v131_v48  ;;  %v99_v61 = vld [vmem:[%s24327_s23 + $0xc0] sm:$0xff] }
 0x197   :  { %v5135_v20 = vpop.f32.mrf.mxu1  ;;  %v5177_v24 = vpop.f32.mrf.mxu0  ;;  %5511 = vmatprep.subr.bf16.mxu0 %v14591_v3  ;;  %v595_v63 = vld [vmem:[%s24327_s23 + $0x1040] sm:$0xff]  ;;  %v14462_v3 = vcombine.low %v115_v47, %v131_v48  ;;  %v14974_v4 = vcombine.low %v627_v50, %v643_v51  ;;  %v14431_v7 = vcombine.high %v83_v59, %v99_v61  ;;  %v14430_v18 = vcombine.low %v83_v59, %v99_v61  ;;  %v180_v61 = vld [vmem:[%s24327_s23 + $0x348] sm:$0xff] }
 0x198   :  { %v19448_v23 = vadd.f32 %v5174_v0, %v5134_v17  ;;  %5551 = vmatpush1.bf16.msra.mxu1 %v15134_v2  ;;  %v14975_v0 = vcombine.high %v627_v50, %v643_v51  ;;  %v611_v2 = vld [vmem:[%s24327_s23 + $0x10c0] sm:$0xff]  ;;  %v324_v17 = vld [vmem:[%s24327_s23 + $0x7c8] sm:$0xff] }
 0x199   :  { %v5136_v27 = vpop.f32.mrf.mxu1  ;;  %5552 = vmatprep.subr.bf16.mxu1 %v15103_v11  ;;  %v579_v10 = vld [vmem:[%s24327_s23 + $0xfc0] sm:$0xff]  ;;  %v308_v11 = vld [vmem:[%s24327_s23 + $0x748] sm:$0xff]  ;;  %v14943_v12 = vcombine.high %v595_v63, %v611_v2  ;;  %v14942_v20 = vcombine.low %v595_v63, %v611_v2 }
 0x19a   :  { %5512 = vmatpush1.bf16.msra.mxu0 %v14590_v22  ;;  %v14911_v22 = vcombine.high %v563_v9, %v579_v10  ;;  %v531_v24 = vld [vmem:[%s24327_s23 + $0xe40] sm:$0xff]  ;;  %v14657_v54 = vcombine.high %v308_v11, %v324_v17  ;;  %v14910_v26 = vcombine.low %v563_v9, %v579_v10  ;;  %v14656_v27 = vcombine.low %v308_v11, %v324_v17  ;;  %v228_v50 = vld [vmem:[%s24327_s23 + $0x4c8] sm:$0xff] }
 0x19b   :  { %5513 = vmatprep.subr.bf16.mxu0 %v14559_v49  ;;  %v276_v49 = vld [vmem:[%s24327_s23 + $0x648] sm:$0xff]  ;;  %v499_v29 = vld [vmem:[%s24327_s23 + $0xd40] sm:$0xff] }
 0x19c   :  { %5553 = vmatpush1.bf16.msra.mxu1 %v15102_v25  ;;  %v547_v25 = vld [vmem:[%s24327_s23 + $0xec0] sm:$0xff]  ;;  %v196_v2 = vld [vmem:[%s24327_s23 + $0x3c8] sm:$0xff] }
 0x19d   :  { %5554 = vmatprep.subr.bf16.mxu1 %v15071_v28  ;;  %v14879_v28 = vcombine.high %v531_v24, %v547_v25  ;;  %v14878_v38 = vcombine.low %v531_v24, %v547_v25  ;;  %v451_v59 = vld [vmem:[%s24327_s23 + $0xbc0] sm:$0xff]  ;;  %v148_v11 = vld [vmem:[%s24327_s23 + $0x248] sm:$0xff] }
 0x19e   :  { %5514 = vmatpush1.bf16.msra.mxu0 %v14558_v30  ;;  %v515_v30 = vld [vmem:[%s24327_s23 + $0xdc0] sm:$0xff]  ;;  %v164_v17 = vld [vmem:[%s24327_s23 + $0x2c8] sm:$0xff] }
 0x19f   :  { %5515 = vmatprep.subr.bf16.mxu0 %v14527_v34  ;;  %v14625_v34 = vcombine.high %v276_v49, %v292_v57  ;;  %v14847_v41 = vcombine.high %v499_v29, %v515_v30  ;;  %v14846_v51 = vcombine.low %v499_v29, %v515_v30  ;;  %v403_v9 = vld [vmem:[%s24327_s23 + $0xa40] sm:$0xff] }
 0x1a0   :  { %5555 = vmatpush1.bf16.msra.mxu1 %v15070_v32  ;;  %v244_v32 = vld [vmem:[%s24327_s23 + $0x548] sm:$0xff]  ;;  %v419_v10 = vld [vmem:[%s24327_s23 + $0xac0] sm:$0xff] }
 0x1a1   :  { %5556 = vmatprep.subr.bf16.mxu1 %v15039_v40  ;;  %v14624_v40 = vcombine.low %v276_v49, %v292_v57  ;;  %v14593_v48 = vcombine.high %v244_v32, %v260_v43  ;;  %v371_v24 = vld [vmem:[%s24327_s23 + $0x940] sm:$0xff]  ;;  %v116_v49 = vld [vmem:[%s24327_s23 + $0x148] sm:$0xff] }
 0x1a2   :  { %5516 = vmatpush1.bf16.msra.mxu0 %v14526_v42  ;;  %v467_v42 = vld [vmem:[%s24327_s23 + $0xc40] sm:$0xff]  ;;  %v132_v57 = vld [vmem:[%s24327_s23 + $0x1c8] sm:$0xff] }
 0x1a3   :  { %5517 = vmatprep.subr.bf16.mxu0 %v14495_v44  ;;  %v212_v44 = vld [vmem:[%s24327_s23 + $0x448] sm:$0xff]  ;;  %v387_v25 = vld [vmem:[%s24327_s23 + $0x9c0] sm:$0xff] }
 0x1a4   :  { %5557 = vmatpush1.bf16.msra.mxu1 %v15038_v1  ;;  %v483_v1 = vld [vmem:[%s24327_s23 + $0xcc0] sm:$0xff] }
 0x1a5   :  { %5558 = vmatprep.subr.bf16.mxu1 %v15007_v35  ;;  %v339_v29 = vld [vmem:[%s24327_s23 + $0x840] sm:$0xff] }
 0x1a6   :  { %5518 = vmatpush1.bf16.msra.mxu0 %v14494_v52  ;;  %v14592_v52 = vcombine.low %v244_v32, %v260_v43  ;;  %v355_v30 = vld [vmem:[%s24327_s23 + $0x8c0] sm:$0xff]  ;;  %v84_v32 = vld [vmem:[%s24327_s23 + $0x48] sm:$0xff] }
 0x1a7   :  { %5519 = vmatprep.subr.bf16.mxu0 %v14463_v58  ;;  %v435_v58 = vld [vmem:[%s24327_s23 + $0xb40] sm:$0xff]  ;;  %v100_v43 = vld [vmem:[%s24327_s23 + $0xc8] sm:$0xff] }
 0x1a8   :  { %5559 = vmatpush1.bf16.msra.mxu1 %v15006_v55  ;;  %v14815_v55 = vcombine.high %v467_v42, %v483_v1 }
 0x1a9   :  { %5560 = vmatprep.subr.bf16.mxu1 %v14975_v0  ;;  %v14561_v0 = vcombine.high %v212_v44, %v228_v50 }
 0x1aa   :  { %5520 = vmatpush1.bf16.msra.mxu0 %v14462_v3  ;;  %v14814_v3 = vcombine.low %v467_v42, %v483_v1  ;;  %v564_v42 = vld [vmem:[%s24327_s23 + $0xf48] sm:$0xff] }
 0x1ab   :  { %5521 = vmatprep.subr.bf16.mxu0 %v14431_v7  ;;  %v14783_v7 = vcombine.high %v435_v58, %v451_v59  ;;  %v580_v1 = vld [vmem:[%s24327_s23 + $0xfc8] sm:$0xff] }
 0x1ac   :  { %5561 = vmatpush1.bf16.msra.mxu1 %v14974_v4  ;;  %v14560_v4 = vcombine.low %v212_v44, %v228_v50  ;;  %v820_v44 = vld [vmem:[%s24327_s23 + $0x1748] sm:$0xff] }
 0x1ad   :  { %5562 = vmatprep.subr.bf16.mxu1 %v14943_v12  ;;  %v14529_v12 = vcombine.high %v180_v61, %v196_v2  ;;  %v836_v50 = vld [vmem:[%s24327_s23 + $0x17c8] sm:$0xff] }
 0x1ae   :  { %5522 = vmatpush1.bf16.msra.mxu0 %v14430_v18  ;;  %v14782_v18 = vcombine.low %v435_v58, %v451_v59  ;;  %v532_v58 = vld [vmem:[%s24327_s23 + $0xe48] sm:$0xff] }
 0x1af   :  { %5523 = vmatprep.subr.bf16.mxu0 %v14911_v22  ;;  %v14751_v22 = vcombine.high %v403_v9, %v419_v10  ;;  %v548_v59 = vld [vmem:[%s24327_s23 + $0xec8] sm:$0xff] }
 0x1b0   :  { %5563 = vmatpush1.bf16.msra.mxu1 %v14942_v20  ;;  %v14528_v20 = vcombine.low %v180_v61, %v196_v2  ;;  %v788_v61 = vld [vmem:[%s24327_s23 + $0x1648] sm:$0xff] }
 0x1b1   :  { %5589 = vmatprep.subr.bf16.mxu1 %v14657_v54  ;;  %v14497_v54 = vcombine.high %v148_v11, %v164_v17 }
 0x1b2   :  { %5524 = vmatpush2.bf16.msra.mxu0 %v14910_v26  ;;  %v14750_v26 = vcombine.low %v403_v9, %v419_v10  ;;  %v500_v9 = vld [vmem:[%s24327_s23 + $0xd48] sm:$0xff] }
 0x1b3   :  { %v19534_v37 = vpop.f32.mrf.mxu1  ;;  %5581 = vmatmul.mubr.bf16.vlgmr.msra.gmra.mxu1 %v18252_v16  ;;  %5525 = vmatprep.subr.bf16.mxu0 %v14879_v28  ;;  %v14719_v28 = vcombine.high %v371_v24, %v387_v25  ;;  %v516_v10 = vld [vmem:[%s24327_s23 + $0xdc8] sm:$0xff] }
 0x1b4   :  { %5590 = vmatpush1.bf16.msra.mxu1 %v14656_v27  ;;  %5621 = vmatprep.mubr.bf16.mxu1 %v18222_v62  ;;  %v14496_v27 = vcombine.low %v148_v11, %v164_v17  ;;  %v756_v11 = vld [vmem:[%s24327_s23 + $0x1548] sm:$0xff]  ;;  %v14881_v17 = vcombine.high %v532_v58, %v548_v59 }
 0x1b5   :  { %v19546_v47 = vpop.f32.mrf.mxu1  ;;  %5591 = vmatprep.subr.bf16.mxu1 %v14625_v34  ;;  %v14465_v34 = vcombine.high %v116_v49, %v132_v57 }
 0x1b6   :  { %5526 = vmatpush2.bf16.msra.mxu0 %v14878_v38  ;;  %v14718_v38 = vcombine.low %v371_v24, %v387_v25 }
 0x1b7   :  { %v5258_v35 = vpop.f32.mrf.mxu1  ;;  %5527 = vmatprep.subr.bf16.mxu0 %v14847_v41  ;;  %v14687_v41 = vcombine.high %v339_v29, %v355_v30 }
 0x1b8   :  { %5592 = vmatpush1.bf16.msra.mxu1 %v14624_v40  ;;  %v14464_v40 = vcombine.low %v116_v49, %v132_v57  ;;  %v19615_v35 = vld [vmem:[%s24329_s29 + $0x8] sm:$0xff]  ;;  %v14880_v49 = vcombine.low %v532_v58, %v548_v59 }
 0x1b9   :  { %v5259_v63 = vpop.f32.mrf.mxu1  ;;  %5593 = vmatprep.subr.bf16.mxu1 %v14593_v48  ;;  %v14433_v48 = vcombine.high %v84_v32, %v100_v43  ;;  %v886_v2 = vrot.slane %v19615_v35, %v18948_v45  ;;  %v468_v57 = vld [vmem:[%s24327_s23 + $0xc48] sm:$0xff] }
 0x1ba   :  { %5528 = vmatpush2.bf16.msra.mxu0 %v14846_v51  ;;  %v14686_v51 = vcombine.low %v339_v29, %v355_v30  ;;  %v14913_v63 = vcombine.high %v564_v42, %v580_v1  ;;  %v14849_v30 = vcombine.high %v500_v9, %v516_v10  ;;  %v420_v58 = vld [vmem:[%s24327_s23 + $0xac8] sm:$0xff] }
 0x1bb   :  { %5529 = vmatprep.subr.bf16.mxu0 %v14815_v55  ;;  %v15169_v55 = vcombine.high %v820_v44, %v836_v50  ;;  %v660_v59 = vld [vmem:[%s24327_s23 + $0x1248] sm:$0xff] }
 0x1bc   :  { %5594 = vmatpush1.bf16.msra.mxu1 %v14592_v52  ;;  %v14432_v52 = vcombine.low %v84_v32, %v100_v43  ;;  %v740_v32 = vld [vmem:[%s24327_s23 + $0x14c8] sm:$0xff] }
 0x1bd   :  { %5595 = vmatprep.subr.bf16.mxu1 %v14561_v0  ;;  %v804_v0 = vld [vmem:[%s24327_s23 + $0x16c8] sm:$0xff] }
 0x1be   :  { %5530 = vmatpush2.bf16.msra.mxu0 %v14814_v3  ;;  %v15168_v3 = vcombine.low %v820_v44, %v836_v50  ;;  %v15136_v24 = vcombine.low %v788_v61, %v804_v0 }
 0x1bf   :  { %5531 = vmatprep.subr.bf16.mxu0 %v14783_v7  ;;  %v15137_v7 = vcombine.high %v788_v61, %v804_v0 }
 0x1c0   :  { %5596 = vmatpush1.bf16.msra.mxu1 %v14560_v4  ;;  %v14912_v4 = vcombine.low %v564_v42, %v580_v1  ;;  %v452_v1 = vld [vmem:[%s24327_s23 + $0xbc8] sm:$0xff] }
 0x1c1   :  { %5597 = vmatprep.subr.bf16.mxu1 %v14529_v12  ;;  %v890_v12 = vrot.slane %v19615_v35, %v18960_v53 }
 0x1c2   :  { %5532 = vmatpush2.bf16.msra.mxu0 %v14782_v18  ;;  %v772_v18 = vld [vmem:[%s24327_s23 + $0x15c8] sm:$0xff] }
 0x1c3   :  { %5533 = vmatprep.subr.bf16.mxu0 %v14751_v22 }
 0x1c4   :  { %5598 = vmatpush1.bf16.msra.mxu1 %v14528_v20 }
 0x1c5   :  { %5599 = vmatprep.subr.bf16.mxu1 %v14497_v54  ;;  %v15105_v54 = vcombine.high %v756_v11, %v772_v18 }
 0x1c6   :  { %5534 = vmatpush2.bf16.msra.mxu0 %v14750_v26  ;;  %v484_v26 = vld [vmem:[%s24327_s23 + $0xcc8] sm:$0xff] }
 0x1c7   :  { %5535 = vmatprep.subr.bf16.mxu0 %v14719_v28  ;;  %v14817_v44 = vcombine.high %v468_v57, %v484_v26 }
 0x1c8   :  { %5600 = vmatpush1.bf16.msra.mxu1 %v14496_v27  ;;  %v724_v27 = vld [vmem:[%s24327_s23 + $0x1448] sm:$0xff] }
 0x1c9   :  { %5601 = vmatprep.subr.bf16.mxu1 %v14465_v34  ;;  %v15073_v42 = vcombine.high %v724_v27, %v740_v32  ;;  %v15072_v50 = vcombine.low %v724_v27, %v740_v32  ;;  %v309_v27 = vld [vmem:[%s24327_s23 + $0x750] sm:$0xff] }
 0x1ca   :  { %5536 = vmatpush2.bf16.msra.mxu0 %v14718_v38  ;;  %v15104_v38 = vcombine.low %v756_v11, %v772_v18  ;;  %v644_v11 = vld [vmem:[%s24327_s23 + $0x11c8] sm:$0xff] }
 0x1cb   :  { %5537 = vmatprep.subr.bf16.mxu0 %v14687_v41  ;;  %v14848_v41 = vcombine.low %v500_v9, %v516_v10  ;;  %v628_v9 = vld [vmem:[%s24327_s23 + $0x1148] sm:$0xff] }
 0x1cc   :  { %5602 = vmatpush1.bf16.msra.mxu1 %v14464_v40  ;;  %v14977_v18 = vcombine.high %v628_v9, %v644_v11 }
 0x1cd   :  { %5603 = vmatprep.subr.bf16.mxu1 %v14433_v48  ;;  %v708_v48 = vld [vmem:[%s24327_s23 + $0x13c8] sm:$0xff] }
 0x1ce   :  { %5538 = vmatpush2.bf16.msra.mxu0 %v14686_v51  ;;  %v14816_v51 = vcombine.low %v468_v57, %v484_v26 }
 0x1cf   :  { %5630 = vmatprep.subr.bf16.mxu0 %v15169_v55  ;;  %v404_v55 = vld [vmem:[%s24327_s23 + $0xa48] sm:$0xff] }
 0x1d0   :  { %5604 = vmatpush1.bf16.msra.mxu1 %v14432_v52  ;;  %v14753_v10 = vcombine.high %v404_v55, %v420_v58 }
 0x1d1   :  { %5605 = vmatprep.subr.bf16.mxu1 %v14913_v63  ;;  %v5213_v20 = vpop.f32.mrf.mxu0  ;;  %5540 = vmatmul.mubr.bf16.vlgmr.msra.gmra.mxu0 %v18348_v19  ;;  %v676_v63 = vld [vmem:[%s24327_s23 + $0x12c8] sm:$0xff] }
 0x1d2   :  { %v5214_v22 = vadd.f32 %v5213_v20, %v886_v2  ;;  %5631 = vmatpush1.bf16.msra.mxu0 %v15168_v3  ;;  %5662 = vmatprep.mubr.bf16.mxu0 %v18008_v8  ;;  %v15009_v3 = vcombine.high %v660_v59, %v676_v63  ;;  %v340_v20 = vld [vmem:[%s24327_s23 + $0x848] sm:$0xff] }
 0x1d3   :  { %v5215_v25 = vpop.f32.mrf.mxu0  ;;  %5632 = vmatprep.subr.bf16.mxu0 %v15137_v7  ;;  %v388_v7 = vld [vmem:[%s24327_s23 + $0x9c8] sm:$0xff] }
 0x1d4   :  { %5606 = vmatpush2.bf16.msra.mxu1 %v14912_v4  ;;  %v19657_v28 = vadd.f32 %v19534_v37, %v5214_v22  ;;  %v5216_v29 = vadd.f32 %v5215_v25, %v890_v12  ;;  %v436_v37 = vld [vmem:[%s24327_s23 + $0xb48] sm:$0xff]  ;;  %v15008_v12 = vcombine.low %v660_v59, %v676_v63  ;;  %v757_v59 = vld [vmem:[%s24327_s23 + $0x1550] sm:$0xff] }
 0x1d5   :  { %5607 = vmatprep.subr.bf16.mxu1 %v14881_v17  ;;  %v5217_v34 = vpop.f32.mrf.mxu0  ;;  %v14785_v61 = vcombine.high %v436_v37, %v452_v1  ;;  %v14784_v2 = vcombine.low %v436_v37, %v452_v1  ;;  %v372_v4 = vld [vmem:[%s24327_s23 + $0x948] sm:$0xff]  ;;  %v14752_v17 = vcombine.low %v404_v55, %v420_v58  ;;  %v293_v37 = vld [vmem:[%s24327_s23 + $0x6d0] sm:$0xff] }
 0x1d6   :  { %v19663_v43 = vadd.f32 %v19546_v47, %v5216_v29  ;;  %5633 = vmatpush1.bf16.msra.mxu0 %v15136_v24  ;;  %v692_v47 = vld [vmem:[%s24327_s23 + $0x1348] sm:$0xff]  ;;  %v14721_v25 = vcombine.high %v372_v4, %v388_v7  ;;  %v14720_v57 = vcombine.low %v372_v4, %v388_v7  ;;  %v325_v29 = vld [vmem:[%s24327_s23 + $0x7d0] sm:$0xff] }
 0x1d7   :  { %v5218_v40 = vpop.f32.mrf.mxu0  ;;  %5634 = vmatprep.subr.bf16.mxu0 %v15105_v54  ;;  %v15041_v52 = vcombine.high %v692_v47, %v708_v48  ;;  %v15040_v0 = vcombine.low %v692_v47, %v708_v48  ;;  %v356_v22 = vld [vmem:[%s24327_s23 + $0x8c8] sm:$0xff]  ;;  %v14976_v54 = vcombine.low %v628_v9, %v644_v11  ;;  %v837_v34 = vld [vmem:[%s24327_s23 + $0x17d0] sm:$0xff]  ;;  %v14658_v48 = vcombine.low %v309_v27, %v325_v29 }
 0x1d8   :  { %5608 = vmatpush2.bf16.msra.mxu1 %v14880_v49  ;;  %v596_v24 = vld [vmem:[%s24327_s23 + $0x1048] sm:$0xff]  ;;  %v14689_v32 = vcombine.high %v340_v20, %v356_v22  ;;  %v14688_v40 = vcombine.low %v340_v20, %v356_v22  ;;  %v789_v1 = vld [vmem:[%s24327_s23 + $0x1650] sm:$0xff] }
 0x1d9   :  { %5609 = vmatprep.subr.bf16.mxu1 %v14849_v30  ;;  %v612_v49 = vld [vmem:[%s24327_s23 + $0x10c8] sm:$0xff]  ;;  %v821_v30 = vld [vmem:[%s24327_s23 + $0x1750] sm:$0xff] }
 0x1da   :  { %5635 = vmatpush1.bf16.msra.mxu0 %v15104_v38  ;;  %v14945_v26 = vcombine.high %v596_v24, %v612_v49  ;;  %v14944_v38 = vcombine.low %v596_v24, %v612_v49  ;;  %v15171_v47 = vcombine.high %v821_v30, %v837_v34  ;;  %v245_v55 = vld [vmem:[%s24327_s23 + $0x550] sm:$0xff] }
 0x1db   :  { %5636 = vmatprep.subr.bf16.mxu0 %v15073_v42  ;;  %v277_v42 = vld [vmem:[%s24327_s23 + $0x650] sm:$0xff] }
 0x1dc   :  { %5610 = vmatpush2.bf16.msra.mxu1 %v14848_v41  ;;  %v14659_v41 = vcombine.high %v309_v27, %v325_v29  ;;  %v261_v58 = vld [vmem:[%s24327_s23 + $0x5d0] sm:$0xff]  ;;  %v14626_v4 = vcombine.low %v277_v42, %v293_v37 }
 0x1dd   :  { %5611 = vmatprep.subr.bf16.mxu1 %v14817_v44  ;;  %v805_v44 = vld [vmem:[%s24327_s23 + $0x16d0] sm:$0xff]  ;;  %v14595_v11 = vcombine.high %v245_v55, %v261_v58 }
 0x1de   :  { %5637 = vmatpush1.bf16.msra.mxu0 %v15072_v50  ;;  %v894_v50 = vrot.slane %v19615_v35, %v19062_v6  ;;  %v773_v63 = vld [vmem:[%s24327_s23 + $0x15d0] sm:$0xff] }
 0x1df   :  { %5638 = vmatprep.subr.bf16.mxu0 %v15041_v52  ;;  %v14627_v52 = vcombine.high %v277_v42, %v293_v37  ;;  %v15107_v20 = vcombine.high %v757_v59, %v773_v63  ;;  %v741_v22 = vld [vmem:[%s24327_s23 + $0x14d0] sm:$0xff]  ;;  %v15106_v29 = vcombine.low %v757_v59, %v773_v63 }
 0x1e0   :  { %5612 = vmatpush2.bf16.msra.mxu1 %v14816_v51  ;;  %v15170_v51 = vcombine.low %v821_v30, %v837_v34  ;;  %v197_v34 = vld [vmem:[%s24327_s23 + $0x3d0] sm:$0xff] }
 0x1e1   :  { %5613 = vmatprep.subr.bf16.mxu1 %v14785_v61  ;;  %v15139_v61 = vcombine.high %v789_v1, %v805_v44  ;;  %v709_v42 = vld [vmem:[%s24327_s23 + $0x13d0] sm:$0xff] }
 0x1e2   :  { %5639 = vmatpush1.bf16.msra.mxu0 %v15040_v0  ;;  %v133_v63 = vld [vmem:[%s24327_s23 + $0x1d0] sm:$0xff] }
 0x1e3   :  { %5640 = vmatprep.subr.bf16.mxu0 %v15009_v3 }
 0x1e4   :  { %5614 = vmatpush2.bf16.msra.mxu1 %v14784_v2  ;;  %v898_v2 = vrot.slane %v19615_v35, %v19077_v15  ;;  %v725_v35 = vld [vmem:[%s24327_s23 + $0x1450] sm:$0xff] }
 0x1e5   :  { %5615 = vmatprep.subr.bf16.mxu1 %v14753_v10  ;;  %v15138_v10 = vcombine.low %v789_v1, %v805_v44  ;;  %v15074_v1 = vcombine.low %v725_v35, %v741_v22  ;;  %v149_v44 = vld [vmem:[%s24327_s23 + $0x250] sm:$0xff] }
 0x1e6   :  { %5641 = vmatpush1.bf16.msra.mxu0 %v15008_v12  ;;  %v213_v12 = vld [vmem:[%s24327_s23 + $0x450] sm:$0xff] }
 0x1e7   :  { %5642 = vmatprep.subr.bf16.mxu0 %v14977_v18 }
 0x1e8   :  { %5616 = vmatpush2.bf16.msra.mxu1 %v14752_v17  ;;  %v229_v17 = vld [vmem:[%s24327_s23 + $0x4d0] sm:$0xff] }
 0x1e9   :  { %5617 = vmatprep.subr.bf16.mxu1 %v14721_v25  ;;  %v14563_v30 = vcombine.high %v213_v12, %v229_v17  ;;  %v14562_v37 = vcombine.low %v213_v12, %v229_v17  ;;  %v597_v12 = vld [vmem:[%s24327_s23 + $0x1050] sm:$0xff] }
 0x1ea   :  { %5643 = vmatpush1.bf16.msra.mxu0 %v14976_v54 }
 0x1eb   :  { %5644 = vmatprep.subr.bf16.mxu0 %v14945_v26 }
 0x1ec   :  { %5618 = vmatpush2.bf16.msra.mxu1 %v14720_v57  ;;  %v14594_v57 = vcombine.low %v245_v55, %v261_v58 }
 0x1ed   :  { %5619 = vmatprep.subr.bf16.mxu1 %v14689_v32  ;;  %v181_v32 = vld [vmem:[%s24327_s23 + $0x350] sm:$0xff] }
 0x1ee   :  { %5645 = vmatpush1.bf16.msra.mxu0 %v14944_v38  ;;  %v693_v38 = vld [vmem:[%s24327_s23 + $0x1350] sm:$0xff]  ;;  %v14530_v55 = vcombine.low %v181_v32, %v197_v34 }
 0x1ef   :  { %5671 = vmatprep.subr.bf16.mxu0 %v14659_v41  ;;  %v15075_v41 = vcombine.high %v725_v35, %v741_v22  ;;  %v15042_v58 = vcombine.low %v693_v38, %v709_v42  ;;  %v613_v35 = vld [vmem:[%s24327_s23 + $0x10d0] sm:$0xff] }
 0x1f0   :  { %5620 = vmatpush2.bf16.msra.mxu1 %v14688_v40 }
 0x1f1   :  { %5712 = vmatprep.subr.bf16.mxu1 %v15171_v47  ;;  %v5336_v0 = vpop.f32.mrf.mxu0  ;;  %5663 = vmatmul.mubr.bf16.vlgmr.msra.gmra.mxu0 %v18252_v16  ;;  %v14531_v47 = vcombine.high %v181_v32, %v197_v34  ;;  %v533_v34 = vld [vmem:[%s24327_s23 + $0xe50] sm:$0xff] }
 0x1f2   :  { %5672 = vmatpush1.bf16.msra.mxu0 %v14658_v48  ;;  %5703 = vmatprep.mubr.bf16.mxu0 %v18222_v62  ;;  %v165_v48 = vld [vmem:[%s24327_s23 + $0x2d0] sm:$0xff] }
 0x1f3   :  { %v5295_v3 = vpop.f32.mrf.mxu1  ;;  %5622 = vmatmul.mubr.bf16.vlgmr.msra.gmra.mxu1 %v18348_v19  ;;  %v5338_v9 = vpop.f32.mrf.mxu0  ;;  %5673 = vmatprep.subr.bf16.mxu0 %v14627_v52  ;;  %v677_v52 = vld [vmem:[%s24327_s23 + $0x12d0] sm:$0xff]  ;;  %v14499_v59 = vcombine.high %v149_v44, %v165_v48 }
 0x1f4   :  { %v5296_v7 = vadd.f32 %v5295_v3, %v894_v50  ;;  %5713 = vmatpush1.bf16.msra.mxu1 %v15170_v51  ;;  %5744 = vmatprep.mubr.bf16.mxu1 %v18008_v8  ;;  %v661_v50 = vld [vmem:[%s24327_s23 + $0x1250] sm:$0xff]  ;;  %v15043_v51 = vcombine.high %v693_v38, %v709_v42  ;;  %v294_v42 = vld [vmem:[%s24327_s23 + $0x6d8] sm:$0xff] }
 0x1f5   :  { %v5297_v18 = vpop.f32.mrf.mxu1  ;;  %5714 = vmatprep.subr.bf16.mxu1 %v15139_v61  ;;  %v5340_v49 = vpop.f32.mrf.mxu0  ;;  %v117_v61 = vld [vmem:[%s24327_s23 + $0x150] sm:$0xff] }
 0x1f6   :  { %v19768_v24 = vadd.f32 %v5336_v0, %v5296_v7  ;;  %v5298_v25 = vadd.f32 %v5297_v18, %v898_v2  ;;  %5674 = vmatpush1.bf16.msra.mxu0 %v14626_v4  ;;  %v629_v0 = vld [vmem:[%s24327_s23 + $0x1150] sm:$0xff]  ;;  %v15011_v2 = vcombine.high %v661_v50, %v677_v52  ;;  %v14498_v4 = vcombine.low %v149_v44, %v165_v48 }
 0x1f7   :  { %v5299_v54 = vpop.f32.mrf.mxu1  ;;  %v5341_v27 = vpop.f32.mrf.mxu0  ;;  %5675 = vmatprep.subr.bf16.mxu0 %v14595_v11  ;;  %v645_v3 = vld [vmem:[%s24327_s23 + $0x11d0] sm:$0xff]  ;;  %v15010_v7 = vcombine.low %v661_v50, %v677_v52  ;;  %v14466_v18 = vcombine.low %v117_v61, %v133_v63  ;;  %v262_v52 = vld [vmem:[%s24327_s23 + $0x5d8] sm:$0xff] }
 0x1f8   :  { %v19771_v26 = vadd.f32 %v5338_v9, %v5298_v25  ;;  %5715 = vmatpush1.bf16.msra.mxu1 %v15138_v10  ;;  %v14467_v9 = vcombine.high %v117_v61, %v133_v63  ;;  %v85_v10 = vld [vmem:[%s24327_s23 + $0x50] sm:$0xff]  ;;  %v14979_v17 = vcombine.high %v629_v0, %v645_v3  ;;  %v310_v54 = vld [vmem:[%s24327_s23 + $0x758] sm:$0xff] }
 0x1f9   :  { %v5300_v40 = vpop.f32.mrf.mxu1  ;;  %5716 = vmatprep.subr.bf16.mxu1 %v15107_v20  ;;  %v101_v11 = vld [vmem:[%s24327_s23 + $0xd0] sm:$0xff]  ;;  %v14978_v20 = vcombine.low %v629_v0, %v645_v3  ;;  %v326_v27 = vld [vmem:[%s24327_s23 + $0x7d8] sm:$0xff] }
 0x1fa   :  { %5676 = vmatpush1.bf16.msra.mxu0 %v14594_v57  ;;  %v14435_v22 = vcombine.high %v85_v10, %v101_v11  ;;  %v565_v25 = vld [vmem:[%s24327_s23 + $0xf50] sm:$0xff]  ;;  %v14947_v57 = vcombine.high %v597_v12, %v613_v35  ;;  %v278_v40 = vld [vmem:[%s24327_s23 + $0x658] sm:$0xff] }
 0x1fb   :  { %5677 = vmatprep.subr.bf16.mxu0 %v14563_v30  ;;  %v581_v49 = vld [vmem:[%s24327_s23 + $0xfd0] sm:$0xff]  ;;  %v14946_v30 = vcombine.low %v597_v12, %v613_v35  ;;  %v14629_v50 = vcombine.high %v278_v40, %v294_v42 }
 0x1fc   :  { %5717 = vmatpush1.bf16.msra.mxu1 %v15106_v29  ;;  %v14434_v29 = vcombine.low %v85_v10, %v101_v11  ;;  %v14915_v32 = vcombine.high %v565_v25, %v581_v49  ;;  %v549_v38 = vld [vmem:[%s24327_s23 + $0xed0] sm:$0xff] }
 0x1fd   :  { %5718 = vmatprep.subr.bf16.mxu1 %v15075_v41  ;;  %v14661_v41 = vcombine.high %v310_v54, %v326_v27  ;;  %v501_v44 = vld [vmem:[%s24327_s23 + $0xd50] sm:$0xff] }
 0x1fe   :  { %5678 = vmatpush1.bf16.msra.mxu0 %v14562_v37  ;;  %v14914_v37 = vcombine.low %v565_v25, %v581_v49  ;;  %v517_v48 = vld [vmem:[%s24327_s23 + $0xdd0] sm:$0xff]  ;;  %v198_v25 = vld [vmem:[%s24327_s23 + $0x3d8] sm:$0xff] }
 0x1ff   :  { %5679 = vmatprep.subr.bf16.mxu0 %v14531_v47  ;;  %v14883_v47 = vcombine.high %v533_v34, %v549_v38  ;;  %v14851_v61 = vcombine.high %v501_v44, %v517_v48  ;;  %v469_v63 = vld [vmem:[%s24327_s23 + $0xc50] sm:$0xff]  ;;  %v14850_v10 = vcombine.low %v501_v44, %v517_v48  ;;  %v134_v44 = vld [vmem:[%s24327_s23 + $0x1d8] sm:$0xff] }
 0x200   :  { %5719 = vmatpush1.bf16.msra.mxu1 %v15074_v1  ;;  %v14660_v1 = vcombine.low %v310_v54, %v326_v27  ;;  %v485_v0 = vld [vmem:[%s24327_s23 + $0xcd0] sm:$0xff] }
 0x201   :  { %5720 = vmatprep.subr.bf16.mxu1 %v15043_v51  ;;  %v246_v51 = vld [vmem:[%s24327_s23 + $0x558] sm:$0xff]  ;;  %v14819_v12 = vcombine.high %v469_v63, %v485_v0  ;;  %v453_v35 = vld [vmem:[%s24327_s23 + $0xbd0] sm:$0xff]  ;;  %v14818_v49 = vcombine.low %v469_v63, %v485_v0 }
 0x202   :  { %5680 = vmatpush1.bf16.msra.mxu0 %v14530_v55  ;;  %v14596_v11 = vcombine.low %v246_v51, %v262_v52  ;;  %v405_v27 = vld [vmem:[%s24327_s23 + $0xa50] sm:$0xff]  ;;  %v102_v63 = vld [vmem:[%s24327_s23 + $0xd8] sm:$0xff] }
 0x203   :  { %5681 = vmatprep.subr.bf16.mxu0 %v14499_v59  ;;  %v14628_v59 = vcombine.low %v278_v40, %v294_v42  ;;  %v373_v42 = vld [vmem:[%s24327_s23 + $0x950] sm:$0xff] }
 0x204   :  { %5721 = vmatpush1.bf16.msra.mxu1 %v15042_v58  ;;  %v14882_v58 = vcombine.low %v533_v34, %v549_v38  ;;  %v166_v34 = vld [vmem:[%s24327_s23 + $0x2d8] sm:$0xff] }
 0x205   :  { %5722 = vmatprep.subr.bf16.mxu1 %v15011_v2  ;;  %v214_v2 = vld [vmem:[%s24327_s23 + $0x458] sm:$0xff] }
 0x206   :  { %5682 = vmatpush1.bf16.msra.mxu0 %v14498_v4  ;;  %v14597_v4 = vcombine.high %v246_v51, %v262_v52  ;;  %v341_v52 = vld [vmem:[%s24327_s23 + $0x850] sm:$0xff] }
 0x207   :  { %5683 = vmatprep.subr.bf16.mxu0 %v14467_v9 }
 0x208   :  { %5723 = vmatpush1.bf16.msra.mxu1 %v15010_v7  ;;  %v230_v7 = vld [vmem:[%s24327_s23 + $0x4d8] sm:$0xff] }
 0x209   :  { %5724 = vmatprep.subr.bf16.mxu1 %v14979_v17  ;;  %v437_v17 = vld [vmem:[%s24327_s23 + $0xb50] sm:$0xff]  ;;  %v14564_v54 = vcombine.low %v214_v2, %v230_v7 }
 0x20a   :  { %5684 = vmatpush1.bf16.msra.mxu0 %v14466_v18  ;;  %v182_v18 = vld [vmem:[%s24327_s23 + $0x358] sm:$0xff]  ;;  %v14786_v38 = vcombine.low %v437_v17, %v453_v35 }
 0x20b   :  { %5685 = vmatprep.subr.bf16.mxu0 %v14435_v22  ;;  %v14565_v22 = vcombine.high %v214_v2, %v230_v7  ;;  %v14532_v40 = vcombine.low %v182_v18, %v198_v25  ;;  %v566_v7 = vld [vmem:[%s24327_s23 + $0xf58] sm:$0xff] }
 0x20c   :  { %5725 = vmatpush1.bf16.msra.mxu1 %v14978_v20 }
 0x20d   :  { %5726 = vmatprep.subr.bf16.mxu1 %v14947_v57  ;;  %v14787_v57 = vcombine.high %v437_v17, %v453_v35 }
 0x20e   :  { %5686 = vmatpush1.bf16.msra.mxu0 %v14434_v29  ;;  %v421_v29 = vld [vmem:[%s24327_s23 + $0xad0] sm:$0xff] }
 0x20f   :  { %5687 = vmatprep.subr.bf16.mxu0 %v14915_v32  ;;  %v14533_v32 = vcombine.high %v182_v18, %v198_v25  ;;  %v14754_v48 = vcombine.low %v405_v27, %v421_v29  ;;  %v790_v25 = vld [vmem:[%s24327_s23 + $0x1658] sm:$0xff] }
 0x210   :  { %5727 = vmatpush1.bf16.msra.mxu1 %v14946_v30  ;;  %v150_v30 = vld [vmem:[%s24327_s23 + $0x258] sm:$0xff] }
 0x211   :  { %5753 = vmatprep.subr.bf16.mxu1 %v14661_v41  ;;  %v14755_v41 = vcombine.high %v405_v27, %v421_v29 }
 0x212   :  { %5688 = vmatpush2.bf16.msra.mxu0 %v14914_v37  ;;  %v389_v37 = vld [vmem:[%s24327_s23 + $0x9d0] sm:$0xff] }
 0x213   :  { %v19857_v55 = vpop.f32.mrf.mxu1  ;;  %5745 = vmatmul.mubr.bf16.vlgmr.msra.gmra.mxu1 %v18252_v16  ;;  %5689 = vmatprep.subr.bf16.mxu0 %v14883_v47  ;;  %v14501_v47 = vcombine.high %v150_v30, %v166_v34  ;;  %v14723_v51 = vcombine.high %v373_v42, %v389_v37  ;;  %v14722_v0 = vcombine.low %v373_v42, %v389_v37  ;;  %v774_v37 = vld [vmem:[%s24327_s23 + $0x15d8] sm:$0xff] }
 0x214   :  { %5754 = vmatpush1.bf16.msra.mxu1 %v14660_v1  ;;  %5785 = vmatprep.mubr.bf16.mxu1 %v18222_v62  ;;  %v118_v1 = vld [vmem:[%s24327_s23 + $0x158] sm:$0xff] }
 0x215   :  { %v19869_v3 = vpop.f32.mrf.mxu1  ;;  %5755 = vmatprep.subr.bf16.mxu1 %v14629_v50  ;;  %v14500_v50 = vcombine.low %v150_v30, %v166_v34  ;;  %v14468_v2 = vcombine.low %v118_v1, %v134_v44  ;;  %v502_v34 = vld [vmem:[%s24327_s23 + $0xd58] sm:$0xff] }
 0x216   :  { %5690 = vmatpush2.bf16.msra.mxu0 %v14882_v58  ;;  %v357_v58 = vld [vmem:[%s24327_s23 + $0x8d0] sm:$0xff] }
 0x217   :  { %v5422_v9 = vpop.f32.mrf.mxu1  ;;  %5691 = vmatprep.subr.bf16.mxu0 %v14851_v61  ;;  %v14469_v61 = vcombine.high %v118_v1, %v134_v44  ;;  %v14690_v17 = vcombine.low %v341_v52, %v357_v58 }
 0x218   :  { %5756 = vmatpush1.bf16.msra.mxu1 %v14628_v59  ;;  %v86_v59 = vld [vmem:[%s24327_s23 + $0x58] sm:$0xff] }
 0x219   :  { %v5423_v20 = vpop.f32.mrf.mxu1  ;;  %5757 = vmatprep.subr.bf16.mxu1 %v14597_v4  ;;  %v14691_v4 = vcombine.high %v341_v52, %v357_v58  ;;  %v582_v9 = vld [vmem:[%s24327_s23 + $0xfd8] sm:$0xff]  ;;  %v14436_v35 = vcombine.low %v86_v59, %v102_v63 }
 0x21a   :  { %5692 = vmatpush2.bf16.msra.mxu0 %v14850_v10  ;;  %v822_v10 = vld [vmem:[%s24327_s23 + $0x1758] sm:$0xff]  ;;  %v14916_v30 = vcombine.low %v566_v7, %v582_v9 }
 0x21b   :  { %5693 = vmatprep.subr.bf16.mxu0 %v14819_v12  ;;  %v838_v12 = vld [vmem:[%s24327_s23 + $0x17d8] sm:$0xff] }
 0x21c   :  { %5758 = vmatpush1.bf16.msra.mxu1 %v14596_v11  ;;  %v14437_v11 = vcombine.high %v86_v59, %v102_v63  ;;  %v15173_v18 = vcombine.high %v822_v10, %v838_v12  ;;  %v534_v20 = vld [vmem:[%s24327_s23 + $0xe58] sm:$0xff]  ;;  %v15172_v29 = vcombine.low %v822_v10, %v838_v12 }
 0x21d   :  { %5759 = vmatprep.subr.bf16.mxu1 %v14565_v22  ;;  %v550_v22 = vld [vmem:[%s24327_s23 + $0xed8] sm:$0xff] }
 0x21e   :  { %5694 = vmatpush2.bf16.msra.mxu0 %v14818_v49  ;;  %v14917_v49 = vcombine.high %v566_v7, %v582_v9  ;;  %v14885_v42 = vcombine.high %v534_v20, %v550_v22  ;;  %v470_v52 = vld [vmem:[%s24327_s23 + $0xc58] sm:$0xff] }
 0x21f   :  { %5695 = vmatprep.subr.bf16.mxu0 %v14787_v57  ;;  %v19950_v57 = vld [vmem:[%s24329_s29 + $0x8] sm:$0xff]  ;;  %v486_v58 = vld [vmem:[%s24327_s23 + $0xcd8] sm:$0xff] }
 0x220   :  { %5760 = vmatpush1.bf16.msra.mxu1 %v14564_v54  ;;  %v806_v54 = vld [vmem:[%s24327_s23 + $0x16d8] sm:$0xff]  ;;  %v902_v27 = vrot.slane %v19950_v57, %v19278_v60 }
 0x221   :  { %5761 = vmatprep.subr.bf16.mxu1 %v14533_v32  ;;  %v15141_v32 = vcombine.high %v790_v25, %v806_v54  ;;  %v15140_v44 = vcombine.low %v790_v25, %v806_v54  ;;  %v726_v59 = vld [vmem:[%s24327_s23 + $0x1458] sm:$0xff] }
 0x222   :  { %5696 = vmatpush2.bf16.msra.mxu0 %v14786_v38  ;;  %v518_v38 = vld [vmem:[%s24327_s23 + $0xdd8] sm:$0xff] }
 0x223   :  { %5697 = vmatprep.subr.bf16.mxu0 %v14755_v41  ;;  %v906_v41 = vrot.slane %v19950_v57, %v19290_v5  ;;  %v422_v54 = vld [vmem:[%s24327_s23 + $0xad8] sm:$0xff] }
 0x224   :  { %5762 = vmatpush1.bf16.msra.mxu1 %v14532_v40  ;;  %v758_v40 = vld [vmem:[%s24327_s23 + $0x1558] sm:$0xff] }
 0x225   :  { %5763 = vmatprep.subr.bf16.mxu1 %v14501_v47  ;;  %v15108_v9 = vcombine.low %v758_v40, %v774_v37 }
 0x226   :  { %5698 = vmatpush2.bf16.msra.mxu0 %v14754_v48 }
 0x227   :  { %5699 = vmatprep.subr.bf16.mxu0 %v14723_v51  ;;  %v15109_v51 = vcombine.high %v758_v40, %v774_v37  ;;  %v374_v40 = vld [vmem:[%s24327_s23 + $0x958] sm:$0xff] }
 0x228   :  { %5764 = vmatpush1.bf16.msra.mxu1 %v14500_v50  ;;  %v14884_v50 = vcombine.low %v534_v20, %v550_v22  ;;  %v14820_v22 = vcombine.low %v470_v52, %v486_v58 }
 0x229   :  { %5765 = vmatprep.subr.bf16.mxu1 %v14469_v61 }
 0x22a   :  { %5700 = vmatpush2.bf16.msra.mxu0 %v14722_v0  ;;  %v14853_v0 = vcombine.high %v502_v34, %v518_v38 }
 0x22b   :  { %5701 = vmatprep.subr.bf16.mxu0 %v14691_v4 }
 0x22c   :  { %5766 = vmatpush1.bf16.msra.mxu1 %v14468_v2  ;;  %v742_v2 = vld [vmem:[%s24327_s23 + $0x14d8] sm:$0xff] }
 0x22d   :  { %5767 = vmatprep.subr.bf16.mxu1 %v14437_v11  ;;  %v14852_v11 = vcombine.low %v502_v34, %v518_v38  ;;  %v15077_v12 = vcombine.high %v726_v59, %v742_v2  ;;  %v15076_v20 = vcombine.low %v726_v59, %v742_v2  ;;  %v614_v59 = vld [vmem:[%s24327_s23 + $0x10d8] sm:$0xff] }
 0x22e   :  { %5702 = vmatpush2.bf16.msra.mxu0 %v14690_v17  ;;  %v454_v17 = vld [vmem:[%s24327_s23 + $0xbd8] sm:$0xff] }
 0x22f   :  { %5794 = vmatprep.subr.bf16.mxu0 %v15173_v18  ;;  %v710_v18 = vld [vmem:[%s24327_s23 + $0x13d8] sm:$0xff] }
 0x230   :  { %5768 = vmatpush1.bf16.msra.mxu1 %v14436_v35  ;;  %v14821_v35 = vcombine.high %v470_v52, %v486_v58  ;;  %v598_v52 = vld [vmem:[%s24327_s23 + $0x1058] sm:$0xff] }
 0x231   :  { %5769 = vmatprep.subr.bf16.mxu1 %v14917_v49  ;;  %v5377_v1 = vpop.f32.mrf.mxu0  ;;  %5704 = vmatmul.mubr.bf16.vlgmr.msra.gmra.mxu0 %v18348_v19  ;;  %v406_v49 = vld [vmem:[%s24327_s23 + $0xa58] sm:$0xff]  ;;  %v14949_v2 = vcombine.high %v598_v52, %v614_v59 }
 0x232   :  { %v5378_v47 = vadd.f32 %v5377_v1, %v902_v27  ;;  %5795 = vmatpush1.bf16.msra.mxu0 %v15172_v29  ;;  %5826 = vmatprep.mubr.bf16.mxu0 %v18008_v8  ;;  %v662_v27 = vld [vmem:[%s24327_s23 + $0x1258] sm:$0xff]  ;;  %v14757_v37 = vcombine.high %v406_v49, %v422_v54 }
 0x233   :  { %v5379_v48 = vpop.f32.mrf.mxu0  ;;  %5796 = vmatprep.subr.bf16.mxu0 %v15141_v32  ;;  %v646_v1 = vld [vmem:[%s24327_s23 + $0x11d8] sm:$0xff] }
 0x234   :  { %5770 = vmatpush2.bf16.msra.mxu1 %v14916_v30  ;;  %v19980_v61 = vadd.f32 %v19857_v55, %v5378_v47  ;;  %v5380_v63 = vadd.f32 %v5379_v48, %v906_v41  ;;  %v438_v55 = vld [vmem:[%s24327_s23 + $0xb58] sm:$0xff] }
 0x235   :  { %5771 = vmatprep.subr.bf16.mxu1 %v14885_v42  ;;  %v5381_v4 = vpop.f32.mrf.mxu0  ;;  %v14789_v29 = vcombine.high %v438_v55, %v454_v17  ;;  %v678_v30 = vld [vmem:[%s24327_s23 + $0x12d8] sm:$0xff]  ;;  %v14788_v34 = vcombine.low %v438_v55, %v454_v17  ;;  %v14948_v55 = vcombine.low %v598_v52, %v614_v59  ;;  %v231_v52 = vld [vmem:[%s24327_s23 + $0x4e0] sm:$0xff] }
 0x236   :  { %v19986_v7 = vadd.f32 %v19869_v3, %v5380_v63  ;;  %5797 = vmatpush1.bf16.msra.mxu0 %v15140_v44  ;;  %v694_v3 = vld [vmem:[%s24327_s23 + $0x1358] sm:$0xff]  ;;  %v15013_v38 = vcombine.high %v662_v27, %v678_v30  ;;  %v15012_v47 = vcombine.low %v662_v27, %v678_v30  ;;  %v14756_v44 = vcombine.low %v406_v49, %v422_v54  ;;  %v311_v4 = vld [vmem:[%s24327_s23 + $0x760] sm:$0xff] }
 0x237   :  { %v5382_v10 = vpop.f32.mrf.mxu0  ;;  %5798 = vmatprep.subr.bf16.mxu0 %v15109_v51  ;;  %v15045_v25 = vcombine.high %v694_v3, %v710_v18  ;;  %v15044_v32 = vcombine.low %v694_v3, %v710_v18  ;;  %v390_v41 = vld [vmem:[%s24327_s23 + $0x9d8] sm:$0xff]  ;;  %v295_v18 = vld [vmem:[%s24327_s23 + $0x6e0] sm:$0xff]  ;;  %v910_v54 = vrot.slane %v19950_v57, %v19397_v33 }
 0x238   :  { %5772 = vmatpush2.bf16.msra.mxu1 %v14884_v50  ;;  %v630_v42 = vld [vmem:[%s24327_s23 + $0x1158] sm:$0xff]  ;;  %v14725_v58 = vcombine.high %v374_v40, %v390_v41  ;;  %v823_v10 = vld [vmem:[%s24327_s23 + $0x1760] sm:$0xff] }
 0x239   :  { %5773 = vmatprep.subr.bf16.mxu1 %v14853_v0  ;;  %v14981_v48 = vcombine.high %v630_v42, %v646_v1  ;;  %v342_v50 = vld [vmem:[%s24327_s23 + $0x858] sm:$0xff]  ;;  %v14980_v63 = vcombine.low %v630_v42, %v646_v1  ;;  %v14724_v0 = vcombine.low %v374_v40, %v390_v41  ;;  %v247_v30 = vld [vmem:[%s24327_s23 + $0x560] sm:$0xff]  ;;  %v914_v42 = vrot.slane %v19950_v57, %v19412_v56 }
 0x23a   :  { %5799 = vmatpush1.bf16.msra.mxu0 %v15108_v9  ;;  %v358_v51 = vld [vmem:[%s24327_s23 + $0x8d8] sm:$0xff]  ;;  %v327_v9 = vld [vmem:[%s24327_s23 + $0x7e0] sm:$0xff] }
 0x23b   :  { %5800 = vmatprep.subr.bf16.mxu0 %v15077_v12  ;;  %v839_v12 = vld [vmem:[%s24327_s23 + $0x17e0] sm:$0xff]  ;;  %v14692_v17 = vcombine.low %v342_v50, %v358_v51  ;;  %v14663_v3 = vcombine.high %v311_v4, %v327_v9  ;;  %v14662_v49 = vcombine.low %v311_v4, %v327_v9 }
 0x23c   :  { %5774 = vmatpush2.bf16.msra.mxu1 %v14852_v11  ;;  %v14693_v11 = vcombine.high %v342_v50, %v358_v51  ;;  %v15174_v27 = vcombine.low %v823_v10, %v839_v12  ;;  %v775_v40 = vld [vmem:[%s24327_s23 + $0x15e0] sm:$0xff] }
 0x23d   :  { %5775 = vmatprep.subr.bf16.mxu1 %v14821_v35  ;;  %v279_v35 = vld [vmem:[%s24327_s23 + $0x660] sm:$0xff] }
 0x23e   :  { %5801 = vmatpush1.bf16.msra.mxu0 %v15076_v20  ;;  %v791_v20 = vld [vmem:[%s24327_s23 + $0x1660] sm:$0xff]  ;;  %v14630_v1 = vcombine.low %v279_v35, %v295_v18 }
 0x23f   :  { %5802 = vmatprep.subr.bf16.mxu0 %v15045_v25  ;;  %v807_v25 = vld [vmem:[%s24327_s23 + $0x16e0] sm:$0xff] }
 0x240   :  { %5776 = vmatpush2.bf16.msra.mxu1 %v14820_v22  ;;  %v15175_v22 = vcombine.high %v823_v10, %v839_v12  ;;  %v215_v51 = vld [vmem:[%s24327_s23 + $0x460] sm:$0xff] }
 0x241   :  { %5777 = vmatprep.subr.bf16.mxu1 %v14789_v29  ;;  %v14631_v29 = vcombine.high %v279_v35, %v295_v18  ;;  %v727_v57 = vld [vmem:[%s24327_s23 + $0x1460] sm:$0xff] }
 0x242   :  { %5803 = vmatpush1.bf16.msra.mxu0 %v15044_v32  ;;  %v263_v32 = vld [vmem:[%s24327_s23 + $0x5e0] sm:$0xff] }
 0x243   :  { %5804 = vmatprep.subr.bf16.mxu0 %v15013_v38  ;;  %v15143_v38 = vcombine.high %v791_v20, %v807_v25  ;;  %v14599_v50 = vcombine.high %v247_v30, %v263_v32  ;;  %v14598_v10 = vcombine.low %v247_v30, %v263_v32  ;;  %v199_v35 = vld [vmem:[%s24327_s23 + $0x3e0] sm:$0xff] }
 0x244   :  { %5778 = vmatpush2.bf16.msra.mxu1 %v14788_v34  ;;  %v759_v34 = vld [vmem:[%s24327_s23 + $0x1560] sm:$0xff] }
 0x245   :  { %5779 = vmatprep.subr.bf16.mxu1 %v14757_v37  ;;  %v15111_v59 = vcombine.high %v759_v34, %v775_v40  ;;  %v695_v18 = vld [vmem:[%s24327_s23 + $0x1360] sm:$0xff] }
 0x246   :  { %5805 = vmatpush1.bf16.msra.mxu0 %v15012_v47  ;;  %v167_v30 = vld [vmem:[%s24327_s23 + $0x2e0] sm:$0xff] }
 0x247   :  { %5806 = vmatprep.subr.bf16.mxu0 %v14981_v48  ;;  %v15142_v48 = vcombine.low %v791_v20, %v807_v25  ;;  %v711_v25 = vld [vmem:[%s24327_s23 + $0x13e0] sm:$0xff] }
 0x248   :  { %5780 = vmatpush2.bf16.msra.mxu1 %v14756_v44  ;;  %v663_v32 = vld [vmem:[%s24327_s23 + $0x1260] sm:$0xff] }
 0x249   :  { %5781 = vmatprep.subr.bf16.mxu1 %v14725_v58 }
 0x24a   :  { %5807 = vmatpush1.bf16.msra.mxu0 %v14980_v63  ;;  %v743_v63 = vld [vmem:[%s24327_s23 + $0x14e0] sm:$0xff] }
 0x24b   :  { %5808 = vmatprep.subr.bf16.mxu0 %v14949_v2 }
 0x24c   :  { %5782 = vmatpush2.bf16.msra.mxu1 %v14724_v0 }
 0x24d   :  { %5783 = vmatprep.subr.bf16.mxu1 %v14693_v11 }
 0x24e   :  { %5809 = vmatpush1.bf16.msra.mxu0 %v14948_v55  ;;  %v15110_v55 = vcombine.low %v759_v34, %v775_v40  ;;  %v15047_v34 = vcombine.high %v695_v18, %v711_v25 }
 0x24f   :  { %5835 = vmatprep.subr.bf16.mxu0 %v14663_v3  ;;  %v183_v3 = vld [vmem:[%s24327_s23 + $0x360] sm:$0xff] }
 0x250   :  { %5784 = vmatpush2.bf16.msra.mxu1 %v14692_v17  ;;  %v14567_v17 = vcombine.high %v215_v51, %v231_v52  ;;  %v14534_v40 = vcombine.low %v183_v3, %v199_v35 }
 0x251   :  { %5876 = vmatprep.subr.bf16.mxu1 %v15175_v22  ;;  %v5500_v41 = vpop.f32.mrf.mxu0  ;;  %5827 = vmatmul.mubr.bf16.vlgmr.msra.gmra.mxu0 %v18252_v16  ;;  %v15079_v22 = vcombine.high %v727_v57, %v743_v63 }
 0x252   :  { %5836 = vmatpush1.bf16.msra.mxu0 %v14662_v49  ;;  %5867 = vmatprep.mubr.bf16.mxu0 %v18222_v62  ;;  %v14566_v49 = vcombine.low %v215_v51, %v231_v52 }
 0x253   :  { %v5459_v37 = vpop.f32.mrf.mxu1  ;;  %5786 = vmatmul.mubr.bf16.vlgmr.msra.gmra.mxu1 %v18348_v19  ;;  %v5502_v44 = vpop.f32.mrf.mxu0  ;;  %5837 = vmatprep.subr.bf16.mxu0 %v14631_v29  ;;  %v151_v29 = vld [vmem:[%s24327_s23 + $0x260] sm:$0xff] }
 0x254   :  { %v5460_v47 = vadd.f32 %v5459_v37, %v910_v54  ;;  %5877 = vmatpush1.bf16.msra.mxu1 %v15174_v27  ;;  %5908 = vmatprep.mubr.bf16.mxu1 %v18008_v8  ;;  %v15078_v54 = vcombine.low %v727_v57, %v743_v63  ;;  %v14535_v27 = vcombine.high %v183_v3, %v199_v35  ;;  %v119_v37 = vld [vmem:[%s24327_s23 + $0x160] sm:$0xff]  ;;  %v328_v35 = vld [vmem:[%s24327_s23 + $0x7e8] sm:$0xff] }
 0x255   :  { %v5461_v58 = vpop.f32.mrf.mxu1  ;;  %5878 = vmatprep.subr.bf16.mxu1 %v15143_v38  ;;  %v5504_v4 = vpop.f32.mrf.mxu0  ;;  %v679_v38 = vld [vmem:[%s24327_s23 + $0x12e0] sm:$0xff] }
 0x256   :  { %v20091_v0 = vadd.f32 %v5500_v41, %v5460_v47  ;;  %v5462_v2 = vadd.f32 %v5461_v58, %v914_v42  ;;  %5838 = vmatpush1.bf16.msra.mxu0 %v14630_v1  ;;  %v15046_v41 = vcombine.low %v695_v18, %v711_v25  ;;  %v14503_v42 = vcombine.high %v151_v29, %v167_v30  ;;  %v135_v1 = vld [vmem:[%s24327_s23 + $0x1e0] sm:$0xff] }
 0x257   :  { %v5463_v9 = vpop.f32.mrf.mxu1  ;;  %v5505_v12 = vpop.f32.mrf.mxu0  ;;  %5839 = vmatprep.subr.bf16.mxu0 %v14599_v50  ;;  %v631_v47 = vld [vmem:[%s24327_s23 + $0x1160] sm:$0xff]  ;;  %v14502_v50 = vcombine.low %v151_v29, %v167_v30  ;;  %v15014_v51 = vcombine.low %v663_v32, %v679_v38  ;;  %v14471_v52 = vcombine.high %v119_v37, %v135_v1  ;;  %v14470_v4 = vcombine.low %v119_v37, %v135_v1  ;;  %v296_v29 = vld [vmem:[%s24327_s23 + $0x6e8] sm:$0xff] }
 0x258   :  { %v20094_v11 = vadd.f32 %v5502_v44, %v5462_v2  ;;  %5879 = vmatpush1.bf16.msra.mxu1 %v15142_v48  ;;  %v15015_v44 = vcombine.high %v663_v32, %v679_v38  ;;  %v647_v48 = vld [vmem:[%s24327_s23 + $0x11e0] sm:$0xff]  ;;  %v264_v37 = vld [vmem:[%s24327_s23 + $0x5e8] sm:$0xff] }
 0x259   :  { %v5464_v20 = vpop.f32.mrf.mxu1  ;;  %5880 = vmatprep.subr.bf16.mxu1 %v15111_v59  ;;  %v87_v57 = vld [vmem:[%s24327_s23 + $0x60] sm:$0xff]  ;;  %v14983_v63 = vcombine.high %v631_v47, %v647_v48  ;;  %v14982_v9 = vcombine.low %v631_v47, %v647_v48 }
 0x25a   :  { %5840 = vmatpush1.bf16.msra.mxu0 %v14598_v10  ;;  %v103_v58 = vld [vmem:[%s24327_s23 + $0xe0] sm:$0xff] }
 0x25b   :  { %5841 = vmatprep.subr.bf16.mxu0 %v14567_v17  ;;  %v599_v59 = vld [vmem:[%s24327_s23 + $0x1060] sm:$0xff]  ;;  %v14439_v10 = vcombine.high %v87_v57, %v103_v58  ;;  %v312_v17 = vld [vmem:[%s24327_s23 + $0x768] sm:$0xff]  ;;  %v14438_v18 = vcombine.low %v87_v57, %v103_v58 }
 0x25c   :  { %5881 = vmatpush1.bf16.msra.mxu1 %v15110_v55  ;;  %v615_v2 = vld [vmem:[%s24327_s23 + $0x10e0] sm:$0xff]  ;;  %v14664_v32 = vcombine.low %v312_v17, %v328_v35 }
 0x25d   :  { %5882 = vmatprep.subr.bf16.mxu1 %v15079_v22  ;;  %v567_v12 = vld [vmem:[%s24327_s23 + $0xf60] sm:$0xff]  ;;  %v14951_v3 = vcombine.high %v599_v59, %v615_v2  ;;  %v14950_v20 = vcombine.low %v599_v59, %v615_v2  ;;  %v232_v59 = vld [vmem:[%s24327_s23 + $0x4e8] sm:$0xff] }
 0x25e   :  { %5842 = vmatpush1.bf16.msra.mxu0 %v14566_v49  ;;  %v583_v55 = vld [vmem:[%s24327_s23 + $0xfe0] sm:$0xff] }
 0x25f   :  { %5843 = vmatprep.subr.bf16.mxu0 %v14535_v27  ;;  %v14919_v22 = vcombine.high %v567_v12, %v583_v55  ;;  %v535_v25 = vld [vmem:[%s24327_s23 + $0xe60] sm:$0xff]  ;;  %v14665_v27 = vcombine.high %v312_v17, %v328_v35  ;;  %v14918_v30 = vcombine.low %v567_v12, %v583_v55  ;;  %v184_v55 = vld [vmem:[%s24327_s23 + $0x368] sm:$0xff] }
 0x260   :  { %5883 = vmatpush1.bf16.msra.mxu1 %v15078_v54  ;;  %v551_v49 = vld [vmem:[%s24327_s23 + $0xee0] sm:$0xff]  ;;  %v280_v54 = vld [vmem:[%s24327_s23 + $0x668] sm:$0xff] }
 0x261   :  { %5884 = vmatprep.subr.bf16.mxu1 %v15047_v34  ;;  %v14887_v34 = vcombine.high %v535_v25, %v551_v49  ;;  %v503_v38 = vld [vmem:[%s24327_s23 + $0xd60] sm:$0xff]  ;;  %v14886_v47 = vcombine.low %v535_v25, %v551_v49  ;;  %v200_v35 = vld [vmem:[%s24327_s23 + $0x3e8] sm:$0xff] }
 0x262   :  { %5844 = vmatpush1.bf16.msra.mxu0 %v14534_v40  ;;  %v519_v40 = vld [vmem:[%s24327_s23 + $0xde0] sm:$0xff] }
 0x263   :  { %5845 = vmatprep.subr.bf16.mxu0 %v14503_v42  ;;  %v14633_v42 = vcombine.high %v280_v54, %v296_v29  ;;  %v14855_v48 = vcombine.high %v503_v38, %v519_v40  ;;  %v14854_v2 = vcombine.low %v503_v38, %v519_v40  ;;  %v455_v12 = vld [vmem:[%s24327_s23 + $0xbe0] sm:$0xff] }
 0x264   :  { %5885 = vmatpush1.bf16.msra.mxu1 %v15046_v41  ;;  %v248_v41 = vld [vmem:[%s24327_s23 + $0x568] sm:$0xff]  ;;  %v407_v25 = vld [vmem:[%s24327_s23 + $0xa60] sm:$0xff] }
 0x265   :  { %5886 = vmatprep.subr.bf16.mxu1 %v15015_v44  ;;  %v14632_v44 = vcombine.low %v280_v54, %v296_v29  ;;  %v14601_v58 = vcombine.high %v248_v41, %v264_v37  ;;  %v423_v49 = vld [vmem:[%s24327_s23 + $0xae0] sm:$0xff]  ;;  %v152_v54 = vld [vmem:[%s24327_s23 + $0x268] sm:$0xff] }
 0x266   :  { %5846 = vmatpush1.bf16.msra.mxu0 %v14502_v50  ;;  %v471_v50 = vld [vmem:[%s24327_s23 + $0xc60] sm:$0xff]  ;;  %v168_v29 = vld [vmem:[%s24327_s23 + $0x2e8] sm:$0xff] }
 0x267   :  { %5847 = vmatprep.subr.bf16.mxu0 %v14471_v52  ;;  %v216_v52 = vld [vmem:[%s24327_s23 + $0x468] sm:$0xff] }
 0x268   :  { %5887 = vmatpush1.bf16.msra.mxu1 %v15014_v51  ;;  %v487_v51 = vld [vmem:[%s24327_s23 + $0xce0] sm:$0xff] }
 0x269   :  { %5888 = vmatprep.subr.bf16.mxu1 %v14983_v63 }
 0x26a   :  { %5848 = vmatpush1.bf16.msra.mxu0 %v14470_v4  ;;  %v14600_v4 = vcombine.low %v248_v41, %v264_v37 }
 0x26b   :  { %5849 = vmatprep.subr.bf16.mxu0 %v14439_v10  ;;  %v439_v10 = vld [vmem:[%s24327_s23 + $0xb60] sm:$0xff] }
 0x26c   :  { %5889 = vmatpush1.bf16.msra.mxu1 %v14982_v9  ;;  %v14823_v9 = vcombine.high %v471_v50, %v487_v51 }
 0x26d   :  { %5890 = vmatprep.subr.bf16.mxu1 %v14951_v3  ;;  %v14569_v3 = vcombine.high %v216_v52, %v232_v59 }
 0x26e   :  { %5850 = vmatpush1.bf16.msra.mxu0 %v14438_v18  ;;  %v14822_v18 = vcombine.low %v471_v50, %v487_v51 }
 0x26f   :  { %5851 = vmatprep.subr.bf16.mxu0 %v14919_v22  ;;  %v14791_v22 = vcombine.high %v439_v10, %v455_v12 }
 0x270   :  { %5891 = vmatpush1.bf16.msra.mxu1 %v14950_v20  ;;  %v14568_v20 = vcombine.low %v216_v52, %v232_v59 }
 0x271   :  { %5917 = vmatprep.subr.bf16.mxu1 %v14665_v27  ;;  %v14537_v27 = vcombine.high %v184_v55, %v200_v35 }
 0x272   :  { %5852 = vmatpush2.bf16.msra.mxu0 %v14918_v30  ;;  %v14790_v30 = vcombine.low %v439_v10, %v455_v12 }
 0x273   :  { %v20180_v1 = vpop.f32.mrf.mxu1  ;;  %5909 = vmatmul.mubr.bf16.vlgmr.msra.gmra.mxu1 %v18252_v16  ;;  %5853 = vmatprep.subr.bf16.mxu0 %v14887_v34 }
 0x274   :  { %5918 = vmatpush1.bf16.msra.mxu1 %v14664_v32  ;;  %5949 = vmatprep.mubr.bf16.mxu1 %v18222_v62 }
 0x275   :  { %v20192_v57 = vpop.f32.mrf.mxu1  ;;  %5919 = vmatprep.subr.bf16.mxu1 %v14633_v42 }
 0x276   :  { %5854 = vmatpush2.bf16.msra.mxu0 %v14886_v47 }
 0x277   :  { %v5586_v63 = vpop.f32.mrf.mxu1  ;;  %5855 = vmatprep.subr.bf16.mxu0 %v14855_v48 }
 0x278   :  { %5920 = vmatpush1.bf16.msra.mxu1 %v14632_v44 }
 0x279   :  { %v5587_v17 = vpop.f32.mrf.mxu1  ;;  %5921 = vmatprep.subr.bf16.mxu1 %v14601_v58 }
 0x27a   :  { %5856 = vmatpush2.bf16.msra.mxu0 %v14854_v2 }
 0x27b   :  { %5857 = vmatprep.subr.bf16.mxu0 %v14823_v9 }
 0x27c   :  { %5922 = vmatpush1.bf16.msra.mxu1 %v14600_v4 }
 0x27d   :  { %5923 = vmatprep.subr.bf16.mxu1 %v14569_v3 }
 0x27e   :  { %5858 = vmatpush2.bf16.msra.mxu0 %v14822_v18 }
 0x27f   :  { %27 = vsyncpa [#allocation5], 0  ;;  %5859 = vmatprep.subr.bf16.mxu0 %v14791_v22  ;;  %v14536_v32 = vcombine.low %v184_v55, %v200_v35  ;;  %v14759_v34 = vcombine.high %v407_v25, %v423_v49  ;;  %v14505_v38 = vcombine.high %v152_v54, %v168_v29  ;;  %v375_v40 = vld [vmem:[%s24327_s23 + $0x960] sm:$0xff]  ;;  %v120_v42 = vld [vmem:[%s24327_s23 + $0x168] sm:$0xff]  ;;  %v14758_v47 = vcombine.low %v407_v25, %v423_v49  ;;  %s24330_s4 = sld [smem:[#allocation11_spill]] }
 0x280   :  { %5924 = vmatpush1.bf16.msra.mxu1 %v14568_v20  ;;  %v391_v41 = vld [vmem:[%s24327_s23 + $0x9e0] sm:$0xff]  ;;  %v136_v37 = vld [vmem:[%s24327_s23 + $0x1e8] sm:$0xff]  ;;  %v14504_v44 = vcombine.low %v152_v54, %v168_v29  ;;  %v20261_v18 = vld [vmem:[%s24329_s29 + $0x10] sm:$0xff]  ;;  %s24331_s22 = sld [smem:[#allocation12_spill]]  ;;  %vm18010_vm0 = vmmov 0   ;;  %vm14077_vm1 = vcmask 257024  }
 0x281   :  { %5925 = vmatprep.subr.bf16.mxu1 %v14537_v27  ;;  %v14727_v48 = vcombine.high %v375_v40, %v391_v41  ;;  %v14473_v50 = vcombine.high %v120_v42, %v136_v37  ;;  %v343_v51 = vld [vmem:[%s24327_s23 + $0x860] sm:$0xff]  ;;  %v88_v58 = vld [vmem:[%s24327_s23 + $0x68] sm:$0xff]  ;;  %v14726_v63 = vcombine.low %v375_v40, %v391_v41  ;;  %v14472_v2 = vcombine.low %v120_v42, %v136_v37 }
 0x282   :  { %5860 = vmatpush2.bf16.msra.mxu0 %v14790_v30  ;;  %v359_v52 = vld [vmem:[%s24327_s23 + $0x8e0] sm:$0xff]  ;;  %v104_v59 = vld [vmem:[%s24327_s23 + $0xe8] sm:$0xff]  ;;  %v918_v29 = vrot.slane %v20261_v18, %v18948_v45  ;;  %vm14103_vm2 = vcmask 261120   ;;  %vm14206_vm4 = vcmask 523264  }
 0x283   :  { %5861 = vmatprep.subr.bf16.mxu0 %v14759_v34  ;;  %v14695_v4 = vcombine.high %v343_v51, %v359_v52  ;;  %v14441_v9 = vcombine.high %v88_v58, %v104_v59  ;;  %v824_v10 = vld [vmem:[%s24327_s23 + $0x1768] sm:$0xff]  ;;  %v14694_v3 = vcombine.low %v343_v51, %v359_v52  ;;  %v14440_v35 = vcombine.low %v88_v58, %v104_v59 }
 0x284   :  { %5926 = vmatpush1.bf16.msra.mxu1 %v14536_v32  ;;  %v840_v12 = vld [vmem:[%s24327_s23 + $0x17e8] sm:$0xff] }
 0x285   :  { %5927 = vmatprep.subr.bf16.mxu1 %v14505_v38  ;;  %v568_v55 = vld [vmem:[%s24327_s23 + $0xf68] sm:$0xff]  ;;  %v15177_v20 = vcombine.high %v824_v10, %v840_v12  ;;  %v15176_v30 = vcombine.low %v824_v10, %v840_v12  ;;  %v922_v38 = vrot.slane %v20261_v18, %v18960_v53 }
 0x286   :  { %5862 = vmatpush2.bf16.msra.mxu0 %v14758_v47  ;;  %v584_v17 = vld [vmem:[%s24327_s23 + $0xfe8] sm:$0xff] }
 0x287   :  { %5863 = vmatprep.subr.bf16.mxu0 %v14727_v48  ;;  %v14921_v22 = vcombine.high %v568_v55, %v584_v17  ;;  %v792_v25 = vld [vmem:[%s24327_s23 + $0x1668] sm:$0xff]  ;;  %v14920_v32 = vcombine.low %v568_v55, %v584_v17 }
 0x288   :  { %5928 = vmatpush1.bf16.msra.mxu1 %v14504_v44  ;;  %v808_v49 = vld [vmem:[%s24327_s23 + $0x16e8] sm:$0xff] }
 0x289   :  { %5929 = vmatprep.subr.bf16.mxu1 %v14473_v50  ;;  %v536_v54 = vld [vmem:[%s24327_s23 + $0xe68] sm:$0xff]  ;;  %v15145_v34 = vcombine.high %v792_v25, %v808_v49  ;;  %v15144_v50 = vcombine.low %v792_v25, %v808_v49 }
 0x28a   :  { %5864 = vmatpush2.bf16.msra.mxu0 %v14726_v63  ;;  %v552_v27 = vld [vmem:[%s24327_s23 + $0xee8] sm:$0xff] }
 0x28b   :  { %5865 = vmatprep.subr.bf16.mxu0 %v14695_v4  ;;  %v14889_v40 = vcombine.high %v536_v54, %v552_v27  ;;  %v760_v41 = vld [vmem:[%s24327_s23 + $0x1568] sm:$0xff]  ;;  %v14888_v52 = vcombine.low %v536_v54, %v552_v27 }
 0x28c   :  { %5930 = vmatpush1.bf16.msra.mxu1 %v14472_v2  ;;  %v776_v42 = vld [vmem:[%s24327_s23 + $0x15e8] sm:$0xff] }
 0x28d   :  { %5931 = vmatprep.subr.bf16.mxu1 %v14441_v9  ;;  %v504_v47 = vld [vmem:[%s24327_s23 + $0xd68] sm:$0xff]  ;;  %v15113_v58 = vcombine.high %v760_v41, %v776_v42  ;;  %v15112_v17 = vcombine.low %v760_v41, %v776_v42 }
 0x28e   :  { %5866 = vmatpush2.bf16.msra.mxu0 %v14694_v3  ;;  %v520_v44 = vld [vmem:[%s24327_s23 + $0xde8] sm:$0xff] }
 0x28f   :  { %5958 = vmatprep.subr.bf16.mxu0 %v15177_v20  ;;  %v14857_v2 = vcombine.high %v504_v47, %v520_v44  ;;  %v728_v4 = vld [vmem:[%s24327_s23 + $0x1468] sm:$0xff] }
 0x290   :  { %5932 = vmatpush1.bf16.msra.mxu1 %v14440_v35  ;;  %v744_v9 = vld [vmem:[%s24327_s23 + $0x14e8] sm:$0xff]  ;;  %v14856_v35 = vcombine.low %v504_v47, %v520_v44 }
 0x291   :  { %5933 = vmatprep.subr.bf16.mxu1 %v14921_v22  ;;  %v5541_v37 = vpop.f32.mrf.mxu0  ;;  %5868 = vmatmul.mubr.bf16.vlgmr.msra.gmra.mxu0 %v18348_v19  ;;  %v472_v12 = vld [vmem:[%s24327_s23 + $0xc68] sm:$0xff]  ;;  %v15081_v20 = vcombine.high %v728_v4, %v744_v9  ;;  %v15080_v27 = vcombine.low %v728_v4, %v744_v9 }
 0x292   :  { %v5542_v48 = vadd.f32 %v5541_v37, %v918_v29  ;;  %5959 = vmatpush1.bf16.msra.mxu0 %v15176_v30  ;;  %5990 = vmatprep.mubr.bf16.mxu0 %v18008_v8  ;;  %v696_v25 = vld [vmem:[%s24327_s23 + $0x1368] sm:$0xff] }
 0x293   :  { %v5543_v51 = vpop.f32.mrf.mxu0  ;;  %5960 = vmatprep.subr.bf16.mxu0 %v15145_v34  ;;  %v712_v49 = vld [vmem:[%s24327_s23 + $0x13e8] sm:$0xff] }
 0x294   :  { %5934 = vmatpush2.bf16.msra.mxu1 %v14920_v32  ;;  %v20294_v59 = vadd.f32 %v20180_v1, %v5542_v48  ;;  %v5544_v63 = vadd.f32 %v5543_v51, %v922_v38  ;;  %v488_v1 = vld [vmem:[%s24327_s23 + $0xce8] sm:$0xff]  ;;  %v15049_v30 = vcombine.high %v696_v25, %v712_v49  ;;  %v15048_v42 = vcombine.low %v696_v25, %v712_v49  ;;  %v329_v25 = vld [vmem:[%s24327_s23 + $0x7f0] sm:$0xff] }
 0x295   :  { %5935 = vmatprep.subr.bf16.mxu1 %v14889_v40  ;;  %v5545_v10 = vpop.f32.mrf.mxu0  ;;  %v14825_v22 = vcombine.high %v472_v12, %v488_v1  ;;  %v456_v54 = vld [vmem:[%s24327_s23 + $0xbe8] sm:$0xff]  ;;  %v14824_v29 = vcombine.low %v472_v12, %v488_v1  ;;  %v825_v49 = vld [vmem:[%s24327_s23 + $0x1770] sm:$0xff] }
 0x296   :  { %v20309_v55 = vadd.f32 %v20192_v57, %v5544_v63  ;;  %5961 = vmatpush1.bf16.msra.mxu0 %v15144_v50  ;;  %v440_v57 = vld [vmem:[%s24327_s23 + $0xb68] sm:$0xff] }
 0x297   :  { %v5546_v3 = vpop.f32.mrf.mxu0  ;;  %5962 = vmatprep.subr.bf16.mxu0 %v15113_v58  ;;  %v14793_v32 = vcombine.high %v440_v57, %v456_v54  ;;  %v664_v34 = vld [vmem:[%s24327_s23 + $0x1268] sm:$0xff]  ;;  %v14792_v37 = vcombine.low %v440_v57, %v456_v54  ;;  %v841_v57 = vld [vmem:[%s24327_s23 + $0x17f0] sm:$0xff] }
 0x298   :  { %5936 = vmatpush2.bf16.msra.mxu1 %v14888_v52  ;;  %v680_v38 = vld [vmem:[%s24327_s23 + $0x12e8] sm:$0xff] }
 0x299   :  { %5937 = vmatprep.subr.bf16.mxu1 %v14857_v2  ;;  %v408_v40 = vld [vmem:[%s24327_s23 + $0xa68] sm:$0xff]  ;;  %v15017_v47 = vcombine.high %v664_v34, %v680_v38  ;;  %v15016_v58 = vcombine.low %v664_v34, %v680_v38  ;;  %v297_v34 = vld [vmem:[%s24327_s23 + $0x6f0] sm:$0xff] }
 0x29a   :  { %5963 = vmatpush1.bf16.msra.mxu0 %v15112_v17  ;;  %v424_v41 = vld [vmem:[%s24327_s23 + $0xae8] sm:$0xff]  ;;  %v793_v38 = vld [vmem:[%s24327_s23 + $0x1670] sm:$0xff] }
 0x29b   :  { %5964 = vmatprep.subr.bf16.mxu0 %v15081_v20  ;;  %v14761_v44 = vcombine.high %v408_v40, %v424_v41  ;;  %v632_v48 = vld [vmem:[%s24327_s23 + $0x1168] sm:$0xff]  ;;  %v14760_v63 = vcombine.low %v408_v40, %v424_v41  ;;  %v809_v40 = vld [vmem:[%s24327_s23 + $0x16f0] sm:$0xff] }
 0x29c   :  { %5938 = vmatpush2.bf16.msra.mxu1 %v14856_v35  ;;  %v648_v50 = vld [vmem:[%s24327_s23 + $0x11e8] sm:$0xff] }
 0x29d   :  { %5939 = vmatprep.subr.bf16.mxu1 %v14825_v22  ;;  %v376_v51 = vld [vmem:[%s24327_s23 + $0x968] sm:$0xff]  ;;  %v14985_v2 = vcombine.high %v632_v48, %v648_v50  ;;  %v14984_v17 = vcombine.low %v632_v48, %v648_v50  ;;  %v313_v22 = vld [vmem:[%s24327_s23 + $0x770] sm:$0xff] }
 0x29e   :  { %5965 = vmatpush1.bf16.msra.mxu0 %v15080_v27  ;;  %v392_v52 = vld [vmem:[%s24327_s23 + $0x9e8] sm:$0xff]  ;;  %v14666_v41 = vcombine.low %v313_v22, %v329_v25  ;;  %v249_v48 = vld [vmem:[%s24327_s23 + $0x570] sm:$0xff] }
 0x29f   :  { %5966 = vmatprep.subr.bf16.mxu0 %v15049_v30  ;;  %v14729_v4 = vcombine.high %v376_v51, %v392_v52  ;;  %v600_v9 = vld [vmem:[%s24327_s23 + $0x1068] sm:$0xff]  ;;  %v14728_v3 = vcombine.low %v376_v51, %v392_v52  ;;  %v15179_v30 = vcombine.high %v825_v49, %v841_v57  ;;  %v265_v50 = vld [vmem:[%s24327_s23 + $0x5f0] sm:$0xff]  ;;  %v930_v52 = vrot.slane %v20261_v18, %v19077_v15 }
 0x2a0   :  { %5940 = vmatpush2.bf16.msra.mxu1 %v14824_v29  ;;  %v616_v10 = vld [vmem:[%s24327_s23 + $0x10e8] sm:$0xff]  ;;  %v14667_v29 = vcombine.high %v313_v22, %v329_v25 }
 0x2a1   :  { %5941 = vmatprep.subr.bf16.mxu1 %v14793_v32  ;;  %v344_v12 = vld [vmem:[%s24327_s23 + $0x868] sm:$0xff]  ;;  %v14953_v35 = vcombine.high %v600_v9, %v616_v10  ;;  %v14952_v54 = vcombine.low %v600_v9, %v616_v10  ;;  %v281_v32 = vld [vmem:[%s24327_s23 + $0x670] sm:$0xff] }
 0x2a2   :  { %5967 = vmatpush1.bf16.msra.mxu0 %v15048_v42  ;;  %v360_v1 = vld [vmem:[%s24327_s23 + $0x8e8] sm:$0xff]  ;;  %v926_v42 = vrot.slane %v20261_v18, %v19062_v6 }
 0x2a3   :  { %5968 = vmatprep.subr.bf16.mxu0 %v15017_v47  ;;  %v14697_v20 = vcombine.high %v344_v12, %v360_v1  ;;  %v14696_v27 = vcombine.low %v344_v12, %v360_v1  ;;  %v14635_v47 = vcombine.high %v281_v32, %v297_v34  ;;  %v15146_v12 = vcombine.low %v793_v38, %v809_v40 }
 0x2a4   :  { %5942 = vmatpush2.bf16.msra.mxu1 %v14792_v37  ;;  %v15178_v37 = vcombine.low %v825_v49, %v841_v57  ;;  %v14603_v1 = vcombine.high %v249_v48, %v265_v50  ;;  %v729_v57 = vld [vmem:[%s24327_s23 + $0x1470] sm:$0xff] }
 0x2a5   :  { %5943 = vmatprep.subr.bf16.mxu1 %v14761_v44  ;;  %v15147_v44 = vcombine.high %v793_v38, %v809_v40 }
 0x2a6   :  { %5969 = vmatpush1.bf16.msra.mxu0 %v15016_v58  ;;  %v761_v58 = vld [vmem:[%s24327_s23 + $0x1570] sm:$0xff] }
 0x2a7   :  { %5970 = vmatprep.subr.bf16.mxu0 %v14985_v2 }
 0x2a8   :  { %5944 = vmatpush2.bf16.msra.mxu1 %v14760_v63  ;;  %v777_v63 = vld [vmem:[%s24327_s23 + $0x15f0] sm:$0xff] }
 0x2a9   :  { %5945 = vmatprep.subr.bf16.mxu1 %v14729_v4  ;;  %v14634_v4 = vcombine.low %v281_v32, %v297_v34  ;;  %v15114_v34 = vcombine.low %v761_v58, %v777_v63 }
 0x2aa   :  { %5971 = vmatpush1.bf16.msra.mxu0 %v14984_v17 }
 0x2ab   :  { %5972 = vmatprep.subr.bf16.mxu0 %v14953_v35  ;;  %v217_v35 = vld [vmem:[%s24327_s23 + $0x470] sm:$0xff] }
 0x2ac   :  { %5946 = vmatpush2.bf16.msra.mxu1 %v14728_v3  ;;  %v15115_v3 = vcombine.high %v761_v58, %v777_v63  ;;  %v153_v58 = vld [vmem:[%s24327_s23 + $0x270] sm:$0xff] }
 0x2ad   :  { %5947 = vmatprep.subr.bf16.mxu1 %v14697_v20  ;;  %v233_v20 = vld [vmem:[%s24327_s23 + $0x4f0] sm:$0xff] }
 0x2ae   :  { %5973 = vmatpush1.bf16.msra.mxu0 %v14952_v54  ;;  %v745_v54 = vld [vmem:[%s24327_s23 + $0x14f0] sm:$0xff]  ;;  %v14571_v38 = vcombine.high %v217_v35, %v233_v20 }
 0x2af   :  { %5999 = vmatprep.subr.bf16.mxu0 %v14667_v29  ;;  %v14602_v29 = vcombine.low %v249_v48, %v265_v50  ;;  %v14570_v48 = vcombine.low %v217_v35, %v233_v20  ;;  %v15082_v50 = vcombine.low %v729_v57, %v745_v54  ;;  %v169_v63 = vld [vmem:[%s24327_s23 + $0x2f0] sm:$0xff] }
 0x2b0   :  { %5948 = vmatpush2.bf16.msra.mxu1 %v14696_v27  ;;  %v633_v35 = vld [vmem:[%s24327_s23 + $0x1170] sm:$0xff] }
 0x2b1   :  { %6040 = vmatprep.subr.bf16.mxu1 %v15179_v30  ;;  %v5664_v51 = vpop.f32.mrf.mxu0  ;;  %5991 = vmatmul.mubr.bf16.vlgmr.msra.gmra.mxu0 %v18252_v16  ;;  %v649_v20 = vld [vmem:[%s24327_s23 + $0x11f0] sm:$0xff] }
 0x2b2   :  { %6000 = vmatpush1.bf16.msra.mxu0 %v14666_v41  ;;  %6031 = vmatprep.mubr.bf16.mxu0 %v18222_v62  ;;  %v15083_v41 = vcombine.high %v729_v57, %v745_v54  ;;  %v14987_v54 = vcombine.high %v633_v35, %v649_v20 }
 0x2b3   :  { %v5623_v2 = vpop.f32.mrf.mxu1  ;;  %5950 = vmatmul.mubr.bf16.vlgmr.msra.gmra.mxu1 %v18348_v19  ;;  %v5666_v10 = vpop.f32.mrf.mxu0  ;;  %6001 = vmatprep.subr.bf16.mxu0 %v14635_v47  ;;  %v697_v47 = vld [vmem:[%s24327_s23 + $0x1370] sm:$0xff] }
 0x2b4   :  { %v5624_v9 = vadd.f32 %v5623_v2, %v926_v42  ;;  %6041 = vmatpush1.bf16.msra.mxu1 %v15178_v37  ;;  %6072 = vmatprep.mubr.bf16.mxu1 %v18008_v8  ;;  %v185_v42 = vld [vmem:[%s24327_s23 + $0x370] sm:$0xff] }
 0x2b5   :  { %v5625_v17 = vpop.f32.mrf.mxu1  ;;  %6042 = vmatprep.subr.bf16.mxu1 %v15147_v44  ;;  %v5668_v49 = vpop.f32.mrf.mxu0  ;;  %v201_v37 = vld [vmem:[%s24327_s23 + $0x3f0] sm:$0xff] }
 0x2b6   :  { %v20408_v22 = vadd.f32 %v5664_v51, %v5624_v9  ;;  %v5626_v25 = vadd.f32 %v5625_v17, %v930_v52  ;;  %6002 = vmatpush1.bf16.msra.mxu0 %v14634_v4  ;;  %v713_v44 = vld [vmem:[%s24327_s23 + $0x13f0] sm:$0xff]  ;;  %v14539_v51 = vcombine.high %v185_v42, %v201_v37  ;;  %v14538_v9 = vcombine.low %v185_v42, %v201_v37 }
 0x2b7   :  { %v5627_v27 = vpop.f32.mrf.mxu1  ;;  %v5669_v32 = vpop.f32.mrf.mxu0  ;;  %6003 = vmatprep.subr.bf16.mxu0 %v14603_v1  ;;  %v15051_v52 = vcombine.high %v697_v47, %v713_v44  ;;  %v665_v2 = vld [vmem:[%s24327_s23 + $0x1270] sm:$0xff] }
 0x2b8   :  { %v20417_v30 = vadd.f32 %v5666_v10, %v5626_v25  ;;  %6043 = vmatpush1.bf16.msra.mxu1 %v15146_v12  ;;  %v681_v4 = vld [vmem:[%s24327_s23 + $0x12f0] sm:$0xff]  ;;  %v15050_v10 = vcombine.low %v697_v47, %v713_v44  ;;  %v14507_v12 = vcombine.high %v153_v58, %v169_v63  ;;  %v14506_v25 = vcombine.low %v153_v58, %v169_v63  ;;  %v314_v44 = vld [vmem:[%s24327_s23 + $0x778] sm:$0xff] }
 0x2b9   :  { %v5628_v40 = vpop.f32.mrf.mxu1  ;;  %6044 = vmatprep.subr.bf16.mxu1 %v15115_v3  ;;  %v15019_v1 = vcombine.high %v665_v2, %v681_v4  ;;  %v121_v17 = vld [vmem:[%s24327_s23 + $0x170] sm:$0xff]  ;;  %v15018_v49 = vcombine.low %v665_v2, %v681_v4  ;;  %v282_v4 = vld [vmem:[%s24327_s23 + $0x678] sm:$0xff] }
 0x2ba   :  { %6004 = vmatpush1.bf16.msra.mxu0 %v14602_v29  ;;  %v137_v3 = vld [vmem:[%s24327_s23 + $0x1f0] sm:$0xff]  ;;  %v14986_v40 = vcombine.low %v633_v35, %v649_v20  ;;  %v250_v20 = vld [vmem:[%s24327_s23 + $0x578] sm:$0xff] }
 0x2bb   :  { %6005 = vmatprep.subr.bf16.mxu0 %v14571_v38  ;;  %v14475_v57 = vcombine.high %v121_v17, %v137_v3  ;;  %v89_v27 = vld [vmem:[%s24327_s23 + $0x70] sm:$0xff]  ;;  %v14474_v38 = vcombine.low %v121_v17, %v137_v3 }
 0x2bc   :  { %6045 = vmatpush1.bf16.msra.mxu1 %v15114_v34  ;;  %v105_v29 = vld [vmem:[%s24327_s23 + $0xf0] sm:$0xff] }
 0x2bd   :  { %6046 = vmatprep.subr.bf16.mxu1 %v15083_v41  ;;  %v601_v32 = vld [vmem:[%s24327_s23 + $0x1070] sm:$0xff]  ;;  %v14443_v41 = vcombine.high %v89_v27, %v105_v29 }
 0x2be   :  { %6006 = vmatpush1.bf16.msra.mxu0 %v14570_v48  ;;  %v617_v34 = vld [vmem:[%s24327_s23 + $0x10f0] sm:$0xff]  ;;  %v330_v48 = vld [vmem:[%s24327_s23 + $0x7f8] sm:$0xff] }
 0x2bf   :  { %6007 = vmatprep.subr.bf16.mxu0 %v14539_v51  ;;  %v14955_v42 = vcombine.high %v601_v32, %v617_v34  ;;  %v569_v37 = vld [vmem:[%s24327_s23 + $0xf70] sm:$0xff]  ;;  %v14954_v51 = vcombine.low %v601_v32, %v617_v34  ;;  %v14669_v58 = vcombine.high %v314_v44, %v330_v48 }
 0x2c0   :  { %6047 = vmatpush1.bf16.msra.mxu1 %v15082_v50  ;;  %v585_v47 = vld [vmem:[%s24327_s23 + $0xff0] sm:$0xff]  ;;  %v14442_v50 = vcombine.low %v89_v27, %v105_v29 }
 0x2c1   :  { %6048 = vmatprep.subr.bf16.mxu1 %v15051_v52  ;;  %v14923_v52 = vcombine.high %v569_v37, %v585_v47  ;;  %v537_v63 = vld [vmem:[%s24327_s23 + $0xe70] sm:$0xff] }
 0x2c2   :  { %6008 = vmatpush1.bf16.msra.mxu0 %v14538_v9  ;;  %v553_v2 = vld [vmem:[%s24327_s23 + $0xef0] sm:$0xff]  ;;  %v298_v9 = vld [vmem:[%s24327_s23 + $0x6f8] sm:$0xff] }
 0x2c3   :  { %6009 = vmatprep.subr.bf16.mxu0 %v14507_v12  ;;  %v14668_v12 = vcombine.low %v314_v44, %v330_v48  ;;  %v14637_v17 = vcombine.high %v282_v4, %v298_v9  ;;  %v505_v3 = vld [vmem:[%s24327_s23 + $0xd70] sm:$0xff] }
 0x2c4   :  { %6049 = vmatpush1.bf16.msra.mxu1 %v15050_v10  ;;  %v14922_v10 = vcombine.low %v569_v37, %v585_v47  ;;  %v521_v35 = vld [vmem:[%s24327_s23 + $0xdf0] sm:$0xff] }
 0x2c5   :  { %6050 = vmatprep.subr.bf16.mxu1 %v15019_v1  ;;  %v14891_v1 = vcombine.high %v537_v63, %v553_v2  ;;  %v14859_v27 = vcombine.high %v505_v3, %v521_v35  ;;  %v473_v34 = vld [vmem:[%s24327_s23 + $0xc70] sm:$0xff]  ;;  %v14858_v37 = vcombine.low %v505_v3, %v521_v35 }
 0x2c6   :  { %6010 = vmatpush1.bf16.msra.mxu0 %v14506_v25  ;;  %v266_v25 = vld [vmem:[%s24327_s23 + $0x5f8] sm:$0xff] }
 0x2c7   :  { %6011 = vmatprep.subr.bf16.mxu0 %v14475_v57  ;;  %v14890_v57 = vcombine.low %v537_v63, %v553_v2  ;;  %v14605_v32 = vcombine.high %v250_v20, %v266_v25  ;;  %v14604_v47 = vcombine.low %v250_v20, %v266_v25 }
 0x2c8   :  { %6051 = vmatpush1.bf16.msra.mxu1 %v15018_v49 }
 0x2c9   :  { %6052 = vmatprep.subr.bf16.mxu1 %v14987_v54  ;;  %v14636_v54 = vcombine.low %v282_v4, %v298_v9 }
 0x2ca   :  { %6012 = vmatpush1.bf16.msra.mxu0 %v14474_v38  ;;  %v489_v38 = vld [vmem:[%s24327_s23 + $0xcf0] sm:$0xff] }
 0x2cb   :  { %6013 = vmatprep.subr.bf16.mxu0 %v14443_v41  ;;  %v234_v41 = vld [vmem:[%s24327_s23 + $0x4f8] sm:$0xff]  ;;  %v14827_v44 = vcombine.high %v473_v34, %v489_v38  ;;  %v14826_v63 = vcombine.low %v473_v34, %v489_v38 }
 0x2cc   :  { %6053 = vmatpush1.bf16.msra.mxu1 %v14986_v40  ;;  %v218_v40 = vld [vmem:[%s24327_s23 + $0x478] sm:$0xff] }
 0x2cd   :  { %6054 = vmatprep.subr.bf16.mxu1 %v14955_v42  ;;  %v14572_v2 = vcombine.low %v218_v40, %v234_v41 }
 0x2ce   :  { %6014 = vmatpush1.bf16.msra.mxu0 %v14442_v50  ;;  %v14573_v50 = vcombine.high %v218_v40, %v234_v41 }
 0x2cf   :  { %6015 = vmatprep.subr.bf16.mxu0 %v14923_v52  ;;  %v186_v52 = vld [vmem:[%s24327_s23 + $0x378] sm:$0xff] }
 0x2d0   :  { %6055 = vmatpush1.bf16.msra.mxu1 %v14954_v51  ;;  %v457_v51 = vld [vmem:[%s24327_s23 + $0xbf0] sm:$0xff] }
 0x2d1   :  { %6081 = vmatprep.subr.bf16.mxu1 %v14669_v58  ;;  %v202_v58 = vld [vmem:[%s24327_s23 + $0x3f8] sm:$0xff] }
 0x2d2   :  { %6016 = vmatpush2.bf16.msra.mxu0 %v14922_v10  ;;  %v14541_v9 = vcombine.high %v186_v52, %v202_v58  ;;  %v409_v10 = vld [vmem:[%s24327_s23 + $0xa70] sm:$0xff]  ;;  %v14540_v35 = vcombine.low %v186_v52, %v202_v58  ;;  %v826_v52 = vld [vmem:[%s24327_s23 + $0x1778] sm:$0xff] }
 0x2d3   :  { %v20503_v49 = vpop.f32.mrf.mxu1  ;;  %6073 = vmatmul.mubr.bf16.vlgmr.msra.gmra.mxu1 %v18252_v16  ;;  %6017 = vmatprep.subr.bf16.mxu0 %v14891_v1  ;;  %v154_v1 = vld [vmem:[%s24327_s23 + $0x278] sm:$0xff] }
 0x2d4   :  { %6082 = vmatpush1.bf16.msra.mxu1 %v14668_v12  ;;  %6113 = vmatprep.mubr.bf16.mxu1 %v18222_v62  ;;  %v441_v62 = vld [vmem:[%s24327_s23 + $0xb70] sm:$0xff]  ;;  %v842_v58 = vld [vmem:[%s24327_s23 + $0x17f8] sm:$0xff] }
 0x2d5   :  { %v20506_v29 = vpop.f32.mrf.mxu1  ;;  %6083 = vmatprep.subr.bf16.mxu1 %v14637_v17  ;;  %v14795_v4 = vcombine.high %v441_v62, %v457_v51  ;;  %v425_v12 = vld [vmem:[%s24327_s23 + $0xaf0] sm:$0xff]  ;;  %v170_v17 = vld [vmem:[%s24327_s23 + $0x2f8] sm:$0xff]  ;;  %v14794_v3 = vcombine.low %v441_v62, %v457_v51 }
 0x2d6   :  { %6018 = vmatpush2.bf16.msra.mxu0 %v14890_v57  ;;  %v14763_v20 = vcombine.high %v409_v10, %v425_v12  ;;  %v14509_v25 = vcombine.high %v154_v1, %v170_v17  ;;  %v377_v57 = vld [vmem:[%s24327_s23 + $0x970] sm:$0xff]  ;;  %v14762_v34 = vcombine.low %v409_v10, %v425_v12  ;;  %v14508_v38 = vcombine.low %v154_v1, %v170_v17  ;;  %v794_v1 = vld [vmem:[%s24327_s23 + $0x1678] sm:$0xff] }
 0x2d7   :  { %v5750_v42 = vpop.f32.mrf.mxu1  ;;  %6019 = vmatprep.subr.bf16.mxu0 %v14859_v27  ;;  %v122_v27 = vld [vmem:[%s24327_s23 + $0x178] sm:$0xff]  ;;  %v15181_v10 = vcombine.high %v826_v52, %v842_v58 }
 0x2d8   :  { %6084 = vmatpush1.bf16.msra.mxu1 %v14636_v54  ;;  %v393_v54 = vld [vmem:[%s24327_s23 + $0x9f0] sm:$0xff]  ;;  %v810_v17 = vld [vmem:[%s24327_s23 + $0x16f8] sm:$0xff] }
 0x2d9   :  { %v5751_v48 = vpop.f32.mrf.mxu1  ;;  %6085 = vmatprep.subr.bf16.mxu1 %v14605_v32  ;;  %v138_v32 = vld [vmem:[%s24327_s23 + $0x1f8] sm:$0xff]  ;;  %v14731_v40 = vcombine.high %v377_v57, %v393_v54  ;;  %v345_v42 = vld [vmem:[%s24327_s23 + $0x870] sm:$0xff] }
 0x2da   :  { %6020 = vmatpush2.bf16.msra.mxu0 %v14858_v37  ;;  %v14477_v41 = vcombine.high %v122_v27, %v138_v32  ;;  %v361_v37 = vld [vmem:[%s24327_s23 + $0x8f0] sm:$0xff]  ;;  %v14730_v48 = vcombine.low %v377_v57, %v393_v54  ;;  %v15149_v54 = vcombine.high %v794_v1, %v810_v17 }
 0x2db   :  { %6021 = vmatprep.subr.bf16.mxu0 %v14827_v44  ;;  %v106_v44 = vld [vmem:[%s24327_s23 + $0xf8] sm:$0xff]  ;;  %v14699_v62 = vcombine.high %v345_v42, %v361_v37 }
 0x2dc   :  { %6086 = vmatpush1.bf16.msra.mxu1 %v14604_v47  ;;  %v90_v47 = vld [vmem:[%s24327_s23 + $0x78] sm:$0xff] }
 0x2dd   :  { %6087 = vmatprep.subr.bf16.mxu1 %v14573_v50  ;;  %v14476_v50 = vcombine.low %v122_v27, %v138_v32  ;;  %v14445_v51 = vcombine.high %v90_v47, %v106_v44  ;;  %v938_v27 = vrot.slane %v20261_v18, %v19290_v5 }
 0x2de   :  { %6022 = vmatpush2.bf16.msra.mxu0 %v14826_v63  ;;  %v570_v63 = vld [vmem:[%s24327_s23 + $0xf78] sm:$0xff] }
 0x2df   :  { %6023 = vmatprep.subr.bf16.mxu0 %v14795_v4  ;;  %v14698_v4 = vcombine.low %v345_v42, %v361_v37  ;;  %v522_v42 = vld [vmem:[%s24327_s23 + $0xdf8] sm:$0xff] }
 0x2e0   :  { %6088 = vmatpush1.bf16.msra.mxu1 %v14572_v2  ;;  %v586_v2 = vld [vmem:[%s24327_s23 + $0xff8] sm:$0xff] }
 0x2e1   :  { %6089 = vmatprep.subr.bf16.mxu1 %v14541_v9  ;;  %v14444_v9 = vcombine.low %v90_v47, %v106_v44  ;;  %v14925_v12 = vcombine.high %v570_v63, %v586_v2  ;;  %v14924_v57 = vcombine.low %v570_v63, %v586_v2  ;;  %v15148_v47 = vcombine.low %v794_v1, %v810_v17  ;;  %v746_v63 = vld [vmem:[%s24327_s23 + $0x14f8] sm:$0xff] }
 0x2e2   :  { %6024 = vmatpush2.bf16.msra.mxu0 %v14794_v3  ;;  %v538_v3 = vld [vmem:[%s24327_s23 + $0xe78] sm:$0xff] }
 0x2e3   :  { %6025 = vmatprep.subr.bf16.mxu0 %v14763_v20  ;;  %v934_v20 = vrot.slane %v20261_v18, %v19278_v60  ;;  %v474_v2 = vld [vmem:[%s24327_s23 + $0xc78] sm:$0xff] }
 0x2e4   :  { %6090 = vmatpush1.bf16.msra.mxu1 %v14540_v35  ;;  %v554_v35 = vld [vmem:[%s24327_s23 + $0xef8] sm:$0xff] }
 0x2e5   :  { %6091 = vmatprep.subr.bf16.mxu1 %v14509_v25  ;;  %v15180_v25 = vcombine.low %v826_v52, %v842_v58  ;;  %v14893_v32 = vcombine.high %v538_v3, %v554_v35  ;;  %v730_v58 = vld [vmem:[%s24327_s23 + $0x1478] sm:$0xff] }
 0x2e6   :  { %6026 = vmatpush2.bf16.msra.mxu0 %v14762_v34  ;;  %v762_v34 = vld [vmem:[%s24327_s23 + $0x1578] sm:$0xff]  ;;  %v15085_v1 = vcombine.high %v730_v58, %v746_v63 }
 0x2e7   :  { %6027 = vmatprep.subr.bf16.mxu0 %v14731_v40 }
 0x2e8   :  { %6092 = vmatpush1.bf16.msra.mxu1 %v14508_v38  ;;  %v778_v38 = vld [vmem:[%s24327_s23 + $0x15f8] sm:$0xff] }
 0x2e9   :  { %6093 = vmatprep.subr.bf16.mxu1 %v14477_v41  ;;  %v506_v41 = vld [vmem:[%s24327_s23 + $0xd78] sm:$0xff] }
 0x2ea   :  { %6028 = vmatpush2.bf16.msra.mxu0 %v14730_v48  ;;  %v14892_v48 = vcombine.low %v538_v3, %v554_v35  ;;  %v14861_v52 = vcombine.high %v506_v41, %v522_v42  ;;  %v698_v3 = vld [vmem:[%s24327_s23 + $0x1378] sm:$0xff] }
 0x2eb   :  { %6029 = vmatprep.subr.bf16.mxu0 %v14699_v62  ;;  %v714_v35 = vld [vmem:[%s24327_s23 + $0x13f8] sm:$0xff] }
 0x2ec   :  { %6094 = vmatpush1.bf16.msra.mxu1 %v14476_v50  ;;  %v15117_v50 = vcombine.high %v762_v34, %v778_v38 }
 0x2ed   :  { %6095 = vmatprep.subr.bf16.mxu1 %v14445_v51 }
 0x2ee   :  { %6030 = vmatpush2.bf16.msra.mxu0 %v14698_v4 }
 0x2ef   :  { %6122 = vmatprep.subr.bf16.mxu0 %v15181_v10 }
 0x2f0   :  { %6096 = vmatpush1.bf16.msra.mxu1 %v14444_v9  ;;  %v15116_v9 = vcombine.low %v762_v34, %v778_v38  ;;  %v682_v34 = vld [vmem:[%s24327_s23 + $0x12f8] sm:$0xff] }
 0x2f1   :  { %6097 = vmatprep.subr.bf16.mxu1 %v14925_v12  ;;  %v5705_v40 = vpop.f32.mrf.mxu0  ;;  %6032 = vmatmul.mubr.bf16.vlgmr.msra.gmra.mxu0 %v18348_v19  ;;  %v14860_v12 = vcombine.low %v506_v41, %v522_v42  ;;  %v410_v38 = vld [vmem:[%s24327_s23 + $0xa78] sm:$0xff]  ;;  %v15052_v41 = vcombine.low %v698_v3, %v714_v35 }
 0x2f2   :  { %v5706_v37 = vadd.f32 %v5705_v40, %v934_v20  ;;  %6123 = vmatpush1.bf16.msra.mxu0 %v15180_v25  ;;  %6154 = vmatprep.mubr.bf16.mxu0 %v18008_v8  ;;  %v458_v20 = vld [vmem:[%s24327_s23 + $0xbf8] sm:$0xff]  ;;  %v15084_v25 = vcombine.low %v730_v58, %v746_v63 }
 0x2f3   :  { %v5707_v44 = vpop.f32.mrf.mxu0  ;;  %6124 = vmatprep.subr.bf16.mxu0 %v15149_v54  ;;  %v15053_v54 = vcombine.high %v698_v3, %v714_v35  ;;  %v426_v40 = vld [vmem:[%s24327_s23 + $0xaf8] sm:$0xff] }
 0x2f4   :  { %6098 = vmatpush2.bf16.msra.mxu1 %v14924_v57  ;;  %v20612_v62 = vadd.f32 %v20503_v49, %v5706_v37  ;;  %v5708_v51 = vadd.f32 %v5707_v44, %v938_v27  ;;  %v490_v49 = vld [vmem:[%s24327_s23 + $0xcf8] sm:$0xff]  ;;  %v14764_v58 = vcombine.low %v410_v38, %v426_v40 }
 0x2f5   :  { %6099 = vmatprep.subr.bf16.mxu1 %v14893_v32  ;;  %v5709_v8 = vpop.f32.mrf.mxu0  ;;  %v14829_v17 = vcombine.high %v474_v2, %v490_v49  ;;  %v14828_v57 = vcombine.low %v474_v2, %v490_v49  ;;  %v666_v32 = vld [vmem:[%s24327_s23 + $0x1278] sm:$0xff] }
 0x2f6   :  { %v20627_v4 = vadd.f32 %v20506_v29, %v5708_v51  ;;  %6125 = vmatpush1.bf16.msra.mxu0 %v15148_v47  ;;  %v442_v29 = vld [vmem:[%s24327_s23 + $0xb78] sm:$0xff]  ;;  %v15021_v37 = vcombine.high %v666_v32, %v682_v34  ;;  %v14765_v47 = vcombine.high %v410_v38, %v426_v40  ;;  %v946_v40 = vrot.slane %v20261_v18, %v19412_v56 }
 0x2f7   :  { %v5710_v10 = vpop.f32.mrf.mxu0  ;;  %6126 = vmatprep.subr.bf16.mxu0 %v15117_v50  ;;  %v14797_v27 = vcombine.high %v442_v29, %v458_v20  ;;  %v14796_v42 = vcombine.low %v442_v29, %v458_v20  ;;  %v634_v44 = vld [vmem:[%s24327_s23 + $0x1178] sm:$0xff]  ;;  %v16371_v20 = vld [vmem:[%s24330_s4 + $0xe4] ss:$16 sps:$4 sm:$0xff]  }
 0x2f8   :  { %6100 = vmatpush2.bf16.msra.mxu1 %v14892_v48  ;;  %v650_v48 = vld [vmem:[%s24327_s23 + $0x11f8] sm:$0xff] }
 0x2f9   :  { %6101 = vmatprep.subr.bf16.mxu1 %v14861_v52  ;;  %v378_v50 = vld [vmem:[%s24327_s23 + $0x978] sm:$0xff]  ;;  %v15020_v52 = vcombine.low %v666_v32, %v682_v34  ;;  %v14989_v63 = vcombine.high %v634_v44, %v650_v48  ;;  %v16377_v32 = vld [vmem:[%s24330_s4 + $0xc4] ss:$16 sps:$4 sm:$0xff]   ;;  %v20696_v34 = vpack.c.bf16 %v18999_v21, %v18999_v21  ;;  %v16375_v21 = vld [vmem:[%s24330_s4 + $0xc0] ss:$16 sps:$4 sm:$0xff]  }
 0x2fa   :  { %6127 = vmatpush1.bf16.msra.mxu0 %v15116_v9  ;;  %v394_v51 = vld [vmem:[%s24327_s23 + $0x9f8] sm:$0xff] }
 0x2fb   :  { %6128 = vmatprep.subr.bf16.mxu0 %v15085_v1  ;;  %v14733_v8 = vcombine.high %v378_v50, %v394_v51  ;;  %v602_v2 = vld [vmem:[%s24327_s23 + $0x1078] sm:$0xff]  ;;  %v14732_v1 = vcombine.low %v378_v50, %v394_v51 }
 0x2fc   :  { %6102 = vmatpush2.bf16.msra.mxu1 %v14860_v12  ;;  %v618_v49 = vld [vmem:[%s24327_s23 + $0x10f8] sm:$0xff]  ;;  %v14988_v12 = vcombine.low %v634_v44, %v650_v48  ;;  %v16386_v44 = vld [vmem:[%s24330_s4 + $0x2a4] ss:$16 sps:$4 sm:$0xff]  }
 0x2fd   :  { %6103 = vmatprep.subr.bf16.mxu1 %v14829_v17  ;;  %v346_v9 = vld [vmem:[%s24327_s23 + $0x878] sm:$0xff]  ;;  %v14957_v17 = vcombine.high %v602_v2, %v618_v49  ;;  %v14956_v35 = vcombine.low %v602_v2, %v618_v49  ;;  %v16384_v2 = vld [vmem:[%s24330_s4 + $0x2a0] ss:$16 sps:$4 sm:$0xff]   ;;  %v16389_v49 = vld [vmem:[%s24330_s4 + $0x84] ss:$16 sps:$4 sm:$0xff]  }
 0x2fe   :  { %6129 = vmatpush1.bf16.msra.mxu0 %v15084_v25  ;;  %v362_v10 = vld [vmem:[%s24327_s23 + $0x8f8] sm:$0xff]  ;;  %v16374_v25 = vld [vmem:[%s24330_s4 + $0x2e4] ss:$16 sps:$4 sm:$0xff]  }
 0x2ff   :  { %6130 = vmatprep.subr.bf16.mxu0 %v15053_v54  ;;  %v14701_v3 = vcombine.high %v346_v9, %v362_v10  ;;  %v14700_v29 = vcombine.low %v346_v9, %v362_v10  ;;  %v942_v54 = vrot.slane %v20261_v18, %v19397_v33  ;;  %v16392_v10 = vld [vmem:[%s24330_s4 + $0x284] ss:$16 sps:$4 sm:$0xff]  }
 0x300   :  { %6104 = vmatpush2.bf16.msra.mxu1 %v14828_v57  ;;  %v16369_v57 = vld [vmem:[%s24330_s4 + $0xe0] ss:$16 sps:$4 sm:$0xff]  }
 0x301   :  { %6105 = vmatprep.subr.bf16.mxu1 %v14797_v27  ;;  %v16372_v27 = vld [vmem:[%s24330_s4 + $0x2e0] ss:$16 sps:$4 sm:$0xff]  }
 0x302   :  { %6131 = vmatpush1.bf16.msra.mxu0 %v15052_v41  ;;  %v16380_v41 = vld [vmem:[%s24330_s4 + $0x2c4] ss:$16 sps:$4 sm:$0xff]  }
 0x303   :  { %6132 = vmatprep.subr.bf16.mxu0 %v15021_v37 }
 0x304   :  { %6106 = vmatpush2.bf16.msra.mxu1 %v14796_v42  ;;  %v20706_v42 = vpack.c.bf16 %v19113_v46, %v19113_v46  ;;  %v16383_v46 = vld [vmem:[%s24330_s4 + $0xa4] ss:$16 sps:$4 sm:$0xff]  }
 0x305   :  { %6107 = vmatprep.subr.bf16.mxu1 %v14765_v47  ;;  %v16378_v47 = vld [vmem:[%s24330_s4 + $0x2c0] ss:$16 sps:$4 sm:$0xff]  }
 0x306   :  { %6133 = vmatpush1.bf16.msra.mxu0 %v15020_v52 }
 0x307   :  { %6134 = vmatprep.subr.bf16.mxu0 %v14989_v63 }
 0x308   :  { %6108 = vmatpush2.bf16.msra.mxu1 %v14764_v58  ;;  %v16381_v58 = vld [vmem:[%s24330_s4 + $0xa0] ss:$16 sps:$4 sm:$0xff]  }
 0x309   :  { %6109 = vmatprep.subr.bf16.mxu1 %v14733_v8 }
 0x30a   :  { %6135 = vmatpush1.bf16.msra.mxu0 %v14988_v12  ;;  %v16387_v12 = vld [vmem:[%s24330_s4 + $0x80] ss:$16 sps:$4 sm:$0xff]  }
 0x30b   :  { %6136 = vmatprep.subr.bf16.mxu0 %v14957_v17  ;;  %v16395_v17 = vld [vmem:[%s24330_s4 + $0x64] ss:$16 sps:$4 sm:$0xff]  }
 0x30c   :  { %6110 = vmatpush2.bf16.msra.mxu1 %v14732_v1  ;;  %v16390_v1 = vld [vmem:[%s24330_s4 + $0x280] ss:$16 sps:$4 sm:$0xff]  }
 0x30d   :  { %6111 = vmatprep.subr.bf16.mxu1 %v14701_v3  ;;  %v16398_v3 = vld [vmem:[%s24330_s4 + $0x264] ss:$16 sps:$4 sm:$0xff]  }
 0x30e   :  { %6137 = vmatpush1.bf16.msra.mxu0 %v14956_v35  ;;  %v16393_v35 = vld [vmem:[%s24330_s4 + $0x60] ss:$16 sps:$4 sm:$0xff]  }
 0x30f   :  { %12361 = vmatprep.subr.bf16.mxu0 %v16371_v20  ;;  %v16401_v20 = vld [vmem:[%s24330_s4 + $0x44] ss:$16 sps:$4 sm:$0xff]  }
 0x310   :  { %6112 = vmatpush2.bf16.msra.mxu1 %v14700_v29  ;;  %v16396_v29 = vld [vmem:[%s24330_s4 + $0x260] ss:$16 sps:$4 sm:$0xff]  }
 0x311   :  { %12402 = vmatprep.subr.bf16.mxu1 %v16374_v25  ;;  %v5828_v38 = vpop.f32.mrf.mxu0  ;;  %6155 = vmatmul.mubr.bf16.vlgmr.msra.gmra.mxu0 %v18252_v16  ;;  %v16404_v25 = vld [vmem:[%s24330_s4 + $0x244] ss:$16 sps:$4 sm:$0xff]  }
 0x312   :  { %12362 = vmatpush1.bf16.msra.mxu0 %v16369_v57  ;;  %12393 = vmatprep.mubr.bf16.mxu0 %v20696_v34  ;;  %v16399_v57 = vld [vmem:[%s24330_s4 + $0x40] ss:$16 sps:$4 sm:$0xff]  }
 0x313   :  { %v5787_v37 = vpop.f32.mrf.mxu1  ;;  %6114 = vmatmul.mubr.bf16.vlgmr.msra.gmra.mxu1 %v18348_v19  ;;  %v5830_v18 = vpop.f32.mrf.mxu0  ;;  %12363 = vmatprep.subr.bf16.mxu0 %v16377_v32  ;;  %v16410_v32 = vld [vmem:[%s24330_s4 + $0x224] ss:$16 sps:$4 sm:$0xff]  }
 0x314   :  { %v5788_v16 = vadd.f32 %v5787_v37, %v942_v54  ;;  %12403 = vmatpush1.bf16.msra.mxu1 %v16372_v27  ;;  %12434 = vmatprep.mubr.bf16.mxu1 %v20706_v42  ;;  %v16402_v54 = vld [vmem:[%s24330_s4 + $0x240] ss:$16 sps:$4 sm:$0xff]   ;;  %v16407_v27 = vld [vmem:[%s24330_s4 + $0x24] ss:$16 sps:$4 sm:$0xff]  }
 0x315   :  { %v5789_v19 = vpop.f32.mrf.mxu1  ;;  %v5832_v51 = vpop.f32.mrf.mxu0  ;;  %12404 = vmatprep.subr.bf16.mxu1 %v16380_v41  ;;  %v16413_v41 = vld [vmem:[%s24330_s4 + $0x4] ss:$16 sps:$4 sm:$0xff]  }
 0x316   :  { %v20723_v48 = vadd.f32 %v5828_v38, %v5788_v16  ;;  %v5790_v50 = vadd.f32 %v5789_v19, %v946_v40  ;;  %12364 = vmatpush1.bf16.msra.mxu0 %v16375_v21  ;;  %v16405_v38 = vld [vmem:[%s24330_s4 + $0x20] ss:$16 sps:$4 sm:$0xff]   ;;  %v16416_v37 = vld [vmem:[%s24330_s4 + $0x204] ss:$16 sps:$4 sm:$0xff]  }
 0x317   :  { %v5791_v52 = vpop.f32.mrf.mxu1  ;;  %v5833_v8 = vpop.f32.mrf.mxu0  ;;  %12365 = vmatprep.subr.bf16.mxu0 %v16383_v46  ;;  %v16408_v40 = vld [vmem:[%s24330_s4 + $0x220] ss:$16 sps:$4 sm:$0xff]  }
 0x318   :  { %v20728_v63 = vadd.f32 %v5830_v18, %v5790_v50  ;;  %12405 = vmatpush1.bf16.msra.mxu1 %v16378_v47  ;;  %v16411_v21 = vld [vmem:[%s24330_s4] ss:$16 sps:$4 sm:$0xff]   ;;  %v16419_v18 = vld [vmem:[%s24330_s4 + $0x1e4] ss:$16 sps:$4 sm:$0xff]  }
 0x319   :  { %v5792_v9 = vpop.f32.mrf.mxu1  ;;  %12406 = vmatprep.subr.bf16.mxu1 %v16386_v44  ;;  %v16414_v16 = vld [vmem:[%s24330_s4 + $0x200] ss:$16 sps:$4 sm:$0xff]   ;;  %v16422_v47 = vld [vmem:[%s24330_s4 + $0x3e4] ss:$16 sps:$4 sm:$0xff]  }
 0x31a   :  { %12366 = vmatpush1.bf16.msra.mxu0 %v16381_v58  ;;  %v16417_v46 = vld [vmem:[%s24330_s4 + $0x1e0] ss:$16 sps:$4 sm:$0xff]   ;;  %v16425_v44 = vld [vmem:[%s24330_s4 + $0x1c4] ss:$16 sps:$4 sm:$0xff]  }
 0x31b   :  { %12367 = vmatprep.subr.bf16.mxu0 %v16389_v49  ;;  %v16420_v19 = vld [vmem:[%s24330_s4 + $0x3e0] ss:$16 sps:$4 sm:$0xff]   ;;  %v16428_v50 = vld [vmem:[%s24330_s4 + $0x3c4] ss:$16 sps:$4 sm:$0xff]  }
 0x31c   :  { %12407 = vmatpush1.bf16.msra.mxu1 %v16384_v2  ;;  %v16423_v52 = vld [vmem:[%s24330_s4 + $0x1c0] ss:$16 sps:$4 sm:$0xff]   ;;  %v16431_v8 = vld [vmem:[%s24330_s4 + $0x1a4] ss:$16 sps:$4 sm:$0xff]  }
 0x31d   :  { %12408 = vmatprep.subr.bf16.mxu1 %v16392_v10  ;;  %v16426_v58 = vld [vmem:[%s24330_s4 + $0x3c0] ss:$16 sps:$4 sm:$0xff]   ;;  %v16434_v49 = vld [vmem:[%s24330_s4 + $0x3a4] ss:$16 sps:$4 sm:$0xff]  }
 0x31e   :  { %12368 = vmatpush1.bf16.msra.mxu0 %v16387_v12  ;;  %v16429_v10 = vld [vmem:[%s24330_s4 + $0x1a0] ss:$16 sps:$4 sm:$0xff]  }
 0x31f   :  { %12369 = vmatprep.subr.bf16.mxu0 %v16395_v17  ;;  %v16432_v12 = vld [vmem:[%s24330_s4 + $0x3a0] ss:$16 sps:$4 sm:$0xff]  }
 0x320   :  { %12409 = vmatpush1.bf16.msra.mxu1 %v16390_v1  ;;  %v16437_v1 = vld [vmem:[%s24330_s4 + $0x184] ss:$16 sps:$4 sm:$0xff]  }
 0x321   :  { %12410 = vmatprep.subr.bf16.mxu1 %v16398_v3  ;;  %v16440_v3 = vld [vmem:[%s24330_s4 + $0x384] ss:$16 sps:$4 sm:$0xff]  }
 0x322   :  { %12370 = vmatpush1.bf16.msra.mxu0 %v16393_v35  ;;  %v16435_v35 = vld [vmem:[%s24330_s4 + $0x180] ss:$16 sps:$4 sm:$0xff]  }
 0x323   :  { %12371 = vmatprep.subr.bf16.mxu0 %v16401_v20  ;;  %v16443_v20 = vld [vmem:[%s24330_s4 + $0x164] ss:$16 sps:$4 sm:$0xff]  }
 0x324   :  { %12411 = vmatpush1.bf16.msra.mxu1 %v16396_v29  ;;  %v16438_v29 = vld [vmem:[%s24330_s4 + $0x380] ss:$16 sps:$4 sm:$0xff]  }
 0x325   :  { %12412 = vmatprep.subr.bf16.mxu1 %v16404_v25  ;;  %v16446_v25 = vld [vmem:[%s24330_s4 + $0x364] ss:$16 sps:$4 sm:$0xff]  }
 0x326   :  { %12372 = vmatpush1.bf16.msra.mxu0 %v16399_v57  ;;  %v16441_v57 = vld [vmem:[%s24330_s4 + $0x160] ss:$16 sps:$4 sm:$0xff]  }
 0x327   :  { %12373 = vmatprep.subr.bf16.mxu0 %v16407_v27  ;;  %v16449_v27 = vld [vmem:[%s24330_s4 + $0x144] ss:$16 sps:$4 sm:$0xff]  }
 0x328   :  { %12413 = vmatpush1.bf16.msra.mxu1 %v16402_v54  ;;  %v16444_v54 = vld [vmem:[%s24330_s4 + $0x360] ss:$16 sps:$4 sm:$0xff]  }
 0x329   :  { %12414 = vmatprep.subr.bf16.mxu1 %v16410_v32  ;;  %v16452_v32 = vld [vmem:[%s24330_s4 + $0x344] ss:$16 sps:$4 sm:$0xff]  }
 0x32a   :  { %12374 = vmatpush1.bf16.msra.mxu0 %v16405_v38  ;;  %v16447_v38 = vld [vmem:[%s24330_s4 + $0x140] ss:$16 sps:$4 sm:$0xff]  }
 0x32b   :  { %12375 = vmatprep.subr.bf16.mxu0 %v16413_v41  ;;  %v16455_v41 = vld [vmem:[%s24330_s4 + $0x124] ss:$16 sps:$4 sm:$0xff]  }
 0x32c   :  { %12415 = vmatpush1.bf16.msra.mxu1 %v16408_v40  ;;  %v16450_v40 = vld [vmem:[%s24330_s4 + $0x340] ss:$16 sps:$4 sm:$0xff]  }
 0x32d   :  { %12416 = vmatprep.subr.bf16.mxu1 %v16416_v37  ;;  %v16458_v37 = vld [vmem:[%s24330_s4 + $0x324] ss:$16 sps:$4 sm:$0xff]  }
 0x32e   :  { %12376 = vmatpush1.bf16.msra.mxu0 %v16411_v21  ;;  %v16453_v21 = vld [vmem:[%s24330_s4 + $0x120] ss:$16 sps:$4 sm:$0xff]  }
 0x32f   :  { %12377 = vmatprep.subr.bf16.mxu0 %v16419_v18  ;;  %v16461_v18 = vld [vmem:[%s24330_s4 + $0x104] ss:$16 sps:$4 sm:$0xff]  }
 0x330   :  { %12417 = vmatpush1.bf16.msra.mxu1 %v16414_v16  ;;  %v16456_v16 = vld [vmem:[%s24330_s4 + $0x320] ss:$16 sps:$4 sm:$0xff]  }
 0x331   :  { %12418 = vmatprep.subr.bf16.mxu1 %v16422_v47  ;;  %v16464_v47 = vld [vmem:[%s24330_s4 + $0x304] ss:$16 sps:$4 sm:$0xff]  }
 0x332   :  { %12378 = vmatpush2.bf16.msra.mxu0 %v16417_v46  ;;  %v16459_v46 = vld [vmem:[%s24330_s4 + $0x100] ss:$16 sps:$4 sm:$0xff]  }
 0x333   :  { %v20811_v51 = vpop.f32.mrf.mxu1  ;;  %12379 = vmatprep.subr.bf16.mxu0 %v16425_v44  ;;  %v20896_v44 = vld [vmem:[%s24329_s29 + $0x18] sm:$0xff] }
 0x334   :  { %12419 = vmatpush2.bf16.msra.mxu1 %v16420_v19  ;;  %v16462_v19 = vld [vmem:[%s24330_s4 + $0x300] ss:$16 sps:$4 sm:$0xff]  }
 0x335   :  { %v20822_v2 = vpop.f32.mrf.mxu1  ;;  %12420 = vmatprep.subr.bf16.mxu1 %v16428_v50  ;;  %v16467_v50 = vld [vmem:[%s24330_s4 + $0x4e4] ss:$16 sps:$4 sm:$0xff]  }
 0x336   :  { %12380 = vmatpush2.bf16.msra.mxu0 %v16423_v52  ;;  %v16470_v52 = vld [vmem:[%s24330_s4 + $0x6e4] ss:$16 sps:$4 sm:$0xff]  }
 0x337   :  { %v5914_v9 = vpop.f32.mrf.mxu1  ;;  %12381 = vmatprep.subr.bf16.mxu0 %v16431_v8  ;;  %v16465_v8 = vld [vmem:[%s24330_s4 + $0x4e0] ss:$16 sps:$4 sm:$0xff]  }
 0x338   :  { %12421 = vmatpush2.bf16.msra.mxu1 %v16426_v58  ;;  %v950_v58 = vrot.slane %v20896_v44, %v18948_v45  ;;  %v16468_v9 = vld [vmem:[%s24330_s4 + $0x6e0] ss:$16 sps:$4 sm:$0xff]  }
 0x339   :  { %v5915_v17 = vpop.f32.mrf.mxu1  ;;  %12422 = vmatprep.subr.bf16.mxu1 %v16434_v49  ;;  %v20911_v49 = vpack.c.bf16 %v18993_v14, %v18993_v14  ;;  %v20927_v14 = vpack.c.bf16 %v19334_v36, %v19334_v36  ;;  %v16471_v36 = vld [vmem:[%s24330_s4 + $0x4c0] ss:$16 sps:$4 sm:$0xff]  }
 0x33a   :  { %12382 = vmatpush2.bf16.msra.mxu0 %v16429_v10  ;;  %v20918_v10 = vpack.c.bf16 %v19110_v39, %v19110_v39  ;;  %v16476_v39 = vld [vmem:[%s24330_s4 + $0x6c4] ss:$16 sps:$4 sm:$0xff]  }
 0x33b   :  { %12383 = vmatprep.subr.bf16.mxu0 %v16437_v1  ;;  %v16473_v1 = vld [vmem:[%s24330_s4 + $0x4c4] ss:$16 sps:$4 sm:$0xff]  }
 0x33c   :  { %12423 = vmatpush2.bf16.msra.mxu1 %v16432_v12  ;;  %v954_v12 = vrot.slane %v20896_v44, %v18960_v53 }
 0x33d   :  { %12424 = vmatprep.subr.bf16.mxu1 %v16440_v3  ;;  %v20935_v3 = vpack.c.bf16 %v19448_v23, %v19448_v23  ;;  %v16479_v23 = vld [vmem:[%s24330_s4 + $0x4a4] ss:$16 sps:$4 sm:$0xff]  }
 0x33e   :  { %12384 = vmatpush2.bf16.msra.mxu0 %v16435_v35 }
 0x33f   :  { %12385 = vmatprep.subr.bf16.mxu0 %v16443_v20  ;;  %v16474_v20 = vld [vmem:[%s24330_s4 + $0x6c0] ss:$16 sps:$4 sm:$0xff]  }
 0x340   :  { %12425 = vmatpush2.bf16.msra.mxu1 %v16438_v29 }
 0x341   :  { %12426 = vmatprep.subr.bf16.mxu1 %v16446_v25 }
 0x342   :  { %12386 = vmatpush2.bf16.msra.mxu0 %v16441_v57 }
 0x343   :  { %12387 = vmatprep.subr.bf16.mxu0 %v16449_v27 }
 0x344   :  { %12427 = vmatpush2.bf16.msra.mxu1 %v16444_v54  ;;  %v16482_v54 = vld [vmem:[%s24330_s4 + $0x6a4] ss:$16 sps:$4 sm:$0xff]  }
 0x345   :  { %12428 = vmatprep.subr.bf16.mxu1 %v16452_v32 }
 0x346   :  { %12388 = vmatpush2.bf16.msra.mxu0 %v16447_v38  ;;  %v16477_v38 = vld [vmem:[%s24330_s4 + $0x4a0] ss:$16 sps:$4 sm:$0xff]  }
 0x347   :  { %12389 = vmatprep.subr.bf16.mxu0 %v16455_v41  ;;  %v16485_v41 = vld [vmem:[%s24330_s4 + $0x484] ss:$16 sps:$4 sm:$0xff]  }
 0x348   :  { %12429 = vmatpush2.bf16.msra.mxu1 %v16450_v40  ;;  %v16480_v40 = vld [vmem:[%s24330_s4 + $0x6a0] ss:$16 sps:$4 sm:$0xff]  }
 0x349   :  { %12430 = vmatprep.subr.bf16.mxu1 %v16458_v37  ;;  %v16483_v37 = vld [vmem:[%s24330_s4 + $0x480] ss:$16 sps:$4 sm:$0xff]  }
 0x34a   :  { %12390 = vmatpush2.bf16.msra.mxu0 %v16453_v21  ;;  %v16486_v21 = vld [vmem:[%s24330_s4 + $0x680] ss:$16 sps:$4 sm:$0xff]  }
 0x34b   :  { %12391 = vmatprep.subr.bf16.mxu0 %v16461_v18  ;;  %v16494_v18 = vld [vmem:[%s24330_s4 + $0x664] ss:$16 sps:$4 sm:$0xff]  }
 0x34c   :  { %12431 = vmatpush2.bf16.msra.mxu1 %v16456_v16  ;;  %v16491_v16 = vld [vmem:[%s24330_s4 + $0x464] ss:$16 sps:$4 sm:$0xff]  }
 0x34d   :  { %12432 = vmatprep.subr.bf16.mxu1 %v16464_v47  ;;  %v16489_v47 = vld [vmem:[%s24330_s4 + $0x460] ss:$16 sps:$4 sm:$0xff]  }
 0x34e   :  { %12392 = vmatpush2.bf16.msra.mxu0 %v16459_v46  ;;  %v16492_v46 = vld [vmem:[%s24330_s4 + $0x660] ss:$16 sps:$4 sm:$0xff]  }
 0x34f   :  { %12443 = vmatprep.subr.bf16.mxu0 %v16467_v50  ;;  %v16500_v50 = vld [vmem:[%s24330_s4 + $0x644] ss:$16 sps:$4 sm:$0xff]  }
 0x350   :  { %12433 = vmatpush2.bf16.msra.mxu1 %v16462_v19  ;;  %v16497_v19 = vld [vmem:[%s24330_s4 + $0x444] ss:$16 sps:$4 sm:$0xff]  }
 0x351   :  { %12484 = vmatprep.subr.bf16.mxu1 %v16470_v52  ;;  %v5869_v17 = vpop.f32.mrf.mxu0  ;;  %12394 = vmatmul.mubr.bf16.vlgmr.msra.gmra.mxu0 %v20911_v49  ;;  %v16495_v52 = vld [vmem:[%s24330_s4 + $0x440] ss:$16 sps:$4 sm:$0xff]  }
 0x352   :  { %v5870_v35 = vadd.f32 %v5869_v17, %v950_v58  ;;  %12444 = vmatpush1.bf16.msra.mxu0 %v16465_v8  ;;  %12475 = vmatprep.mubr.bf16.mxu0 %v20927_v14  ;;  %v16498_v58 = vld [vmem:[%s24330_s4 + $0x640] ss:$16 sps:$4 sm:$0xff]   ;;  %v16503_v8 = vld [vmem:[%s24330_s4 + $0x424] ss:$16 sps:$4 sm:$0xff]  }
 0x353   :  { %12435 = vmatmul.mubr.bf16.vlgmr.msra.gmra.mxu1 %v20918_v10  ;;  %v5871_v29 = vpop.f32.mrf.mxu0  ;;  %12445 = vmatprep.subr.bf16.mxu0 %v16473_v1  ;;  %v16504_v1 = vld [vmem:[%s24330_s4 + $0x620] ss:$16 sps:$4 sm:$0xff]   ;;  %v16509_v17 = vld [vmem:[%s24330_s4 + $0x404] ss:$16 sps:$4 sm:$0xff]  }
 0x354   :  { %12485 = vmatpush1.bf16.msra.mxu1 %v16468_v9  ;;  %v20949_v25 = vadd.f32 %v20811_v51, %v5870_v35  ;;  %12516 = vmatprep.mubr.bf16.mxu1 %v20935_v3  ;;  %v5872_v57 = vadd.f32 %v5871_v29, %v954_v12  ;;  %v16506_v9 = vld [vmem:[%s24330_s4 + $0x624] ss:$16 sps:$4 sm:$0xff]   ;;  %v16501_v12 = vld [vmem:[%s24330_s4 + $0x420] ss:$16 sps:$4 sm:$0xff]  }
 0x355   :  { %v5873_v27 = vpop.f32.mrf.mxu0  ;;  %12486 = vmatprep.subr.bf16.mxu1 %v16476_v39  ;;  %v16512_v39 = vld [vmem:[%s24330_s4 + $0x604] ss:$16 sps:$4 sm:$0xff]   ;;  %v16507_v35 = vld [vmem:[%s24330_s4 + $0x400] ss:$16 sps:$4 sm:$0xff]  }
 0x356   :  { %v20956_v32 = vadd.f32 %v20822_v2, %v5872_v57  ;;  %12446 = vmatpush1.bf16.msra.mxu0 %v16471_v36  ;;  %v16488_v2 = vld [vmem:[%s24330_s4 + $0x684] ss:$16 sps:$4 sm:$0xff]   ;;  %v16510_v36 = vld [vmem:[%s24330_s4 + $0x600] ss:$16 sps:$4 sm:$0xff]   ;;  %v958_v57 = vrot.slane %v20896_v44, %v19062_v6 }
 0x357   :  { %v5874_v51 = vpop.f32.mrf.mxu0  ;;  %12447 = vmatprep.subr.bf16.mxu0 %v16479_v23  ;;  %v16515_v29 = vld [vmem:[%s24330_s4 + $0x5e4] ss:$16 sps:$4 sm:$0xff]   ;;  %v16513_v23 = vld [vmem:[%s24330_s4 + $0x5e0] ss:$16 sps:$4 sm:$0xff]  }
 0x358   :  { %12487 = vmatpush1.bf16.msra.mxu1 %v16474_v20  ;;  %v16518_v20 = vld [vmem:[%s24330_s4 + $0x7e4] ss:$16 sps:$4 sm:$0xff]  }
 0x359   :  { %12488 = vmatprep.subr.bf16.mxu1 %v16482_v54  ;;  %v16516_v54 = vld [vmem:[%s24330_s4 + $0x7e0] ss:$16 sps:$4 sm:$0xff]   ;;  %v16521_v27 = vld [vmem:[%s24330_s4 + $0x5c4] ss:$16 sps:$4 sm:$0xff]  }
 0x35a   :  { %12448 = vmatpush1.bf16.msra.mxu0 %v16477_v38  ;;  %v16524_v38 = vld [vmem:[%s24330_s4 + $0x7c4] ss:$16 sps:$4 sm:$0xff]  }
 0x35b   :  { %12449 = vmatprep.subr.bf16.mxu0 %v16485_v41 }
 0x35c   :  { %12489 = vmatpush1.bf16.msra.mxu1 %v16480_v40  ;;  %v962_v40 = vrot.slane %v20896_v44, %v19077_v15 }
 0x35d   :  { %12490 = vmatprep.subr.bf16.mxu1 %v16488_v2  ;;  %v16519_v2 = vld [vmem:[%s24330_s4 + $0x5c0] ss:$16 sps:$4 sm:$0xff]  }
 0x35e   :  { %12450 = vmatpush1.bf16.msra.mxu0 %v16483_v37 }
 0x35f   :  { %12451 = vmatprep.subr.bf16.mxu0 %v16491_v16  ;;  %v16522_v16 = vld [vmem:[%s24330_s4 + $0x7c0] ss:$16 sps:$4 sm:$0xff]  }
 0x360   :  { %12491 = vmatpush1.bf16.msra.mxu1 %v16486_v21 }
 0x361   :  { %12492 = vmatprep.subr.bf16.mxu1 %v16494_v18  ;;  %v16527_v18 = vld [vmem:[%s24330_s4 + $0x5a4] ss:$16 sps:$4 sm:$0xff]  }
 0x362   :  { %12452 = vmatpush1.bf16.msra.mxu0 %v16489_v47 }
 0x363   :  { %12453 = vmatprep.subr.bf16.mxu0 %v16497_v19 }
 0x364   :  { %12493 = vmatpush1.bf16.msra.mxu1 %v16492_v46  ;;  %v16530_v46 = vld [vmem:[%s24330_s4 + $0x7a4] ss:$16 sps:$4 sm:$0xff]  }
 0x365   :  { %12494 = vmatprep.subr.bf16.mxu1 %v16500_v50 }
 0x366   :  { %12454 = vmatpush1.bf16.msra.mxu0 %v16495_v52 }
 0x367   :  { %12455 = vmatprep.subr.bf16.mxu0 %v16503_v8  ;;  %v16525_v8 = vld [vmem:[%s24330_s4 + $0x5a0] ss:$16 sps:$4 sm:$0xff]  }
 0x368   :  { %12495 = vmatpush1.bf16.msra.mxu1 %v16498_v58 }
 0x369   :  { %12496 = vmatprep.subr.bf16.mxu1 %v16506_v9 }
 0x36a   :  { %12456 = vmatpush1.bf16.msra.mxu0 %v16501_v12 }
 0x36b   :  { %12457 = vmatprep.subr.bf16.mxu0 %v16509_v17  ;;  %v16533_v17 = vld [vmem:[%s24330_s4 + $0x584] ss:$16 sps:$4 sm:$0xff]  }
 0x36c   :  { %12497 = vmatpush1.bf16.msra.mxu1 %v16504_v1  ;;  %v16528_v1 = vld [vmem:[%s24330_s4 + $0x7a0] ss:$16 sps:$4 sm:$0xff]  }
 0x36d   :  { %12498 = vmatprep.subr.bf16.mxu1 %v16512_v39 }
 0x36e   :  { %12458 = vmatpush1.bf16.msra.mxu0 %v16507_v35  ;;  %v16536_v35 = vld [vmem:[%s24330_s4 + $0x784] ss:$16 sps:$4 sm:$0xff]  }
 0x36f   :  { %12459 = vmatprep.subr.bf16.mxu0 %v16515_v29  ;;  %v16534_v29 = vld [vmem:[%s24330_s4 + $0x780] ss:$16 sps:$4 sm:$0xff]  }
 0x370   :  { %12499 = vmatpush1.bf16.msra.mxu1 %v16510_v36  ;;  %v16531_v36 = vld [vmem:[%s24330_s4 + $0x580] ss:$16 sps:$4 sm:$0xff]  }
 0x371   :  { %12500 = vmatprep.subr.bf16.mxu1 %v16518_v20  ;;  %v5992_v51 = vpop.f32.mrf.mxu0  ;;  %v16539_v20 = vld [vmem:[%s24330_s4 + $0x564] ss:$16 sps:$4 sm:$0xff]  }
 0x372   :  { %12460 = vmatpush2.bf16.msra.mxu0 %v16513_v23  ;;  %v16542_v23 = vld [vmem:[%s24330_s4 + $0x764] ss:$16 sps:$4 sm:$0xff]  }
 0x373   :  { %v5951_v41 = vpop.f32.mrf.mxu1  ;;  %v5994_v21 = vpop.f32.mrf.mxu0  ;;  %12461 = vmatprep.subr.bf16.mxu0 %v16521_v27  ;;  %v16545_v27 = vld [vmem:[%s24330_s4 + $0x544] ss:$16 sps:$4 sm:$0xff]  }
 0x374   :  { %v5952_v37 = vadd.f32 %v5951_v41, %v958_v57  ;;  %12501 = vmatpush2.bf16.msra.mxu1 %v16516_v54  ;;  %v16537_v57 = vld [vmem:[%s24330_s4 + $0x560] ss:$16 sps:$4 sm:$0xff]   ;;  %v16551_v41 = vld [vmem:[%s24330_s4 + $0x524] ss:$16 sps:$4 sm:$0xff]  }
 0x375   :  { %v5953_v47 = vpop.f32.mrf.mxu1  ;;  %12502 = vmatprep.subr.bf16.mxu1 %v16524_v38  ;;  %v5996_v52 = vpop.f32.mrf.mxu0  ;;  %v16540_v54 = vld [vmem:[%s24330_s4 + $0x760] ss:$16 sps:$4 sm:$0xff]   ;;  %v16548_v38 = vld [vmem:[%s24330_s4 + $0x744] ss:$16 sps:$4 sm:$0xff]  }
 0x376   :  { %v21058_v19 = vadd.f32 %v5992_v51, %v5952_v37  ;;  %v5954_v50 = vadd.f32 %v5953_v47, %v962_v40  ;;  %12462 = vmatpush2.bf16.msra.mxu0 %v16519_v2  ;;  %v16543_v51 = vld [vmem:[%s24330_s4 + $0x540] ss:$16 sps:$4 sm:$0xff]   ;;  %v16554_v2 = vld [vmem:[%s24330_s4 + $0x724] ss:$16 sps:$4 sm:$0xff]  }
 0x377   :  { %v5955_v58 = vpop.f32.mrf.mxu1  ;;  %v5997_v12 = vpop.f32.mrf.mxu0  ;;  %12463 = vmatprep.subr.bf16.mxu0 %v16527_v18  ;;  %v16546_v40 = vld [vmem:[%s24330_s4 + $0x740] ss:$16 sps:$4 sm:$0xff]   ;;  %v16560_v18 = vld [vmem:[%s24330_s4 + $0x704] ss:$16 sps:$4 sm:$0xff]  }
 0x378   :  { %v21063_v9 = vadd.f32 %v5994_v21, %v5954_v50  ;;  %12503 = vmatpush2.bf16.msra.mxu1 %v16522_v16  ;;  %v16549_v37 = vld [vmem:[%s24330_s4 + $0x520] ss:$16 sps:$4 sm:$0xff]   ;;  %v16557_v16 = vld [vmem:[%s24330_s4 + $0x504] ss:$16 sps:$4 sm:$0xff]  }
 0x379   :  { %v5956_v39 = vpop.f32.mrf.mxu1  ;;  %12504 = vmatprep.subr.bf16.mxu1 %v16530_v46  ;;  %v16552_v21 = vld [vmem:[%s24330_s4 + $0x720] ss:$16 sps:$4 sm:$0xff]   ;;  %v16563_v50 = vld [vmem:[%s24330_s4 + $0x8e4] ss:$16 sps:$4 sm:$0xff]  }
 0x37a   :  { %12464 = vmatpush2.bf16.msra.mxu0 %v16525_v8  ;;  %v16555_v47 = vld [vmem:[%s24330_s4 + $0x500] ss:$16 sps:$4 sm:$0xff]   ;;  %v16566_v52 = vld [vmem:[%s24330_s4 + $0xae4] ss:$16 sps:$4 sm:$0xff]   ;;  %v21139_v8 = vpack.c.bf16 %v19328_v31, %v19328_v31  ;;  %v21153_v39 = vpack.c.bf16 %v19663_v43, %v19663_v43 }
 0x37b   :  { %12465 = vmatprep.subr.bf16.mxu0 %v16533_v17  ;;  %v16558_v46 = vld [vmem:[%s24330_s4 + $0x700] ss:$16 sps:$4 sm:$0xff]   ;;  %v16569_v17 = vld [vmem:[%s24330_s4 + $0x8c4] ss:$16 sps:$4 sm:$0xff]  }
 0x37c   :  { %12505 = vmatpush2.bf16.msra.mxu1 %v16528_v1  ;;  %v16561_v58 = vld [vmem:[%s24330_s4 + $0x8e0] ss:$16 sps:$4 sm:$0xff]   ;;  %v21146_v1 = vpack.c.bf16 %v19445_v13, %v19445_v13  ;;  %v16572_v31 = vld [vmem:[%s24330_s4 + $0xac4] ss:$16 sps:$4 sm:$0xff]  }
 0x37d   :  { %12506 = vmatprep.subr.bf16.mxu1 %v16536_v35  ;;  %v16564_v12 = vld [vmem:[%s24330_s4 + $0xae0] ss:$16 sps:$4 sm:$0xff]   ;;  %v21161_v35 = vpack.c.bf16 %v19771_v26, %v19771_v26  ;;  %v16575_v26 = vld [vmem:[%s24330_s4 + $0x8a4] ss:$16 sps:$4 sm:$0xff]  }
 0x37e   :  { %12466 = vmatpush2.bf16.msra.mxu0 %v16531_v36  ;;  %v16567_v43 = vld [vmem:[%s24330_s4 + $0x8c0] ss:$16 sps:$4 sm:$0xff]  }
 0x37f   :  { %12467 = vmatprep.subr.bf16.mxu0 %v16539_v20  ;;  %v16570_v36 = vld [vmem:[%s24330_s4 + $0xac0] ss:$16 sps:$4 sm:$0xff]   ;;  %v16578_v20 = vld [vmem:[%s24330_s4 + $0xaa4] ss:$16 sps:$4 sm:$0xff]  }
 0x380   :  { %12507 = vmatpush2.bf16.msra.mxu1 %v16534_v29 }
 0x381   :  { %12508 = vmatprep.subr.bf16.mxu1 %v16542_v23 }
 0x382   :  { %12468 = vmatpush2.bf16.msra.mxu0 %v16537_v57  ;;  %v16573_v57 = vld [vmem:[%s24330_s4 + $0x8a0] ss:$16 sps:$4 sm:$0xff]  }
 0x383   :  { %12469 = vmatprep.subr.bf16.mxu0 %v16545_v27  ;;  %v16581_v27 = vld [vmem:[%s24330_s4 + $0x884] ss:$16 sps:$4 sm:$0xff]  }
 0x384   :  { %12509 = vmatpush2.bf16.msra.mxu1 %v16540_v54  ;;  %v16576_v54 = vld [vmem:[%s24330_s4 + $0xaa0] ss:$16 sps:$4 sm:$0xff]  }
 0x385   :  { %12510 = vmatprep.subr.bf16.mxu1 %v16548_v38 }
 0x386   :  { %12470 = vmatpush2.bf16.msra.mxu0 %v16543_v51  ;;  %v16584_v51 = vld [vmem:[%s24330_s4 + $0xa84] ss:$16 sps:$4 sm:$0xff]  }
 0x387   :  { %12471 = vmatprep.subr.bf16.mxu0 %v16551_v41  ;;  %v16582_v41 = vld [vmem:[%s24330_s4 + $0xa80] ss:$16 sps:$4 sm:$0xff]  }
 0x388   :  { %12511 = vmatpush2.bf16.msra.mxu1 %v16546_v40  ;;  %v16579_v40 = vld [vmem:[%s24330_s4 + $0x880] ss:$16 sps:$4 sm:$0xff]  }
 0x389   :  { %12512 = vmatprep.subr.bf16.mxu1 %v16554_v2  ;;  %v16587_v2 = vld [vmem:[%s24330_s4 + $0x864] ss:$16 sps:$4 sm:$0xff]  }
 0x38a   :  { %12472 = vmatpush2.bf16.msra.mxu0 %v16549_v37  ;;  %v16590_v37 = vld [vmem:[%s24330_s4 + $0xa64] ss:$16 sps:$4 sm:$0xff]  }
 0x38b   :  { %12473 = vmatprep.subr.bf16.mxu0 %v16557_v16  ;;  %v16588_v16 = vld [vmem:[%s24330_s4 + $0xa60] ss:$16 sps:$4 sm:$0xff]  }
 0x38c   :  { %12513 = vmatpush2.bf16.msra.mxu1 %v16552_v21  ;;  %v16585_v21 = vld [vmem:[%s24330_s4 + $0x860] ss:$16 sps:$4 sm:$0xff]  }
 0x38d   :  { %12514 = vmatprep.subr.bf16.mxu1 %v16560_v18  ;;  %v16593_v18 = vld [vmem:[%s24330_s4 + $0x844] ss:$16 sps:$4 sm:$0xff]  }
 0x38e   :  { %12474 = vmatpush2.bf16.msra.mxu0 %v16555_v47  ;;  %v16596_v47 = vld [vmem:[%s24330_s4 + $0xa44] ss:$16 sps:$4 sm:$0xff]  }
 0x38f   :  { %12525 = vmatprep.subr.bf16.mxu0 %v16563_v50  ;;  %v16594_v50 = vld [vmem:[%s24330_s4 + $0xa40] ss:$16 sps:$4 sm:$0xff]  }
 0x390   :  { %12515 = vmatpush2.bf16.msra.mxu1 %v16558_v46  ;;  %v16591_v46 = vld [vmem:[%s24330_s4 + $0x840] ss:$16 sps:$4 sm:$0xff]  }
 0x391   :  { %12566 = vmatprep.subr.bf16.mxu1 %v16566_v52  ;;  %12476 = vmatmul.mubr.bf16.vlgmr.msra.gmra.mxu0 %v21139_v8  ;;  %v16599_v52 = vld [vmem:[%s24330_s4 + $0x824] ss:$16 sps:$4 sm:$0xff]  }
 0x392   :  { %12526 = vmatpush1.bf16.msra.mxu0 %v16561_v58  ;;  %12557 = vmatprep.mubr.bf16.mxu0 %v21153_v39  ;;  %v16602_v58 = vld [vmem:[%s24330_s4 + $0xa24] ss:$16 sps:$4 sm:$0xff]  }
 0x393   :  { %v21163_v13 = vpop.f32.mrf.mxu1  ;;  %12517 = vmatmul.mubr.bf16.vlgmr.msra.gmra.mxu1 %v21146_v1  ;;  %12527 = vmatprep.subr.bf16.mxu0 %v16569_v17  ;;  %v16600_v17 = vld [vmem:[%s24330_s4 + $0xa20] ss:$16 sps:$4 sm:$0xff]  }
 0x394   :  { %12567 = vmatpush1.bf16.msra.mxu1 %v16564_v12  ;;  %12598 = vmatprep.mubr.bf16.mxu1 %v21161_v35  ;;  %v16597_v12 = vld [vmem:[%s24330_s4 + $0x820] ss:$16 sps:$4 sm:$0xff]  }
 0x395   :  { %v21177_v29 = vpop.f32.mrf.mxu1  ;;  %12568 = vmatprep.subr.bf16.mxu1 %v16572_v31  ;;  %v16605_v31 = vld [vmem:[%s24330_s4 + $0x804] ss:$16 sps:$4 sm:$0xff]  }
 0x396   :  { %12528 = vmatpush1.bf16.msra.mxu0 %v16567_v43  ;;  %v16608_v43 = vld [vmem:[%s24330_s4 + $0xa04] ss:$16 sps:$4 sm:$0xff]  }
 0x397   :  { %v6078_v23 = vpop.f32.mrf.mxu1  ;;  %12529 = vmatprep.subr.bf16.mxu0 %v16575_v26  ;;  %v16606_v26 = vld [vmem:[%s24330_s4 + $0xa00] ss:$16 sps:$4 sm:$0xff]  }
 0x398   :  { %12569 = vmatpush1.bf16.msra.mxu1 %v16570_v36  ;;  %v16603_v36 = vld [vmem:[%s24330_s4 + $0x800] ss:$16 sps:$4 sm:$0xff]   ;;  %v16614_v23 = vld [vmem:[%s24330_s4 + $0xbe4] ss:$16 sps:$4 sm:$0xff]  }
 0x399   :  { %v6079_v38 = vpop.f32.mrf.mxu1  ;;  %12570 = vmatprep.subr.bf16.mxu1 %v16578_v20  ;;  %v16611_v20 = vld [vmem:[%s24330_s4 + $0x9e4] ss:$16 sps:$4 sm:$0xff]  }
 0x39a   :  { %12530 = vmatpush1.bf16.msra.mxu0 %v16573_v57  ;;  %v966_v57 = vrot.slane %v20896_v44, %v19278_v60  ;;  %v16617_v38 = vld [vmem:[%s24330_s4 + $0x9c4] ss:$16 sps:$4 sm:$0xff]  }
 0x39b   :  { %12531 = vmatprep.subr.bf16.mxu0 %v16581_v27  ;;  %v16612_v27 = vld [vmem:[%s24330_s4 + $0xbe0] ss:$16 sps:$4 sm:$0xff]   ;;  %v16620_v60 = vld [vmem:[%s24330_s4 + $0xbc4] ss:$16 sps:$4 sm:$0xff]  }
 0x39c   :  { %12571 = vmatpush1.bf16.msra.mxu1 %v16576_v54  ;;  %v16609_v54 = vld [vmem:[%s24330_s4 + $0x9e0] ss:$16 sps:$4 sm:$0xff]  }
 0x39d   :  { %12572 = vmatprep.subr.bf16.mxu1 %v16584_v51  ;;  %v970_v51 = vrot.slane %v20896_v44, %v19290_v5  ;;  %v16623_v5 = vld [vmem:[%s24330_s4 + $0x9a4] ss:$16 sps:$4 sm:$0xff]  }
 0x39e   :  { %12532 = vmatpush1.bf16.msra.mxu0 %v16579_v40 }
 0x39f   :  { %12533 = vmatprep.subr.bf16.mxu0 %v16587_v2  ;;  %v16615_v2 = vld [vmem:[%s24330_s4 + $0x9c0] ss:$16 sps:$4 sm:$0xff]  }
 0x3a0   :  { %12573 = vmatpush1.bf16.msra.mxu1 %v16582_v41 }
 0x3a1   :  { %12574 = vmatprep.subr.bf16.mxu1 %v16590_v37 }
 0x3a2   :  { %12534 = vmatpush1.bf16.msra.mxu0 %v16585_v21  ;;  %v16618_v21 = vld [vmem:[%s24330_s4 + $0xbc0] ss:$16 sps:$4 sm:$0xff]  }
 0x3a3   :  { %12535 = vmatprep.subr.bf16.mxu0 %v16593_v18 }
 0x3a4   :  { %12575 = vmatpush1.bf16.msra.mxu1 %v16588_v16 }
 0x3a5   :  { %12576 = vmatprep.subr.bf16.mxu1 %v16596_v47  ;;  %v16626_v47 = vld [vmem:[%s24330_s4 + $0xba4] ss:$16 sps:$4 sm:$0xff]  }
 0x3a6   :  { %12536 = vmatpush1.bf16.msra.mxu0 %v16591_v46 }
 0x3a7   :  { %12537 = vmatprep.subr.bf16.mxu0 %v16599_v52  ;;  %v16621_v52 = vld [vmem:[%s24330_s4 + $0x9a0] ss:$16 sps:$4 sm:$0xff]  }
 0x3a8   :  { %12577 = vmatpush1.bf16.msra.mxu1 %v16594_v50 }
 0x3a9   :  { %12578 = vmatprep.subr.bf16.mxu1 %v16602_v58 }
 0x3aa   :  { %12538 = vmatpush1.bf16.msra.mxu0 %v16597_v12  ;;  %v16629_v12 = vld [vmem:[%s24330_s4 + $0x984] ss:$16 sps:$4 sm:$0xff]  }
 0x3ab   :  { %12539 = vmatprep.subr.bf16.mxu0 %v16605_v31  ;;  %v16630_v31 = vld [vmem:[%s24330_s4 + $0xb80] ss:$16 sps:$4 sm:$0xff]  }
 0x3ac   :  { %12579 = vmatpush1.bf16.msra.mxu1 %v16600_v17  ;;  %v16627_v17 = vld [vmem:[%s24330_s4 + $0x980] ss:$16 sps:$4 sm:$0xff]  }
 0x3ad   :  { %12580 = vmatprep.subr.bf16.mxu1 %v16608_v43  ;;  %v16635_v43 = vld [vmem:[%s24330_s4 + $0x964] ss:$16 sps:$4 sm:$0xff]  }
 0x3ae   :  { %12540 = vmatpush1.bf16.msra.mxu0 %v16603_v36  ;;  %v16638_v36 = vld [vmem:[%s24330_s4 + $0xb64] ss:$16 sps:$4 sm:$0xff]  }
 0x3af   :  { %12541 = vmatprep.subr.bf16.mxu0 %v16611_v20  ;;  %v16636_v20 = vld [vmem:[%s24330_s4 + $0xb60] ss:$16 sps:$4 sm:$0xff]  }
 0x3b0   :  { %12581 = vmatpush1.bf16.msra.mxu1 %v16606_v26  ;;  %v16633_v26 = vld [vmem:[%s24330_s4 + $0x960] ss:$16 sps:$4 sm:$0xff]  }
 0x3b1   :  { %12582 = vmatprep.subr.bf16.mxu1 %v16614_v23  ;;  %v6033_v40 = vpop.f32.mrf.mxu0  ;;  %v16641_v23 = vld [vmem:[%s24330_s4 + $0x944] ss:$16 sps:$4 sm:$0xff]  }
 0x3b2   :  { %v6034_v41 = vadd.f32 %v6033_v40, %v966_v57  ;;  %12542 = vmatpush2.bf16.msra.mxu0 %v16609_v54  ;;  %v16644_v57 = vld [vmem:[%s24330_s4 + $0xb44] ss:$16 sps:$4 sm:$0xff]   ;;  %v16639_v54 = vld [vmem:[%s24330_s4 + $0x940] ss:$16 sps:$4 sm:$0xff]  }
 0x3b3   :  { %v6035_v37 = vpop.f32.mrf.mxu0  ;;  %12543 = vmatprep.subr.bf16.mxu0 %v16617_v38  ;;  %v16647_v38 = vld [vmem:[%s24330_s4 + $0x924] ss:$16 sps:$4 sm:$0xff]   ;;  %v16648_v40 = vld [vmem:[%s24330_s4 + $0xb20] ss:$16 sps:$4 sm:$0xff]  }
 0x3b4   :  { %12583 = vmatpush2.bf16.msra.mxu1 %v16612_v27  ;;  %v21280_v16 = vadd.f32 %v21163_v13, %v6034_v41  ;;  %v6036_v18 = vadd.f32 %v6035_v37, %v970_v51  ;;  %v16624_v13 = vld [vmem:[%s24330_s4 + $0xba0] ss:$16 sps:$4 sm:$0xff]   ;;  %v16650_v51 = vld [vmem:[%s24330_s4 + $0xb24] ss:$16 sps:$4 sm:$0xff]  }
 0x3b5   :  { %12584 = vmatprep.subr.bf16.mxu1 %v16620_v60  ;;  %v6037_v46 = vpop.f32.mrf.mxu0  ;;  %v16642_v27 = vld [vmem:[%s24330_s4 + $0xb40] ss:$16 sps:$4 sm:$0xff]   ;;  %v16653_v41 = vld [vmem:[%s24330_s4 + $0x904] ss:$16 sps:$4 sm:$0xff]  }
 0x3b6   :  { %v21286_v50 = vadd.f32 %v21177_v29, %v6036_v18  ;;  %12544 = vmatpush2.bf16.msra.mxu0 %v16615_v2  ;;  %v16632_v29 = vld [vmem:[%s24330_s4 + $0xb84] ss:$16 sps:$4 sm:$0xff]   ;;  %v16645_v60 = vld [vmem:[%s24330_s4 + $0x920] ss:$16 sps:$4 sm:$0xff]   ;;  %v21365_v46 = vpack.c.bf16 %v19657_v28, %v19657_v28  ;;  %v21381_v28 = vpack.c.bf16 %v19986_v7, %v19986_v7 }
 0x3b7   :  { %v6038_v58 = vpop.f32.mrf.mxu0  ;;  %12545 = vmatprep.subr.bf16.mxu0 %v16623_v5  ;;  %v16656_v2 = vld [vmem:[%s24330_s4 + $0xb04] ss:$16 sps:$4 sm:$0xff]   ;;  %v16651_v37 = vld [vmem:[%s24330_s4 + $0x900] ss:$16 sps:$4 sm:$0xff]  }
 0x3b8   :  { %12585 = vmatpush2.bf16.msra.mxu1 %v16618_v21  ;;  %v16654_v21 = vld [vmem:[%s24330_s4 + $0xb00] ss:$16 sps:$4 sm:$0xff]   ;;  %v16659_v5 = vld [vmem:[%s24330_s4 + $0xce4] ss:$16 sps:$4 sm:$0xff]  }
 0x3b9   :  { %12586 = vmatprep.subr.bf16.mxu1 %v16626_v47  ;;  %v16662_v18 = vld [vmem:[%s24330_s4 + $0xee4] ss:$16 sps:$4 sm:$0xff]   ;;  %v16657_v47 = vld [vmem:[%s24330_s4 + $0xce0] ss:$16 sps:$4 sm:$0xff]  }
 0x3ba   :  { %12546 = vmatpush2.bf16.msra.mxu0 %v16621_v52  ;;  %v974_v52 = vrot.slane %v20896_v44, %v19397_v33  ;;  %v16660_v58 = vld [vmem:[%s24330_s4 + $0xee0] ss:$16 sps:$4 sm:$0xff]   ;;  %v978_v33 = vrot.slane %v20896_v44, %v19412_v56 }
 0x3bb   :  { %12547 = vmatprep.subr.bf16.mxu0 %v16629_v12  ;;  %v16665_v12 = vld [vmem:[%s24330_s4 + $0xcc4] ss:$16 sps:$4 sm:$0xff]   ;;  %v16663_v7 = vld [vmem:[%s24330_s4 + $0xcc0] ss:$16 sps:$4 sm:$0xff]  }
 0x3bc   :  { %12587 = vmatpush2.bf16.msra.mxu1 %v16624_v13  ;;  %v21374_v13 = vpack.c.bf16 %v19768_v24, %v19768_v24  ;;  %v16668_v24 = vld [vmem:[%s24330_s4 + $0xec4] ss:$16 sps:$4 sm:$0xff]   ;;  %v16666_v44 = vld [vmem:[%s24330_s4 + $0xec0] ss:$16 sps:$4 sm:$0xff]  }
 0x3bd   :  { %12588 = vmatprep.subr.bf16.mxu1 %v16632_v29 }
 0x3be   :  { %12548 = vmatpush2.bf16.msra.mxu0 %v16627_v17  ;;  %v21391_v17 = vpack.c.bf16 %v20094_v11, %v20094_v11  ;;  %v16671_v11 = vld [vmem:[%s24330_s4 + $0xca4] ss:$16 sps:$4 sm:$0xff]  }
 0x3bf   :  { %12549 = vmatprep.subr.bf16.mxu0 %v16635_v43 }
 0x3c0   :  { %12589 = vmatpush2.bf16.msra.mxu1 %v16630_v31 }
 0x3c1   :  { %12590 = vmatprep.subr.bf16.mxu1 %v16638_v36 }
 0x3c2   :  { %12550 = vmatpush2.bf16.msra.mxu0 %v16633_v26  ;;  %v16674_v26 = vld [vmem:[%s24330_s4 + $0xea4] ss:$16 sps:$4 sm:$0xff]  }
 0x3c3   :  { %12551 = vmatprep.subr.bf16.mxu0 %v16641_v23 }
 0x3c4   :  { %12591 = vmatpush2.bf16.msra.mxu1 %v16636_v20 }
 0x3c5   :  { %12592 = vmatprep.subr.bf16.mxu1 %v16644_v57 }
 0x3c6   :  { %12552 = vmatpush2.bf16.msra.mxu0 %v16639_v54 }
 0x3c7   :  { %12553 = vmatprep.subr.bf16.mxu0 %v16647_v38 }
 0x3c8   :  { %12593 = vmatpush2.bf16.msra.mxu1 %v16642_v27  ;;  %v16669_v27 = vld [vmem:[%s24330_s4 + $0xca0] ss:$16 sps:$4 sm:$0xff]  }
 0x3c9   :  { %12594 = vmatprep.subr.bf16.mxu1 %v16650_v51 }
 0x3ca   :  { %12554 = vmatpush2.bf16.msra.mxu0 %v16645_v60  ;;  %v16672_v60 = vld [vmem:[%s24330_s4 + $0xea0] ss:$16 sps:$4 sm:$0xff]  }
 0x3cb   :  { %12555 = vmatprep.subr.bf16.mxu0 %v16653_v41 }
 0x3cc   :  { %12595 = vmatpush2.bf16.msra.mxu1 %v16648_v40  ;;  %v16677_v40 = vld [vmem:[%s24330_s4 + $0xc84] ss:$16 sps:$4 sm:$0xff]  }
 0x3cd   :  { %12596 = vmatprep.subr.bf16.mxu1 %v16656_v2  ;;  %v16680_v2 = vld [vmem:[%s24330_s4 + $0xe84] ss:$16 sps:$4 sm:$0xff]  }
 0x3ce   :  { %12556 = vmatpush2.bf16.msra.mxu0 %v16651_v37  ;;  %v16675_v37 = vld [vmem:[%s24330_s4 + $0xc80] ss:$16 sps:$4 sm:$0xff]  }
 0x3cf   :  { %12607 = vmatprep.subr.bf16.mxu0 %v16659_v5  ;;  %v16683_v5 = vld [vmem:[%s24330_s4 + $0xc64] ss:$16 sps:$4 sm:$0xff]  }
 0x3d0   :  { %12597 = vmatpush2.bf16.msra.mxu1 %v16654_v21  ;;  %v16678_v21 = vld [vmem:[%s24330_s4 + $0xe80] ss:$16 sps:$4 sm:$0xff]  }
 0x3d1   :  { %12648 = vmatprep.subr.bf16.mxu1 %v16662_v18  ;;  %v6156_v29 = vpop.f32.mrf.mxu0  ;;  %12558 = vmatmul.mubr.bf16.vlgmr.msra.gmra.mxu0 %v21365_v46  ;;  %v16686_v18 = vld [vmem:[%s24330_s4 + $0xe64] ss:$16 sps:$4 sm:$0xff]  }
 0x3d2   :  { %12608 = vmatpush1.bf16.msra.mxu0 %v16657_v47  ;;  %12639 = vmatprep.mubr.bf16.mxu0 %v21381_v28  ;;  %v16681_v47 = vld [vmem:[%s24330_s4 + $0xc60] ss:$16 sps:$4 sm:$0xff]  }
 0x3d3   :  { %v6115_v31 = vpop.f32.mrf.mxu1  ;;  %12599 = vmatmul.mubr.bf16.vlgmr.msra.gmra.mxu1 %v21374_v13  ;;  %v6158_v56 = vpop.f32.mrf.mxu0  ;;  %12609 = vmatprep.subr.bf16.mxu0 %v16665_v12  ;;  %v16692_v12 = vld [vmem:[%s24330_s4 + $0xe44] ss:$16 sps:$4 sm:$0xff]  }
 0x3d4   :  { %v6116_v43 = vadd.f32 %v6115_v31, %v974_v52  ;;  %12649 = vmatpush1.bf16.msra.mxu1 %v16660_v58  ;;  %12680 = vmatprep.mubr.bf16.mxu1 %v21391_v17  ;;  %v16684_v52 = vld [vmem:[%s24330_s4 + $0xe60] ss:$16 sps:$4 sm:$0xff]   ;;  %v16689_v58 = vld [vmem:[%s24330_s4 + $0xc44] ss:$16 sps:$4 sm:$0xff]  }
 0x3d5   :  { %v6117_v36 = vpop.f32.mrf.mxu1  ;;  %v6160_v57 = vpop.f32.mrf.mxu0  ;;  %12650 = vmatprep.subr.bf16.mxu1 %v16668_v24  ;;  %v16695_v24 = vld [vmem:[%s24330_s4 + $0xc24] ss:$16 sps:$4 sm:$0xff]  }
 0x3d6   :  { %v21408_v20 = vadd.f32 %v6156_v29, %v6116_v43  ;;  %v6118_v23 = vadd.f32 %v6117_v36, %v978_v33  ;;  %12610 = vmatpush1.bf16.msra.mxu0 %v16663_v7  ;;  %v16687_v29 = vld [vmem:[%s24330_s4 + $0xc40] ss:$16 sps:$4 sm:$0xff]   ;;  %v16698_v31 = vld [vmem:[%s24330_s4 + $0xe24] ss:$16 sps:$4 sm:$0xff]  }
 0x3d7   :  { %v6119_v54 = vpop.f32.mrf.mxu1  ;;  %v6161_v51 = vpop.f32.mrf.mxu0  ;;  %12611 = vmatprep.subr.bf16.mxu0 %v16671_v11  ;;  %v16690_v33 = vld [vmem:[%s24330_s4 + $0xe40] ss:$16 sps:$4 sm:$0xff]  }
 0x3d8   :  { %v21413_v38 = vadd.f32 %v6158_v56, %v6118_v23  ;;  %12651 = vmatpush1.bf16.msra.mxu1 %v16666_v44  ;;  %v16693_v7 = vld [vmem:[%s24330_s4 + $0xc20] ss:$16 sps:$4 sm:$0xff]   ;;  %v16701_v56 = vld [vmem:[%s24330_s4 + $0xc04] ss:$16 sps:$4 sm:$0xff]  }
 0x3d9   :  { %v6120_v41 = vpop.f32.mrf.mxu1  ;;  %12652 = vmatprep.subr.bf16.mxu1 %v16674_v26  ;;  %v16696_v43 = vld [vmem:[%s24330_s4 + $0xe20] ss:$16 sps:$4 sm:$0xff]   ;;  %v16704_v44 = vld [vmem:[%s24330_s4 + $0xe04] ss:$16 sps:$4 sm:$0xff]  }
 0x3da   :  { %12612 = vmatpush1.bf16.msra.mxu0 %v16669_v27  ;;  %v16699_v11 = vld [vmem:[%s24330_s4 + $0xc00] ss:$16 sps:$4 sm:$0xff]   ;;  %v16707_v26 = vld [vmem:[%s24330_s4 + $0xde4] ss:$16 sps:$4 sm:$0xff]  }
 0x3db   :  { %12613 = vmatprep.subr.bf16.mxu0 %v16677_v40  ;;  %v16702_v36 = vld [vmem:[%s24330_s4 + $0xe00] ss:$16 sps:$4 sm:$0xff]   ;;  %v16710_v23 = vld [vmem:[%s24330_s4 + $0xfe4] ss:$16 sps:$4 sm:$0xff]  }
 0x3dc   :  { %12653 = vmatpush1.bf16.msra.mxu1 %v16672_v60  ;;  %v16705_v57 = vld [vmem:[%s24330_s4 + $0xde0] ss:$16 sps:$4 sm:$0xff]   ;;  %v16713_v27 = vld [vmem:[%s24330_s4 + $0xdc4] ss:$16 sps:$4 sm:$0xff]  }
 0x3dd   :  { %12654 = vmatprep.subr.bf16.mxu1 %v16680_v2  ;;  %v16708_v54 = vld [vmem:[%s24330_s4 + $0xfe0] ss:$16 sps:$4 sm:$0xff]   ;;  %v16716_v51 = vld [vmem:[%s24330_s4 + $0xfc4] ss:$16 sps:$4 sm:$0xff]  }
 0x3de   :  { %12614 = vmatpush1.bf16.msra.mxu0 %v16675_v37  ;;  %v16711_v60 = vld [vmem:[%s24330_s4 + $0xdc0] ss:$16 sps:$4 sm:$0xff]   ;;  %v16719_v41 = vld [vmem:[%s24330_s4 + $0xda4] ss:$16 sps:$4 sm:$0xff]  }
 0x3df   :  { %12615 = vmatprep.subr.bf16.mxu0 %v16683_v5  ;;  %v16714_v40 = vld [vmem:[%s24330_s4 + $0xfc0] ss:$16 sps:$4 sm:$0xff]   ;;  %v16722_v2 = vld [vmem:[%s24330_s4 + $0xfa4] ss:$16 sps:$4 sm:$0xff]  }
 0x3e0   :  { %12655 = vmatpush1.bf16.msra.mxu1 %v16678_v21  ;;  %v16717_v37 = vld [vmem:[%s24330_s4 + $0xda0] ss:$16 sps:$4 sm:$0xff]   ;;  %v16725_v5 = vld [vmem:[%s24330_s4 + $0xd84] ss:$16 sps:$4 sm:$0xff]  }
 0x3e1   :  { %12656 = vmatprep.subr.bf16.mxu1 %v16686_v18  ;;  %v16720_v21 = vld [vmem:[%s24330_s4 + $0xfa0] ss:$16 sps:$4 sm:$0xff]   ;;  %v16728_v18 = vld [vmem:[%s24330_s4 + $0xf84] ss:$16 sps:$4 sm:$0xff]  }
 0x3e2   :  { %12616 = vmatpush1.bf16.msra.mxu0 %v16681_v47  ;;  %v16723_v47 = vld [vmem:[%s24330_s4 + $0xd80] ss:$16 sps:$4 sm:$0xff]  }
 0x3e3   :  { %12617 = vmatprep.subr.bf16.mxu0 %v16689_v58  ;;  %v16731_v58 = vld [vmem:[%s24330_s4 + $0xd64] ss:$16 sps:$4 sm:$0xff]  }
 0x3e4   :  { %12657 = vmatpush1.bf16.msra.mxu1 %v16684_v52  ;;  %v16726_v52 = vld [vmem:[%s24330_s4 + $0xf80] ss:$16 sps:$4 sm:$0xff]  }
 0x3e5   :  { %12658 = vmatprep.subr.bf16.mxu1 %v16692_v12  ;;  %v16734_v12 = vld [vmem:[%s24330_s4 + $0xf64] ss:$16 sps:$4 sm:$0xff]  }
 0x3e6   :  { %12618 = vmatpush1.bf16.msra.mxu0 %v16687_v29  ;;  %v16729_v29 = vld [vmem:[%s24330_s4 + $0xd60] ss:$16 sps:$4 sm:$0xff]  }
 0x3e7   :  { %12619 = vmatprep.subr.bf16.mxu0 %v16695_v24  ;;  %v16737_v24 = vld [vmem:[%s24330_s4 + $0xd44] ss:$16 sps:$4 sm:$0xff]  }
 0x3e8   :  { %12659 = vmatpush1.bf16.msra.mxu1 %v16690_v33  ;;  %v16732_v33 = vld [vmem:[%s24330_s4 + $0xf60] ss:$16 sps:$4 sm:$0xff]  }
 0x3e9   :  { %12660 = vmatprep.subr.bf16.mxu1 %v16698_v31  ;;  %v16740_v31 = vld [vmem:[%s24330_s4 + $0xf44] ss:$16 sps:$4 sm:$0xff]  }
 0x3ea   :  { %12620 = vmatpush1.bf16.msra.mxu0 %v16693_v7  ;;  %v16735_v7 = vld [vmem:[%s24330_s4 + $0xd40] ss:$16 sps:$4 sm:$0xff]  }
 0x3eb   :  { %12621 = vmatprep.subr.bf16.mxu0 %v16701_v56  ;;  %v16743_v56 = vld [vmem:[%s24330_s4 + $0xd24] ss:$16 sps:$4 sm:$0xff]  }
 0x3ec   :  { %12661 = vmatpush1.bf16.msra.mxu1 %v16696_v43  ;;  %v16738_v43 = vld [vmem:[%s24330_s4 + $0xf40] ss:$16 sps:$4 sm:$0xff]  }
 0x3ed   :  { %12662 = vmatprep.subr.bf16.mxu1 %v16704_v44  ;;  %v16746_v44 = vld [vmem:[%s24330_s4 + $0xf24] ss:$16 sps:$4 sm:$0xff]  }
 0x3ee   :  { %12622 = vmatpush1.bf16.msra.mxu0 %v16699_v11  ;;  %v16741_v11 = vld [vmem:[%s24330_s4 + $0xd20] ss:$16 sps:$4 sm:$0xff]  }
 0x3ef   :  { %12623 = vmatprep.subr.bf16.mxu0 %v16707_v26  ;;  %v16749_v26 = vld [vmem:[%s24330_s4 + $0xd04] ss:$16 sps:$4 sm:$0xff]  }
 0x3f0   :  { %12663 = vmatpush1.bf16.msra.mxu1 %v16702_v36  ;;  %v16744_v36 = vld [vmem:[%s24330_s4 + $0xf20] ss:$16 sps:$4 sm:$0xff]  }
 0x3f1   :  { %12664 = vmatprep.subr.bf16.mxu1 %v16710_v23  ;;  %v16752_v23 = vld [vmem:[%s24330_s4 + $0xf04] ss:$16 sps:$4 sm:$0xff]  }
 0x3f2   :  { %12624 = vmatpush2.bf16.msra.mxu0 %v16705_v57  ;;  %v16747_v57 = vld [vmem:[%s24330_s4 + $0xd00] ss:$16 sps:$4 sm:$0xff]  }
 0x3f3   :  { %12625 = vmatprep.subr.bf16.mxu0 %v16713_v27  ;;  %v7219_v27 = vld [vmem:[%s24331_s22] sm:$0xf] }
 0x3f4   :  { %12665 = vmatpush2.bf16.msra.mxu1 %v16708_v54  ;;  %v16750_v54 = vld [vmem:[%s24330_s4 + $0xf00] ss:$16 sps:$4 sm:$0xff]  }
 0x3f5   :  { %12666 = vmatprep.subr.bf16.mxu1 %v16716_v51  ;;  %v16755_v51 = vld [vmem:[%s24330_s4 + $0x10e4] ss:$16 sps:$4 sm:$0xff]  }
 0x3f6   :  { %12626 = vmatpush2.bf16.msra.mxu0 %v16711_v60  ;;  %v16758_v60 = vld [vmem:[%s24330_s4 + $0x12e4] ss:$16 sps:$4 sm:$0xff]  }
 0x3f7   :  { %12627 = vmatprep.subr.bf16.mxu0 %v16719_v41  ;;  %v16753_v41 = vld [vmem:[%s24330_s4 + $0x10e0] ss:$16 sps:$4 sm:$0xff]  }
 0x3f8   :  { %12667 = vmatpush2.bf16.msra.mxu1 %v16714_v40  ;;  %v7224_v40 = vrot.slane %v7219_v27, %v18948_v45 }
 0x3f9   :  { %12668 = vmatprep.subr.bf16.mxu1 %v16722_v2  ;;  %v21589_v2 = vpack.c.bf16 %v19980_v61, %v19980_v61  ;;  %v21604_v61 = vpack.c.bf16 %v20309_v55, %v20309_v55  ;;  %v16759_v55 = vld [vmem:[%s24330_s4 + $0x10c0] ss:$16 sps:$4 sm:$0xff]  }
 0x3fa   :  { %12628 = vmatpush2.bf16.msra.mxu0 %v16717_v37  ;;  %v16756_v37 = vld [vmem:[%s24330_s4 + $0x12e0] ss:$16 sps:$4 sm:$0xff]  }
 0x3fb   :  { %12629 = vmatprep.subr.bf16.mxu0 %v16725_v5  ;;  %v7228_v5 = vrot.slane %v7219_v27, %v18960_v53  ;;  %v16776_v27 = vld [vmem:[%s24330_s4 + $0x1284] ss:$16 sps:$4 sm:$0xff]  }
 0x3fc   :  { %12669 = vmatpush2.bf16.msra.mxu1 %v16720_v21  ;;  %v21596_v21 = vpack.c.bf16 %v20091_v0, %v20091_v0  ;;  %v21612_v0 = vpack.c.bf16 %v20417_v30, %v20417_v30  ;;  %v16767_v30 = vld [vmem:[%s24330_s4 + $0x10a4] ss:$16 sps:$4 sm:$0xff]  }
 0x3fd   :  { %12670 = vmatprep.subr.bf16.mxu1 %v16728_v18  ;;  %v16761_v18 = vld [vmem:[%s24330_s4 + $0x10c4] ss:$16 sps:$4 sm:$0xff]  }
 0x3fe   :  { %12630 = vmatpush2.bf16.msra.mxu0 %v16723_v47 }
 0x3ff   :  { %12631 = vmatprep.subr.bf16.mxu0 %v16731_v58 }
 0x400   :  { %12671 = vmatpush2.bf16.msra.mxu1 %v16726_v52  ;;  %v16764_v52 = vld [vmem:[%s24330_s4 + $0x12c4] ss:$16 sps:$4 sm:$0xff]  }
 0x401   :  { %12672 = vmatprep.subr.bf16.mxu1 %v16734_v12 }
 0x402   :  { %12632 = vmatpush2.bf16.msra.mxu0 %v16729_v29 }
 0x403   :  { %12633 = vmatprep.subr.bf16.mxu0 %v16737_v24 }
 0x404   :  { %12673 = vmatpush2.bf16.msra.mxu1 %v16732_v33  ;;  %v16762_v33 = vld [vmem:[%s24330_s4 + $0x12c0] ss:$16 sps:$4 sm:$0xff]  }
 0x405   :  { %12674 = vmatprep.subr.bf16.mxu1 %v16740_v31 }
 0x406   :  { %12634 = vmatpush2.bf16.msra.mxu0 %v16735_v7 }
 0x407   :  { %12635 = vmatprep.subr.bf16.mxu0 %v16743_v56 }
 0x408   :  { %12675 = vmatpush2.bf16.msra.mxu1 %v16738_v43  ;;  %v16770_v43 = vld [vmem:[%s24330_s4 + $0x12a4] ss:$16 sps:$4 sm:$0xff]  }
 0x409   :  { %12676 = vmatprep.subr.bf16.mxu1 %v16746_v44 }
 0x40a   :  { %12636 = vmatpush2.bf16.msra.mxu0 %v16741_v11 }
 0x40b   :  { %12637 = vmatprep.subr.bf16.mxu0 %v16749_v26 }
 0x40c   :  { %12677 = vmatpush2.bf16.msra.mxu1 %v16744_v36  ;;  %v16765_v36 = vld [vmem:[%s24330_s4 + $0x10a0] ss:$16 sps:$4 sm:$0xff]  }
 0x40d   :  { %12678 = vmatprep.subr.bf16.mxu1 %v16752_v23  ;;  %v16768_v23 = vld [vmem:[%s24330_s4 + $0x12a0] ss:$16 sps:$4 sm:$0xff]  }
 0x40e   :  { %12638 = vmatpush2.bf16.msra.mxu0 %v16747_v57  ;;  %v16773_v57 = vld [vmem:[%s24330_s4 + $0x1084] ss:$16 sps:$4 sm:$0xff]  }
 0x40f   :  { %12689 = vmatprep.subr.bf16.mxu0 %v16755_v51  ;;  %v16771_v51 = vld [vmem:[%s24330_s4 + $0x1080] ss:$16 sps:$4 sm:$0xff]  }
 0x410   :  { %12679 = vmatpush2.bf16.msra.mxu1 %v16750_v54 }
 0x411   :  { %12730 = vmatprep.subr.bf16.mxu1 %v16758_v60  ;;  %v12395_v47 = vpop.f32.mrf.mxu0  ;;  %12640 = vmatmul.mubr.bf16.vlgmr.msra.gmra.mxu0 %v21589_v2  ;;  %v16774_v60 = vld [vmem:[%s24330_s4 + $0x1280] ss:$16 sps:$4 sm:$0xff]  }
 0x412   :  { %v12396_v58 = vadd.f32 %v12395_v47, %v7224_v40  ;;  %12690 = vmatpush1.bf16.msra.mxu0 %v16753_v41  ;;  %12721 = vmatprep.mubr.bf16.mxu0 %v21604_v61  ;;  %v16779_v40 = vld [vmem:[%s24330_s4 + $0x1064] ss:$16 sps:$4 sm:$0xff]  }
 0x413   :  { %v12436_v12 = vpop.f32.mrf.mxu1  ;;  %12681 = vmatmul.mubr.bf16.vlgmr.msra.gmra.mxu1 %v21596_v21  ;;  %v12397_v29 = vpop.f32.mrf.mxu0  ;;  %12691 = vmatprep.subr.bf16.mxu0 %v16761_v18  ;;  %v16782_v41 = vld [vmem:[%s24330_s4 + $0x1264] ss:$16 sps:$4 sm:$0xff]  }
 0x414   :  { %12731 = vmatpush1.bf16.msra.mxu1 %v16756_v37  ;;  %v21625_v24 = vadd.f32 %v12436_v12, %v12396_v58  ;;  %12762 = vmatprep.mubr.bf16.mxu1 %v21612_v0  ;;  %v12398_v31 = vadd.f32 %v12397_v29, %v7228_v5  ;;  %v16777_v37 = vld [vmem:[%s24330_s4 + $0x1060] ss:$16 sps:$4 sm:$0xff]   ;;  %v16785_v18 = vld [vmem:[%s24330_s4 + $0x1044] ss:$16 sps:$4 sm:$0xff]  }
 0x415   :  { %v12438_v7 = vpop.f32.mrf.mxu1  ;;  %v12399_v56 = vpop.f32.mrf.mxu0  ;;  %12732 = vmatprep.subr.bf16.mxu1 %v16764_v52  ;;  %v16780_v5 = vld [vmem:[%s24330_s4 + $0x1260] ss:$16 sps:$4 sm:$0xff]   ;;  %v16788_v47 = vld [vmem:[%s24330_s4 + $0x1244] ss:$16 sps:$4 sm:$0xff]  }
 0x416   :  { %v21631_v44 = vadd.f32 %v12438_v7, %v12398_v31  ;;  %12692 = vmatpush1.bf16.msra.mxu0 %v16759_v55  ;;  %v16783_v52 = vld [vmem:[%s24330_s4 + $0x1040] ss:$16 sps:$4 sm:$0xff]   ;;  %v16791_v12 = vld [vmem:[%s24330_s4 + $0x1024] ss:$16 sps:$4 sm:$0xff]  }
 0x417   :  { %v12440_v11 = vpop.f32.mrf.mxu1  ;;  %v12400_v26 = vpop.f32.mrf.mxu0  ;;  %12693 = vmatprep.subr.bf16.mxu0 %v16767_v30  ;;  %v16786_v58 = vld [vmem:[%s24330_s4 + $0x1240] ss:$16 sps:$4 sm:$0xff]   ;;  %v16794_v55 = vld [vmem:[%s24330_s4 + $0x1224] ss:$16 sps:$4 sm:$0xff]  }
 0x418   :  { %12733 = vmatpush1.bf16.msra.mxu1 %v16762_v33  ;;  %v16789_v29 = vld [vmem:[%s24330_s4 + $0x1020] ss:$16 sps:$4 sm:$0xff]   ;;  %v16797_v30 = vld [vmem:[%s24330_s4 + $0x1004] ss:$16 sps:$4 sm:$0xff]  }
 0x419   :  { %v12441_v54 = vpop.f32.mrf.mxu1  ;;  %12734 = vmatprep.subr.bf16.mxu1 %v16770_v43  ;;  %v16792_v33 = vld [vmem:[%s24330_s4 + $0x1220] ss:$16 sps:$4 sm:$0xff]   ;;  %v16800_v31 = vld [vmem:[%s24330_s4 + $0x1204] ss:$16 sps:$4 sm:$0xff]  }
 0x41a   :  { %12694 = vmatpush1.bf16.msra.mxu0 %v16765_v36  ;;  %v16795_v7 = vld [vmem:[%s24330_s4 + $0x1000] ss:$16 sps:$4 sm:$0xff]   ;;  %v16803_v56 = vld [vmem:[%s24330_s4 + $0x11e4] ss:$16 sps:$4 sm:$0xff]  }
 0x41b   :  { %12695 = vmatprep.subr.bf16.mxu0 %v16773_v57  ;;  %v16798_v43 = vld [vmem:[%s24330_s4 + $0x1200] ss:$16 sps:$4 sm:$0xff]   ;;  %v16806_v11 = vld [vmem:[%s24330_s4 + $0x13e4] ss:$16 sps:$4 sm:$0xff]  }
 0x41c   :  { %12735 = vmatpush1.bf16.msra.mxu1 %v16768_v23  ;;  %v16801_v36 = vld [vmem:[%s24330_s4 + $0x11e0] ss:$16 sps:$4 sm:$0xff]   ;;  %v16809_v23 = vld [vmem:[%s24330_s4 + $0x11c4] ss:$16 sps:$4 sm:$0xff]  }
 0x41d   :  { %12736 = vmatprep.subr.bf16.mxu1 %v16776_v27  ;;  %v16804_v26 = vld [vmem:[%s24330_s4 + $0x13e0] ss:$16 sps:$4 sm:$0xff]   ;;  %v16812_v57 = vld [vmem:[%s24330_s4 + $0x13c4] ss:$16 sps:$4 sm:$0xff]  }
 0x41e   :  { %12696 = vmatpush1.bf16.msra.mxu0 %v16771_v51  ;;  %v16807_v54 = vld [vmem:[%s24330_s4 + $0x11c0] ss:$16 sps:$4 sm:$0xff]   ;;  %v16815_v51 = vld [vmem:[%s24330_s4 + $0x11a4] ss:$16 sps:$4 sm:$0xff]  }
 0x41f   :  { %12697 = vmatprep.subr.bf16.mxu0 %v16779_v40  ;;  %v16810_v27 = vld [vmem:[%s24330_s4 + $0x13c0] ss:$16 sps:$4 sm:$0xff]  }
 0x420   :  { %12737 = vmatpush1.bf16.msra.mxu1 %v16774_v60  ;;  %v16818_v60 = vld [vmem:[%s24330_s4 + $0x13a4] ss:$16 sps:$4 sm:$0xff]   ;;  %v16813_v40 = vld [vmem:[%s24330_s4 + $0x11a0] ss:$16 sps:$4 sm:$0xff]  }
 0x421   :  { %12738 = vmatprep.subr.bf16.mxu1 %v16782_v41  ;;  %v16816_v41 = vld [vmem:[%s24330_s4 + $0x13a0] ss:$16 sps:$4 sm:$0xff]  }
 0x422   :  { %12698 = vmatpush1.bf16.msra.mxu0 %v16777_v37  ;;  %v16821_v37 = vld [vmem:[%s24330_s4 + $0x1184] ss:$16 sps:$4 sm:$0xff]  }
 0x423   :  { %12699 = vmatprep.subr.bf16.mxu0 %v16785_v18  ;;  %v16819_v18 = vld [vmem:[%s24330_s4 + $0x1180] ss:$16 sps:$4 sm:$0xff]  }
 0x424   :  { %12739 = vmatpush1.bf16.msra.mxu1 %v16780_v5  ;;  %v16824_v5 = vld [vmem:[%s24330_s4 + $0x1384] ss:$16 sps:$4 sm:$0xff]  }
 0x425   :  { %12740 = vmatprep.subr.bf16.mxu1 %v16788_v47  ;;  %v16822_v47 = vld [vmem:[%s24330_s4 + $0x1380] ss:$16 sps:$4 sm:$0xff]  }
 0x426   :  { %12700 = vmatpush1.bf16.msra.mxu0 %v16783_v52  ;;  %v16827_v52 = vld [vmem:[%s24330_s4 + $0x1164] ss:$16 sps:$4 sm:$0xff]  }
 0x427   :  { %12701 = vmatprep.subr.bf16.mxu0 %v16791_v12  ;;  %v16825_v12 = vld [vmem:[%s24330_s4 + $0x1160] ss:$16 sps:$4 sm:$0xff]  }
 0x428   :  { %12741 = vmatpush1.bf16.msra.mxu1 %v16786_v58  ;;  %v16830_v58 = vld [vmem:[%s24330_s4 + $0x1364] ss:$16 sps:$4 sm:$0xff]  }
 0x429   :  { %12742 = vmatprep.subr.bf16.mxu1 %v16794_v55  ;;  %v16828_v55 = vld [vmem:[%s24330_s4 + $0x1360] ss:$16 sps:$4 sm:$0xff]  }
 0x42a   :  { %12702 = vmatpush1.bf16.msra.mxu0 %v16789_v29  ;;  %v16833_v29 = vld [vmem:[%s24330_s4 + $0x1144] ss:$16 sps:$4 sm:$0xff]  }
 0x42b   :  { %12703 = vmatprep.subr.bf16.mxu0 %v16797_v30  ;;  %v16831_v30 = vld [vmem:[%s24330_s4 + $0x1140] ss:$16 sps:$4 sm:$0xff]  }
 0x42c   :  { %12743 = vmatpush1.bf16.msra.mxu1 %v16792_v33  ;;  %v16836_v33 = vld [vmem:[%s24330_s4 + $0x1344] ss:$16 sps:$4 sm:$0xff]  }
 0x42d   :  { %12744 = vmatprep.subr.bf16.mxu1 %v16800_v31  ;;  %v16834_v31 = vld [vmem:[%s24330_s4 + $0x1340] ss:$16 sps:$4 sm:$0xff]  }
 0x42e   :  { %12704 = vmatpush1.bf16.msra.mxu0 %v16795_v7  ;;  %v16839_v7 = vld [vmem:[%s24330_s4 + $0x1124] ss:$16 sps:$4 sm:$0xff]  }
 0x42f   :  { %12705 = vmatprep.subr.bf16.mxu0 %v16803_v56  ;;  %v16837_v56 = vld [vmem:[%s24330_s4 + $0x1120] ss:$16 sps:$4 sm:$0xff]  }
 0x430   :  { %12745 = vmatpush1.bf16.msra.mxu1 %v16798_v43  ;;  %v16842_v43 = vld [vmem:[%s24330_s4 + $0x1324] ss:$16 sps:$4 sm:$0xff]  }
 0x431   :  { %12746 = vmatprep.subr.bf16.mxu1 %v16806_v11  ;;  %v16840_v11 = vld [vmem:[%s24330_s4 + $0x1320] ss:$16 sps:$4 sm:$0xff]  }
 0x432   :  { %12706 = vmatpush2.bf16.msra.mxu0 %v16801_v36  ;;  %v16845_v36 = vld [vmem:[%s24330_s4 + $0x1104] ss:$16 sps:$4 sm:$0xff]  }
 0x433   :  { %12707 = vmatprep.subr.bf16.mxu0 %v16809_v23  ;;  %v16843_v23 = vld [vmem:[%s24330_s4 + $0x1100] ss:$16 sps:$4 sm:$0xff]  }
 0x434   :  { %12747 = vmatpush2.bf16.msra.mxu1 %v16804_v26  ;;  %v16848_v26 = vld [vmem:[%s24330_s4 + $0x1304] ss:$16 sps:$4 sm:$0xff]  }
 0x435   :  { %12748 = vmatprep.subr.bf16.mxu1 %v16812_v57  ;;  %v16846_v57 = vld [vmem:[%s24330_s4 + $0x1300] ss:$16 sps:$4 sm:$0xff]  }
 0x436   :  { %12708 = vmatpush2.bf16.msra.mxu0 %v16807_v54  ;;  %v16851_v54 = vld [vmem:[%s24330_s4 + $0x14e4] ss:$16 sps:$4 sm:$0xff]  }
 0x437   :  { %12709 = vmatprep.subr.bf16.mxu0 %v16815_v51  ;;  %v16849_v51 = vld [vmem:[%s24330_s4 + $0x14e0] ss:$16 sps:$4 sm:$0xff]  }
 0x438   :  { %12749 = vmatpush2.bf16.msra.mxu1 %v16810_v27  ;;  %v16854_v27 = vld [vmem:[%s24330_s4 + $0x16e4] ss:$16 sps:$4 sm:$0xff]  }
 0x439   :  { %12750 = vmatprep.subr.bf16.mxu1 %v16818_v60  ;;  %v21806_v60 = vpack.c.bf16 %v20294_v59, %v20294_v59 }
 0x43a   :  { %12710 = vmatpush2.bf16.msra.mxu0 %v16813_v40  ;;  %v16852_v40 = vld [vmem:[%s24330_s4 + $0x16e0] ss:$16 sps:$4 sm:$0xff]  }
 0x43b   :  { %12711 = vmatprep.subr.bf16.mxu0 %v16821_v37  ;;  %v16857_v37 = vld [vmem:[%s24330_s4 + $0x14c4] ss:$16 sps:$4 sm:$0xff]  }
 0x43c   :  { %12751 = vmatpush2.bf16.msra.mxu1 %v16816_v41  ;;  %v21813_v41 = vpack.c.bf16 %v20408_v22, %v20408_v22  ;;  %v21828_v22 = vpack.c.bf16 %v20728_v63, %v20728_v63  ;;  %v16863_v63 = vld [vmem:[%s24330_s4 + $0x14a4] ss:$16 sps:$4 sm:$0xff]  }
 0x43d   :  { %12752 = vmatprep.subr.bf16.mxu1 %v16824_v5  ;;  %v21820_v5 = vpack.c.bf16 %v20627_v4, %v20627_v4  ;;  %v16855_v4 = vld [vmem:[%s24330_s4 + $0x14c0] ss:$16 sps:$4 sm:$0xff]  }
 0x43e   :  { %12712 = vmatpush2.bf16.msra.mxu0 %v16819_v18  ;;  %v16860_v18 = vld [vmem:[%s24330_s4 + $0x16c4] ss:$16 sps:$4 sm:$0xff]  }
 0x43f   :  { %12713 = vmatprep.subr.bf16.mxu0 %v16827_v52 }
 0x440   :  { %12753 = vmatpush2.bf16.msra.mxu1 %v16822_v47 }
 0x441   :  { %12754 = vmatprep.subr.bf16.mxu1 %v16830_v58 }
 0x442   :  { %12714 = vmatpush2.bf16.msra.mxu0 %v16825_v12  ;;  %v16858_v12 = vld [vmem:[%s24330_s4 + $0x16c0] ss:$16 sps:$4 sm:$0xff]  }
 0x443   :  { %12715 = vmatprep.subr.bf16.mxu0 %v16833_v29 }
 0x444   :  { %12755 = vmatpush2.bf16.msra.mxu1 %v16828_v55 }
 0x445   :  { %12756 = vmatprep.subr.bf16.mxu1 %v16836_v33  ;;  %v16866_v33 = vld [vmem:[%s24330_s4 + $0x16a4] ss:$16 sps:$4 sm:$0xff]  }
 0x446   :  { %12716 = vmatpush2.bf16.msra.mxu0 %v16831_v30 }
 0x447   :  { %12717 = vmatprep.subr.bf16.mxu0 %v16839_v7 }
 0x448   :  { %12757 = vmatpush2.bf16.msra.mxu1 %v16834_v31 }
 0x449   :  { %12758 = vmatprep.subr.bf16.mxu1 %v16842_v43  ;;  %v16861_v43 = vld [vmem:[%s24330_s4 + $0x14a0] ss:$16 sps:$4 sm:$0xff]  }
 0x44a   :  { %12718 = vmatpush2.bf16.msra.mxu0 %v16837_v56 }
 0x44b   :  { %12719 = vmatprep.subr.bf16.mxu0 %v16845_v36 }
 0x44c   :  { %12759 = vmatpush2.bf16.msra.mxu1 %v16840_v11  ;;  %v16869_v11 = vld [vmem:[%s24330_s4 + $0x1484] ss:$16 sps:$4 sm:$0xff]  }
 0x44d   :  { %12760 = vmatprep.subr.bf16.mxu1 %v16848_v26  ;;  %v16872_v26 = vld [vmem:[%s24330_s4 + $0x1684] ss:$16 sps:$4 sm:$0xff]  }
 0x44e   :  { %12720 = vmatpush2.bf16.msra.mxu0 %v16843_v23  ;;  %v16867_v23 = vld [vmem:[%s24330_s4 + $0x1480] ss:$16 sps:$4 sm:$0xff]  }
 0x44f   :  { %12771 = vmatprep.subr.bf16.mxu0 %v16851_v54  ;;  %v16875_v54 = vld [vmem:[%s24330_s4 + $0x1464] ss:$16 sps:$4 sm:$0xff]  }
 0x450   :  { %12761 = vmatpush2.bf16.msra.mxu1 %v16846_v57  ;;  %v16870_v57 = vld [vmem:[%s24330_s4 + $0x1680] ss:$16 sps:$4 sm:$0xff]  }
 0x451   :  { %12812 = vmatprep.subr.bf16.mxu1 %v16854_v27  ;;  %v12477_v59 = vpop.f32.mrf.mxu0  ;;  %12722 = vmatmul.mubr.bf16.vlgmr.msra.gmra.mxu0 %v21806_v60  ;;  %v16878_v27 = vld [vmem:[%s24330_s4 + $0x1664] ss:$16 sps:$4 sm:$0xff]  }
 0x452   :  { %v12478_v47 = vadd.f32 %v12477_v59, %v21625_v24  ;;  %12772 = vmatpush1.bf16.msra.mxu0 %v16849_v51  ;;  %12803 = vmatprep.mubr.bf16.mxu0 %v21820_v5  ;;  %v16873_v51 = vld [vmem:[%s24330_s4 + $0x1460] ss:$16 sps:$4 sm:$0xff]   ;;  %v16884_v59 = vld [vmem:[%s24330_s4 + $0x1644] ss:$16 sps:$4 sm:$0xff]  }
 0x453   :  { %v12518_v52 = vpop.f32.mrf.mxu1  ;;  %12763 = vmatmul.mubr.bf16.vlgmr.msra.gmra.mxu1 %v21813_v41  ;;  %v12479_v58 = vpop.f32.mrf.mxu0  ;;  %12773 = vmatprep.subr.bf16.mxu0 %v16857_v37  ;;  %v16881_v37 = vld [vmem:[%s24330_s4 + $0x1444] ss:$16 sps:$4 sm:$0xff]  }
 0x454   :  { %12813 = vmatpush1.bf16.msra.mxu1 %v16852_v40  ;;  %v21842_v24 = vadd.f32 %v12518_v52, %v12478_v47  ;;  %12844 = vmatprep.mubr.bf16.mxu1 %v21828_v22  ;;  %v12480_v55 = vadd.f32 %v12479_v58, %v21631_v44  ;;  %v16864_v44 = vld [vmem:[%s24330_s4 + $0x16a0] ss:$16 sps:$4 sm:$0xff]   ;;  %v16887_v52 = vld [vmem:[%s24330_s4 + $0x1424] ss:$16 sps:$4 sm:$0xff]  }
 0x455   :  { %v12520_v29 = vpop.f32.mrf.mxu1  ;;  %v12481_v30 = vpop.f32.mrf.mxu0  ;;  %12814 = vmatprep.subr.bf16.mxu1 %v16860_v18  ;;  %v16876_v40 = vld [vmem:[%s24330_s4 + $0x1660] ss:$16 sps:$4 sm:$0xff]  }
 0x456   :  { %v21849_v31 = vadd.f32 %v12520_v29, %v12480_v55  ;;  %12774 = vmatpush1.bf16.msra.mxu0 %v16855_v4  ;;  %v16879_v18 = vld [vmem:[%s24330_s4 + $0x1440] ss:$16 sps:$4 sm:$0xff]   ;;  %v16890_v4 = vld [vmem:[%s24330_s4 + $0x1624] ss:$16 sps:$4 sm:$0xff]  }
 0x457   :  { %v12522_v7 = vpop.f32.mrf.mxu1  ;;  %v12482_v56 = vpop.f32.mrf.mxu0  ;;  %12775 = vmatprep.subr.bf16.mxu0 %v16863_v63  ;;  %v16882_v47 = vld [vmem:[%s24330_s4 + $0x1640] ss:$16 sps:$4 sm:$0xff]   ;;  %v16893_v63 = vld [vmem:[%s24330_s4 + $0x1404] ss:$16 sps:$4 sm:$0xff]  }
 0x458   :  { %12815 = vmatpush1.bf16.msra.mxu1 %v16858_v12  ;;  %v16885_v58 = vld [vmem:[%s24330_s4 + $0x1420] ss:$16 sps:$4 sm:$0xff]   ;;  %v16896_v55 = vld [vmem:[%s24330_s4 + $0x1604] ss:$16 sps:$4 sm:$0xff]  }
 0x459   :  { %v12523_v36 = vpop.f32.mrf.mxu1  ;;  %12816 = vmatprep.subr.bf16.mxu1 %v16866_v33  ;;  %v16888_v12 = vld [vmem:[%s24330_s4 + $0x1620] ss:$16 sps:$4 sm:$0xff]   ;;  %v16899_v30 = vld [vmem:[%s24330_s4 + $0x15e4] ss:$16 sps:$4 sm:$0xff]  }
 0x45a   :  { %12776 = vmatpush1.bf16.msra.mxu0 %v16861_v43  ;;  %v16891_v29 = vld [vmem:[%s24330_s4 + $0x1400] ss:$16 sps:$4 sm:$0xff]   ;;  %v16902_v7 = vld [vmem:[%s24330_s4 + $0x17e4] ss:$16 sps:$4 sm:$0xff]  }
 0x45b   :  { %12777 = vmatprep.subr.bf16.mxu0 %v16869_v11  ;;  %v16894_v33 = vld [vmem:[%s24330_s4 + $0x1600] ss:$16 sps:$4 sm:$0xff]   ;;  %v16908_v11 = vld [vmem:[%s24330_s4 + $0x17c4] ss:$16 sps:$4 sm:$0xff]  }
 0x45c   :  { %12817 = vmatpush1.bf16.msra.mxu1 %v16864_v44  ;;  %v16897_v43 = vld [vmem:[%s24330_s4 + $0x15e0] ss:$16 sps:$4 sm:$0xff]   ;;  %v16905_v44 = vld [vmem:[%s24330_s4 + $0x15c4] ss:$16 sps:$4 sm:$0xff]  }
 0x45d   :  { %12818 = vmatprep.subr.bf16.mxu1 %v16872_v26  ;;  %v16900_v56 = vld [vmem:[%s24330_s4 + $0x17e0] ss:$16 sps:$4 sm:$0xff]  }
 0x45e   :  { %12778 = vmatpush1.bf16.msra.mxu0 %v16867_v23  ;;  %v16903_v36 = vld [vmem:[%s24330_s4 + $0x15c0] ss:$16 sps:$4 sm:$0xff]   ;;  %v16911_v23 = vld [vmem:[%s24330_s4 + $0x15a4] ss:$16 sps:$4 sm:$0xff]  }
 0x45f   :  { %12779 = vmatprep.subr.bf16.mxu0 %v16875_v54  ;;  %v16906_v26 = vld [vmem:[%s24330_s4 + $0x17c0] ss:$16 sps:$4 sm:$0xff]  }
 0x460   :  { %12819 = vmatpush1.bf16.msra.mxu1 %v16870_v57  ;;  %v16914_v57 = vld [vmem:[%s24330_s4 + $0x17a4] ss:$16 sps:$4 sm:$0xff]   ;;  %v16909_v54 = vld [vmem:[%s24330_s4 + $0x15a0] ss:$16 sps:$4 sm:$0xff]  }
 0x461   :  { %12820 = vmatprep.subr.bf16.mxu1 %v16878_v27  ;;  %v16912_v27 = vld [vmem:[%s24330_s4 + $0x17a0] ss:$16 sps:$4 sm:$0xff]  }
 0x462   :  { %12780 = vmatpush1.bf16.msra.mxu0 %v16873_v51  ;;  %v16917_v51 = vld [vmem:[%s24330_s4 + $0x1584] ss:$16 sps:$4 sm:$0xff]  }
 0x463   :  { %12781 = vmatprep.subr.bf16.mxu0 %v16881_v37  ;;  %v16915_v37 = vld [vmem:[%s24330_s4 + $0x1580] ss:$16 sps:$4 sm:$0xff]  }
 0x464   :  { %12821 = vmatpush1.bf16.msra.mxu1 %v16876_v40  ;;  %v16920_v40 = vld [vmem:[%s24330_s4 + $0x1784] ss:$16 sps:$4 sm:$0xff]  }
 0x465   :  { %12822 = vmatprep.subr.bf16.mxu1 %v16884_v59  ;;  %v16918_v59 = vld [vmem:[%s24330_s4 + $0x1780] ss:$16 sps:$4 sm:$0xff]  }
 0x466   :  { %12782 = vmatpush1.bf16.msra.mxu0 %v16879_v18  ;;  %v16923_v18 = vld [vmem:[%s24330_s4 + $0x1564] ss:$16 sps:$4 sm:$0xff]  }
 0x467   :  { %12783 = vmatprep.subr.bf16.mxu0 %v16887_v52  ;;  %v16921_v52 = vld [vmem:[%s24330_s4 + $0x1560] ss:$16 sps:$4 sm:$0xff]  }
 0x468   :  { %12823 = vmatpush1.bf16.msra.mxu1 %v16882_v47  ;;  %v16926_v47 = vld [vmem:[%s24330_s4 + $0x1764] ss:$16 sps:$4 sm:$0xff]  }
 0x469   :  { %12824 = vmatprep.subr.bf16.mxu1 %v16890_v4  ;;  %v16924_v4 = vld [vmem:[%s24330_s4 + $0x1760] ss:$16 sps:$4 sm:$0xff]  }
 0x46a   :  { %12784 = vmatpush1.bf16.msra.mxu0 %v16885_v58  ;;  %v16929_v58 = vld [vmem:[%s24330_s4 + $0x1544] ss:$16 sps:$4 sm:$0xff]  }
 0x46b   :  { %12785 = vmatprep.subr.bf16.mxu0 %v16893_v63  ;;  %v16927_v63 = vld [vmem:[%s24330_s4 + $0x1540] ss:$16 sps:$4 sm:$0xff]  }
 0x46c   :  { %12825 = vmatpush1.bf16.msra.mxu1 %v16888_v12  ;;  %v16932_v12 = vld [vmem:[%s24330_s4 + $0x1744] ss:$16 sps:$4 sm:$0xff]  }
 0x46d   :  { %12826 = vmatprep.subr.bf16.mxu1 %v16896_v55  ;;  %v16930_v55 = vld [vmem:[%s24330_s4 + $0x1740] ss:$16 sps:$4 sm:$0xff]  }
 0x46e   :  { %12786 = vmatpush1.bf16.msra.mxu0 %v16891_v29  ;;  %v16935_v29 = vld [vmem:[%s24330_s4 + $0x1524] ss:$16 sps:$4 sm:$0xff]  }
 0x46f   :  { %12787 = vmatprep.subr.bf16.mxu0 %v16899_v30  ;;  %v16933_v30 = vld [vmem:[%s24330_s4 + $0x1520] ss:$16 sps:$4 sm:$0xff]  }
 0x470   :  { %12827 = vmatpush1.bf16.msra.mxu1 %v16894_v33  ;;  %v16938_v33 = vld [vmem:[%s24330_s4 + $0x1724] ss:$16 sps:$4 sm:$0xff]  }
 0x471   :  { %12828 = vmatprep.subr.bf16.mxu1 %v16902_v7  ;;  %v16936_v7 = vld [vmem:[%s24330_s4 + $0x1720] ss:$16 sps:$4 sm:$0xff]  }
 0x472   :  { %12788 = vmatpush2.bf16.msra.mxu0 %v16897_v43  ;;  %v16941_v43 = vld [vmem:[%s24330_s4 + $0x1504] ss:$16 sps:$4 sm:$0xff]  }
 0x473   :  { %12789 = vmatprep.subr.bf16.mxu0 %v16905_v44  ;;  %v16939_v44 = vld [vmem:[%s24330_s4 + $0x1500] ss:$16 sps:$4 sm:$0xff]  }
 0x474   :  { %12829 = vmatpush2.bf16.msra.mxu1 %v16900_v56  ;;  %v16944_v56 = vld [vmem:[%s24330_s4 + $0x1704] ss:$16 sps:$4 sm:$0xff]  }
 0x475   :  { %12830 = vmatprep.subr.bf16.mxu1 %v16908_v11  ;;  %v16942_v11 = vld [vmem:[%s24330_s4 + $0x1700] ss:$16 sps:$4 sm:$0xff]  }
 0x476   :  { %12790 = vmatpush2.bf16.msra.mxu0 %v16903_v36  ;;  %v16947_v36 = vld [vmem:[%s24330_s4 + $0x18e4] ss:$16 sps:$4 sm:$0xff]  }
 0x477   :  { %12791 = vmatprep.subr.bf16.mxu0 %v16911_v23  ;;  %v16945_v23 = vld [vmem:[%s24330_s4 + $0x18e0] ss:$16 sps:$4 sm:$0xff]  }
 0x478   :  { %12831 = vmatpush2.bf16.msra.mxu1 %v16906_v26  ;;  %v16950_v26 = vld [vmem:[%s24330_s4 + $0x1ae4] ss:$16 sps:$4 sm:$0xff]  }
 0x479   :  { %12832 = vmatprep.subr.bf16.mxu1 %v16914_v57  ;;  %v22024_v57 = vpack.c.bf16 %v20612_v62, %v20612_v62 }
 0x47a   :  { %12792 = vmatpush2.bf16.msra.mxu0 %v16909_v54  ;;  %v16948_v54 = vld [vmem:[%s24330_s4 + $0x1ae0] ss:$16 sps:$4 sm:$0xff]  }
 0x47b   :  { %12793 = vmatprep.subr.bf16.mxu0 %v16917_v51  ;;  %v16953_v51 = vld [vmem:[%s24330_s4 + $0x18c4] ss:$16 sps:$4 sm:$0xff]  }
 0x47c   :  { %12833 = vmatpush2.bf16.msra.mxu1 %v16912_v27  ;;  %v22031_v27 = vpack.c.bf16 %v20723_v48, %v20723_v48  ;;  %v22046_v48 = vpack.c.bf16 %v21063_v9, %v21063_v9  ;;  %v16959_v9 = vld [vmem:[%s24330_s4 + $0x18a4] ss:$16 sps:$4 sm:$0xff]  }
 0x47d   :  { %12834 = vmatprep.subr.bf16.mxu1 %v16920_v40  ;;  %v22038_v40 = vpack.c.bf16 %v20956_v32, %v20956_v32  ;;  %v16951_v32 = vld [vmem:[%s24330_s4 + $0x18c0] ss:$16 sps:$4 sm:$0xff]  }
 0x47e   :  { %12794 = vmatpush2.bf16.msra.mxu0 %v16915_v37  ;;  %v16956_v37 = vld [vmem:[%s24330_s4 + $0x1ac4] ss:$16 sps:$4 sm:$0xff]  }
 0x47f   :  { %12795 = vmatprep.subr.bf16.mxu0 %v16923_v18 }
 0x480   :  { %12835 = vmatpush2.bf16.msra.mxu1 %v16918_v59 }
 0x481   :  { %12836 = vmatprep.subr.bf16.mxu1 %v16926_v47 }
 0x482   :  { %12796 = vmatpush2.bf16.msra.mxu0 %v16921_v52  ;;  %v16954_v52 = vld [vmem:[%s24330_s4 + $0x1ac0] ss:$16 sps:$4 sm:$0xff]  }
 0x483   :  { %12797 = vmatprep.subr.bf16.mxu0 %v16929_v58 }
 0x484   :  { %12837 = vmatpush2.bf16.msra.mxu1 %v16924_v4 }
 0x485   :  { %12838 = vmatprep.subr.bf16.mxu1 %v16932_v12  ;;  %v16962_v12 = vld [vmem:[%s24330_s4 + $0x1aa4] ss:$16 sps:$4 sm:$0xff]  }
 0x486   :  { %12798 = vmatpush2.bf16.msra.mxu0 %v16927_v63 }
 0x487   :  { %12799 = vmatprep.subr.bf16.mxu0 %v16935_v29 }
 0x488   :  { %12839 = vmatpush2.bf16.msra.mxu1 %v16930_v55 }
 0x489   :  { %12840 = vmatprep.subr.bf16.mxu1 %v16938_v33  ;;  %v16957_v33 = vld [vmem:[%s24330_s4 + $0x18a0] ss:$16 sps:$4 sm:$0xff]  }
 0x48a   :  { %12800 = vmatpush2.bf16.msra.mxu0 %v16933_v30 }
 0x48b   :  { %12801 = vmatprep.subr.bf16.mxu0 %v16941_v43 }
 0x48c   :  { %12841 = vmatpush2.bf16.msra.mxu1 %v16936_v7  ;;  %v16965_v7 = vld [vmem:[%s24330_s4 + $0x1884] ss:$16 sps:$4 sm:$0xff]  }
 0x48d   :  { %12842 = vmatprep.subr.bf16.mxu1 %v16944_v56  ;;  %v16968_v56 = vld [vmem:[%s24330_s4 + $0x1a84] ss:$16 sps:$4 sm:$0xff]  }
 0x48e   :  { %12802 = vmatpush2.bf16.msra.mxu0 %v16939_v44  ;;  %v16963_v44 = vld [vmem:[%s24330_s4 + $0x1880] ss:$16 sps:$4 sm:$0xff]  }
 0x48f   :  { %12853 = vmatprep.subr.bf16.mxu0 %v16947_v36  ;;  %v16971_v36 = vld [vmem:[%s24330_s4 + $0x1864] ss:$16 sps:$4 sm:$0xff]  }
 0x490   :  { %12843 = vmatpush2.bf16.msra.mxu1 %v16942_v11  ;;  %v16966_v11 = vld [vmem:[%s24330_s4 + $0x1a80] ss:$16 sps:$4 sm:$0xff]  }
 0x491   :  { %12894 = vmatprep.subr.bf16.mxu1 %v16950_v26  ;;  %v12559_v62 = vpop.f32.mrf.mxu0  ;;  %12804 = vmatmul.mubr.bf16.vlgmr.msra.gmra.mxu0 %v22024_v57  ;;  %v16974_v26 = vld [vmem:[%s24330_s4 + $0x1a64] ss:$16 sps:$4 sm:$0xff]  }
 0x492   :  { %v12560_v59 = vadd.f32 %v12559_v62, %v21842_v24  ;;  %12854 = vmatpush1.bf16.msra.mxu0 %v16945_v23  ;;  %12885 = vmatprep.mubr.bf16.mxu0 %v22038_v40  ;;  %v16969_v23 = vld [vmem:[%s24330_s4 + $0x1860] ss:$16 sps:$4 sm:$0xff]   ;;  %v16980_v62 = vld [vmem:[%s24330_s4 + $0x1a44] ss:$16 sps:$4 sm:$0xff]  }
 0x493   :  { %v12600_v18 = vpop.f32.mrf.mxu1  ;;  %12845 = vmatmul.mubr.bf16.vlgmr.msra.gmra.mxu1 %v22031_v27  ;;  %v12561_v47 = vpop.f32.mrf.mxu0  ;;  %12855 = vmatprep.subr.bf16.mxu0 %v16953_v51  ;;  %v16977_v51 = vld [vmem:[%s24330_s4 + $0x1844] ss:$16 sps:$4 sm:$0xff]  }
 0x494   :  { %12895 = vmatpush1.bf16.msra.mxu1 %v16948_v54  ;;  %v22060_v24 = vadd.f32 %v12600_v18, %v12560_v59  ;;  %12926 = vmatprep.mubr.bf16.mxu1 %v22046_v48  ;;  %v12562_v4 = vadd.f32 %v12561_v47, %v21849_v31  ;;  %v16960_v31 = vld [vmem:[%s24330_s4 + $0x1aa0] ss:$16 sps:$4 sm:$0xff]   ;;  %v16983_v18 = vld [vmem:[%s24330_s4 + $0x1824] ss:$16 sps:$4 sm:$0xff]  }
 0x495   :  { %v12602_v58 = vpop.f32.mrf.mxu1  ;;  %v12563_v63 = vpop.f32.mrf.mxu0  ;;  %12896 = vmatprep.subr.bf16.mxu1 %v16956_v37  ;;  %v16972_v54 = vld [vmem:[%s24330_s4 + $0x1a60] ss:$16 sps:$4 sm:$0xff]  }
 0x496   :  { %v22067_v55 = vadd.f32 %v12602_v58, %v12562_v4  ;;  %12856 = vmatpush1.bf16.msra.mxu0 %v16951_v32  ;;  %v16975_v37 = vld [vmem:[%s24330_s4 + $0x1840] ss:$16 sps:$4 sm:$0xff]   ;;  %v16986_v32 = vld [vmem:[%s24330_s4 + $0x1a24] ss:$16 sps:$4 sm:$0xff]  }
 0x497   :  { %v12604_v29 = vpop.f32.mrf.mxu1  ;;  %v12564_v30 = vpop.f32.mrf.mxu0  ;;  %12857 = vmatprep.subr.bf16.mxu0 %v16959_v9  ;;  %v16978_v59 = vld [vmem:[%s24330_s4 + $0x1a40] ss:$16 sps:$4 sm:$0xff]   ;;  %v16989_v9 = vld [vmem:[%s24330_s4 + $0x1804] ss:$16 sps:$4 sm:$0xff]  }
 0x498   :  { %12897 = vmatpush1.bf16.msra.mxu1 %v16954_v52  ;;  %v16981_v47 = vld [vmem:[%s24330_s4 + $0x1820] ss:$16 sps:$4 sm:$0xff]   ;;  %v16992_v4 = vld [vmem:[%s24330_s4 + $0x1a04] ss:$16 sps:$4 sm:$0xff]  }
 0x499   :  { %v12605_v43 = vpop.f32.mrf.mxu1  ;;  %12898 = vmatprep.subr.bf16.mxu1 %v16962_v12  ;;  %v16984_v52 = vld [vmem:[%s24330_s4 + $0x1a20] ss:$16 sps:$4 sm:$0xff]   ;;  %v16995_v63 = vld [vmem:[%s24330_s4 + $0x19e4] ss:$16 sps:$4 sm:$0xff]  }
 0x49a   :  { %12858 = vmatpush1.bf16.msra.mxu0 %v16957_v33  ;;  %v16987_v58 = vld [vmem:[%s24330_s4 + $0x1800] ss:$16 sps:$4 sm:$0xff]   ;;  %v16998_v29 = vld [vmem:[%s24330_s4 + $0x1be4] ss:$16 sps:$4 sm:$0xff]  }
 0x49b   :  { %12859 = vmatprep.subr.bf16.mxu0 %v16965_v7  ;;  %v16990_v12 = vld [vmem:[%s24330_s4 + $0x1a00] ss:$16 sps:$4 sm:$0xff]   ;;  %v17004_v7 = vld [vmem:[%s24330_s4 + $0x1bc4] ss:$16 sps:$4 sm:$0xff]  }
 0x49c   :  { %12899 = vmatpush1.bf16.msra.mxu1 %v16960_v31  ;;  %v16993_v33 = vld [vmem:[%s24330_s4 + $0x19e0] ss:$16 sps:$4 sm:$0xff]   ;;  %v17001_v31 = vld [vmem:[%s24330_s4 + $0x19c4] ss:$16 sps:$4 sm:$0xff]  }
 0x49d   :  { %12900 = vmatprep.subr.bf16.mxu1 %v16968_v56  ;;  %v16996_v30 = vld [vmem:[%s24330_s4 + $0x1be0] ss:$16 sps:$4 sm:$0xff]  }
 0x49e   :  { %12860 = vmatpush1.bf16.msra.mxu0 %v16963_v44  ;;  %v16999_v43 = vld [vmem:[%s24330_s4 + $0x19c0] ss:$16 sps:$4 sm:$0xff]   ;;  %v17007_v44 = vld [vmem:[%s24330_s4 + $0x19a4] ss:$16 sps:$4 sm:$0xff]  }
 0x49f   :  { %12861 = vmatprep.subr.bf16.mxu0 %v16971_v36  ;;  %v17002_v56 = vld [vmem:[%s24330_s4 + $0x1bc0] ss:$16 sps:$4 sm:$0xff]  }
 0x4a0   :  { %12901 = vmatpush1.bf16.msra.mxu1 %v16966_v11  ;;  %v17010_v11 = vld [vmem:[%s24330_s4 + $0x1ba4] ss:$16 sps:$4 sm:$0xff]   ;;  %v17005_v36 = vld [vmem:[%s24330_s4 + $0x19a0] ss:$16 sps:$4 sm:$0xff]  }
 0x4a1   :  { %12902 = vmatprep.subr.bf16.mxu1 %v16974_v26  ;;  %v17008_v26 = vld [vmem:[%s24330_s4 + $0x1ba0] ss:$16 sps:$4 sm:$0xff]  }
 0x4a2   :  { %12862 = vmatpush1.bf16.msra.mxu0 %v16969_v23  ;;  %v17013_v23 = vld [vmem:[%s24330_s4 + $0x1984] ss:$16 sps:$4 sm:$0xff]  }
 0x4a3   :  { %12863 = vmatprep.subr.bf16.mxu0 %v16977_v51  ;;  %v17011_v51 = vld [vmem:[%s24330_s4 + $0x1980] ss:$16 sps:$4 sm:$0xff]  }
 0x4a4   :  { %12903 = vmatpush1.bf16.msra.mxu1 %v16972_v54  ;;  %v17016_v54 = vld [vmem:[%s24330_s4 + $0x1b84] ss:$16 sps:$4 sm:$0xff]  }
 0x4a5   :  { %12904 = vmatprep.subr.bf16.mxu1 %v16980_v62  ;;  %v17014_v62 = vld [vmem:[%s24330_s4 + $0x1b80] ss:$16 sps:$4 sm:$0xff]  }
 0x4a6   :  { %12864 = vmatpush1.bf16.msra.mxu0 %v16975_v37  ;;  %v17019_v37 = vld [vmem:[%s24330_s4 + $0x1964] ss:$16 sps:$4 sm:$0xff]  }
 0x4a7   :  { %12865 = vmatprep.subr.bf16.mxu0 %v16983_v18  ;;  %v17017_v18 = vld [vmem:[%s24330_s4 + $0x1960] ss:$16 sps:$4 sm:$0xff]  }
 0x4a8   :  { %12905 = vmatpush1.bf16.msra.mxu1 %v16978_v59  ;;  %v17022_v59 = vld [vmem:[%s24330_s4 + $0x1b64] ss:$16 sps:$4 sm:$0xff]  }
 0x4a9   :  { %12906 = vmatprep.subr.bf16.mxu1 %v16986_v32  ;;  %v17020_v32 = vld [vmem:[%s24330_s4 + $0x1b60] ss:$16 sps:$4 sm:$0xff]  }
 0x4aa   :  { %12866 = vmatpush1.bf16.msra.mxu0 %v16981_v47  ;;  %v17025_v47 = vld [vmem:[%s24330_s4 + $0x1944] ss:$16 sps:$4 sm:$0xff]  }
 0x4ab   :  { %12867 = vmatprep.subr.bf16.mxu0 %v16989_v9  ;;  %v17023_v9 = vld [vmem:[%s24330_s4 + $0x1940] ss:$16 sps:$4 sm:$0xff]  }
 0x4ac   :  { %12907 = vmatpush1.bf16.msra.mxu1 %v16984_v52  ;;  %v17028_v52 = vld [vmem:[%s24330_s4 + $0x1b44] ss:$16 sps:$4 sm:$0xff]  }
 0x4ad   :  { %12908 = vmatprep.subr.bf16.mxu1 %v16992_v4  ;;  %v17026_v4 = vld [vmem:[%s24330_s4 + $0x1b40] ss:$16 sps:$4 sm:$0xff]  }
 0x4ae   :  { %12868 = vmatpush1.bf16.msra.mxu0 %v16987_v58  ;;  %v17031_v58 = vld [vmem:[%s24330_s4 + $0x1924] ss:$16 sps:$4 sm:$0xff]  }
 0x4af   :  { %12869 = vmatprep.subr.bf16.mxu0 %v16995_v63  ;;  %v17029_v63 = vld [vmem:[%s24330_s4 + $0x1920] ss:$16 sps:$4 sm:$0xff]  }
 0x4b0   :  { %12909 = vmatpush1.bf16.msra.mxu1 %v16990_v12  ;;  %v17034_v12 = vld [vmem:[%s24330_s4 + $0x1b24] ss:$16 sps:$4 sm:$0xff]  }
 0x4b1   :  { %12910 = vmatprep.subr.bf16.mxu1 %v16998_v29  ;;  %v17032_v29 = vld [vmem:[%s24330_s4 + $0x1b20] ss:$16 sps:$4 sm:$0xff]  }
 0x4b2   :  { %12870 = vmatpush2.bf16.msra.mxu0 %v16993_v33  ;;  %v17037_v33 = vld [vmem:[%s24330_s4 + $0x1904] ss:$16 sps:$4 sm:$0xff]  }
 0x4b3   :  { %12871 = vmatprep.subr.bf16.mxu0 %v17001_v31  ;;  %v17035_v31 = vld [vmem:[%s24330_s4 + $0x1900] ss:$16 sps:$4 sm:$0xff]  }
 0x4b4   :  { %12911 = vmatpush2.bf16.msra.mxu1 %v16996_v30  ;;  %v17040_v30 = vld [vmem:[%s24330_s4 + $0x1b04] ss:$16 sps:$4 sm:$0xff]  }
 0x4b5   :  { %12912 = vmatprep.subr.bf16.mxu1 %v17004_v7  ;;  %v17038_v7 = vld [vmem:[%s24330_s4 + $0x1b00] ss:$16 sps:$4 sm:$0xff]  }
 0x4b6   :  { %12872 = vmatpush2.bf16.msra.mxu0 %v16999_v43  ;;  %v17043_v43 = vld [vmem:[%s24330_s4 + $0x1ce4] ss:$16 sps:$4 sm:$0xff]  }
 0x4b7   :  { %12873 = vmatprep.subr.bf16.mxu0 %v17007_v44  ;;  %v17041_v44 = vld [vmem:[%s24330_s4 + $0x1ce0] ss:$16 sps:$4 sm:$0xff]  }
 0x4b8   :  { %12913 = vmatpush2.bf16.msra.mxu1 %v17002_v56  ;;  %v17046_v56 = vld [vmem:[%s24330_s4 + $0x1ee4] ss:$16 sps:$4 sm:$0xff]  }
 0x4b9   :  { %12914 = vmatprep.subr.bf16.mxu1 %v17010_v11  ;;  %v22242_v11 = vpack.c.bf16 %v20949_v25, %v20949_v25 }
 0x4ba   :  { %12874 = vmatpush2.bf16.msra.mxu0 %v17005_v36  ;;  %v17044_v36 = vld [vmem:[%s24330_s4 + $0x1ee0] ss:$16 sps:$4 sm:$0xff]  }
 0x4bb   :  { %12875 = vmatprep.subr.bf16.mxu0 %v17013_v23  ;;  %v17049_v23 = vld [vmem:[%s24330_s4 + $0x1cc4] ss:$16 sps:$4 sm:$0xff]  }
 0x4bc   :  { %12915 = vmatpush2.bf16.msra.mxu1 %v17008_v26  ;;  %v22249_v26 = vpack.c.bf16 %v21058_v19, %v21058_v19  ;;  %v22264_v19 = vpack.c.bf16 %v21413_v38, %v21413_v38  ;;  %v17055_v38 = vld [vmem:[%s24330_s4 + $0x1ca4] ss:$16 sps:$4 sm:$0xff]  }
 0x4bd   :  { %12916 = vmatprep.subr.bf16.mxu1 %v17016_v54  ;;  %v22256_v54 = vpack.c.bf16 %v21286_v50, %v21286_v50  ;;  %v17047_v50 = vld [vmem:[%s24330_s4 + $0x1cc0] ss:$16 sps:$4 sm:$0xff]  }
 0x4be   :  { %12876 = vmatpush2.bf16.msra.mxu0 %v17011_v51  ;;  %v17052_v51 = vld [vmem:[%s24330_s4 + $0x1ec4] ss:$16 sps:$4 sm:$0xff]  }
 0x4bf   :  { %12877 = vmatprep.subr.bf16.mxu0 %v17019_v37 }
 0x4c0   :  { %12917 = vmatpush2.bf16.msra.mxu1 %v17014_v62 }
 0x4c1   :  { %12918 = vmatprep.subr.bf16.mxu1 %v17022_v59 }
 0x4c2   :  { %12878 = vmatpush2.bf16.msra.mxu0 %v17017_v18  ;;  %v17050_v18 = vld [vmem:[%s24330_s4 + $0x1ec0] ss:$16 sps:$4 sm:$0xff]  }
 0x4c3   :  { %12879 = vmatprep.subr.bf16.mxu0 %v17025_v47 }
 0x4c4   :  { %12919 = vmatpush2.bf16.msra.mxu1 %v17020_v32 }
 0x4c5   :  { %12920 = vmatprep.subr.bf16.mxu1 %v17028_v52  ;;  %v17058_v52 = vld [vmem:[%s24330_s4 + $0x1ea4] ss:$16 sps:$4 sm:$0xff]  }
 0x4c6   :  { %12880 = vmatpush2.bf16.msra.mxu0 %v17023_v9 }
 0x4c7   :  { %12881 = vmatprep.subr.bf16.mxu0 %v17031_v58 }
 0x4c8   :  { %12921 = vmatpush2.bf16.msra.mxu1 %v17026_v4 }
 0x4c9   :  { %12922 = vmatprep.subr.bf16.mxu1 %v17034_v12  ;;  %v17053_v12 = vld [vmem:[%s24330_s4 + $0x1ca0] ss:$16 sps:$4 sm:$0xff]  }
 0x4ca   :  { %12882 = vmatpush2.bf16.msra.mxu0 %v17029_v63 }
 0x4cb   :  { %12883 = vmatprep.subr.bf16.mxu0 %v17037_v33 }
 0x4cc   :  { %12923 = vmatpush2.bf16.msra.mxu1 %v17032_v29  ;;  %v17061_v29 = vld [vmem:[%s24330_s4 + $0x1c84] ss:$16 sps:$4 sm:$0xff]  }
 0x4cd   :  { %12924 = vmatprep.subr.bf16.mxu1 %v17040_v30  ;;  %v17064_v30 = vld [vmem:[%s24330_s4 + $0x1e84] ss:$16 sps:$4 sm:$0xff]  }
 0x4ce   :  { %12884 = vmatpush2.bf16.msra.mxu0 %v17035_v31  ;;  %v17059_v31 = vld [vmem:[%s24330_s4 + $0x1c80] ss:$16 sps:$4 sm:$0xff]  }
 0x4cf   :  { %12935 = vmatprep.subr.bf16.mxu0 %v17043_v43  ;;  %v17067_v43 = vld [vmem:[%s24330_s4 + $0x1c64] ss:$16 sps:$4 sm:$0xff]  }
 0x4d0   :  { %12925 = vmatpush2.bf16.msra.mxu1 %v17038_v7  ;;  %v17062_v7 = vld [vmem:[%s24330_s4 + $0x1e80] ss:$16 sps:$4 sm:$0xff]  }
 0x4d1   :  { %12976 = vmatprep.subr.bf16.mxu1 %v17046_v56  ;;  %v12641_v25 = vpop.f32.mrf.mxu0  ;;  %12886 = vmatmul.mubr.bf16.vlgmr.msra.gmra.mxu0 %v22242_v11  ;;  %v17070_v56 = vld [vmem:[%s24330_s4 + $0x1e64] ss:$16 sps:$4 sm:$0xff]  }
 0x4d2   :  { %v12642_v62 = vadd.f32 %v12641_v25, %v22060_v24  ;;  %12936 = vmatpush1.bf16.msra.mxu0 %v17041_v44  ;;  %12967 = vmatprep.mubr.bf16.mxu0 %v22256_v54  ;;  %v17065_v44 = vld [vmem:[%s24330_s4 + $0x1c60] ss:$16 sps:$4 sm:$0xff]   ;;  %v17076_v25 = vld [vmem:[%s24330_s4 + $0x1e44] ss:$16 sps:$4 sm:$0xff]  }
 0x4d3   :  { %v12682_v37 = vpop.f32.mrf.mxu1  ;;  %12927 = vmatmul.mubr.bf16.vlgmr.msra.gmra.mxu1 %v22249_v26  ;;  %v12643_v59 = vpop.f32.mrf.mxu0  ;;  %12937 = vmatprep.subr.bf16.mxu0 %v17049_v23  ;;  %v17073_v23 = vld [vmem:[%s24330_s4 + $0x1c44] ss:$16 sps:$4 sm:$0xff]  }
 0x4d4   :  { %12977 = vmatpush1.bf16.msra.mxu1 %v17044_v36  ;;  %v22278_v24 = vadd.f32 %v12682_v37, %v12642_v62  ;;  %13008 = vmatprep.mubr.bf16.mxu1 %v22264_v19  ;;  %v12644_v32 = vadd.f32 %v12643_v59, %v22067_v55  ;;  %v17056_v55 = vld [vmem:[%s24330_s4 + $0x1ea0] ss:$16 sps:$4 sm:$0xff]   ;;  %v17079_v37 = vld [vmem:[%s24330_s4 + $0x1c24] ss:$16 sps:$4 sm:$0xff]  }
 0x4d5   :  { %v12684_v47 = vpop.f32.mrf.mxu1  ;;  %v12645_v9 = vpop.f32.mrf.mxu0  ;;  %12978 = vmatprep.subr.bf16.mxu1 %v17052_v51  ;;  %v17068_v36 = vld [vmem:[%s24330_s4 + $0x1e60] ss:$16 sps:$4 sm:$0xff]  }
 0x4d6   :  { %v22285_v4 = vadd.f32 %v12684_v47, %v12644_v32  ;;  %12938 = vmatpush1.bf16.msra.mxu0 %v17047_v50  ;;  %v17071_v51 = vld [vmem:[%s24330_s4 + $0x1c40] ss:$16 sps:$4 sm:$0xff]   ;;  %v17082_v50 = vld [vmem:[%s24330_s4 + $0x1e24] ss:$16 sps:$4 sm:$0xff]  }
 0x4d7   :  { %v12686_v58 = vpop.f32.mrf.mxu1  ;;  %v12646_v63 = vpop.f32.mrf.mxu0  ;;  %12939 = vmatprep.subr.bf16.mxu0 %v17055_v38  ;;  %v17074_v62 = vld [vmem:[%s24330_s4 + $0x1e40] ss:$16 sps:$4 sm:$0xff]   ;;  %v17085_v38 = vld [vmem:[%s24330_s4 + $0x1c04] ss:$16 sps:$4 sm:$0xff]  }
 0x4d8   :  { %12979 = vmatpush1.bf16.msra.mxu1 %v17050_v18  ;;  %v17077_v59 = vld [vmem:[%s24330_s4 + $0x1c20] ss:$16 sps:$4 sm:$0xff]   ;;  %v17088_v32 = vld [vmem:[%s24330_s4 + $0x1e04] ss:$16 sps:$4 sm:$0xff]  }
 0x4d9   :  { %v12687_v33 = vpop.f32.mrf.mxu1  ;;  %12980 = vmatprep.subr.bf16.mxu1 %v17058_v52  ;;  %v17080_v18 = vld [vmem:[%s24330_s4 + $0x1e20] ss:$16 sps:$4 sm:$0xff]   ;;  %v17091_v9 = vld [vmem:[%s24330_s4 + $0x1de4] ss:$16 sps:$4 sm:$0xff]  }
 0x4da   :  { %12940 = vmatpush1.bf16.msra.mxu0 %v17053_v12  ;;  %v17083_v47 = vld [vmem:[%s24330_s4 + $0x1c00] ss:$16 sps:$4 sm:$0xff]   ;;  %v17094_v58 = vld [vmem:[%s24330_s4 + $0x1fe4] ss:$16 sps:$4 sm:$0xff]  }
 0x4db   :  { %12941 = vmatprep.subr.bf16.mxu0 %v17061_v29  ;;  %v17086_v52 = vld [vmem:[%s24330_s4 + $0x1e00] ss:$16 sps:$4 sm:$0xff]   ;;  %v17100_v29 = vld [vmem:[%s24330_s4 + $0x1fc4] ss:$16 sps:$4 sm:$0xff]  }
 0x4dc   :  { %12981 = vmatpush1.bf16.msra.mxu1 %v17056_v55  ;;  %v17089_v12 = vld [vmem:[%s24330_s4 + $0x1de0] ss:$16 sps:$4 sm:$0xff]   ;;  %v17097_v55 = vld [vmem:[%s24330_s4 + $0x1dc4] ss:$16 sps:$4 sm:$0xff]  }
 0x4dd   :  { %12982 = vmatprep.subr.bf16.mxu1 %v17064_v30  ;;  %v17092_v63 = vld [vmem:[%s24330_s4 + $0x1fe0] ss:$16 sps:$4 sm:$0xff]  }
 0x4de   :  { %12942 = vmatpush1.bf16.msra.mxu0 %v17059_v31  ;;  %v17095_v33 = vld [vmem:[%s24330_s4 + $0x1dc0] ss:$16 sps:$4 sm:$0xff]   ;;  %v17103_v31 = vld [vmem:[%s24330_s4 + $0x1da4] ss:$16 sps:$4 sm:$0xff]  }
 0x4df   :  { %12943 = vmatprep.subr.bf16.mxu0 %v17067_v43  ;;  %v17098_v30 = vld [vmem:[%s24330_s4 + $0x1fc0] ss:$16 sps:$4 sm:$0xff]  }
 0x4e0   :  { %12983 = vmatpush1.bf16.msra.mxu1 %v17062_v7  ;;  %v17106_v7 = vld [vmem:[%s24330_s4 + $0x1fa4] ss:$16 sps:$4 sm:$0xff]   ;;  %v17101_v43 = vld [vmem:[%s24330_s4 + $0x1da0] ss:$16 sps:$4 sm:$0xff]  }
 0x4e1   :  { %12984 = vmatprep.subr.bf16.mxu1 %v17070_v56  ;;  %v17104_v56 = vld [vmem:[%s24330_s4 + $0x1fa0] ss:$16 sps:$4 sm:$0xff]  }
 0x4e2   :  { %12944 = vmatpush1.bf16.msra.mxu0 %v17065_v44  ;;  %v17109_v44 = vld [vmem:[%s24330_s4 + $0x1d84] ss:$16 sps:$4 sm:$0xff]  }
 0x4e3   :  { %12945 = vmatprep.subr.bf16.mxu0 %v17073_v23  ;;  %v17107_v23 = vld [vmem:[%s24330_s4 + $0x1d80] ss:$16 sps:$4 sm:$0xff]  }
 0x4e4   :  { %12985 = vmatpush1.bf16.msra.mxu1 %v17068_v36  ;;  %v17112_v36 = vld [vmem:[%s24330_s4 + $0x1f84] ss:$16 sps:$4 sm:$0xff]  }
 0x4e5   :  { %12986 = vmatprep.subr.bf16.mxu1 %v17076_v25  ;;  %v17110_v25 = vld [vmem:[%s24330_s4 + $0x1f80] ss:$16 sps:$4 sm:$0xff]  }
 0x4e6   :  { %12946 = vmatpush1.bf16.msra.mxu0 %v17071_v51  ;;  %v17115_v51 = vld [vmem:[%s24330_s4 + $0x1d64] ss:$16 sps:$4 sm:$0xff]  }
 0x4e7   :  { %12947 = vmatprep.subr.bf16.mxu0 %v17079_v37  ;;  %v17113_v37 = vld [vmem:[%s24330_s4 + $0x1d60] ss:$16 sps:$4 sm:$0xff]  }
 0x4e8   :  { %12987 = vmatpush1.bf16.msra.mxu1 %v17074_v62  ;;  %v17118_v62 = vld [vmem:[%s24330_s4 + $0x1f64] ss:$16 sps:$4 sm:$0xff]  }
 0x4e9   :  { %12988 = vmatprep.subr.bf16.mxu1 %v17082_v50  ;;  %v17116_v50 = vld [vmem:[%s24330_s4 + $0x1f60] ss:$16 sps:$4 sm:$0xff]  }
 0x4ea   :  { %12948 = vmatpush1.bf16.msra.mxu0 %v17077_v59  ;;  %v17121_v59 = vld [vmem:[%s24330_s4 + $0x1d44] ss:$16 sps:$4 sm:$0xff]  }
 0x4eb   :  { %12949 = vmatprep.subr.bf16.mxu0 %v17085_v38  ;;  %v17119_v38 = vld [vmem:[%s24330_s4 + $0x1d40] ss:$16 sps:$4 sm:$0xff]  }
 0x4ec   :  { %12989 = vmatpush1.bf16.msra.mxu1 %v17080_v18  ;;  %v17124_v18 = vld [vmem:[%s24330_s4 + $0x1f44] ss:$16 sps:$4 sm:$0xff]  }
 0x4ed   :  { %12990 = vmatprep.subr.bf16.mxu1 %v17088_v32  ;;  %v17122_v32 = vld [vmem:[%s24330_s4 + $0x1f40] ss:$16 sps:$4 sm:$0xff]  }
 0x4ee   :  { %12950 = vmatpush1.bf16.msra.mxu0 %v17083_v47  ;;  %v17127_v47 = vld [vmem:[%s24330_s4 + $0x1d24] ss:$16 sps:$4 sm:$0xff]  }
 0x4ef   :  { %12951 = vmatprep.subr.bf16.mxu0 %v17091_v9  ;;  %v17125_v9 = vld [vmem:[%s24330_s4 + $0x1d20] ss:$16 sps:$4 sm:$0xff]  }
 0x4f0   :  { %12991 = vmatpush1.bf16.msra.mxu1 %v17086_v52  ;;  %v17130_v52 = vld [vmem:[%s24330_s4 + $0x1f24] ss:$16 sps:$4 sm:$0xff]  }
 0x4f1   :  { %12992 = vmatprep.subr.bf16.mxu1 %v17094_v58  ;;  %v17128_v58 = vld [vmem:[%s24330_s4 + $0x1f20] ss:$16 sps:$4 sm:$0xff]  }
 0x4f2   :  { %12952 = vmatpush2.bf16.msra.mxu0 %v17089_v12  ;;  %v17133_v12 = vld [vmem:[%s24330_s4 + $0x1d04] ss:$16 sps:$4 sm:$0xff]  }
 0x4f3   :  { %12953 = vmatprep.subr.bf16.mxu0 %v17097_v55  ;;  %v17131_v55 = vld [vmem:[%s24330_s4 + $0x1d00] ss:$16 sps:$4 sm:$0xff]  }
 0x4f4   :  { %12993 = vmatpush2.bf16.msra.mxu1 %v17092_v63  ;;  %v17136_v63 = vld [vmem:[%s24330_s4 + $0x1f04] ss:$16 sps:$4 sm:$0xff]  }
 0x4f5   :  { %12994 = vmatprep.subr.bf16.mxu1 %v17100_v29  ;;  %v17134_v29 = vld [vmem:[%s24330_s4 + $0x1f00] ss:$16 sps:$4 sm:$0xff]  }
 0x4f6   :  { %12954 = vmatpush2.bf16.msra.mxu0 %v17095_v33  ;;  %v17139_v33 = vld [vmem:[%s24330_s4 + $0xec] ss:$16 sps:$4 sm:$0xff]  }
 0x4f7   :  { %12955 = vmatprep.subr.bf16.mxu0 %v17103_v31  ;;  %v17137_v31 = vld [vmem:[%s24330_s4 + $0xe8] ss:$16 sps:$4 sm:$0xff]  }
 0x4f8   :  { %12995 = vmatpush2.bf16.msra.mxu1 %v17098_v30  ;;  %v17142_v30 = vld [vmem:[%s24330_s4 + $0x2ec] ss:$16 sps:$4 sm:$0xff]  }
 0x4f9   :  { %12996 = vmatprep.subr.bf16.mxu1 %v17106_v7  ;;  %v22460_v7 = vpack.c.bf16 %v21280_v16, %v21280_v16  ;;  %v17148_v16 = vld [vmem:[%s24330_s4 + $0x2cc] ss:$16 sps:$4 sm:$0xff]  }
 0x4fa   :  { %12956 = vmatpush2.bf16.msra.mxu0 %v17101_v43  ;;  %v17140_v43 = vld [vmem:[%s24330_s4 + $0x2e8] ss:$16 sps:$4 sm:$0xff]  }
 0x4fb   :  { %12957 = vmatprep.subr.bf16.mxu0 %v17109_v44  ;;  %v17145_v44 = vld [vmem:[%s24330_s4 + $0xcc] ss:$16 sps:$4 sm:$0xff]  }
 0x4fc   :  { %12997 = vmatpush2.bf16.msra.mxu1 %v17104_v56  ;;  %v22467_v56 = vpack.c.bf16 %v21408_v20, %v21408_v20  ;;  %v17143_v20 = vld [vmem:[%s24330_s4 + $0xc8] ss:$16 sps:$4 sm:$0xff]  }
 0x4fd   :  { %12998 = vmatprep.subr.bf16.mxu1 %v17112_v36 }
 0x4fe   :  { %12958 = vmatpush2.bf16.msra.mxu0 %v17107_v23 }
 0x4ff   :  { %12959 = vmatprep.subr.bf16.mxu0 %v17115_v51 }
 0x500   :  { %12999 = vmatpush2.bf16.msra.mxu1 %v17110_v25 }
 0x501   :  { %13000 = vmatprep.subr.bf16.mxu1 %v17118_v62  ;;  %v17146_v62 = vld [vmem:[%s24330_s4 + $0x2c8] ss:$16 sps:$4 sm:$0xff]  }
 0x502   :  { %12960 = vmatpush2.bf16.msra.mxu0 %v17113_v37 }
 0x503   :  { %12961 = vmatprep.subr.bf16.mxu0 %v17121_v59 }
 0x504   :  { %13001 = vmatpush2.bf16.msra.mxu1 %v17116_v50 }
 0x505   :  { %13002 = vmatprep.subr.bf16.mxu1 %v17124_v18 }
 0x506   :  { %12962 = vmatpush2.bf16.msra.mxu0 %v17119_v38 }
 0x507   :  { %12963 = vmatprep.subr.bf16.mxu0 %v17127_v47  ;;  %v17149_v47 = vld [vmem:[%s24330_s4 + $0xa8] ss:$16 sps:$4 sm:$0xff]  }
 0x508   :  { %13003 = vmatpush2.bf16.msra.mxu1 %v17122_v32 }
 0x509   :  { %13004 = vmatprep.subr.bf16.mxu1 %v17130_v52  ;;  %v17157_v52 = vld [vmem:[%s24330_s4 + $0x8c] ss:$16 sps:$4 sm:$0xff]  }
 0x50a   :  { %12964 = vmatpush2.bf16.msra.mxu0 %v17125_v9 }
 0x50b   :  { %12965 = vmatprep.subr.bf16.mxu0 %v17133_v12  ;;  %v17155_v12 = vld [vmem:[%s24330_s4 + $0x88] ss:$16 sps:$4 sm:$0xff]  }
 0x50c   :  { %13005 = vmatpush2.bf16.msra.mxu1 %v17128_v58  ;;  %v17160_v58 = vld [vmem:[%s24330_s4 + $0x28c] ss:$16 sps:$4 sm:$0xff]  }
 0x50d   :  { %13006 = vmatprep.subr.bf16.mxu1 %v17136_v63  ;;  %v17158_v63 = vld [vmem:[%s24330_s4 + $0x288] ss:$16 sps:$4 sm:$0xff]  }
 0x50e   :  { %12966 = vmatpush2.bf16.msra.mxu0 %v17131_v55  ;;  %v17163_v55 = vld [vmem:[%s24330_s4 + $0x6c] ss:$16 sps:$4 sm:$0xff]  }
 0x50f   :  { %13017 = vmatprep.subr.bf16.mxu0 %v17139_v33  ;;  %v17161_v33 = vld [vmem:[%s24330_s4 + $0x68] ss:$16 sps:$4 sm:$0xff]  }
 0x510   :  { %13007 = vmatpush2.bf16.msra.mxu1 %v17134_v29  ;;  %v17166_v29 = vld [vmem:[%s24330_s4 + $0x26c] ss:$16 sps:$4 sm:$0xff]  }
 0x511   :  { %13058 = vmatprep.subr.bf16.mxu1 %v17142_v30  ;;  %v12723_v36 = vpop.f32.mrf.mxu0  ;;  %12968 = vmatmul.mubr.bf16.vlgmr.msra.gmra.mxu0 %v22460_v7  ;;  %v17164_v30 = vld [vmem:[%s24330_s4 + $0x268] ss:$16 sps:$4 sm:$0xff]  }
 0x512   :  { %v12724_v23 = vadd.f32 %v12723_v36, %v22278_v24  ;;  %13018 = vmatpush1.bf16.msra.mxu0 %v17137_v31  ;;  %13049 = vmatprep.mubr.bf16.mxu0 %v20696_v34  ;;  %v17151_v24 = vld [vmem:[%s24330_s4 + $0xac] ss:$16 sps:$4 sm:$0xff]   ;;  %v17170_v36 = vld [vmem:[%s24330_s4 + $0x248] ss:$16 sps:$4 sm:$0xff]  }
 0x513   :  { %v12764_v25 = vpop.f32.mrf.mxu1  ;;  %13009 = vmatmul.mubr.bf16.vlgmr.msra.gmra.mxu1 %v22467_v56  ;;  %v12725_v51 = vpop.f32.mrf.mxu0  ;;  %13019 = vmatprep.subr.bf16.mxu0 %v17145_v44  ;;  %v17154_v34 = vld [vmem:[%s24330_s4 + $0x2ac] ss:$16 sps:$4 sm:$0xff]   ;;  %v17167_v44 = vld [vmem:[%s24330_s4 + $0x48] ss:$16 sps:$4 sm:$0xff]  }
 0x514   :  { %13059 = vmatpush1.bf16.msra.mxu1 %v17140_v43  ;;  %v22488_v37 = vadd.f32 %v12764_v25, %v12724_v23  ;;  %13090 = vmatprep.mubr.bf16.mxu1 %v20706_v42  ;;  %v12726_v50 = vadd.f32 %v12725_v51, %v22285_v4  ;;  %v17152_v4 = vld [vmem:[%s24330_s4 + $0x2a8] ss:$16 sps:$4 sm:$0xff]   ;;  %v17169_v31 = vld [vmem:[%s24330_s4 + $0x4c] ss:$16 sps:$4 sm:$0xff]  }
 0x515   :  { %v12766_v59 = vpop.f32.mrf.mxu1  ;;  %v12727_v18 = vpop.f32.mrf.mxu0  ;;  %13060 = vmatprep.subr.bf16.mxu1 %v17148_v16  ;;  %v17172_v43 = vld [vmem:[%s24330_s4 + $0x24c] ss:$16 sps:$4 sm:$0xff]   ;;  %v17173_v25 = vld [vmem:[%s24330_s4 + $0x28] ss:$16 sps:$4 sm:$0xff]  }
 0x516   :  { %v22495_v38 = vadd.f32 %v12766_v59, %v12726_v50  ;;  %13020 = vmatpush1.bf16.msra.mxu0 %v17143_v20  ;;  %v17175_v16 = vld [vmem:[%s24330_s4 + $0x2c] ss:$16 sps:$4 sm:$0xff]   ;;  %v17176_v20 = vld [vmem:[%s24330_s4 + $0x228] ss:$16 sps:$4 sm:$0xff]  }
 0x517   :  { %v12768_v32 = vpop.f32.mrf.mxu1  ;;  %v12728_v42 = vpop.f32.mrf.mxu0  ;;  %13021 = vmatprep.subr.bf16.mxu0 %v17151_v24  ;;  %v17178_v23 = vld [vmem:[%s24330_s4 + $0x22c] ss:$16 sps:$4 sm:$0xff]   ;;  %v17179_v24 = vld [vmem:[%s24330_s4 + $0x8] ss:$16 sps:$4 sm:$0xff]  }
 0x518   :  { %13061 = vmatpush1.bf16.msra.mxu1 %v17146_v62  ;;  %v17181_v51 = vld [vmem:[%s24330_s4 + $0xc] ss:$16 sps:$4 sm:$0xff]   ;;  %v17182_v50 = vld [vmem:[%s24330_s4 + $0x208] ss:$16 sps:$4 sm:$0xff]  }
 0x519   :  { %v12769_v9 = vpop.f32.mrf.mxu1  ;;  %13062 = vmatprep.subr.bf16.mxu1 %v17154_v34  ;;  %v17184_v62 = vld [vmem:[%s24330_s4 + $0x20c] ss:$16 sps:$4 sm:$0xff]   ;;  %v17185_v18 = vld [vmem:[%s24330_s4 + $0x1e8] ss:$16 sps:$4 sm:$0xff]  }
 0x51a   :  { %13022 = vmatpush1.bf16.msra.mxu0 %v17149_v47  ;;  %v17187_v59 = vld [vmem:[%s24330_s4 + $0x1ec] ss:$16 sps:$4 sm:$0xff]   ;;  %v17188_v32 = vld [vmem:[%s24330_s4 + $0x3e8] ss:$16 sps:$4 sm:$0xff]  }
 0x51b   :  { %13023 = vmatprep.subr.bf16.mxu0 %v17157_v52  ;;  %v17190_v34 = vld [vmem:[%s24330_s4 + $0x3ec] ss:$16 sps:$4 sm:$0xff]   ;;  %v17194_v52 = vld [vmem:[%s24330_s4 + $0x3c8] ss:$16 sps:$4 sm:$0xff]  }
 0x51c   :  { %13063 = vmatpush1.bf16.msra.mxu1 %v17152_v4  ;;  %v17193_v47 = vld [vmem:[%s24330_s4 + $0x1cc] ss:$16 sps:$4 sm:$0xff]   ;;  %v17191_v4 = vld [vmem:[%s24330_s4 + $0x1c8] ss:$16 sps:$4 sm:$0xff]  }
 0x51d   :  { %13064 = vmatprep.subr.bf16.mxu1 %v17160_v58  ;;  %v17196_v42 = vld [vmem:[%s24330_s4 + $0x3cc] ss:$16 sps:$4 sm:$0xff]  }
 0x51e   :  { %13024 = vmatpush1.bf16.msra.mxu0 %v17155_v12  ;;  %v17199_v9 = vld [vmem:[%s24330_s4 + $0x1ac] ss:$16 sps:$4 sm:$0xff]   ;;  %v17197_v12 = vld [vmem:[%s24330_s4 + $0x1a8] ss:$16 sps:$4 sm:$0xff]  }
 0x51f   :  { %13025 = vmatprep.subr.bf16.mxu0 %v17163_v55  ;;  %v17202_v58 = vld [vmem:[%s24330_s4 + $0x3ac] ss:$16 sps:$4 sm:$0xff]  }
 0x520   :  { %13065 = vmatpush1.bf16.msra.mxu1 %v17158_v63  ;;  %v17200_v63 = vld [vmem:[%s24330_s4 + $0x3a8] ss:$16 sps:$4 sm:$0xff]   ;;  %v17205_v55 = vld [vmem:[%s24330_s4 + $0x18c] ss:$16 sps:$4 sm:$0xff]  }
 0x521   :  { %13066 = vmatprep.subr.bf16.mxu1 %v17166_v29  ;;  %v17208_v29 = vld [vmem:[%s24330_s4 + $0x38c] ss:$16 sps:$4 sm:$0xff]  }
 0x522   :  { %13026 = vmatpush1.bf16.msra.mxu0 %v17161_v33  ;;  %v17203_v33 = vld [vmem:[%s24330_s4 + $0x188] ss:$16 sps:$4 sm:$0xff]  }
 0x523   :  { %13027 = vmatprep.subr.bf16.mxu0 %v17169_v31  ;;  %v17211_v31 = vld [vmem:[%s24330_s4 + $0x16c] ss:$16 sps:$4 sm:$0xff]  }
 0x524   :  { %13067 = vmatpush1.bf16.msra.mxu1 %v17164_v30  ;;  %v17206_v30 = vld [vmem:[%s24330_s4 + $0x388] ss:$16 sps:$4 sm:$0xff]  }
 0x525   :  { %13068 = vmatprep.subr.bf16.mxu1 %v17172_v43  ;;  %v17214_v43 = vld [vmem:[%s24330_s4 + $0x36c] ss:$16 sps:$4 sm:$0xff]  }
 0x526   :  { %13028 = vmatpush1.bf16.msra.mxu0 %v17167_v44  ;;  %v17209_v44 = vld [vmem:[%s24330_s4 + $0x168] ss:$16 sps:$4 sm:$0xff]  }
 0x527   :  { %13029 = vmatprep.subr.bf16.mxu0 %v17175_v16  ;;  %v17217_v16 = vld [vmem:[%s24330_s4 + $0x14c] ss:$16 sps:$4 sm:$0xff]  }
 0x528   :  { %13069 = vmatpush1.bf16.msra.mxu1 %v17170_v36  ;;  %v17212_v36 = vld [vmem:[%s24330_s4 + $0x368] ss:$16 sps:$4 sm:$0xff]  }
 0x529   :  { %13070 = vmatprep.subr.bf16.mxu1 %v17178_v23  ;;  %v17220_v23 = vld [vmem:[%s24330_s4 + $0x34c] ss:$16 sps:$4 sm:$0xff]  }
 0x52a   :  { %13030 = vmatpush1.bf16.msra.mxu0 %v17173_v25  ;;  %v17215_v25 = vld [vmem:[%s24330_s4 + $0x148] ss:$16 sps:$4 sm:$0xff]  }
 0x52b   :  { %13031 = vmatprep.subr.bf16.mxu0 %v17181_v51  ;;  %v17223_v51 = vld [vmem:[%s24330_s4 + $0x12c] ss:$16 sps:$4 sm:$0xff]  }
 0x52c   :  { %13071 = vmatpush1.bf16.msra.mxu1 %v17176_v20  ;;  %v17218_v20 = vld [vmem:[%s24330_s4 + $0x348] ss:$16 sps:$4 sm:$0xff]  }
 0x52d   :  { %13072 = vmatprep.subr.bf16.mxu1 %v17184_v62  ;;  %v17226_v62 = vld [vmem:[%s24330_s4 + $0x32c] ss:$16 sps:$4 sm:$0xff]  }
 0x52e   :  { %13032 = vmatpush1.bf16.msra.mxu0 %v17179_v24  ;;  %v17221_v24 = vld [vmem:[%s24330_s4 + $0x128] ss:$16 sps:$4 sm:$0xff]  }
 0x52f   :  { %13033 = vmatprep.subr.bf16.mxu0 %v17187_v59  ;;  %v17229_v59 = vld [vmem:[%s24330_s4 + $0x10c] ss:$16 sps:$4 sm:$0xff]  }
 0x530   :  { %13073 = vmatpush1.bf16.msra.mxu1 %v17182_v50  ;;  %v17224_v50 = vld [vmem:[%s24330_s4 + $0x328] ss:$16 sps:$4 sm:$0xff]  }
 0x531   :  { %13074 = vmatprep.subr.bf16.mxu1 %v17190_v34  ;;  %v17232_v34 = vld [vmem:[%s24330_s4 + $0x30c] ss:$16 sps:$4 sm:$0xff]  }
 0x532   :  { %13034 = vmatpush2.bf16.msra.mxu0 %v17185_v18  ;;  %v17227_v18 = vld [vmem:[%s24330_s4 + $0x108] ss:$16 sps:$4 sm:$0xff]  }
 0x533   :  { %13035 = vmatprep.subr.bf16.mxu0 %v17193_v47  ;;  %v17235_v47 = vld [vmem:[%s24330_s4 + $0x4ec] ss:$16 sps:$4 sm:$0xff]  }
 0x534   :  { %13075 = vmatpush2.bf16.msra.mxu1 %v17188_v32  ;;  %v17230_v32 = vld [vmem:[%s24330_s4 + $0x308] ss:$16 sps:$4 sm:$0xff]  }
 0x535   :  { %13076 = vmatprep.subr.bf16.mxu1 %v17196_v42  ;;  %v17238_v42 = vld [vmem:[%s24330_s4 + $0x6ec] ss:$16 sps:$4 sm:$0xff]  }
 0x536   :  { %13036 = vmatpush2.bf16.msra.mxu0 %v17191_v4  ;;  %v17233_v4 = vld [vmem:[%s24330_s4 + $0x4e8] ss:$16 sps:$4 sm:$0xff]  }
 0x537   :  { %13037 = vmatprep.subr.bf16.mxu0 %v17199_v9  ;;  %v17241_v9 = vld [vmem:[%s24330_s4 + $0x4cc] ss:$16 sps:$4 sm:$0xff]  }
 0x538   :  { %13077 = vmatpush2.bf16.msra.mxu1 %v17194_v52  ;;  %v17236_v52 = vld [vmem:[%s24330_s4 + $0x6e8] ss:$16 sps:$4 sm:$0xff]  }
 0x539   :  { %13078 = vmatprep.subr.bf16.mxu1 %v17202_v58 }
 0x53a   :  { %13038 = vmatpush2.bf16.msra.mxu0 %v17197_v12  ;;  %v17244_v12 = vld [vmem:[%s24330_s4 + $0x6cc] ss:$16 sps:$4 sm:$0xff]  }
 0x53b   :  { %13039 = vmatprep.subr.bf16.mxu0 %v17205_v55 }
 0x53c   :  { %13079 = vmatpush2.bf16.msra.mxu1 %v17200_v63 }
 0x53d   :  { %13080 = vmatprep.subr.bf16.mxu1 %v17208_v29  ;;  %v17239_v29 = vld [vmem:[%s24330_s4 + $0x4c8] ss:$16 sps:$4 sm:$0xff]  }
 0x53e   :  { %13040 = vmatpush2.bf16.msra.mxu0 %v17203_v33 }
 0x53f   :  { %13041 = vmatprep.subr.bf16.mxu0 %v17211_v31 }
 0x540   :  { %13081 = vmatpush2.bf16.msra.mxu1 %v17206_v30 }
 0x541   :  { %13082 = vmatprep.subr.bf16.mxu1 %v17214_v43 }
 0x542   :  { %13042 = vmatpush2.bf16.msra.mxu0 %v17209_v44 }
 0x543   :  { %13043 = vmatprep.subr.bf16.mxu0 %v17217_v16  ;;  %v17245_v16 = vld [vmem:[%s24330_s4 + $0x4a8] ss:$16 sps:$4 sm:$0xff]  }
 0x544   :  { %13083 = vmatpush2.bf16.msra.mxu1 %v17212_v36 }
 0x545   :  { %13084 = vmatprep.subr.bf16.mxu1 %v17220_v23  ;;  %v17253_v23 = vld [vmem:[%s24330_s4 + $0x48c] ss:$16 sps:$4 sm:$0xff]  }
 0x546   :  { %13044 = vmatpush2.bf16.msra.mxu0 %v17215_v25 }
 0x547   :  { %13045 = vmatprep.subr.bf16.mxu0 %v17223_v51  ;;  %v17251_v51 = vld [vmem:[%s24330_s4 + $0x488] ss:$16 sps:$4 sm:$0xff]  }
 0x548   :  { %13085 = vmatpush2.bf16.msra.mxu1 %v17218_v20  ;;  %v17256_v20 = vld [vmem:[%s24330_s4 + $0x68c] ss:$16 sps:$4 sm:$0xff]  }
 0x549   :  { %13086 = vmatprep.subr.bf16.mxu1 %v17226_v62  ;;  %v17254_v62 = vld [vmem:[%s24330_s4 + $0x688] ss:$16 sps:$4 sm:$0xff]  }
 0x54a   :  { %13046 = vmatpush2.bf16.msra.mxu0 %v17221_v24  ;;  %v17259_v24 = vld [vmem:[%s24330_s4 + $0x46c] ss:$16 sps:$4 sm:$0xff]  }
 0x54b   :  { %13047 = vmatprep.subr.bf16.mxu0 %v17229_v59  ;;  %v17257_v59 = vld [vmem:[%s24330_s4 + $0x468] ss:$16 sps:$4 sm:$0xff]  }
 0x54c   :  { %13087 = vmatpush2.bf16.msra.mxu1 %v17224_v50  ;;  %v17262_v50 = vld [vmem:[%s24330_s4 + $0x66c] ss:$16 sps:$4 sm:$0xff]  }
 0x54d   :  { %13088 = vmatprep.subr.bf16.mxu1 %v17232_v34  ;;  %v17260_v34 = vld [vmem:[%s24330_s4 + $0x668] ss:$16 sps:$4 sm:$0xff]  }
 0x54e   :  { %13048 = vmatpush2.bf16.msra.mxu0 %v17227_v18  ;;  %v17265_v18 = vld [vmem:[%s24330_s4 + $0x44c] ss:$16 sps:$4 sm:$0xff]  }
 0x54f   :  { %13099 = vmatprep.subr.bf16.mxu0 %v17235_v47  ;;  %v17263_v47 = vld [vmem:[%s24330_s4 + $0x448] ss:$16 sps:$4 sm:$0xff]  }
 0x550   :  { %13089 = vmatpush2.bf16.msra.mxu1 %v17230_v32  ;;  %v17268_v32 = vld [vmem:[%s24330_s4 + $0x64c] ss:$16 sps:$4 sm:$0xff]  }
 0x551   :  { %13140 = vmatprep.subr.bf16.mxu1 %v17238_v42  ;;  %v12805_v58 = vpop.f32.mrf.mxu0  ;;  %13050 = vmatmul.mubr.bf16.vlgmr.msra.gmra.mxu0 %v20911_v49  ;;  %v17242_v49 = vld [vmem:[%s24330_s4 + $0x6c8] ss:$16 sps:$4 sm:$0xff]  }
 0x552   :  { %v12806_v63 = vadd.f32 %v12805_v58, %v22488_v37  ;;  %13100 = vmatpush1.bf16.msra.mxu0 %v17233_v4  ;;  %13131 = vmatprep.mubr.bf16.mxu0 %v20927_v14  ;;  %v17247_v37 = vld [vmem:[%s24330_s4 + $0x4ac] ss:$16 sps:$4 sm:$0xff]   ;;  %v17266_v42 = vld [vmem:[%s24330_s4 + $0x648] ss:$16 sps:$4 sm:$0xff]  }
 0x553   :  { %v12846_v55 = vpop.f32.mrf.mxu1  ;;  %13091 = vmatmul.mubr.bf16.vlgmr.msra.gmra.mxu1 %v20918_v10  ;;  %v12807_v33 = vpop.f32.mrf.mxu0  ;;  %13101 = vmatprep.subr.bf16.mxu0 %v17241_v9  ;;  %v17250_v14 = vld [vmem:[%s24330_s4 + $0x6ac] ss:$16 sps:$4 sm:$0xff]   ;;  %v17269_v9 = vld [vmem:[%s24330_s4 + $0x428] ss:$16 sps:$4 sm:$0xff]  }
 0x554   :  { %13141 = vmatpush1.bf16.msra.mxu1 %v17236_v52  ;;  %v22690_v30 = vadd.f32 %v12846_v55, %v12806_v63  ;;  %13172 = vmatprep.mubr.bf16.mxu1 %v20935_v3  ;;  %v12808_v10 = vadd.f32 %v12807_v33, %v22495_v38  ;;  %v17248_v38 = vld [vmem:[%s24330_s4 + $0x6a8] ss:$16 sps:$4 sm:$0xff]   ;;  %v17271_v4 = vld [vmem:[%s24330_s4 + $0x42c] ss:$16 sps:$4 sm:$0xff]  }
 0x555   :  { %v12848_v31 = vpop.f32.mrf.mxu1  ;;  %v12809_v43 = vpop.f32.mrf.mxu0  ;;  %13142 = vmatprep.subr.bf16.mxu1 %v17244_v12  ;;  %v17274_v52 = vld [vmem:[%s24330_s4 + $0x62c] ss:$16 sps:$4 sm:$0xff]   ;;  %v17272_v58 = vld [vmem:[%s24330_s4 + $0x628] ss:$16 sps:$4 sm:$0xff]  }
 0x556   :  { %v22697_v44 = vadd.f32 %v12848_v31, %v12808_v10  ;;  %13102 = vmatpush1.bf16.msra.mxu0 %v17239_v29  ;;  %v17277_v12 = vld [vmem:[%s24330_s4 + $0x40c] ss:$16 sps:$4 sm:$0xff]   ;;  %v17275_v55 = vld [vmem:[%s24330_s4 + $0x408] ss:$16 sps:$4 sm:$0xff]  }
 0x557   :  { %v12850_v36 = vpop.f32.mrf.mxu1  ;;  %v12810_v3 = vpop.f32.mrf.mxu0  ;;  %13103 = vmatprep.subr.bf16.mxu0 %v17247_v37  ;;  %v17280_v63 = vld [vmem:[%s24330_s4 + $0x60c] ss:$16 sps:$4 sm:$0xff]   ;;  %v17278_v29 = vld [vmem:[%s24330_s4 + $0x608] ss:$16 sps:$4 sm:$0xff]  }
 0x558   :  { %13143 = vmatpush1.bf16.msra.mxu1 %v17242_v49  ;;  %v17283_v33 = vld [vmem:[%s24330_s4 + $0x5ec] ss:$16 sps:$4 sm:$0xff]   ;;  %v17281_v37 = vld [vmem:[%s24330_s4 + $0x5e8] ss:$16 sps:$4 sm:$0xff]  }
 0x559   :  { %v12851_v25 = vpop.f32.mrf.mxu1  ;;  %13144 = vmatprep.subr.bf16.mxu1 %v17250_v14  ;;  %v17286_v49 = vld [vmem:[%s24330_s4 + $0x7ec] ss:$16 sps:$4 sm:$0xff]   ;;  %v17284_v10 = vld [vmem:[%s24330_s4 + $0x7e8] ss:$16 sps:$4 sm:$0xff]  }
 0x55a   :  { %13104 = vmatpush1.bf16.msra.mxu0 %v17245_v16  ;;  %v17289_v31 = vld [vmem:[%s24330_s4 + $0x5cc] ss:$16 sps:$4 sm:$0xff]   ;;  %v17287_v43 = vld [vmem:[%s24330_s4 + $0x5c8] ss:$16 sps:$4 sm:$0xff]  }
 0x55b   :  { %13105 = vmatprep.subr.bf16.mxu0 %v17253_v23  ;;  %v17292_v14 = vld [vmem:[%s24330_s4 + $0x7cc] ss:$16 sps:$4 sm:$0xff]   ;;  %v17290_v36 = vld [vmem:[%s24330_s4 + $0x7c8] ss:$16 sps:$4 sm:$0xff]  }
 0x55c   :  { %13145 = vmatpush1.bf16.msra.mxu1 %v17248_v38  ;;  %v17295_v16 = vld [vmem:[%s24330_s4 + $0x5ac] ss:$16 sps:$4 sm:$0xff]   ;;  %v17293_v38 = vld [vmem:[%s24330_s4 + $0x5a8] ss:$16 sps:$4 sm:$0xff]  }
 0x55d   :  { %13146 = vmatprep.subr.bf16.mxu1 %v17256_v20  ;;  %v17298_v3 = vld [vmem:[%s24330_s4 + $0x7ac] ss:$16 sps:$4 sm:$0xff]   ;;  %v17296_v23 = vld [vmem:[%s24330_s4 + $0x7a8] ss:$16 sps:$4 sm:$0xff]  }
 0x55e   :  { %13106 = vmatpush1.bf16.msra.mxu0 %v17251_v51  ;;  %v17301_v25 = vld [vmem:[%s24330_s4 + $0x58c] ss:$16 sps:$4 sm:$0xff]   ;;  %v17299_v51 = vld [vmem:[%s24330_s4 + $0x588] ss:$16 sps:$4 sm:$0xff]  }
 0x55f   :  { %13107 = vmatprep.subr.bf16.mxu0 %v17259_v24  ;;  %v17304_v20 = vld [vmem:[%s24330_s4 + $0x78c] ss:$16 sps:$4 sm:$0xff]  }
 0x560   :  { %13147 = vmatpush1.bf16.msra.mxu1 %v17254_v62  ;;  %v17302_v62 = vld [vmem:[%s24330_s4 + $0x788] ss:$16 sps:$4 sm:$0xff]   ;;  %v17307_v24 = vld [vmem:[%s24330_s4 + $0x56c] ss:$16 sps:$4 sm:$0xff]  }
 0x561   :  { %13148 = vmatprep.subr.bf16.mxu1 %v17262_v50  ;;  %v17310_v50 = vld [vmem:[%s24330_s4 + $0x76c] ss:$16 sps:$4 sm:$0xff]  }
 0x562   :  { %13108 = vmatpush1.bf16.msra.mxu0 %v17257_v59  ;;  %v17305_v59 = vld [vmem:[%s24330_s4 + $0x568] ss:$16 sps:$4 sm:$0xff]  }
 0x563   :  { %13109 = vmatprep.subr.bf16.mxu0 %v17265_v18  ;;  %v17313_v18 = vld [vmem:[%s24330_s4 + $0x54c] ss:$16 sps:$4 sm:$0xff]  }
 0x564   :  { %13149 = vmatpush1.bf16.msra.mxu1 %v17260_v34  ;;  %v17308_v34 = vld [vmem:[%s24330_s4 + $0x768] ss:$16 sps:$4 sm:$0xff]  }
 0x565   :  { %13150 = vmatprep.subr.bf16.mxu1 %v17268_v32  ;;  %v17316_v32 = vld [vmem:[%s24330_s4 + $0x74c] ss:$16 sps:$4 sm:$0xff]  }
 0x566   :  { %13110 = vmatpush1.bf16.msra.mxu0 %v17263_v47  ;;  %v17311_v47 = vld [vmem:[%s24330_s4 + $0x548] ss:$16 sps:$4 sm:$0xff]  }
 0x567   :  { %13111 = vmatprep.subr.bf16.mxu0 %v17271_v4  ;;  %v17319_v4 = vld [vmem:[%s24330_s4 + $0x52c] ss:$16 sps:$4 sm:$0xff]  }
 0x568   :  { %13151 = vmatpush1.bf16.msra.mxu1 %v17266_v42  ;;  %v17314_v42 = vld [vmem:[%s24330_s4 + $0x748] ss:$16 sps:$4 sm:$0xff]  }
 0x569   :  { %13152 = vmatprep.subr.bf16.mxu1 %v17274_v52  ;;  %v17322_v52 = vld [vmem:[%s24330_s4 + $0x72c] ss:$16 sps:$4 sm:$0xff]  }
 0x56a   :  { %13112 = vmatpush1.bf16.msra.mxu0 %v17269_v9  ;;  %v17317_v9 = vld [vmem:[%s24330_s4 + $0x528] ss:$16 sps:$4 sm:$0xff]  }
 0x56b   :  { %13113 = vmatprep.subr.bf16.mxu0 %v17277_v12  ;;  %v17325_v12 = vld [vmem:[%s24330_s4 + $0x50c] ss:$16 sps:$4 sm:$0xff]  }
 0x56c   :  { %13153 = vmatpush1.bf16.msra.mxu1 %v17272_v58  ;;  %v17320_v58 = vld [vmem:[%s24330_s4 + $0x728] ss:$16 sps:$4 sm:$0xff]  }
 0x56d   :  { %13154 = vmatprep.subr.bf16.mxu1 %v17280_v63  ;;  %v17328_v63 = vld [vmem:[%s24330_s4 + $0x70c] ss:$16 sps:$4 sm:$0xff]  }
 0x56e   :  { %13114 = vmatpush1.bf16.msra.mxu0 %v17275_v55  ;;  %v17323_v55 = vld [vmem:[%s24330_s4 + $0x508] ss:$16 sps:$4 sm:$0xff]  }
 0x56f   :  { %13115 = vmatprep.subr.bf16.mxu0 %v17283_v33  ;;  %v17331_v33 = vld [vmem:[%s24330_s4 + $0x8ec] ss:$16 sps:$4 sm:$0xff]  }
 0x570   :  { %13155 = vmatpush1.bf16.msra.mxu1 %v17278_v29  ;;  %v17326_v29 = vld [vmem:[%s24330_s4 + $0x708] ss:$16 sps:$4 sm:$0xff]  }
 0x571   :  { %13156 = vmatprep.subr.bf16.mxu1 %v17286_v49  ;;  %v17334_v49 = vld [vmem:[%s24330_s4 + $0xaec] ss:$16 sps:$4 sm:$0xff]  }
 0x572   :  { %13116 = vmatpush2.bf16.msra.mxu0 %v17281_v37  ;;  %v17329_v37 = vld [vmem:[%s24330_s4 + $0x8e8] ss:$16 sps:$4 sm:$0xff]  }
 0x573   :  { %13117 = vmatprep.subr.bf16.mxu0 %v17289_v31  ;;  %v17337_v31 = vld [vmem:[%s24330_s4 + $0x8cc] ss:$16 sps:$4 sm:$0xff]  }
 0x574   :  { %13157 = vmatpush2.bf16.msra.mxu1 %v17284_v10  ;;  %v17332_v10 = vld [vmem:[%s24330_s4 + $0xae8] ss:$16 sps:$4 sm:$0xff]  }
 0x575   :  { %13158 = vmatprep.subr.bf16.mxu1 %v17292_v14 }
 0x576   :  { %13118 = vmatpush2.bf16.msra.mxu0 %v17287_v43  ;;  %v17340_v43 = vld [vmem:[%s24330_s4 + $0xacc] ss:$16 sps:$4 sm:$0xff]  }
 0x577   :  { %13119 = vmatprep.subr.bf16.mxu0 %v17295_v16 }
 0x578   :  { %13159 = vmatpush2.bf16.msra.mxu1 %v17290_v36 }
 0x579   :  { %13160 = vmatprep.subr.bf16.mxu1 %v17298_v3  ;;  %v17335_v3 = vld [vmem:[%s24330_s4 + $0x8c8] ss:$16 sps:$4 sm:$0xff]  }
 0x57a   :  { %13120 = vmatpush2.bf16.msra.mxu0 %v17293_v38 }
 0x57b   :  { %13121 = vmatprep.subr.bf16.mxu0 %v17301_v25 }
 0x57c   :  { %13161 = vmatpush2.bf16.msra.mxu1 %v17296_v23 }
 0x57d   :  { %13162 = vmatprep.subr.bf16.mxu1 %v17304_v20 }
 0x57e   :  { %13122 = vmatpush2.bf16.msra.mxu0 %v17299_v51 }
 0x57f   :  { %13123 = vmatprep.subr.bf16.mxu0 %v17307_v24  ;;  %v17341_v24 = vld [vmem:[%s24330_s4 + $0x8a8] ss:$16 sps:$4 sm:$0xff]  }
 0x580   :  { %13163 = vmatpush2.bf16.msra.mxu1 %v17302_v62 }
 0x581   :  { %13164 = vmatprep.subr.bf16.mxu1 %v17310_v50  ;;  %v17349_v50 = vld [vmem:[%s24330_s4 + $0x88c] ss:$16 sps:$4 sm:$0xff]  }
 0x582   :  { %13124 = vmatpush2.bf16.msra.mxu0 %v17305_v59 }
 0x583   :  { %13125 = vmatprep.subr.bf16.mxu0 %v17313_v18  ;;  %v17347_v18 = vld [vmem:[%s24330_s4 + $0x888] ss:$16 sps:$4 sm:$0xff]  }
 0x584   :  { %13165 = vmatpush2.bf16.msra.mxu1 %v17308_v34  ;;  %v17352_v34 = vld [vmem:[%s24330_s4 + $0xa8c] ss:$16 sps:$4 sm:$0xff]  }
 0x585   :  { %13166 = vmatprep.subr.bf16.mxu1 %v17316_v32  ;;  %v17350_v32 = vld [vmem:[%s24330_s4 + $0xa88] ss:$16 sps:$4 sm:$0xff]  }
 0x586   :  { %13126 = vmatpush2.bf16.msra.mxu0 %v17311_v47  ;;  %v17355_v47 = vld [vmem:[%s24330_s4 + $0x86c] ss:$16 sps:$4 sm:$0xff]  }
 0x587   :  { %13127 = vmatprep.subr.bf16.mxu0 %v17319_v4  ;;  %v17353_v4 = vld [vmem:[%s24330_s4 + $0x868] ss:$16 sps:$4 sm:$0xff]  }
 0x588   :  { %13167 = vmatpush2.bf16.msra.mxu1 %v17314_v42  ;;  %v17358_v42 = vld [vmem:[%s24330_s4 + $0xa6c] ss:$16 sps:$4 sm:$0xff]  }
 0x589   :  { %13168 = vmatprep.subr.bf16.mxu1 %v17322_v52  ;;  %v17356_v52 = vld [vmem:[%s24330_s4 + $0xa68] ss:$16 sps:$4 sm:$0xff]  }
 0x58a   :  { %13128 = vmatpush2.bf16.msra.mxu0 %v17317_v9  ;;  %v17361_v9 = vld [vmem:[%s24330_s4 + $0x84c] ss:$16 sps:$4 sm:$0xff]  }
 0x58b   :  { %13129 = vmatprep.subr.bf16.mxu0 %v17325_v12  ;;  %v17359_v12 = vld [vmem:[%s24330_s4 + $0x848] ss:$16 sps:$4 sm:$0xff]  }
 0x58c   :  { %13169 = vmatpush2.bf16.msra.mxu1 %v17320_v58  ;;  %v17364_v58 = vld [vmem:[%s24330_s4 + $0xa4c] ss:$16 sps:$4 sm:$0xff]  }
 0x58d   :  { %13170 = vmatprep.subr.bf16.mxu1 %v17328_v63  ;;  %v17362_v63 = vld [vmem:[%s24330_s4 + $0xa48] ss:$16 sps:$4 sm:$0xff]  }
 0x58e   :  { %13130 = vmatpush2.bf16.msra.mxu0 %v17323_v55  ;;  %v17367_v55 = vld [vmem:[%s24330_s4 + $0x82c] ss:$16 sps:$4 sm:$0xff]  }
 0x58f   :  { %13181 = vmatprep.subr.bf16.mxu0 %v17331_v33  ;;  %v17365_v33 = vld [vmem:[%s24330_s4 + $0x828] ss:$16 sps:$4 sm:$0xff]  }
 0x590   :  { %13171 = vmatpush2.bf16.msra.mxu1 %v17326_v29  ;;  %v17370_v29 = vld [vmem:[%s24330_s4 + $0xa2c] ss:$16 sps:$4 sm:$0xff]  }
 0x591   :  { %13222 = vmatprep.subr.bf16.mxu1 %v17334_v49  ;;  %v12887_v14 = vpop.f32.mrf.mxu0  ;;  %13132 = vmatmul.mubr.bf16.vlgmr.msra.gmra.mxu0 %v21139_v8  ;;  %v17338_v8 = vld [vmem:[%s24330_s4 + $0xac8] ss:$16 sps:$4 sm:$0xff]  }
 0x592   :  { %v12888_v36 = vadd.f32 %v12887_v14, %v22690_v30  ;;  %13182 = vmatpush1.bf16.msra.mxu0 %v17329_v37  ;;  %13213 = vmatprep.mubr.bf16.mxu0 %v21153_v39  ;;  %v17343_v30 = vld [vmem:[%s24330_s4 + $0x8ac] ss:$16 sps:$4 sm:$0xff]   ;;  %v17368_v49 = vld [vmem:[%s24330_s4 + $0xa28] ss:$16 sps:$4 sm:$0xff]  }
 0x593   :  { %v12928_v16 = vpop.f32.mrf.mxu1  ;;  %13173 = vmatmul.mubr.bf16.vlgmr.msra.gmra.mxu1 %v21146_v1  ;;  %v12889_v38 = vpop.f32.mrf.mxu0  ;;  %13183 = vmatprep.subr.bf16.mxu0 %v17337_v31  ;;  %v17346_v39 = vld [vmem:[%s24330_s4 + $0xaac] ss:$16 sps:$4 sm:$0xff]   ;;  %v17371_v31 = vld [vmem:[%s24330_s4 + $0x808] ss:$16 sps:$4 sm:$0xff]  }
 0x594   :  { %13223 = vmatpush1.bf16.msra.mxu1 %v17332_v10  ;;  %v22892_v23 = vadd.f32 %v12928_v16, %v12888_v36  ;;  %13254 = vmatprep.mubr.bf16.mxu1 %v21161_v35  ;;  %v12890_v1 = vadd.f32 %v12889_v38, %v22697_v44  ;;  %v17344_v44 = vld [vmem:[%s24330_s4 + $0xaa8] ss:$16 sps:$4 sm:$0xff]   ;;  %v17373_v37 = vld [vmem:[%s24330_s4 + $0x80c] ss:$16 sps:$4 sm:$0xff]  }
 0x595   :  { %v12930_v25 = vpop.f32.mrf.mxu1  ;;  %v12891_v20 = vpop.f32.mrf.mxu0  ;;  %13224 = vmatprep.subr.bf16.mxu1 %v17340_v43  ;;  %v17376_v10 = vld [vmem:[%s24330_s4 + $0xa0c] ss:$16 sps:$4 sm:$0xff]   ;;  %v17374_v14 = vld [vmem:[%s24330_s4 + $0xa08] ss:$16 sps:$4 sm:$0xff]  }
 0x596   :  { %v22899_v51 = vadd.f32 %v12930_v25, %v12890_v1  ;;  %13184 = vmatpush1.bf16.msra.mxu0 %v17335_v3  ;;  %v17379_v43 = vld [vmem:[%s24330_s4 + $0x9ec] ss:$16 sps:$4 sm:$0xff]   ;;  %v17377_v16 = vld [vmem:[%s24330_s4 + $0x9e8] ss:$16 sps:$4 sm:$0xff]  }
 0x597   :  { %v12932_v62 = vpop.f32.mrf.mxu1  ;;  %v12892_v35 = vpop.f32.mrf.mxu0  ;;  %13185 = vmatprep.subr.bf16.mxu0 %v17343_v30  ;;  %v17382_v36 = vld [vmem:[%s24330_s4 + $0xbec] ss:$16 sps:$4 sm:$0xff]   ;;  %v17380_v3 = vld [vmem:[%s24330_s4 + $0xbe8] ss:$16 sps:$4 sm:$0xff]  }
 0x598   :  { %13225 = vmatpush1.bf16.msra.mxu1 %v17338_v8  ;;  %v17385_v38 = vld [vmem:[%s24330_s4 + $0x9cc] ss:$16 sps:$4 sm:$0xff]   ;;  %v17383_v30 = vld [vmem:[%s24330_s4 + $0x9c8] ss:$16 sps:$4 sm:$0xff]  }
 0x599   :  { %v12933_v59 = vpop.f32.mrf.mxu1  ;;  %13226 = vmatprep.subr.bf16.mxu1 %v17346_v39  ;;  %v17388_v8 = vld [vmem:[%s24330_s4 + $0xbcc] ss:$16 sps:$4 sm:$0xff]   ;;  %v17386_v1 = vld [vmem:[%s24330_s4 + $0xbc8] ss:$16 sps:$4 sm:$0xff]  }
 0x59a   :  { %13186 = vmatpush1.bf16.msra.mxu0 %v17341_v24  ;;  %v17391_v25 = vld [vmem:[%s24330_s4 + $0x9ac] ss:$16 sps:$4 sm:$0xff]   ;;  %v17389_v20 = vld [vmem:[%s24330_s4 + $0x9a8] ss:$16 sps:$4 sm:$0xff]  }
 0x59b   :  { %13187 = vmatprep.subr.bf16.mxu0 %v17349_v50  ;;  %v17394_v39 = vld [vmem:[%s24330_s4 + $0xbac] ss:$16 sps:$4 sm:$0xff]   ;;  %v17392_v62 = vld [vmem:[%s24330_s4 + $0xba8] ss:$16 sps:$4 sm:$0xff]  }
 0x59c   :  { %13227 = vmatpush1.bf16.msra.mxu1 %v17344_v44  ;;  %v17397_v24 = vld [vmem:[%s24330_s4 + $0x98c] ss:$16 sps:$4 sm:$0xff]   ;;  %v17395_v44 = vld [vmem:[%s24330_s4 + $0x988] ss:$16 sps:$4 sm:$0xff]  }
 0x59d   :  { %13228 = vmatprep.subr.bf16.mxu1 %v17352_v34  ;;  %v17400_v35 = vld [vmem:[%s24330_s4 + $0xb8c] ss:$16 sps:$4 sm:$0xff]   ;;  %v17398_v50 = vld [vmem:[%s24330_s4 + $0xb88] ss:$16 sps:$4 sm:$0xff]  }
 0x59e   :  { %13188 = vmatpush1.bf16.msra.mxu0 %v17347_v18  ;;  %v17403_v59 = vld [vmem:[%s24330_s4 + $0x96c] ss:$16 sps:$4 sm:$0xff]   ;;  %v17401_v18 = vld [vmem:[%s24330_s4 + $0x968] ss:$16 sps:$4 sm:$0xff]  }
 0x59f   :  { %13189 = vmatprep.subr.bf16.mxu0 %v17355_v47  ;;  %v17406_v34 = vld [vmem:[%s24330_s4 + $0xb6c] ss:$16 sps:$4 sm:$0xff]  }
 0x5a0   :  { %13229 = vmatpush1.bf16.msra.mxu1 %v17350_v32  ;;  %v17404_v32 = vld [vmem:[%s24330_s4 + $0xb68] ss:$16 sps:$4 sm:$0xff]   ;;  %v17409_v47 = vld [vmem:[%s24330_s4 + $0x94c] ss:$16 sps:$4 sm:$0xff]  }
 0x5a1   :  { %13230 = vmatprep.subr.bf16.mxu1 %v17358_v42  ;;  %v17412_v42 = vld [vmem:[%s24330_s4 + $0xb4c] ss:$16 sps:$4 sm:$0xff]  }
 0x5a2   :  { %13190 = vmatpush1.bf16.msra.mxu0 %v17353_v4  ;;  %v17407_v4 = vld [vmem:[%s24330_s4 + $0x948] ss:$16 sps:$4 sm:$0xff]  }
 0x5a3   :  { %13191 = vmatprep.subr.bf16.mxu0 %v17361_v9  ;;  %v17415_v9 = vld [vmem:[%s24330_s4 + $0x92c] ss:$16 sps:$4 sm:$0xff]  }
 0x5a4   :  { %13231 = vmatpush1.bf16.msra.mxu1 %v17356_v52  ;;  %v17410_v52 = vld [vmem:[%s24330_s4 + $0xb48] ss:$16 sps:$4 sm:$0xff]  }
 0x5a5   :  { %13232 = vmatprep.subr.bf16.mxu1 %v17364_v58  ;;  %v17418_v58 = vld [vmem:[%s24330_s4 + $0xb2c] ss:$16 sps:$4 sm:$0xff]  }
 0x5a6   :  { %13192 = vmatpush1.bf16.msra.mxu0 %v17359_v12  ;;  %v17413_v12 = vld [vmem:[%s24330_s4 + $0x928] ss:$16 sps:$4 sm:$0xff]  }
 0x5a7   :  { %13193 = vmatprep.subr.bf16.mxu0 %v17367_v55  ;;  %v17421_v55 = vld [vmem:[%s24330_s4 + $0x90c] ss:$16 sps:$4 sm:$0xff]  }
 0x5a8   :  { %13233 = vmatpush1.bf16.msra.mxu1 %v17362_v63  ;;  %v17416_v63 = vld [vmem:[%s24330_s4 + $0xb28] ss:$16 sps:$4 sm:$0xff]  }
 0x5a9   :  { %13234 = vmatprep.subr.bf16.mxu1 %v17370_v29  ;;  %v17424_v29 = vld [vmem:[%s24330_s4 + $0xb0c] ss:$16 sps:$4 sm:$0xff]  }
 0x5aa   :  { %13194 = vmatpush1.bf16.msra.mxu0 %v17365_v33  ;;  %v17419_v33 = vld [vmem:[%s24330_s4 + $0x908] ss:$16 sps:$4 sm:$0xff]  }
 0x5ab   :  { %13195 = vmatprep.subr.bf16.mxu0 %v17373_v37  ;;  %v17427_v37 = vld [vmem:[%s24330_s4 + $0xcec] ss:$16 sps:$4 sm:$0xff]  }
 0x5ac   :  { %13235 = vmatpush1.bf16.msra.mxu1 %v17368_v49  ;;  %v17422_v49 = vld [vmem:[%s24330_s4 + $0xb08] ss:$16 sps:$4 sm:$0xff]  }
 0x5ad   :  { %13236 = vmatprep.subr.bf16.mxu1 %v17376_v10  ;;  %v17430_v10 = vld [vmem:[%s24330_s4 + $0xeec] ss:$16 sps:$4 sm:$0xff]  }
 0x5ae   :  { %13196 = vmatpush1.bf16.msra.mxu0 %v17371_v31  ;;  %v17425_v31 = vld [vmem:[%s24330_s4 + $0xce8] ss:$16 sps:$4 sm:$0xff]  }
 0x5af   :  { %13197 = vmatprep.subr.bf16.mxu0 %v17379_v43  ;;  %v17433_v43 = vld [vmem:[%s24330_s4 + $0xccc] ss:$16 sps:$4 sm:$0xff]  }
 0x5b0   :  { %13237 = vmatpush1.bf16.msra.mxu1 %v17374_v14  ;;  %v17428_v14 = vld [vmem:[%s24330_s4 + $0xee8] ss:$16 sps:$4 sm:$0xff]  }
 0x5b1   :  { %13238 = vmatprep.subr.bf16.mxu1 %v17382_v36 }
 0x5b2   :  { %13198 = vmatpush2.bf16.msra.mxu0 %v17377_v16  ;;  %v17436_v16 = vld [vmem:[%s24330_s4 + $0xecc] ss:$16 sps:$4 sm:$0xff]  }
 0x5b3   :  { %13199 = vmatprep.subr.bf16.mxu0 %v17385_v38 }
 0x5b4   :  { %13239 = vmatpush2.bf16.msra.mxu1 %v17380_v3 }
 0x5b5   :  { %13240 = vmatprep.subr.bf16.mxu1 %v17388_v8  ;;  %v17431_v8 = vld [vmem:[%s24330_s4 + $0xcc8] ss:$16 sps:$4 sm:$0xff]  }
 0x5b6   :  { %13200 = vmatpush2.bf16.msra.mxu0 %v17383_v30 }
 0x5b7   :  { %13201 = vmatprep.subr.bf16.mxu0 %v17391_v25 }
 0x5b8   :  { %13241 = vmatpush2.bf16.msra.mxu1 %v17386_v1 }
 0x5b9   :  { %13242 = vmatprep.subr.bf16.mxu1 %v17394_v39 }
 0x5ba   :  { %13202 = vmatpush2.bf16.msra.mxu0 %v17389_v20 }
 0x5bb   :  { %13203 = vmatprep.subr.bf16.mxu0 %v17397_v24  ;;  %v17437_v24 = vld [vmem:[%s24330_s4 + $0xca8] ss:$16 sps:$4 sm:$0xff]  }
 0x5bc   :  { %13243 = vmatpush2.bf16.msra.mxu1 %v17392_v62 }
 0x5bd   :  { %13244 = vmatprep.subr.bf16.mxu1 %v17400_v35  ;;  %v17445_v35 = vld [vmem:[%s24330_s4 + $0xc8c] ss:$16 sps:$4 sm:$0xff]  }
 0x5be   :  { %13204 = vmatpush2.bf16.msra.mxu0 %v17395_v44 }
 0x5bf   :  { %13205 = vmatprep.subr.bf16.mxu0 %v17403_v59  ;;  %v17443_v59 = vld [vmem:[%s24330_s4 + $0xc88] ss:$16 sps:$4 sm:$0xff]  }
 0x5c0   :  { %13245 = vmatpush2.bf16.msra.mxu1 %v17398_v50  ;;  %v17448_v50 = vld [vmem:[%s24330_s4 + $0xe8c] ss:$16 sps:$4 sm:$0xff]  }
 0x5c1   :  { %13246 = vmatprep.subr.bf16.mxu1 %v17406_v34  ;;  %v17446_v34 = vld [vmem:[%s24330_s4 + $0xe88] ss:$16 sps:$4 sm:$0xff]  }
 0x5c2   :  { %13206 = vmatpush2.bf16.msra.mxu0 %v17401_v18  ;;  %v17451_v18 = vld [vmem:[%s24330_s4 + $0xc6c] ss:$16 sps:$4 sm:$0xff]  }
 0x5c3   :  { %13207 = vmatprep.subr.bf16.mxu0 %v17409_v47  ;;  %v17449_v47 = vld [vmem:[%s24330_s4 + $0xc68] ss:$16 sps:$4 sm:$0xff]  }
 0x5c4   :  { %13247 = vmatpush2.bf16.msra.mxu1 %v17404_v32  ;;  %v17454_v32 = vld [vmem:[%s24330_s4 + $0xe6c] ss:$16 sps:$4 sm:$0xff]  }
 0x5c5   :  { %13248 = vmatprep.subr.bf16.mxu1 %v17412_v42  ;;  %v17452_v42 = vld [vmem:[%s24330_s4 + $0xe68] ss:$16 sps:$4 sm:$0xff]  }
 0x5c6   :  { %13208 = vmatpush2.bf16.msra.mxu0 %v17407_v4  ;;  %v17457_v4 = vld [vmem:[%s24330_s4 + $0xc4c] ss:$16 sps:$4 sm:$0xff]  }
 0x5c7   :  { %13209 = vmatprep.subr.bf16.mxu0 %v17415_v9  ;;  %v17455_v9 = vld [vmem:[%s24330_s4 + $0xc48] ss:$16 sps:$4 sm:$0xff]  }
 0x5c8   :  { %13249 = vmatpush2.bf16.msra.mxu1 %v17410_v52  ;;  %v17460_v52 = vld [vmem:[%s24330_s4 + $0xe4c] ss:$16 sps:$4 sm:$0xff]  }
 0x5c9   :  { %13250 = vmatprep.subr.bf16.mxu1 %v17418_v58  ;;  %v17458_v58 = vld [vmem:[%s24330_s4 + $0xe48] ss:$16 sps:$4 sm:$0xff]  }
 0x5ca   :  { %13210 = vmatpush2.bf16.msra.mxu0 %v17413_v12  ;;  %v17463_v12 = vld [vmem:[%s24330_s4 + $0xc2c] ss:$16 sps:$4 sm:$0xff]  }
 0x5cb   :  { %13211 = vmatprep.subr.bf16.mxu0 %v17421_v55  ;;  %v17461_v55 = vld [vmem:[%s24330_s4 + $0xc28] ss:$16 sps:$4 sm:$0xff]  }
 0x5cc   :  { %13251 = vmatpush2.bf16.msra.mxu1 %v17416_v63  ;;  %v17466_v63 = vld [vmem:[%s24330_s4 + $0xe2c] ss:$16 sps:$4 sm:$0xff]  }
 0x5cd   :  { %13252 = vmatprep.subr.bf16.mxu1 %v17424_v29  ;;  %v17464_v29 = vld [vmem:[%s24330_s4 + $0xe28] ss:$16 sps:$4 sm:$0xff]  }
 0x5ce   :  { %13212 = vmatpush2.bf16.msra.mxu0 %v17419_v33  ;;  %v17469_v33 = vld [vmem:[%s24330_s4 + $0xc0c] ss:$16 sps:$4 sm:$0xff]  }
 0x5cf   :  { %13263 = vmatprep.subr.bf16.mxu0 %v17427_v37  ;;  %v17467_v37 = vld [vmem:[%s24330_s4 + $0xc08] ss:$16 sps:$4 sm:$0xff]  }
 0x5d0   :  { %13253 = vmatpush2.bf16.msra.mxu1 %v17422_v49  ;;  %v17472_v49 = vld [vmem:[%s24330_s4 + $0xe0c] ss:$16 sps:$4 sm:$0xff]  }
 0x5d1   :  { %13304 = vmatprep.subr.bf16.mxu1 %v17430_v10  ;;  %v12969_v36 = vpop.f32.mrf.mxu0  ;;  %13214 = vmatmul.mubr.bf16.vlgmr.msra.gmra.mxu0 %v21365_v46  ;;  %v17434_v46 = vld [vmem:[%s24330_s4 + $0xec8] ss:$16 sps:$4 sm:$0xff]  }
 0x5d2   :  { %v12970_v3 = vadd.f32 %v12969_v36, %v22892_v23  ;;  %13264 = vmatpush1.bf16.msra.mxu0 %v17425_v31  ;;  %13295 = vmatprep.mubr.bf16.mxu0 %v21381_v28  ;;  %v17439_v23 = vld [vmem:[%s24330_s4 + $0xcac] ss:$16 sps:$4 sm:$0xff]   ;;  %v17470_v10 = vld [vmem:[%s24330_s4 + $0xe08] ss:$16 sps:$4 sm:$0xff]  }
 0x5d3   :  { %v13010_v38 = vpop.f32.mrf.mxu1  ;;  %13255 = vmatmul.mubr.bf16.vlgmr.msra.gmra.mxu1 %v21374_v13  ;;  %v12971_v30 = vpop.f32.mrf.mxu0  ;;  %13265 = vmatprep.subr.bf16.mxu0 %v17433_v43  ;;  %v17442_v28 = vld [vmem:[%s24330_s4 + $0xeac] ss:$16 sps:$4 sm:$0xff]   ;;  %v17473_v43 = vld [vmem:[%s24330_s4 + $0xde8] ss:$16 sps:$4 sm:$0xff]  }
 0x5d4   :  { %13305 = vmatpush1.bf16.msra.mxu1 %v17428_v14  ;;  %v23094_v1 = vadd.f32 %v13010_v38, %v12970_v3  ;;  %13336 = vmatprep.mubr.bf16.mxu1 %v21391_v17  ;;  %v12972_v13 = vadd.f32 %v12971_v30, %v22899_v51  ;;  %v17440_v51 = vld [vmem:[%s24330_s4 + $0xea8] ss:$16 sps:$4 sm:$0xff]   ;;  %v17475_v31 = vld [vmem:[%s24330_s4 + $0xdec] ss:$16 sps:$4 sm:$0xff]  }
 0x5d5   :  { %v13012_v25 = vpop.f32.mrf.mxu1  ;;  %v12973_v39 = vpop.f32.mrf.mxu0  ;;  %13306 = vmatprep.subr.bf16.mxu1 %v17436_v16  ;;  %v17478_v14 = vld [vmem:[%s24330_s4 + $0xfec] ss:$16 sps:$4 sm:$0xff]   ;;  %v17476_v36 = vld [vmem:[%s24330_s4 + $0xfe8] ss:$16 sps:$4 sm:$0xff]  }
 0x5d6   :  { %v23101_v20 = vadd.f32 %v13012_v25, %v12972_v13  ;;  %13266 = vmatpush1.bf16.msra.mxu0 %v17431_v8  ;;  %v17481_v16 = vld [vmem:[%s24330_s4 + $0xdcc] ss:$16 sps:$4 sm:$0xff]   ;;  %v17479_v38 = vld [vmem:[%s24330_s4 + $0xdc8] ss:$16 sps:$4 sm:$0xff]  }
 0x5d7   :  { %v13014_v62 = vpop.f32.mrf.mxu1  ;;  %v12974_v17 = vpop.f32.mrf.mxu0  ;;  %13267 = vmatprep.subr.bf16.mxu0 %v17439_v23  ;;  %v17484_v3 = vld [vmem:[%s24330_s4 + $0xfcc] ss:$16 sps:$4 sm:$0xff]   ;;  %v17482_v8 = vld [vmem:[%s24330_s4 + $0xfc8] ss:$16 sps:$4 sm:$0xff]  }
 0x5d8   :  { %13307 = vmatpush1.bf16.msra.mxu1 %v17434_v46  ;;  %v17487_v30 = vld [vmem:[%s24330_s4 + $0xdac] ss:$16 sps:$4 sm:$0xff]   ;;  %v17485_v23 = vld [vmem:[%s24330_s4 + $0xda8] ss:$16 sps:$4 sm:$0xff]   ;;  %17951 = vtanh.f32 %v23101_v20 }
 0x5d9   :  { %v13015_v44 = vpop.f32.mrf.mxu1  ;;  %13308 = vmatprep.subr.bf16.mxu1 %v17442_v28  ;;  %v17490_v46 = vld [vmem:[%s24330_s4 + $0xfac] ss:$16 sps:$4 sm:$0xff]   ;;  %v17488_v13 = vld [vmem:[%s24330_s4 + $0xfa8] ss:$16 sps:$4 sm:$0xff]   ;;  %17953 = vtanh.f32 %v23094_v1  ;;  %v17912_v1 = vld [vmem:[%s24303_s7 + $0x20] sm:$0xff]  }
 0x5da   :  { %13268 = vmatpush1.bf16.msra.mxu0 %v17437_v24  ;;  %v17493_v25 = vld [vmem:[%s24330_s4 + $0xd8c] ss:$16 sps:$4 sm:$0xff]   ;;  %v17491_v39 = vld [vmem:[%s24330_s4 + $0xd88] ss:$16 sps:$4 sm:$0xff]  }
 0x5db   :  { %13269 = vmatprep.subr.bf16.mxu0 %v17445_v35  ;;  %v17496_v28 = vld [vmem:[%s24330_s4 + $0xf8c] ss:$16 sps:$4 sm:$0xff]   ;;  %v17494_v62 = vld [vmem:[%s24330_s4 + $0xf88] ss:$16 sps:$4 sm:$0xff]  }
 0x5dc   :  { %13309 = vmatpush1.bf16.msra.mxu1 %v17440_v51  ;;  %v17499_v24 = vld [vmem:[%s24330_s4 + $0xd6c] ss:$16 sps:$4 sm:$0xff]   ;;  %v17497_v51 = vld [vmem:[%s24330_s4 + $0xd68] ss:$16 sps:$4 sm:$0xff]  }
 0x5dd   :  { %13310 = vmatprep.subr.bf16.mxu1 %v17448_v50  ;;  %v17502_v17 = vld [vmem:[%s24330_s4 + $0xf6c] ss:$16 sps:$4 sm:$0xff]   ;;  %v17500_v35 = vld [vmem:[%s24330_s4 + $0xf68] ss:$16 sps:$4 sm:$0xff]  }
 0x5de   :  { %13270 = vmatpush1.bf16.msra.mxu0 %v17443_v59  ;;  %v17505_v44 = vld [vmem:[%s24330_s4 + $0xd4c] ss:$16 sps:$4 sm:$0xff]   ;;  %v17503_v59 = vld [vmem:[%s24330_s4 + $0xd48] ss:$16 sps:$4 sm:$0xff]  }
 0x5df   :  { %13271 = vmatprep.subr.bf16.mxu0 %v17451_v18  ;;  %v17508_v50 = vld [vmem:[%s24330_s4 + $0xf4c] ss:$16 sps:$4 sm:$0xff]  }
 0x5e0   :  { %13311 = vmatpush1.bf16.msra.mxu1 %v17446_v34  ;;  %v17506_v34 = vld [vmem:[%s24330_s4 + $0xf48] ss:$16 sps:$4 sm:$0xff]   ;;  %v17511_v18 = vld [vmem:[%s24330_s4 + $0xd2c] ss:$16 sps:$4 sm:$0xff]  }
 0x5e1   :  { %13312 = vmatprep.subr.bf16.mxu1 %v17454_v32  ;;  %v17514_v32 = vld [vmem:[%s24330_s4 + $0xf2c] ss:$16 sps:$4 sm:$0xff]  }
 0x5e2   :  { %13272 = vmatpush1.bf16.msra.mxu0 %v17449_v47  ;;  %v17509_v47 = vld [vmem:[%s24330_s4 + $0xd28] ss:$16 sps:$4 sm:$0xff]   ;;  %v17886_v20 = vld [vmem:[%s24330_s4 + $0x1f6c] ss:$16 sps:$4 sm:$0xff]  }
 0x5e3   :  { %13273 = vmatprep.subr.bf16.mxu0 %v17457_v4  ;;  %v17517_v4 = vld [vmem:[%s24330_s4 + $0xd0c] ss:$16 sps:$4 sm:$0xff]  }
 0x5e4   :  { %13313 = vmatpush1.bf16.msra.mxu1 %v17452_v42  ;;  %v17512_v42 = vld [vmem:[%s24330_s4 + $0xf28] ss:$16 sps:$4 sm:$0xff]  }
 0x5e5   :  { %13314 = vmatprep.subr.bf16.mxu1 %v17460_v52  ;;  %v17520_v52 = vld [vmem:[%s24330_s4 + $0xf0c] ss:$16 sps:$4 sm:$0xff]  }
 0x5e6   :  { %13274 = vmatpush1.bf16.msra.mxu0 %v17455_v9  ;;  %v17515_v9 = vld [vmem:[%s24330_s4 + $0xd08] ss:$16 sps:$4 sm:$0xff]  }
 0x5e7   :  { %13275 = vmatprep.subr.bf16.mxu0 %v17463_v12  ;;  %v17523_v12 = vld [vmem:[%s24330_s4 + $0x10ec] ss:$16 sps:$4 sm:$0xff]  }
 0x5e8   :  { %13315 = vmatpush1.bf16.msra.mxu1 %v17458_v58  ;;  %v17518_v58 = vld [vmem:[%s24330_s4 + $0xf08] ss:$16 sps:$4 sm:$0xff]  }
 0x5e9   :  { %13316 = vmatprep.subr.bf16.mxu1 %v17466_v63  ;;  %v17526_v63 = vld [vmem:[%s24330_s4 + $0x12ec] ss:$16 sps:$4 sm:$0xff]  }
 0x5ea   :  { %13276 = vmatpush1.bf16.msra.mxu0 %v17461_v55  ;;  %v17963_v55 = vld [vmem:[%s24331_s22] sm:$0xf] }
 0x5eb   :  { %13277 = vmatprep.subr.bf16.mxu0 %v17469_v33  ;;  %v17521_v33 = vld [vmem:[%s24330_s4 + $0x10e8] ss:$16 sps:$4 sm:$0xff]  }
 0x5ec   :  { %13317 = vmatpush1.bf16.msra.mxu1 %v17464_v29  ;;  %v7232_v29 = vrot.slane %v17963_v55, %v19062_v6 }
 0x5ed   :  { %13318 = vmatprep.subr.bf16.mxu1 %v17472_v49  ;;  %v17524_v49 = vld [vmem:[%s24330_s4 + $0x12e8] ss:$16 sps:$4 sm:$0xff]  }
 0x5ee   :  { %13278 = vmatpush1.bf16.msra.mxu0 %v17467_v37  ;;  %v7236_v37 = vrot.slane %v17963_v55, %v19077_v15  ;;  %v17566_v55 = vld [vmem:[%s24330_s4 + $0x1208] ss:$16 sps:$4 sm:$0xff]  }
 0x5ef   :  { %13279 = vmatprep.subr.bf16.mxu0 %v17475_v31 }
 0x5f0   :  { %13319 = vmatpush1.bf16.msra.mxu1 %v17470_v10  ;;  %v17529_v10 = vld [vmem:[%s24330_s4 + $0x10cc] ss:$16 sps:$4 sm:$0xff]  }
 0x5f1   :  { %13320 = vmatprep.subr.bf16.mxu1 %v17478_v14  ;;  %v17532_v14 = vld [vmem:[%s24330_s4 + $0x12cc] ss:$16 sps:$4 sm:$0xff]  }
 0x5f2   :  { %13280 = vmatpush2.bf16.msra.mxu0 %v17473_v43 }
 0x5f3   :  { %13281 = vmatprep.subr.bf16.mxu0 %v17481_v16  ;;  %v17527_v16 = vld [vmem:[%s24330_s4 + $0x10c8] ss:$16 sps:$4 sm:$0xff]  }
 0x5f4   :  { %13321 = vmatpush2.bf16.msra.mxu1 %v17476_v36 }
 0x5f5   :  { %13322 = vmatprep.subr.bf16.mxu1 %v17484_v3 }
 0x5f6   :  { %13282 = vmatpush2.bf16.msra.mxu0 %v17479_v38  ;;  %v17535_v38 = vld [vmem:[%s24330_s4 + $0x10ac] ss:$16 sps:$4 sm:$0xff]  }
 0x5f7   :  { %13283 = vmatprep.subr.bf16.mxu0 %v17487_v30 }
 0x5f8   :  { %13323 = vmatpush2.bf16.msra.mxu1 %v17482_v8 }
 0x5f9   :  { %13324 = vmatprep.subr.bf16.mxu1 %v17490_v46 }
 0x5fa   :  { %13284 = vmatpush2.bf16.msra.mxu0 %v17485_v23 }
 0x5fb   :  { %13285 = vmatprep.subr.bf16.mxu0 %v17493_v25  ;;  %v17533_v25 = vld [vmem:[%s24330_s4 + $0x10a8] ss:$16 sps:$4 sm:$0xff]  }
 0x5fc   :  { %13325 = vmatpush2.bf16.msra.mxu1 %v17488_v13 }
 0x5fd   :  { %13326 = vmatprep.subr.bf16.mxu1 %v17496_v28 }
 0x5fe   :  { %13286 = vmatpush2.bf16.msra.mxu0 %v17491_v39  ;;  %v17541_v39 = vld [vmem:[%s24330_s4 + $0x108c] ss:$16 sps:$4 sm:$0xff]  }
 0x5ff   :  { %13287 = vmatprep.subr.bf16.mxu0 %v17499_v24  ;;  %v17544_v24 = vld [vmem:[%s24330_s4 + $0x128c] ss:$16 sps:$4 sm:$0xff]  }
 0x600   :  { %13327 = vmatpush2.bf16.msra.mxu1 %v17494_v62 }
 0x601   :  { %13328 = vmatprep.subr.bf16.mxu1 %v17502_v17  ;;  %v17539_v17 = vld [vmem:[%s24330_s4 + $0x1088] ss:$16 sps:$4 sm:$0xff]  }
 0x602   :  { %13288 = vmatpush2.bf16.msra.mxu0 %v17497_v51  ;;  %v17542_v51 = vld [vmem:[%s24330_s4 + $0x1288] ss:$16 sps:$4 sm:$0xff]  }
 0x603   :  { %13289 = vmatprep.subr.bf16.mxu0 %v17505_v44  ;;  %v17550_v44 = vld [vmem:[%s24330_s4 + $0x126c] ss:$16 sps:$4 sm:$0xff]  }
 0x604   :  { %13329 = vmatpush2.bf16.msra.mxu1 %v17500_v35  ;;  %v17547_v35 = vld [vmem:[%s24330_s4 + $0x106c] ss:$16 sps:$4 sm:$0xff]  }
 0x605   :  { %13330 = vmatprep.subr.bf16.mxu1 %v17508_v50  ;;  %v17545_v50 = vld [vmem:[%s24330_s4 + $0x1068] ss:$16 sps:$4 sm:$0xff]  }
 0x606   :  { %13290 = vmatpush2.bf16.msra.mxu0 %v17503_v59  ;;  %v17548_v59 = vld [vmem:[%s24330_s4 + $0x1268] ss:$16 sps:$4 sm:$0xff]  }
 0x607   :  { %13291 = vmatprep.subr.bf16.mxu0 %v17511_v18  ;;  %v17556_v18 = vld [vmem:[%s24330_s4 + $0x124c] ss:$16 sps:$4 sm:$0xff]  }
 0x608   :  { %13331 = vmatpush2.bf16.msra.mxu1 %v17506_v34  ;;  %v17553_v34 = vld [vmem:[%s24330_s4 + $0x104c] ss:$16 sps:$4 sm:$0xff]  }
 0x609   :  { %13332 = vmatprep.subr.bf16.mxu1 %v17514_v32  ;;  %v17551_v32 = vld [vmem:[%s24330_s4 + $0x1048] ss:$16 sps:$4 sm:$0xff]  }
 0x60a   :  { %13292 = vmatpush2.bf16.msra.mxu0 %v17509_v47  ;;  %v17554_v47 = vld [vmem:[%s24330_s4 + $0x1248] ss:$16 sps:$4 sm:$0xff]  }
 0x60b   :  { %13293 = vmatprep.subr.bf16.mxu0 %v17517_v4  ;;  %v17562_v4 = vld [vmem:[%s24330_s4 + $0x122c] ss:$16 sps:$4 sm:$0xff]  }
 0x60c   :  { %13333 = vmatpush2.bf16.msra.mxu1 %v17512_v42  ;;  %v17559_v42 = vld [vmem:[%s24330_s4 + $0x102c] ss:$16 sps:$4 sm:$0xff]  }
 0x60d   :  { %13334 = vmatprep.subr.bf16.mxu1 %v17520_v52  ;;  %v17557_v52 = vld [vmem:[%s24330_s4 + $0x1028] ss:$16 sps:$4 sm:$0xff]  }
 0x60e   :  { %13294 = vmatpush2.bf16.msra.mxu0 %v17515_v9  ;;  %v17560_v9 = vld [vmem:[%s24330_s4 + $0x1228] ss:$16 sps:$4 sm:$0xff]  }
 0x60f   :  { %13345 = vmatprep.subr.bf16.mxu0 %v17523_v12  ;;  %v17568_v12 = vld [vmem:[%s24330_s4 + $0x120c] ss:$16 sps:$4 sm:$0xff]  }
 0x610   :  { %13335 = vmatpush2.bf16.msra.mxu1 %v17518_v58  ;;  %v17565_v58 = vld [vmem:[%s24330_s4 + $0x100c] ss:$16 sps:$4 sm:$0xff]  }
 0x611   :  { %13386 = vmatprep.subr.bf16.mxu1 %v17526_v63  ;;  %v13051_v31 = vpop.f32.mrf.mxu0  ;;  %13296 = vmatmul.mubr.bf16.vlgmr.msra.gmra.mxu0 %v21589_v2  ;;  %v17530_v2 = vld [vmem:[%s24330_s4 + $0x12c8] ss:$16 sps:$4 sm:$0xff]  }
 0x612   :  { %v13052_v43 = vadd.f32 %v13051_v31, %v7232_v29  ;;  %13346 = vmatpush1.bf16.msra.mxu0 %v17521_v33  ;;  %13377 = vmatprep.mubr.bf16.mxu0 %v21604_v61  ;;  %v17538_v61 = vld [vmem:[%s24330_s4 + $0x12ac] ss:$16 sps:$4 sm:$0xff]   ;;  %v17563_v63 = vld [vmem:[%s24330_s4 + $0x1008] ss:$16 sps:$4 sm:$0xff]  }
 0x613   :  { %v13092_v36 = vpop.f32.mrf.mxu1  ;;  %13337 = vmatmul.mubr.bf16.vlgmr.msra.gmra.mxu1 %v21596_v21  ;;  %v13053_v3 = vpop.f32.mrf.mxu0  ;;  %13347 = vmatprep.subr.bf16.mxu0 %v17529_v10  ;;  %v17571_v29 = vld [vmem:[%s24330_s4 + $0x11ec] ss:$16 sps:$4 sm:$0xff]  }
 0x614   :  { %13387 = vmatpush1.bf16.msra.mxu1 %v17524_v49  ;;  %v23300_v8 = vadd.f32 %v13092_v36, %v13052_v43  ;;  %13418 = vmatprep.mubr.bf16.mxu1 %v21612_v0  ;;  %v13054_v21 = vadd.f32 %v13053_v3, %v7236_v37  ;;  %v17536_v0 = vld [vmem:[%s24330_s4 + $0x12a8] ss:$16 sps:$4 sm:$0xff]   ;;  %v17574_v33 = vld [vmem:[%s24330_s4 + $0x13ec] ss:$16 sps:$4 sm:$0xff]  }
 0x615   :  { %v13094_v30 = vpop.f32.mrf.mxu1  ;;  %v13055_v46 = vpop.f32.mrf.mxu0  ;;  %13388 = vmatprep.subr.bf16.mxu1 %v17532_v14  ;;  %v17569_v49 = vld [vmem:[%s24330_s4 + $0x11e8] ss:$16 sps:$4 sm:$0xff]   ;;  %v17577_v10 = vld [vmem:[%s24330_s4 + $0x11cc] ss:$16 sps:$4 sm:$0xff]  }
 0x616   :  { %v23306_v23 = vadd.f32 %v13094_v30, %v13054_v21  ;;  %13348 = vmatpush1.bf16.msra.mxu0 %v17527_v16  ;;  %v17572_v37 = vld [vmem:[%s24330_s4 + $0x13e8] ss:$16 sps:$4 sm:$0xff]   ;;  %v17580_v31 = vld [vmem:[%s24330_s4 + $0x13cc] ss:$16 sps:$4 sm:$0xff]  }
 0x617   :  { %v13096_v13 = vpop.f32.mrf.mxu1  ;;  %v13056_v28 = vpop.f32.mrf.mxu0  ;;  %13349 = vmatprep.subr.bf16.mxu0 %v17535_v38  ;;  %v17575_v14 = vld [vmem:[%s24330_s4 + $0x11c8] ss:$16 sps:$4 sm:$0xff]   ;;  %v17583_v36 = vld [vmem:[%s24330_s4 + $0x11ac] ss:$16 sps:$4 sm:$0xff]  }
 0x618   :  { %13389 = vmatpush1.bf16.msra.mxu1 %v17530_v2  ;;  %v17578_v43 = vld [vmem:[%s24330_s4 + $0x13c8] ss:$16 sps:$4 sm:$0xff]   ;;  %v17586_v16 = vld [vmem:[%s24330_s4 + $0x13ac] ss:$16 sps:$4 sm:$0xff]  }
 0x619   :  { %v13097_v62 = vpop.f32.mrf.mxu1  ;;  %13390 = vmatprep.subr.bf16.mxu1 %v17538_v61  ;;  %v17581_v3 = vld [vmem:[%s24330_s4 + $0x11a8] ss:$16 sps:$4 sm:$0xff]   ;;  %v17589_v38 = vld [vmem:[%s24330_s4 + $0x118c] ss:$16 sps:$4 sm:$0xff]  }
 0x61a   :  { %13350 = vmatpush1.bf16.msra.mxu0 %v17533_v25  ;;  %v17584_v2 = vld [vmem:[%s24330_s4 + $0x13a8] ss:$16 sps:$4 sm:$0xff]   ;;  %v17592_v21 = vld [vmem:[%s24330_s4 + $0x138c] ss:$16 sps:$4 sm:$0xff]  }
 0x61b   :  { %13351 = vmatprep.subr.bf16.mxu0 %v17541_v39  ;;  %v17587_v30 = vld [vmem:[%s24330_s4 + $0x1188] ss:$16 sps:$4 sm:$0xff]   ;;  %v17595_v46 = vld [vmem:[%s24330_s4 + $0x116c] ss:$16 sps:$4 sm:$0xff]  }
 0x61c   :  { %13391 = vmatpush1.bf16.msra.mxu1 %v17536_v0  ;;  %v17590_v61 = vld [vmem:[%s24330_s4 + $0x1388] ss:$16 sps:$4 sm:$0xff]   ;;  %v17598_v13 = vld [vmem:[%s24330_s4 + $0x136c] ss:$16 sps:$4 sm:$0xff]  }
 0x61d   :  { %13392 = vmatprep.subr.bf16.mxu1 %v17544_v24  ;;  %v17593_v25 = vld [vmem:[%s24330_s4 + $0x1168] ss:$16 sps:$4 sm:$0xff]   ;;  %v17601_v0 = vld [vmem:[%s24330_s4 + $0x114c] ss:$16 sps:$4 sm:$0xff]  }
 0x61e   :  { %13352 = vmatpush1.bf16.msra.mxu0 %v17539_v17  ;;  %v17596_v28 = vld [vmem:[%s24330_s4 + $0x1368] ss:$16 sps:$4 sm:$0xff]   ;;  %v17604_v39 = vld [vmem:[%s24330_s4 + $0x134c] ss:$16 sps:$4 sm:$0xff]  }
 0x61f   :  { %13353 = vmatprep.subr.bf16.mxu0 %v17547_v35  ;;  %v17599_v62 = vld [vmem:[%s24330_s4 + $0x1148] ss:$16 sps:$4 sm:$0xff]   ;;  %v17607_v17 = vld [vmem:[%s24330_s4 + $0x112c] ss:$16 sps:$4 sm:$0xff]  }
 0x620   :  { %13393 = vmatpush1.bf16.msra.mxu1 %v17542_v51  ;;  %v17602_v24 = vld [vmem:[%s24330_s4 + $0x1348] ss:$16 sps:$4 sm:$0xff]   ;;  %v17610_v51 = vld [vmem:[%s24330_s4 + $0x132c] ss:$16 sps:$4 sm:$0xff]  }
 0x621   :  { %13394 = vmatprep.subr.bf16.mxu1 %v17550_v44  ;;  %v17605_v35 = vld [vmem:[%s24330_s4 + $0x1128] ss:$16 sps:$4 sm:$0xff]  }
 0x622   :  { %13354 = vmatpush1.bf16.msra.mxu0 %v17545_v50  ;;  %v17608_v44 = vld [vmem:[%s24330_s4 + $0x1328] ss:$16 sps:$4 sm:$0xff]   ;;  %v17613_v50 = vld [vmem:[%s24330_s4 + $0x110c] ss:$16 sps:$4 sm:$0xff]  }
 0x623   :  { %13355 = vmatprep.subr.bf16.mxu0 %v17553_v34  ;;  %v17611_v34 = vld [vmem:[%s24330_s4 + $0x1108] ss:$16 sps:$4 sm:$0xff]  }
 0x624   :  { %13395 = vmatpush1.bf16.msra.mxu1 %v17548_v59  ;;  %v17616_v59 = vld [vmem:[%s24330_s4 + $0x130c] ss:$16 sps:$4 sm:$0xff]  }
 0x625   :  { %13396 = vmatprep.subr.bf16.mxu1 %v17556_v18  ;;  %v17614_v18 = vld [vmem:[%s24330_s4 + $0x1308] ss:$16 sps:$4 sm:$0xff]  }
 0x626   :  { %13356 = vmatpush1.bf16.msra.mxu0 %v17551_v32  ;;  %v17619_v32 = vld [vmem:[%s24330_s4 + $0x14ec] ss:$16 sps:$4 sm:$0xff]  }
 0x627   :  { %13357 = vmatprep.subr.bf16.mxu0 %v17559_v42  ;;  %v17617_v42 = vld [vmem:[%s24330_s4 + $0x14e8] ss:$16 sps:$4 sm:$0xff]  }
 0x628   :  { %13397 = vmatpush1.bf16.msra.mxu1 %v17554_v47  ;;  %v17622_v47 = vld [vmem:[%s24330_s4 + $0x16ec] ss:$16 sps:$4 sm:$0xff]  }
 0x629   :  { %13398 = vmatprep.subr.bf16.mxu1 %v17562_v4  ;;  %v17620_v4 = vld [vmem:[%s24330_s4 + $0x16e8] ss:$16 sps:$4 sm:$0xff]  }
 0x62a   :  { %13358 = vmatpush1.bf16.msra.mxu0 %v17557_v52  ;;  %v17625_v52 = vld [vmem:[%s24330_s4 + $0x14cc] ss:$16 sps:$4 sm:$0xff]  }
 0x62b   :  { %13359 = vmatprep.subr.bf16.mxu0 %v17565_v58  ;;  %v17628_v58 = vld [vmem:[%s24330_s4 + $0x16cc] ss:$16 sps:$4 sm:$0xff]  }
 0x62c   :  { %13399 = vmatpush1.bf16.msra.mxu1 %v17560_v9 }
 0x62d   :  { %13400 = vmatprep.subr.bf16.mxu1 %v17568_v12 }
 0x62e   :  { %13360 = vmatpush1.bf16.msra.mxu0 %v17563_v63 }
 0x62f   :  { %13361 = vmatprep.subr.bf16.mxu0 %v17571_v29 }
 0x630   :  { %13401 = vmatpush1.bf16.msra.mxu1 %v17566_v55  ;;  %v17623_v55 = vld [vmem:[%s24330_s4 + $0x14c8] ss:$16 sps:$4 sm:$0xff]  }
 0x631   :  { %13402 = vmatprep.subr.bf16.mxu1 %v17574_v33 }
 0x632   :  { %13362 = vmatpush2.bf16.msra.mxu0 %v17569_v49 }
 0x633   :  { %13363 = vmatprep.subr.bf16.mxu0 %v17577_v10 }
 0x634   :  { %13403 = vmatpush2.bf16.msra.mxu1 %v17572_v37 }
 0x635   :  { %13404 = vmatprep.subr.bf16.mxu1 %v17580_v31 }
 0x636   :  { %13364 = vmatpush2.bf16.msra.mxu0 %v17575_v14  ;;  %v17629_v14 = vld [vmem:[%s24330_s4 + $0x14a8] ss:$16 sps:$4 sm:$0xff]  }
 0x637   :  { %13365 = vmatprep.subr.bf16.mxu0 %v17583_v36 }
 0x638   :  { %13405 = vmatpush2.bf16.msra.mxu1 %v17578_v43  ;;  %v17637_v43 = vld [vmem:[%s24330_s4 + $0x148c] ss:$16 sps:$4 sm:$0xff]  }
 0x639   :  { %13406 = vmatprep.subr.bf16.mxu1 %v17586_v16  ;;  %v17640_v16 = vld [vmem:[%s24330_s4 + $0x168c] ss:$16 sps:$4 sm:$0xff]  }
 0x63a   :  { %13366 = vmatpush2.bf16.msra.mxu0 %v17581_v3  ;;  %v17635_v3 = vld [vmem:[%s24330_s4 + $0x1488] ss:$16 sps:$4 sm:$0xff]  }
 0x63b   :  { %13367 = vmatprep.subr.bf16.mxu0 %v17589_v38  ;;  %v17643_v38 = vld [vmem:[%s24330_s4 + $0x146c] ss:$16 sps:$4 sm:$0xff]  }
 0x63c   :  { %13407 = vmatpush2.bf16.msra.mxu1 %v17584_v2  ;;  %v17638_v2 = vld [vmem:[%s24330_s4 + $0x1688] ss:$16 sps:$4 sm:$0xff]  }
 0x63d   :  { %13408 = vmatprep.subr.bf16.mxu1 %v17592_v21  ;;  %v17646_v21 = vld [vmem:[%s24330_s4 + $0x166c] ss:$16 sps:$4 sm:$0xff]  }
 0x63e   :  { %13368 = vmatpush2.bf16.msra.mxu0 %v17587_v30  ;;  %v17641_v30 = vld [vmem:[%s24330_s4 + $0x1468] ss:$16 sps:$4 sm:$0xff]  }
 0x63f   :  { %13369 = vmatprep.subr.bf16.mxu0 %v17595_v46  ;;  %v17649_v46 = vld [vmem:[%s24330_s4 + $0x144c] ss:$16 sps:$4 sm:$0xff]  }
 0x640   :  { %13409 = vmatpush2.bf16.msra.mxu1 %v17590_v61  ;;  %v17644_v61 = vld [vmem:[%s24330_s4 + $0x1668] ss:$16 sps:$4 sm:$0xff]  }
 0x641   :  { %13410 = vmatprep.subr.bf16.mxu1 %v17598_v13  ;;  %v17652_v13 = vld [vmem:[%s24330_s4 + $0x164c] ss:$16 sps:$4 sm:$0xff]  }
 0x642   :  { %13370 = vmatpush2.bf16.msra.mxu0 %v17593_v25  ;;  %v17647_v25 = vld [vmem:[%s24330_s4 + $0x1448] ss:$16 sps:$4 sm:$0xff]  }
 0x643   :  { %13371 = vmatprep.subr.bf16.mxu0 %v17601_v0  ;;  %v17655_v0 = vld [vmem:[%s24330_s4 + $0x142c] ss:$16 sps:$4 sm:$0xff]  }
 0x644   :  { %13411 = vmatpush2.bf16.msra.mxu1 %v17596_v28  ;;  %v17650_v28 = vld [vmem:[%s24330_s4 + $0x1648] ss:$16 sps:$4 sm:$0xff]  }
 0x645   :  { %13412 = vmatprep.subr.bf16.mxu1 %v17604_v39  ;;  %v17658_v39 = vld [vmem:[%s24330_s4 + $0x162c] ss:$16 sps:$4 sm:$0xff]  }
 0x646   :  { %13372 = vmatpush2.bf16.msra.mxu0 %v17599_v62  ;;  %v17653_v62 = vld [vmem:[%s24330_s4 + $0x1428] ss:$16 sps:$4 sm:$0xff]  }
 0x647   :  { %13373 = vmatprep.subr.bf16.mxu0 %v17607_v17  ;;  %v17661_v17 = vld [vmem:[%s24330_s4 + $0x140c] ss:$16 sps:$4 sm:$0xff]  }
 0x648   :  { %13413 = vmatpush2.bf16.msra.mxu1 %v17602_v24  ;;  %v17656_v24 = vld [vmem:[%s24330_s4 + $0x1628] ss:$16 sps:$4 sm:$0xff]  }
 0x649   :  { %13414 = vmatprep.subr.bf16.mxu1 %v17610_v51  ;;  %v17664_v51 = vld [vmem:[%s24330_s4 + $0x160c] ss:$16 sps:$4 sm:$0xff]  }
 0x64a   :  { %13374 = vmatpush2.bf16.msra.mxu0 %v17605_v35  ;;  %v17659_v35 = vld [vmem:[%s24330_s4 + $0x1408] ss:$16 sps:$4 sm:$0xff]  }
 0x64b   :  { %13375 = vmatprep.subr.bf16.mxu0 %v17613_v50  ;;  %v17667_v50 = vld [vmem:[%s24330_s4 + $0x15ec] ss:$16 sps:$4 sm:$0xff]  }
 0x64c   :  { %13415 = vmatpush2.bf16.msra.mxu1 %v17608_v44  ;;  %v17662_v44 = vld [vmem:[%s24330_s4 + $0x1608] ss:$16 sps:$4 sm:$0xff]  }
 0x64d   :  { %13416 = vmatprep.subr.bf16.mxu1 %v17616_v59  ;;  %v17670_v59 = vld [vmem:[%s24330_s4 + $0x17ec] ss:$16 sps:$4 sm:$0xff]  }
 0x64e   :  { %13376 = vmatpush2.bf16.msra.mxu0 %v17611_v34  ;;  %v17665_v34 = vld [vmem:[%s24330_s4 + $0x15e8] ss:$16 sps:$4 sm:$0xff]  }
 0x64f   :  { %13427 = vmatprep.subr.bf16.mxu0 %v17619_v32  ;;  %v17673_v32 = vld [vmem:[%s24330_s4 + $0x15cc] ss:$16 sps:$4 sm:$0xff]  }
 0x650   :  { %13417 = vmatpush2.bf16.msra.mxu1 %v17614_v18  ;;  %v17668_v18 = vld [vmem:[%s24330_s4 + $0x17e8] ss:$16 sps:$4 sm:$0xff]  }
 0x651   :  { %13468 = vmatprep.subr.bf16.mxu1 %v17622_v47  ;;  %v13133_v9 = vpop.f32.mrf.mxu0  ;;  %13378 = vmatmul.mubr.bf16.vlgmr.msra.gmra.mxu0 %v21806_v60  ;;  %v17626_v60 = vld [vmem:[%s24330_s4 + $0x16c8] ss:$16 sps:$4 sm:$0xff]   ;;  %v17676_v47 = vld [vmem:[%s24330_s4 + $0x17cc] ss:$16 sps:$4 sm:$0xff]  }
 0x652   :  { %v13134_v12 = vadd.f32 %v13133_v9, %v23300_v8  ;;  %13428 = vmatpush1.bf16.msra.mxu0 %v17617_v42  ;;  %13459 = vmatprep.mubr.bf16.mxu0 %v21820_v5  ;;  %v17631_v8 = vld [vmem:[%s24330_s4 + $0x14ac] ss:$16 sps:$4 sm:$0xff]   ;;  %v17671_v42 = vld [vmem:[%s24330_s4 + $0x15c8] ss:$16 sps:$4 sm:$0xff]  }
 0x653   :  { %v13174_v63 = vpop.f32.mrf.mxu1  ;;  %13419 = vmatmul.mubr.bf16.vlgmr.msra.gmra.mxu1 %v21813_v41  ;;  %v13135_v29 = vpop.f32.mrf.mxu0  ;;  %13429 = vmatprep.subr.bf16.mxu0 %v17625_v52  ;;  %v17634_v5 = vld [vmem:[%s24330_s4 + $0x16ac] ss:$16 sps:$4 sm:$0xff]  }
 0x654   :  { %13469 = vmatpush1.bf16.msra.mxu1 %v17620_v4  ;;  %v23501_v33 = vadd.f32 %v13174_v63, %v13134_v12  ;;  %13500 = vmatprep.mubr.bf16.mxu1 %v21828_v22  ;;  %v13136_v41 = vadd.f32 %v13135_v29, %v23306_v23  ;;  %v17632_v23 = vld [vmem:[%s24330_s4 + $0x16a8] ss:$16 sps:$4 sm:$0xff]   ;;  %v17679_v52 = vld [vmem:[%s24330_s4 + $0x15ac] ss:$16 sps:$4 sm:$0xff]  }
 0x655   :  { %v13176_v49 = vpop.f32.mrf.mxu1  ;;  %v13137_v37 = vpop.f32.mrf.mxu0  ;;  %13470 = vmatprep.subr.bf16.mxu1 %v17628_v58  ;;  %v17674_v4 = vld [vmem:[%s24330_s4 + $0x17c8] ss:$16 sps:$4 sm:$0xff]   ;;  %v17682_v9 = vld [vmem:[%s24330_s4 + $0x17ac] ss:$16 sps:$4 sm:$0xff]  }
 0x656   :  { %v23508_v10 = vadd.f32 %v13176_v49, %v13136_v41  ;;  %13430 = vmatpush1.bf16.msra.mxu0 %v17623_v55  ;;  %v17677_v58 = vld [vmem:[%s24330_s4 + $0x15a8] ss:$16 sps:$4 sm:$0xff]   ;;  %v17685_v63 = vld [vmem:[%s24330_s4 + $0x158c] ss:$16 sps:$4 sm:$0xff]  }
 0x657   :  { %v13178_v31 = vpop.f32.mrf.mxu1  ;;  %v13138_v22 = vpop.f32.mrf.mxu0  ;;  %13431 = vmatprep.subr.bf16.mxu0 %v17631_v8  ;;  %v17680_v12 = vld [vmem:[%s24330_s4 + $0x17a8] ss:$16 sps:$4 sm:$0xff]   ;;  %v17688_v55 = vld [vmem:[%s24330_s4 + $0x178c] ss:$16 sps:$4 sm:$0xff]  }
 0x658   :  { %13471 = vmatpush1.bf16.msra.mxu1 %v17626_v60  ;;  %v17683_v29 = vld [vmem:[%s24330_s4 + $0x1588] ss:$16 sps:$4 sm:$0xff]   ;;  %v17691_v8 = vld [vmem:[%s24330_s4 + $0x156c] ss:$16 sps:$4 sm:$0xff]  }
 0x659   :  { %v13179_v36 = vpop.f32.mrf.mxu1  ;;  %13472 = vmatprep.subr.bf16.mxu1 %v17634_v5  ;;  %v17686_v60 = vld [vmem:[%s24330_s4 + $0x1788] ss:$16 sps:$4 sm:$0xff]   ;;  %v17694_v41 = vld [vmem:[%s24330_s4 + $0x176c] ss:$16 sps:$4 sm:$0xff]  }
 0x65a   :  { %13432 = vmatpush1.bf16.msra.mxu0 %v17629_v14  ;;  %v17689_v49 = vld [vmem:[%s24330_s4 + $0x1568] ss:$16 sps:$4 sm:$0xff]   ;;  %v17697_v37 = vld [vmem:[%s24330_s4 + $0x154c] ss:$16 sps:$4 sm:$0xff]  }
 0x65b   :  { %13433 = vmatprep.subr.bf16.mxu0 %v17637_v43  ;;  %v17692_v5 = vld [vmem:[%s24330_s4 + $0x1768] ss:$16 sps:$4 sm:$0xff]   ;;  %v17700_v31 = vld [vmem:[%s24330_s4 + $0x174c] ss:$16 sps:$4 sm:$0xff]  }
 0x65c   :  { %13473 = vmatpush1.bf16.msra.mxu1 %v17632_v23  ;;  %v17695_v14 = vld [vmem:[%s24330_s4 + $0x1548] ss:$16 sps:$4 sm:$0xff]   ;;  %v17703_v23 = vld [vmem:[%s24330_s4 + $0x152c] ss:$16 sps:$4 sm:$0xff]  }
 0x65d   :  { %13474 = vmatprep.subr.bf16.mxu1 %v17640_v16  ;;  %v17698_v22 = vld [vmem:[%s24330_s4 + $0x1748] ss:$16 sps:$4 sm:$0xff]   ;;  %v17706_v43 = vld [vmem:[%s24330_s4 + $0x172c] ss:$16 sps:$4 sm:$0xff]  }
 0x65e   :  { %13434 = vmatpush1.bf16.msra.mxu0 %v17635_v3  ;;  %v17701_v36 = vld [vmem:[%s24330_s4 + $0x1528] ss:$16 sps:$4 sm:$0xff]   ;;  %v17709_v3 = vld [vmem:[%s24330_s4 + $0x150c] ss:$16 sps:$4 sm:$0xff]  }
 0x65f   :  { %13435 = vmatprep.subr.bf16.mxu0 %v17643_v38  ;;  %v17704_v16 = vld [vmem:[%s24330_s4 + $0x1728] ss:$16 sps:$4 sm:$0xff]  }
 0x660   :  { %13475 = vmatpush1.bf16.msra.mxu1 %v17638_v2  ;;  %v17712_v2 = vld [vmem:[%s24330_s4 + $0x170c] ss:$16 sps:$4 sm:$0xff]   ;;  %v17707_v38 = vld [vmem:[%s24330_s4 + $0x1508] ss:$16 sps:$4 sm:$0xff]  }
 0x661   :  { %13476 = vmatprep.subr.bf16.mxu1 %v17646_v21  ;;  %v17710_v21 = vld [vmem:[%s24330_s4 + $0x1708] ss:$16 sps:$4 sm:$0xff]  }
 0x662   :  { %13436 = vmatpush1.bf16.msra.mxu0 %v17641_v30  ;;  %v17715_v30 = vld [vmem:[%s24330_s4 + $0x18ec] ss:$16 sps:$4 sm:$0xff]  }
 0x663   :  { %13437 = vmatprep.subr.bf16.mxu0 %v17649_v46  ;;  %v17713_v46 = vld [vmem:[%s24330_s4 + $0x18e8] ss:$16 sps:$4 sm:$0xff]  }
 0x664   :  { %13477 = vmatpush1.bf16.msra.mxu1 %v17644_v61  ;;  %v17718_v61 = vld [vmem:[%s24330_s4 + $0x1aec] ss:$16 sps:$4 sm:$0xff]  }
 0x665   :  { %13478 = vmatprep.subr.bf16.mxu1 %v17652_v13  ;;  %v17716_v13 = vld [vmem:[%s24330_s4 + $0x1ae8] ss:$16 sps:$4 sm:$0xff]  }
 0x666   :  { %13438 = vmatpush1.bf16.msra.mxu0 %v17647_v25  ;;  %v17721_v25 = vld [vmem:[%s24330_s4 + $0x18cc] ss:$16 sps:$4 sm:$0xff]  }
 0x667   :  { %13439 = vmatprep.subr.bf16.mxu0 %v17655_v0  ;;  %v17724_v0 = vld [vmem:[%s24330_s4 + $0x1acc] ss:$16 sps:$4 sm:$0xff]  }
 0x668   :  { %13479 = vmatpush1.bf16.msra.mxu1 %v17650_v28 }
 0x669   :  { %13480 = vmatprep.subr.bf16.mxu1 %v17658_v39 }
 0x66a   :  { %13440 = vmatpush1.bf16.msra.mxu0 %v17653_v62 }
 0x66b   :  { %13441 = vmatprep.subr.bf16.mxu0 %v17661_v17 }
 0x66c   :  { %13481 = vmatpush1.bf16.msra.mxu1 %v17656_v24  ;;  %v17719_v24 = vld [vmem:[%s24330_s4 + $0x18c8] ss:$16 sps:$4 sm:$0xff]  }
 0x66d   :  { %13482 = vmatprep.subr.bf16.mxu1 %v17664_v51 }
 0x66e   :  { %13442 = vmatpush1.bf16.msra.mxu0 %v17659_v35 }
 0x66f   :  { %13443 = vmatprep.subr.bf16.mxu0 %v17667_v50 }
 0x670   :  { %13483 = vmatpush1.bf16.msra.mxu1 %v17662_v44 }
 0x671   :  { %13484 = vmatprep.subr.bf16.mxu1 %v17670_v59 }
 0x672   :  { %13444 = vmatpush2.bf16.msra.mxu0 %v17665_v34  ;;  %v17725_v34 = vld [vmem:[%s24330_s4 + $0x18a8] ss:$16 sps:$4 sm:$0xff]  }
 0x673   :  { %13445 = vmatprep.subr.bf16.mxu0 %v17673_v32 }
 0x674   :  { %13485 = vmatpush2.bf16.msra.mxu1 %v17668_v18  ;;  %v17733_v18 = vld [vmem:[%s24330_s4 + $0x188c] ss:$16 sps:$4 sm:$0xff]  }
 0x675   :  { %13486 = vmatprep.subr.bf16.mxu1 %v17676_v47  ;;  %v17736_v47 = vld [vmem:[%s24330_s4 + $0x1a8c] ss:$16 sps:$4 sm:$0xff]  }
 0x676   :  { %13446 = vmatpush2.bf16.msra.mxu0 %v17671_v42  ;;  %v17731_v42 = vld [vmem:[%s24330_s4 + $0x1888] ss:$16 sps:$4 sm:$0xff]  }
 0x677   :  { %13447 = vmatprep.subr.bf16.mxu0 %v17679_v52  ;;  %v17739_v52 = vld [vmem:[%s24330_s4 + $0x186c] ss:$16 sps:$4 sm:$0xff]  }
 0x678   :  { %13487 = vmatpush2.bf16.msra.mxu1 %v17674_v4  ;;  %v17734_v4 = vld [vmem:[%s24330_s4 + $0x1a88] ss:$16 sps:$4 sm:$0xff]  }
 0x679   :  { %13488 = vmatprep.subr.bf16.mxu1 %v17682_v9  ;;  %v17742_v9 = vld [vmem:[%s24330_s4 + $0x1a6c] ss:$16 sps:$4 sm:$0xff]  }
 0x67a   :  { %13448 = vmatpush2.bf16.msra.mxu0 %v17677_v58  ;;  %v17737_v58 = vld [vmem:[%s24330_s4 + $0x1868] ss:$16 sps:$4 sm:$0xff]  }
 0x67b   :  { %13449 = vmatprep.subr.bf16.mxu0 %v17685_v63  ;;  %v17745_v63 = vld [vmem:[%s24330_s4 + $0x184c] ss:$16 sps:$4 sm:$0xff]  }
 0x67c   :  { %13489 = vmatpush2.bf16.msra.mxu1 %v17680_v12  ;;  %v17740_v12 = vld [vmem:[%s24330_s4 + $0x1a68] ss:$16 sps:$4 sm:$0xff]  }
 0x67d   :  { %13490 = vmatprep.subr.bf16.mxu1 %v17688_v55  ;;  %v17748_v55 = vld [vmem:[%s24330_s4 + $0x1a4c] ss:$16 sps:$4 sm:$0xff]  }
 0x67e   :  { %13450 = vmatpush2.bf16.msra.mxu0 %v17683_v29  ;;  %v17743_v29 = vld [vmem:[%s24330_s4 + $0x1848] ss:$16 sps:$4 sm:$0xff]  }
 0x67f   :  { %13451 = vmatprep.subr.bf16.mxu0 %v17691_v8  ;;  %v17751_v8 = vld [vmem:[%s24330_s4 + $0x182c] ss:$16 sps:$4 sm:$0xff]  }
 0x680   :  { %13491 = vmatpush2.bf16.msra.mxu1 %v17686_v60  ;;  %v17746_v60 = vld [vmem:[%s24330_s4 + $0x1a48] ss:$16 sps:$4 sm:$0xff]  }
 0x681   :  { %13492 = vmatprep.subr.bf16.mxu1 %v17694_v41  ;;  %v17754_v41 = vld [vmem:[%s24330_s4 + $0x1a2c] ss:$16 sps:$4 sm:$0xff]  }
 0x682   :  { %13452 = vmatpush2.bf16.msra.mxu0 %v17689_v49  ;;  %v17749_v49 = vld [vmem:[%s24330_s4 + $0x1828] ss:$16 sps:$4 sm:$0xff]  }
 0x683   :  { %13453 = vmatprep.subr.bf16.mxu0 %v17697_v37  ;;  %v17757_v37 = vld [vmem:[%s24330_s4 + $0x180c] ss:$16 sps:$4 sm:$0xff]  }
 0x684   :  { %13493 = vmatpush2.bf16.msra.mxu1 %v17692_v5  ;;  %v17752_v5 = vld [vmem:[%s24330_s4 + $0x1a28] ss:$16 sps:$4 sm:$0xff]  }
 0x685   :  { %13494 = vmatprep.subr.bf16.mxu1 %v17700_v31  ;;  %v17760_v31 = vld [vmem:[%s24330_s4 + $0x1a0c] ss:$16 sps:$4 sm:$0xff]  }
 0x686   :  { %13454 = vmatpush2.bf16.msra.mxu0 %v17695_v14  ;;  %v17755_v14 = vld [vmem:[%s24330_s4 + $0x1808] ss:$16 sps:$4 sm:$0xff]  }
 0x687   :  { %13455 = vmatprep.subr.bf16.mxu0 %v17703_v23  ;;  %v17763_v23 = vld [vmem:[%s24330_s4 + $0x19ec] ss:$16 sps:$4 sm:$0xff]  }
 0x688   :  { %13495 = vmatpush2.bf16.msra.mxu1 %v17698_v22  ;;  %v17758_v22 = vld [vmem:[%s24330_s4 + $0x1a08] ss:$16 sps:$4 sm:$0xff]  }
 0x689   :  { %13496 = vmatprep.subr.bf16.mxu1 %v17706_v43  ;;  %v17766_v43 = vld [vmem:[%s24330_s4 + $0x1bec] ss:$16 sps:$4 sm:$0xff]  }
 0x68a   :  { %13456 = vmatpush2.bf16.msra.mxu0 %v17701_v36  ;;  %v17761_v36 = vld [vmem:[%s24330_s4 + $0x19e8] ss:$16 sps:$4 sm:$0xff]  }
 0x68b   :  { %13457 = vmatprep.subr.bf16.mxu0 %v17709_v3  ;;  %v17769_v3 = vld [vmem:[%s24330_s4 + $0x19cc] ss:$16 sps:$4 sm:$0xff]  }
 0x68c   :  { %13497 = vmatpush2.bf16.msra.mxu1 %v17704_v16  ;;  %v17764_v16 = vld [vmem:[%s24330_s4 + $0x1be8] ss:$16 sps:$4 sm:$0xff]  }
 0x68d   :  { %13498 = vmatprep.subr.bf16.mxu1 %v17712_v2  ;;  %v17772_v2 = vld [vmem:[%s24330_s4 + $0x1bcc] ss:$16 sps:$4 sm:$0xff]  }
 0x68e   :  { %13458 = vmatpush2.bf16.msra.mxu0 %v17707_v38  ;;  %v17767_v38 = vld [vmem:[%s24330_s4 + $0x19c8] ss:$16 sps:$4 sm:$0xff]  }
 0x68f   :  { %13509 = vmatprep.subr.bf16.mxu0 %v17715_v30  ;;  %v17775_v30 = vld [vmem:[%s24330_s4 + $0x19ac] ss:$16 sps:$4 sm:$0xff]  }
 0x690   :  { %13499 = vmatpush2.bf16.msra.mxu1 %v17710_v21  ;;  %v17770_v21 = vld [vmem:[%s24330_s4 + $0x1bc8] ss:$16 sps:$4 sm:$0xff]  }
 0x691   :  { %13550 = vmatprep.subr.bf16.mxu1 %v17718_v61  ;;  %v13215_v28 = vpop.f32.mrf.mxu0  ;;  %13460 = vmatmul.mubr.bf16.vlgmr.msra.gmra.mxu0 %v22024_v57  ;;  %v17722_v57 = vld [vmem:[%s24330_s4 + $0x1ac8] ss:$16 sps:$4 sm:$0xff]   ;;  %v17778_v61 = vld [vmem:[%s24330_s4 + $0x1bac] ss:$16 sps:$4 sm:$0xff]  }
 0x692   :  { %v13216_v39 = vadd.f32 %v13215_v28, %v23501_v33  ;;  %13510 = vmatpush1.bf16.msra.mxu0 %v17713_v46  ;;  %13541 = vmatprep.mubr.bf16.mxu0 %v22038_v40  ;;  %v17727_v33 = vld [vmem:[%s24330_s4 + $0x18ac] ss:$16 sps:$4 sm:$0xff]   ;;  %v17773_v46 = vld [vmem:[%s24330_s4 + $0x19a8] ss:$16 sps:$4 sm:$0xff]  }
 0x693   :  { %v13256_v62 = vpop.f32.mrf.mxu1  ;;  %13501 = vmatmul.mubr.bf16.vlgmr.msra.gmra.mxu1 %v22031_v27  ;;  %v13217_v17 = vpop.f32.mrf.mxu0  ;;  %13511 = vmatprep.subr.bf16.mxu0 %v17721_v25  ;;  %v17730_v40 = vld [vmem:[%s24330_s4 + $0x1aac] ss:$16 sps:$4 sm:$0xff]  }
 0x694   :  { %13551 = vmatpush1.bf16.msra.mxu1 %v17716_v13  ;;  %v23703_v51 = vadd.f32 %v13256_v62, %v13216_v39  ;;  %13582 = vmatprep.mubr.bf16.mxu1 %v22046_v48  ;;  %v13218_v27 = vadd.f32 %v13217_v17, %v23508_v10  ;;  %v17728_v10 = vld [vmem:[%s24330_s4 + $0x1aa8] ss:$16 sps:$4 sm:$0xff]   ;;  %v17781_v25 = vld [vmem:[%s24330_s4 + $0x198c] ss:$16 sps:$4 sm:$0xff]  }
 0x695   :  { %v13258_v35 = vpop.f32.mrf.mxu1  ;;  %v13219_v44 = vpop.f32.mrf.mxu0  ;;  %13552 = vmatprep.subr.bf16.mxu1 %v17724_v0  ;;  %v17776_v13 = vld [vmem:[%s24330_s4 + $0x1ba8] ss:$16 sps:$4 sm:$0xff]   ;;  %v17784_v28 = vld [vmem:[%s24330_s4 + $0x1b8c] ss:$16 sps:$4 sm:$0xff]  }
 0x696   :  { %v23710_v50 = vadd.f32 %v13258_v35, %v13218_v27  ;;  %13512 = vmatpush1.bf16.msra.mxu0 %v17719_v24  ;;  %v17779_v0 = vld [vmem:[%s24330_s4 + $0x1988] ss:$16 sps:$4 sm:$0xff]   ;;  %v17787_v62 = vld [vmem:[%s24330_s4 + $0x196c] ss:$16 sps:$4 sm:$0xff]  }
 0x697   :  { %v13260_v59 = vpop.f32.mrf.mxu1  ;;  %v13220_v48 = vpop.f32.mrf.mxu0  ;;  %13513 = vmatprep.subr.bf16.mxu0 %v17727_v33  ;;  %v17782_v39 = vld [vmem:[%s24330_s4 + $0x1b88] ss:$16 sps:$4 sm:$0xff]   ;;  %v17790_v24 = vld [vmem:[%s24330_s4 + $0x1b6c] ss:$16 sps:$4 sm:$0xff]  }
 0x698   :  { %13553 = vmatpush1.bf16.msra.mxu1 %v17722_v57  ;;  %v17785_v17 = vld [vmem:[%s24330_s4 + $0x1968] ss:$16 sps:$4 sm:$0xff]   ;;  %v17793_v33 = vld [vmem:[%s24330_s4 + $0x194c] ss:$16 sps:$4 sm:$0xff]  }
 0x699   :  { %v13261_v32 = vpop.f32.mrf.mxu1  ;;  %13554 = vmatprep.subr.bf16.mxu1 %v17730_v40  ;;  %v17788_v57 = vld [vmem:[%s24330_s4 + $0x1b68] ss:$16 sps:$4 sm:$0xff]   ;;  %v17796_v27 = vld [vmem:[%s24330_s4 + $0x1b4c] ss:$16 sps:$4 sm:$0xff]  }
 0x69a   :  { %13514 = vmatpush1.bf16.msra.mxu0 %v17725_v34  ;;  %v17791_v35 = vld [vmem:[%s24330_s4 + $0x1948] ss:$16 sps:$4 sm:$0xff]   ;;  %v17799_v44 = vld [vmem:[%s24330_s4 + $0x192c] ss:$16 sps:$4 sm:$0xff]  }
 0x69b   :  { %13515 = vmatprep.subr.bf16.mxu0 %v17733_v18  ;;  %v17794_v40 = vld [vmem:[%s24330_s4 + $0x1b48] ss:$16 sps:$4 sm:$0xff]   ;;  %v17802_v59 = vld [vmem:[%s24330_s4 + $0x1b2c] ss:$16 sps:$4 sm:$0xff]  }
 0x69c   :  { %13555 = vmatpush1.bf16.msra.mxu1 %v17728_v10  ;;  %v17797_v34 = vld [vmem:[%s24330_s4 + $0x1928] ss:$16 sps:$4 sm:$0xff]   ;;  %v17805_v10 = vld [vmem:[%s24330_s4 + $0x190c] ss:$16 sps:$4 sm:$0xff]  }
 0x69d   :  { %13556 = vmatprep.subr.bf16.mxu1 %v17736_v47  ;;  %v17800_v48 = vld [vmem:[%s24330_s4 + $0x1b28] ss:$16 sps:$4 sm:$0xff]   ;;  %v17808_v18 = vld [vmem:[%s24330_s4 + $0x1b0c] ss:$16 sps:$4 sm:$0xff]  }
 0x69e   :  { %13516 = vmatpush1.bf16.msra.mxu0 %v17731_v42  ;;  %v17803_v32 = vld [vmem:[%s24330_s4 + $0x1908] ss:$16 sps:$4 sm:$0xff]   ;;  %v17811_v42 = vld [vmem:[%s24330_s4 + $0x1cec] ss:$16 sps:$4 sm:$0xff]  }
 0x69f   :  { %13517 = vmatprep.subr.bf16.mxu0 %v17739_v52  ;;  %v17806_v47 = vld [vmem:[%s24330_s4 + $0x1b08] ss:$16 sps:$4 sm:$0xff]  }
 0x6a0   :  { %13557 = vmatpush1.bf16.msra.mxu1 %v17734_v4  ;;  %v17814_v4 = vld [vmem:[%s24330_s4 + $0x1eec] ss:$16 sps:$4 sm:$0xff]   ;;  %v17809_v52 = vld [vmem:[%s24330_s4 + $0x1ce8] ss:$16 sps:$4 sm:$0xff]  }
 0x6a1   :  { %13558 = vmatprep.subr.bf16.mxu1 %v17742_v9  ;;  %v17812_v9 = vld [vmem:[%s24330_s4 + $0x1ee8] ss:$16 sps:$4 sm:$0xff]  }
 0x6a2   :  { %13518 = vmatpush1.bf16.msra.mxu0 %v17737_v58  ;;  %v17817_v58 = vld [vmem:[%s24330_s4 + $0x1ccc] ss:$16 sps:$4 sm:$0xff]  }
 0x6a3   :  { %13519 = vmatprep.subr.bf16.mxu0 %v17745_v63  ;;  %v17820_v63 = vld [vmem:[%s24330_s4 + $0x1ecc] ss:$16 sps:$4 sm:$0xff]  }
 0x6a4   :  { %13559 = vmatpush1.bf16.msra.mxu1 %v17740_v12 }
 0x6a5   :  { %13560 = vmatprep.subr.bf16.mxu1 %v17748_v55 }
 0x6a6   :  { %13520 = vmatpush1.bf16.msra.mxu0 %v17743_v29 }
 0x6a7   :  { %13521 = vmatprep.subr.bf16.mxu0 %v17751_v8 }
 0x6a8   :  { %13561 = vmatpush1.bf16.msra.mxu1 %v17746_v60  ;;  %v17815_v60 = vld [vmem:[%s24330_s4 + $0x1cc8] ss:$16 sps:$4 sm:$0xff]  }
 0x6a9   :  { %13562 = vmatprep.subr.bf16.mxu1 %v17754_v41 }
 0x6aa   :  { %13522 = vmatpush1.bf16.msra.mxu0 %v17749_v49 }
 0x6ab   :  { %13523 = vmatprep.subr.bf16.mxu0 %v17757_v37 }
 0x6ac   :  { %13563 = vmatpush1.bf16.msra.mxu1 %v17752_v5 }
 0x6ad   :  { %13564 = vmatprep.subr.bf16.mxu1 %v17760_v31 }
 0x6ae   :  { %13524 = vmatpush1.bf16.msra.mxu0 %v17755_v14  ;;  %v17821_v14 = vld [vmem:[%s24330_s4 + $0x1ca8] ss:$16 sps:$4 sm:$0xff]  }
 0x6af   :  { %13525 = vmatprep.subr.bf16.mxu0 %v17763_v23 }
 0x6b0   :  { %13565 = vmatpush1.bf16.msra.mxu1 %v17758_v22  ;;  %v17829_v22 = vld [vmem:[%s24330_s4 + $0x1c8c] ss:$16 sps:$4 sm:$0xff]  }
 0x6b1   :  { %13566 = vmatprep.subr.bf16.mxu1 %v17766_v43  ;;  %v17832_v43 = vld [vmem:[%s24330_s4 + $0x1e8c] ss:$16 sps:$4 sm:$0xff]  }
 0x6b2   :  { %13526 = vmatpush2.bf16.msra.mxu0 %v17761_v36  ;;  %v17827_v36 = vld [vmem:[%s24330_s4 + $0x1c88] ss:$16 sps:$4 sm:$0xff]  }
 0x6b3   :  { %13527 = vmatprep.subr.bf16.mxu0 %v17769_v3  ;;  %v17835_v3 = vld [vmem:[%s24330_s4 + $0x1c6c] ss:$16 sps:$4 sm:$0xff]  }
 0x6b4   :  { %13567 = vmatpush2.bf16.msra.mxu1 %v17764_v16  ;;  %v17830_v16 = vld [vmem:[%s24330_s4 + $0x1e88] ss:$16 sps:$4 sm:$0xff]  }
 0x6b5   :  { %13568 = vmatprep.subr.bf16.mxu1 %v17772_v2  ;;  %v17838_v2 = vld [vmem:[%s24330_s4 + $0x1e6c] ss:$16 sps:$4 sm:$0xff]  }
 0x6b6   :  { %13528 = vmatpush2.bf16.msra.mxu0 %v17767_v38  ;;  %v17833_v38 = vld [vmem:[%s24330_s4 + $0x1c68] ss:$16 sps:$4 sm:$0xff]  }
 0x6b7   :  { %13529 = vmatprep.subr.bf16.mxu0 %v17775_v30  ;;  %v17841_v30 = vld [vmem:[%s24330_s4 + $0x1c4c] ss:$16 sps:$4 sm:$0xff]  }
 0x6b8   :  { %13569 = vmatpush2.bf16.msra.mxu1 %v17770_v21  ;;  %v17836_v21 = vld [vmem:[%s24330_s4 + $0x1e68] ss:$16 sps:$4 sm:$0xff]  }
 0x6b9   :  { %13570 = vmatprep.subr.bf16.mxu1 %v17778_v61  ;;  %v17844_v61 = vld [vmem:[%s24330_s4 + $0x1e4c] ss:$16 sps:$4 sm:$0xff]  }
 0x6ba   :  { %13530 = vmatpush2.bf16.msra.mxu0 %v17773_v46  ;;  %v17839_v46 = vld [vmem:[%s24330_s4 + $0x1c48] ss:$16 sps:$4 sm:$0xff]  }
 0x6bb   :  { %13531 = vmatprep.subr.bf16.mxu0 %v17781_v25  ;;  %v17847_v25 = vld [vmem:[%s24330_s4 + $0x1c2c] ss:$16 sps:$4 sm:$0xff]  }
 0x6bc   :  { %13571 = vmatpush2.bf16.msra.mxu1 %v17776_v13  ;;  %v17842_v13 = vld [vmem:[%s24330_s4 + $0x1e48] ss:$16 sps:$4 sm:$0xff]  }
 0x6bd   :  { %13572 = vmatprep.subr.bf16.mxu1 %v17784_v28  ;;  %v17850_v28 = vld [vmem:[%s24330_s4 + $0x1e2c] ss:$16 sps:$4 sm:$0xff]  }
 0x6be   :  { %13532 = vmatpush2.bf16.msra.mxu0 %v17779_v0  ;;  %v17845_v0 = vld [vmem:[%s24330_s4 + $0x1c28] ss:$16 sps:$4 sm:$0xff]  }
 0x6bf   :  { %13533 = vmatprep.subr.bf16.mxu0 %v17787_v62  ;;  %v17853_v62 = vld [vmem:[%s24330_s4 + $0x1c0c] ss:$16 sps:$4 sm:$0xff]  }
 0x6c0   :  { %13573 = vmatpush2.bf16.msra.mxu1 %v17782_v39  ;;  %v17848_v39 = vld [vmem:[%s24330_s4 + $0x1e28] ss:$16 sps:$4 sm:$0xff]  }
 0x6c1   :  { %13574 = vmatprep.subr.bf16.mxu1 %v17790_v24  ;;  %v17856_v24 = vld [vmem:[%s24330_s4 + $0x1e0c] ss:$16 sps:$4 sm:$0xff]  }
 0x6c2   :  { %13534 = vmatpush2.bf16.msra.mxu0 %v17785_v17  ;;  %v17851_v17 = vld [vmem:[%s24330_s4 + $0x1c08] ss:$16 sps:$4 sm:$0xff]  }
 0x6c3   :  { %13535 = vmatprep.subr.bf16.mxu0 %v17793_v33  ;;  %v17859_v33 = vld [vmem:[%s24330_s4 + $0x1dec] ss:$16 sps:$4 sm:$0xff]  }
 0x6c4   :  { %13575 = vmatpush2.bf16.msra.mxu1 %v17788_v57  ;;  %v17854_v57 = vld [vmem:[%s24330_s4 + $0x1e08] ss:$16 sps:$4 sm:$0xff]  }
 0x6c5   :  { %13576 = vmatprep.subr.bf16.mxu1 %v17796_v27  ;;  %v17862_v27 = vld [vmem:[%s24330_s4 + $0x1fec] ss:$16 sps:$4 sm:$0xff]  }
 0x6c6   :  { %13536 = vmatpush2.bf16.msra.mxu0 %v17791_v35  ;;  %v17857_v35 = vld [vmem:[%s24330_s4 + $0x1de8] ss:$16 sps:$4 sm:$0xff]  }
 0x6c7   :  { %13537 = vmatprep.subr.bf16.mxu0 %v17799_v44  ;;  %v17865_v44 = vld [vmem:[%s24330_s4 + $0x1dcc] ss:$16 sps:$4 sm:$0xff]  }
 0x6c8   :  { %13577 = vmatpush2.bf16.msra.mxu1 %v17794_v40  ;;  %v17860_v40 = vld [vmem:[%s24330_s4 + $0x1fe8] ss:$16 sps:$4 sm:$0xff]  }
 0x6c9   :  { %13578 = vmatprep.subr.bf16.mxu1 %v17802_v59  ;;  %v17868_v59 = vld [vmem:[%s24330_s4 + $0x1fcc] ss:$16 sps:$4 sm:$0xff]  }
 0x6ca   :  { %13538 = vmatpush2.bf16.msra.mxu0 %v17797_v34  ;;  %v17863_v34 = vld [vmem:[%s24330_s4 + $0x1dc8] ss:$16 sps:$4 sm:$0xff]  }
 0x6cb   :  { %13539 = vmatprep.subr.bf16.mxu0 %v17805_v10  ;;  %v17871_v10 = vld [vmem:[%s24330_s4 + $0x1dac] ss:$16 sps:$4 sm:$0xff]  }
 0x6cc   :  { %13579 = vmatpush2.bf16.msra.mxu1 %v17800_v48  ;;  %v17866_v48 = vld [vmem:[%s24330_s4 + $0x1fc8] ss:$16 sps:$4 sm:$0xff]  }
 0x6cd   :  { %13580 = vmatprep.subr.bf16.mxu1 %v17808_v18  ;;  %v17874_v18 = vld [vmem:[%s24330_s4 + $0x1fac] ss:$16 sps:$4 sm:$0xff]  }
 0x6ce   :  { %13540 = vmatpush2.bf16.msra.mxu0 %v17803_v32  ;;  %v17869_v32 = vld [vmem:[%s24330_s4 + $0x1da8] ss:$16 sps:$4 sm:$0xff]  }
 0x6cf   :  { %13591 = vmatprep.subr.bf16.mxu0 %v17811_v42  ;;  %v17877_v42 = vld [vmem:[%s24330_s4 + $0x1d8c] ss:$16 sps:$4 sm:$0xff]  }
 0x6d0   :  { %13581 = vmatpush2.bf16.msra.mxu1 %v17806_v47  ;;  %v17872_v47 = vld [vmem:[%s24330_s4 + $0x1fa8] ss:$16 sps:$4 sm:$0xff]  }
 0x6d1   :  { %13632 = vmatprep.subr.bf16.mxu1 %v17814_v4  ;;  %v13297_v12 = vpop.f32.mrf.mxu0  ;;  %13542 = vmatmul.mubr.bf16.vlgmr.msra.gmra.mxu0 %v22242_v11  ;;  %v17818_v11 = vld [vmem:[%s24330_s4 + $0x1ec8] ss:$16 sps:$4 sm:$0xff]   ;;  %v17880_v4 = vld [vmem:[%s24330_s4 + $0x1f8c] ss:$16 sps:$4 sm:$0xff]  }
 0x6d2   :  { %v13298_v55 = vadd.f32 %v13297_v12, %v23703_v51  ;;  %13592 = vmatpush1.bf16.msra.mxu0 %v17809_v52  ;;  %13623 = vmatprep.mubr.bf16.mxu0 %v22256_v54  ;;  %v17823_v51 = vld [vmem:[%s24330_s4 + $0x1cac] ss:$16 sps:$4 sm:$0xff]   ;;  %v17875_v52 = vld [vmem:[%s24330_s4 + $0x1d88] ss:$16 sps:$4 sm:$0xff]  }
 0x6d3   :  { %v13338_v29 = vpop.f32.mrf.mxu1  ;;  %13583 = vmatmul.mubr.bf16.vlgmr.msra.gmra.mxu1 %v22249_v26  ;;  %v13299_v8 = vpop.f32.mrf.mxu0  ;;  %13593 = vmatprep.subr.bf16.mxu0 %v17817_v58  ;;  %v17826_v54 = vld [vmem:[%s24330_s4 + $0x1eac] ss:$16 sps:$4 sm:$0xff]   ;;  %v17881_v12 = vld [vmem:[%s24330_s4 + $0x1d68] ss:$16 sps:$4 sm:$0xff]  }
 0x6d4   :  { %13633 = vmatpush1.bf16.msra.mxu1 %v17812_v9  ;;  %v23905_v41 = vadd.f32 %v13338_v29, %v13298_v55  ;;  %13664 = vmatprep.mubr.bf16.mxu1 %v22264_v19  ;;  %v13300_v26 = vadd.f32 %v13299_v8, %v23710_v50  ;;  %v17824_v50 = vld [vmem:[%s24330_s4 + $0x1ea8] ss:$16 sps:$4 sm:$0xff]   ;;  %v17883_v58 = vld [vmem:[%s24330_s4 + $0x1d6c] ss:$16 sps:$4 sm:$0xff]  }
 0x6d5   :  { %v13340_v49 = vpop.f32.mrf.mxu1  ;;  %v13301_v5 = vpop.f32.mrf.mxu0  ;;  %13634 = vmatprep.subr.bf16.mxu1 %v17820_v63  ;;  %v17878_v9 = vld [vmem:[%s24330_s4 + $0x1f88] ss:$16 sps:$4 sm:$0xff]   ;;  %v17889_v55 = vld [vmem:[%s24330_s4 + $0x1d4c] ss:$16 sps:$4 sm:$0xff]  }
 0x6d6   :  { %v23912_v37 = vadd.f32 %v13340_v49, %v13300_v26  ;;  %13594 = vmatpush1.bf16.msra.mxu0 %v17815_v60  ;;  %v17884_v63 = vld [vmem:[%s24330_s4 + $0x1f68] ss:$16 sps:$4 sm:$0xff]   ;;  %v17892_v29 = vld [vmem:[%s24330_s4 + $0x1f4c] ss:$16 sps:$4 sm:$0xff]   ;;  %v24062_v26 = vld [vmem:[%s24301_s5] sm:$0xf] }
 0x6d7   :  { %v13342_v31 = vpop.f32.mrf.mxu1  ;;  %v13302_v19 = vpop.f32.mrf.mxu0  ;;  %13595 = vmatprep.subr.bf16.mxu0 %v17823_v51  ;;  %v17887_v60 = vld [vmem:[%s24330_s4 + $0x1d48] ss:$16 sps:$4 sm:$0xff]   ;;  %v17898_v51 = vld [vmem:[%s24330_s4 + $0x1f2c] ss:$16 sps:$4 sm:$0xff]   ;;  %v13686_v49 = vrot.slane %v24062_v26, %v18960_v53 }
 0x6d8   :  { %13635 = vmatpush1.bf16.msra.mxu1 %v17818_v11  ;;  %v17890_v8 = vld [vmem:[%s24330_s4 + $0x1f48] ss:$16 sps:$4 sm:$0xff]   ;;  %v17895_v11 = vld [vmem:[%s24330_s4 + $0x1d2c] ss:$16 sps:$4 sm:$0xff]  }
 0x6d9   :  { %v13343_v23 = vpop.f32.mrf.mxu1  ;;  %13636 = vmatprep.subr.bf16.mxu1 %v17826_v54  ;;  %v17952_v54 = vpop.eup %17951  ;;  %v17893_v5 = vld [vmem:[%s24330_s4 + $0x1d28] ss:$16 sps:$4 sm:$0xff]   ;;  %v17904_v19 = vld [vmem:[%s24330_s4 + $0x1f0c] ss:$16 sps:$4 sm:$0xff]  }
 0x6da   :  { %13596 = vmatpush1.bf16.msra.mxu0 %v17821_v14  ;;  %v17896_v31 = vld [vmem:[%s24330_s4 + $0x1f28] ss:$16 sps:$4 sm:$0xff]   ;;  %v17901_v14 = vld [vmem:[%s24330_s4 + $0x1d0c] ss:$16 sps:$4 sm:$0xff]  }
 0x6db   :  { %13597 = vmatprep.subr.bf16.mxu0 %v17829_v22  ;;  %v13700_v22 = vmul.f32 %v17952_v54, %v13686_v49  ;;  %v17926_v54 = vld [vmem:[%s24303_s7 + $0xa8] sm:$0xff]  }
 0x6dc   :  { %13637 = vmatpush1.bf16.msra.mxu1 %v17824_v50  ;;  %v24081_v50 = vld [vmem:[%s24302_s6] sm:$0xf] }
 0x6dd   :  { %13638 = vmatprep.subr.bf16.mxu1 %v17832_v43  ;;  %v13712_v23 = vrot.slane %v24081_v50, %v18960_v53  ;;  %v17899_v43 = vld [vmem:[%s24330_s4 + $0x1d08] ss:$16 sps:$4 sm:$0xff]  }
 0x6de   :  { %13598 = vmatpush1.bf16.msra.mxu0 %v17827_v36  ;;  %v17902_v36 = vld [vmem:[%s24330_s4 + $0x1f08] ss:$16 sps:$4 sm:$0xff]  }
 0x6df   :  { %13599 = vmatprep.subr.bf16.mxu0 %v17835_v3  ;;  %v13726_v3 = vadd.f32 %v13712_v23, %v13700_v22  ;;  %v17906_v53 = vld [vmem:[%s24303_s7 + $0x38] sm:$0xff]  }
 0x6e0   :  { %13639 = vmatpush1.bf16.msra.mxu1 %v17830_v16  ;;  %v17905_v16 = vld [vmem:[%s24303_s7 + $0x78] sm:$0xff]  }
 0x6e1   :  { %13640 = vmatprep.subr.bf16.mxu1 %v17838_v2  ;;  %v17907_v2 = vld [vmem:[%s24303_s7 + $0x70] sm:$0xff]   ;;  %v17929_v22 = vld [vmem:[%s24303_s7 + $0xd8] sm:$0xff]  }
 0x6e2   :  { %13600 = vmatpush1.bf16.msra.mxu0 %v17833_v38  ;;  %v17930_v23 = vld [vmem:[%s24303_s7 + $0x98] sm:$0xff]  }
 0x6e3   :  { %13601 = vmatprep.subr.bf16.mxu0 %v17841_v30 }
 0x6e4   :  { %13641 = vmatpush1.bf16.msra.mxu1 %v17836_v21  ;;  %v13730_v21 = vpack.c.bf16 %v13726_v3, %v13726_v3  ;;  %v17934_v3 = vld [vmem:[%s24303_s7 + $0x88] sm:$0xff]  }
 0x6e5   :  { %13642 = vmatprep.subr.bf16.mxu1 %v17844_v61 }
 0x6e6   :  { %13602 = vmatpush1.bf16.msra.mxu0 %v17839_v46  ;;  %v17908_v46 = vld [vmem:[%s24303_s7 + $0x30] sm:$0xff]  }
 0x6e7   :  { %13603 = vmatprep.subr.bf16.mxu0 %v17847_v25  ;;  %v17909_v25 = vld [vmem:[%s24303_s7 + $0x68] sm:$0xff]  }
 0x6e8   :  { %13643 = vmatpush1.bf16.msra.mxu1 %v17842_v13 }
 0x6e9   :  { %13644 = vmatprep.subr.bf16.mxu1 %v17850_v28 }
 0x6ea   :  { %13604 = vmatpush1.bf16.msra.mxu0 %v17845_v0 }
 0x6eb   :  { %13605 = vmatprep.subr.bf16.mxu0 %v17853_v62 }
 0x6ec   :  { %13645 = vmatpush1.bf16.msra.mxu1 %v17848_v39 }
 0x6ed   :  { %13646 = vmatprep.subr.bf16.mxu1 %v17856_v24 }
 0x6ee   :  { %13606 = vmatpush1.bf16.msra.mxu0 %v17851_v17  ;;  %v17911_v17 = vld [vmem:[%s24303_s7 + $0x60] sm:$0xff]  }
 0x6ef   :  { %13607 = vmatprep.subr.bf16.mxu0 %v17859_v33  ;;  %v17922_v33 = vld [vmem:[%s24303_s7 + $0xb8] sm:$0xff]  }
 0x6f0   :  { %13647 = vmatpush1.bf16.msra.mxu1 %v17854_v57 }
 0x6f1   :  { %13648 = vmatprep.subr.bf16.mxu1 %v17862_v27  ;;  %v17913_v27 = vld [vmem:[%s24303_s7 + $0x58] sm:$0xff]  }
 0x6f2   :  { %13608 = vmatpush2.bf16.msra.mxu0 %v17857_v35  ;;  %v17914_v35 = vld [vmem:[%s24303_s7 + $0x18] sm:$0xff]  }
 0x6f3   :  { %13609 = vmatprep.subr.bf16.mxu0 %v17865_v44  ;;  %v17916_v44 = vld [vmem:[%s24303_s7 + $0x10] sm:$0xff]  }
 0x6f4   :  { %13649 = vmatpush2.bf16.msra.mxu1 %v17860_v40  ;;  %v17915_v40 = vld [vmem:[%s24303_s7 + $0x50] sm:$0xff]  }
 0x6f5   :  { %13650 = vmatprep.subr.bf16.mxu1 %v17868_v59  ;;  %v17917_v59 = vld [vmem:[%s24303_s7 + $0x48] sm:$0xff]  }
 0x6f6   :  { %13610 = vmatpush2.bf16.msra.mxu0 %v17863_v34  ;;  %v13682_v34 = vrot.slane %v24062_v26, %v18948_v45 }
 0x6f7   :  { %13611 = vmatprep.subr.bf16.mxu0 %v17871_v10  ;;  %v17918_v10 = vld [vmem:[%s24303_s7 + $0x8] sm:$0xff]  }
 0x6f8   :  { %13651 = vmatpush2.bf16.msra.mxu1 %v17866_v48  ;;  %v17954_v48 = vpop.eup %17953 }
 0x6f9   :  { %13652 = vmatprep.subr.bf16.mxu1 %v17874_v18  ;;  %v17919_v18 = vld [vmem:[%s24303_s7 + $0x40] sm:$0xff]  }
 0x6fa   :  { %13612 = vmatpush2.bf16.msra.mxu0 %v17869_v32  ;;  %v13699_v32 = vmul.f32 %v17954_v48, %v13682_v34  ;;  %v13694_v34 = vrot.slane %v24062_v26, %v19077_v15 }
 0x6fb   :  { %13613 = vmatprep.subr.bf16.mxu0 %v17877_v42  ;;  %v17920_v42 = vld [vmem:[%s24303_s7] sm:$0xff]  }
 0x6fc   :  { %13653 = vmatpush2.bf16.msra.mxu1 %v17872_v47  ;;  %v13708_v47 = vrot.slane %v24081_v50, %v18948_v45  ;;  %v17924_v45 = vld [vmem:[%s24303_s7 + $0xb0] sm:$0xff]  }
 0x6fd   :  { %13654 = vmatprep.subr.bf16.mxu1 %v17880_v4 }
 0x6fe   :  { %13614 = vmatpush2.bf16.msra.mxu0 %v17875_v52  ;;  %v13725_v4 = vadd.f32 %v13708_v47, %v13699_v32 }
 0x6ff   :  { %13615 = vmatprep.subr.bf16.mxu0 %v17883_v58  ;;  %v17923_v58 = vld [vmem:[%s24303_s7 + $0xf0] sm:$0xff]  }
 0x700   :  { %13655 = vmatpush2.bf16.msra.mxu1 %v17878_v9  ;;  %v13729_v52 = vpack.c.bf16 %v13725_v4, %v13725_v4 }
 0x701   :  { %13656 = vmatprep.subr.bf16.mxu1 %v17886_v20 }
 0x702   :  { %13616 = vmatpush2.bf16.msra.mxu0 %v17881_v12 }
 0x703   :  { %13617 = vmatprep.subr.bf16.mxu0 %v17889_v55 }
 0x704   :  { %13657 = vmatpush2.bf16.msra.mxu1 %v17884_v63 }
 0x705   :  { %13658 = vmatprep.subr.bf16.mxu1 %v17892_v29 }
 0x706   :  { %13618 = vmatpush2.bf16.msra.mxu0 %v17887_v60 }
 0x707   :  { %13619 = vmatprep.subr.bf16.mxu0 %v17895_v11  ;;  %v17925_v11 = vld [vmem:[%s24303_s7 + $0xe8] sm:$0xff]  }
 0x708   :  { %13659 = vmatpush2.bf16.msra.mxu1 %v17890_v8 }
 0x709   :  { %13660 = vmatprep.subr.bf16.mxu1 %v17898_v51 }
 0x70a   :  { %13620 = vmatpush2.bf16.msra.mxu0 %v17893_v5 }
 0x70b   :  { %13621 = vmatprep.subr.bf16.mxu0 %v17901_v14  ;;  %v17927_v14 = vld [vmem:[%s24303_s7 + $0xe0] sm:$0xff]  }
 0x70c   :  { %13661 = vmatpush2.bf16.msra.mxu1 %v17896_v31 }
 0x70d   :  { %13662 = vmatprep.subr.bf16.mxu1 %v17904_v19  ;;  %v17928_v19 = vld [vmem:[%s24303_s7 + $0xa0] sm:$0xff]  }
 0x70e   :  { %13622 = vmatpush2.bf16.msra.mxu0 %v17899_v43  ;;  %v17931_v43 = vld [vmem:[%s24303_s7 + $0xd0] sm:$0xff]  }
 0x70f   :  { %16262 = vmatprep.subr.bf16.mxu0 %v17905_v16  ;;  %v17933_v16 = vld [vmem:[%s24303_s7 + $0xc8] sm:$0xff]  }
 0x710   :  { %13663 = vmatpush2.bf16.msra.mxu1 %v17902_v36  ;;  %v17932_v36 = vld [vmem:[%s24303_s7 + $0x90] sm:$0xff]  }
 0x711   :  { %v13379_v38 = vpop.f32.mrf.mxu0  ;;  %13624 = vmatmul.mubr.bf16.vlgmr.msra.gmra.mxu0 %v22460_v7 }
 0x712   :  { %v13380_v30 = vadd.f32 %v13379_v38, %v23905_v41  ;;  %16263 = vmatpush3.bf16.msra.mxu0 %v17906_v53  ;;  %14028 = vmatprep.mubr.bf16.mxu0 %v13730_v21  ;;  %v17935_v53 = vld [vmem:[%s24303_s7 + $0xc0] sm:$0xff]  }
 0x713   :  { %v13420_v61 = vpop.f32.mrf.mxu1  ;;  %13665 = vmatmul.mubr.bf16.vlgmr.msra.gmra.mxu1 %v22467_v56  ;;  %v13381_v13 = vpop.f32.mrf.mxu0  ;;  %16264 = vmatprep.subr.bf16.mxu0 %v17907_v2  ;;  %v17910_v56 = vld [vmem:[%s24303_s7 + $0x28] sm:$0xff]   ;;  %v17936_v2 = vld [vmem:[%s24303_s7 + $0x80] sm:$0xff]  }
 0x714   :  { %v13421_v28 = vadd.f32 %v13420_v61, %v13380_v30  ;;  %v13382_v7 = vadd.f32 %v13381_v13, %v23912_v37  ;;  %v17921_v37 = vld [vmem:[%s24303_s7 + $0xf8] sm:$0xff]  }
 0x715   :  { %v13422_v0 = vpop.f32.mrf.mxu1  ;;  %v13383_v41 = vpop.f32.mrf.mxu0  ;;  %16284 = vmatprep.subr.bf16.mxu1 %v17921_v37 }
 0x716   :  { %v13423_v39 = vadd.f32 %v13422_v0, %v13382_v7  ;;  %16265 = vmatpush3.bf16.msra.mxu0 %v17908_v46  ;;  %16285 = vmatpush3.bf16.msra.mxu1 %v17922_v33 }
 0x717   :  { %v13424_v62 = vpop.f32.mrf.mxu1  ;;  %v13384_v24 = vpop.f32.mrf.mxu0  ;;  %16266 = vmatprep.subr.bf16.mxu0 %v17909_v25  ;;  %16286 = vmatprep.subr.bf16.mxu1 %v17923_v58 }
 0x719   :  { %v13425_v57 = vpop.f32.mrf.mxu1 }
 0x71a   :  { %16267 = vmatpush3.bf16.msra.mxu0 %v17910_v56  ;;  %16287 = vmatpush3.bf16.msra.mxu1 %v17924_v45 }
 0x71b   :  { %16268 = vmatprep.subr.bf16.mxu0 %v17911_v17  ;;  %16288 = vmatprep.subr.bf16.mxu1 %v17925_v11 }
 0x71e   :  { %16269 = vmatpush3.bf16.msra.mxu0 %v17912_v1  ;;  %16289 = vmatpush3.bf16.msra.mxu1 %v17926_v54 }
 0x71f   :  { %16270 = vmatprep.subr.bf16.mxu0 %v17913_v27  ;;  %16290 = vmatprep.subr.bf16.mxu1 %v17927_v14 }
 0x722   :  { %16271 = vmatpush3.bf16.msra.mxu0 %v17914_v35  ;;  %16291 = vmatpush3.bf16.msra.mxu1 %v17928_v19  ;;  %v17940_v19 = vld [vmem:[%s24309_s13 + $0x10] sm:$0xff]  }
 0x723   :  { %16272 = vmatprep.subr.bf16.mxu0 %v17915_v40  ;;  %16292 = vmatprep.subr.bf16.mxu1 %v17929_v22  ;;  %v17941_v22 = vld [vmem:[%s24309_s13 + $0x8] sm:$0xff]  }
 0x726   :  { %16273 = vmatpush3.bf16.msra.mxu0 %v17916_v44  ;;  %16293 = vmatpush3.bf16.msra.mxu1 %v17930_v23  ;;  %v17942_v23 = vld [vmem:[%s24309_s13] sm:$0xff]  }
 0x727   :  { %16274 = vmatprep.subr.bf16.mxu0 %v17917_v59  ;;  %16294 = vmatprep.subr.bf16.mxu1 %v17931_v43  ;;  %v13690_v59 = vrot.slane %v24062_v26, %v19062_v6  ;;  %v17943_v43 = vld [vmem:[%s24313_s17 + $0x38] sm:$0xff]  }
 0x72a   :  { %16275 = vmatpush3.bf16.msra.mxu0 %v17918_v10  ;;  %16295 = vmatpush3.bf16.msra.mxu1 %v17932_v36  ;;  %v13716_v10 = vrot.slane %v24081_v50, %v19062_v6  ;;  %v17937_v6 = vld [vmem:[%s24305_s9 + $0x8] sm:$0xff]   ;;  %v17944_v36 = vld [vmem:[%s24313_s17 + $0x30] sm:$0xff]  }
 0x72b   :  { %16276 = vmatprep.subr.bf16.mxu0 %v17919_v18  ;;  %16296 = vmatprep.subr.bf16.mxu1 %v17933_v16  ;;  %v13720_v18 = vrot.slane %v24081_v50, %v19077_v15  ;;  %v17938_v15 = vld [vmem:[%s24305_s9] sm:$0xff]   ;;  %v17945_v16 = vld [vmem:[%s24313_s17 + $0x28] sm:$0xff]  }
 0x72c   :  { %v16206_v50 = vld [vmem:[%s24304_s8] ss:$0 sm:$0xff] }
 0x72e   :  { %16277 = vmatpush3.bf16.msra.mxu0 %v17920_v42  ;;  %16297 = vmatpush3.bf16.msra.mxu1 %v17934_v3  ;;  %v17946_v3 = vld [vmem:[%s24313_s17 + $0x20] sm:$0xff]  }
 0x72f   :  { %16298 = vmatprep.subr.bf16.mxu1 %v17935_v53  ;;  %v17947_v53 = vld [vmem:[%s24313_s17 + $0x18] sm:$0xff]  }
 0x731   :  { %14029 = vmatmul.mubr.bf16.vlgmr.msra.gmra.mxu0 %v13729_v52 }
 0x732   :  { %16299 = vmatpush3.bf16.msra.mxu1 %v17936_v2  ;;  %v16239_v2 = vld [vmem:[%s24306_s10] ss:$0 sm:$0xff] }
 0x751   :  { %v13461_v9 = vpop.f32.mrf.mxu0 }
 0x752   :  { %v13462_v20 = vadd.f32 %v13461_v9, %v13421_v28 }
 0x753   :  { %v13502_v12 = vpop.f32.mrf.mxu1  ;;  %v13463_v63 = vpop.f32.mrf.mxu0 }
 0x754   :  { %v13503_v55 = vadd.f32 %v13502_v12, %v13462_v20  ;;  %v13464_v29 = vadd.f32 %v13463_v63, %v13423_v39 }
 0x755   :  { %v13504_v60 = vpop.f32.mrf.mxu1  ;;  %v13465_v8 = vpop.f32.mrf.mxu0 }
 0x756   :  { %v13505_v51 = vadd.f32 %v13504_v60, %v13464_v29 }
 0x757   :  { %v13506_v49 = vpop.f32.mrf.mxu1  ;;  %v13466_v5 = vpop.f32.mrf.mxu0 }
 0x759   :  { %v13507_v31 = vpop.f32.mrf.mxu1 }
 0x75a   :  { %v17939_v31 = vld [vmem:[%s24309_s13 + $0x18] sm:$0xff]  }
 0x791   :  { %v13543_v38 = vpop.f32.mrf.mxu0 }
 0x792   :  { %v13544_v21 = vadd.f32 %v13543_v38, %v13503_v55  ;;  %v18009_v55 = vmov 0.0  }
 0x793   :  { %v13584_v30 = vpop.f32.mrf.mxu1  ;;  %v13545_v61 = vpop.f32.mrf.mxu0  ;;  %16323 = vmatprep.subr.bf16.mxu1 %v18009_v55  ;;  %16343 = vmatprep.subr.bf16.mxu0 %v18009_v55 }
 0x794   :  { %v13585_v46 = vadd.f32 %v13584_v30, %v13544_v21  ;;  %v13546_v41 = vadd.f32 %v13545_v61, %v13505_v51  ;;  %16359 = vmatprep.mubr.msk.bf16.mxu0 %vm18010_vm0, %v18009_v55  ;;  %16344 = vmatpush3.bf16.msra.mxu0 %v17943_v43 }
 0x795   :  { %v13586_v13 = vpop.f32.mrf.mxu1  ;;  %v13547_v25 = vpop.f32.mrf.mxu0  ;;  %16345 = vmatprep.subr.bf16.mxu0 %v18009_v55 }
 0x796   :  { %v13587_v62 = vadd.f32 %v13586_v13, %v13546_v41 }
 0x797   :  { %v13588_v28 = vpop.f32.mrf.mxu1  ;;  %v13548_v7 = vpop.f32.mrf.mxu0 }
 0x798   :  { %16346 = vmatpush3.bf16.msra.mxu0 %v17944_v36  ;;  %v16244_v28 = vld [vmem:[%s24308_s12] ss:$0 sm:$0xff] }
 0x799   :  { %v13589_v0 = vpop.f32.mrf.mxu1  ;;  %16347 = vmatprep.subr.bf16.mxu0 %v18009_v55 }
 0x79c   :  { %16348 = vmatpush3.bf16.msra.mxu0 %v17945_v16 }
 0x79d   :  { %16349 = vmatprep.subr.bf16.mxu0 %v18009_v55 }
 0x7a0   :  { %16350 = vmatpush3.bf16.msra.mxu0 %v17946_v3 }
 0x7a1   :  { %16351 = vmatprep.subr.bf16.mxu0 %v18009_v55 }
 0x7a4   :  { %16352 = vmatpush3.bf16.msra.mxu0 %v17947_v53 }
 0x7a5   :  { %16353 = vmatprep.subr.bf16.mxu0 %v18009_v55 }
 0x7d1   :  { %v13625_v39 = vpop.f32.mrf.mxu0 }
 0x7d2   :  { %v13626_v56 = vadd.f32 %v13625_v39, %v13585_v46  ;;  %v16243_v46 = vld [vmem:[%s24307_s11] ss:$0 sm:$0xff] }
 0x7d3   :  { %v13666_v24 = vpop.f32.mrf.mxu1  ;;  %v13627_v17 = vpop.f32.mrf.mxu0 }
 0x7d4   :  { %v13667_v57 = vadd.f32 %v13666_v24, %v13626_v56  ;;  %v13628_v37 = vadd.f32 %v13627_v17, %v13587_v62  ;;  %v17948_v62 = vld [vmem:[%s24313_s17 + $0x10] sm:$0xff]   ;;  %v17949_v56 = vld [vmem:[%s24313_s17 + $0x8] sm:$0xff]   ;;  %v17950_v24 = vld [vmem:[%s24313_s17] sm:$0xff]  }
 0x7d5   :  { %v13668_v33 = vpop.f32.mrf.mxu1  ;;  %v13629_v1 = vpop.f32.mrf.mxu0  ;;  %16354 = vmatpush3.bf16.msra.mxu0 %v17948_v62  ;;  %v16245_v17 = vld [vmem:[%s24310_s14] ss:$0 sm:$0xff]  ;;  %s18011_s14 = smov [#allocation2]  }
 0x7d6   :  { %17955 = vtanh.f32 %v13667_v57  ;;  %v13669_v27 = vadd.f32 %v13668_v33, %v13628_v37  ;;  %16355 = vmatprep.subr.bf16.mxu0 %v18009_v55  ;;  %s14392_s17 = sshll.u32 %s18011_s14, 4  ;;  %s14393_s17 = int_to_ptr.vmem [resolvable:$true] %s14392_s17 }
 0x7d7   :  { %v13670_v35 = vpop.f32.mrf.mxu1  ;;  %v13630_v40 = vpop.f32.mrf.mxu0  ;;  %s17964_s26 = scalar_lea.vmem %s14393_s17, 64  ;;  %p17969_p1 = scmp.lt.s32.totalorder %s14393_s17, %s14393_s17 }
 0x7d8   :  { %17957 = vtanh.f32 %v13669_v27  ;;  %v16251_v27 = vld [vmem:[%s24311_s15] ss:$0 sm:$0xff]  ;;  %p17965_p0 = scmp.ne.s32.totalorder %s14393_s17, %s17964_s26  ;;  %p17970_p2 = scmp.lt.s32.totalorder %s17964_s26, %s17964_s26 }
 0x7d9   :  { %v13671_v44 = vpop.f32.mrf.mxu1  ;;  %16356 = vmatpush3.bf16.msra.mxu0 %v17949_v56 }
 0x7da   :  { %16357 = vmatprep.subr.bf16.mxu0 %v18009_v55  ;;  %v16252_v44 = vld [vmem:[%s24312_s16] ss:$0 sm:$0xff]  ;;  %p17971_p3 = por %p17970_p2, %p17969_p1 }
 0x7dc   :  { %p17972_p4 = pnand %p17971_p3, %p17965_p0 }
 0x7dd   :  { %16358 = vmatpush3.bf16.msra.mxu0 %v17950_v24 }
 0x7e3   :  { %v17956_v48 = vpop.eup %17955 }
 0x7e4   :  { %v13701_v32 = vmul.f32 %v17956_v48, %v13690_v59 }
 0x7e5   :  { %v17958_v47 = vpop.eup %17957 }
 0x7e6   :  { %v13702_v42 = vmul.f32 %v17958_v47, %v13694_v34  ;;  %v13727_v4 = vadd.f32 %v13716_v10, %v13701_v32 }
 0x7e8   :  { %v13728_v52 = vadd.f32 %v13720_v18, %v13702_v42  ;;  %v13731_v58 = vpack.c.bf16 %v13727_v4, %v13727_v4 }
 0x7ea   :  { %v13732_v9 = vpack.c.bf16 %v13728_v52, %v13728_v52 }
 0x7ec   :  { %14068 = vmatprep.mubr.bf16.mxu1 %v13732_v9 }
 0x7ed   :  { %14069 = vmatmul.mubr.bf16.vlgmr.msra.gmra.mxu1 %v13731_v58 }
 0x7ee   :  { %16324 = vmatpush3.bf16.msra.mxu1 %v17937_v6  ;;  %16327 = vmatprep.mubr.msk.bf16.mxu1 %vm18010_vm0, %v18009_v55 }
 0x7ef   :  { %16325 = vmatprep.subr.bf16.mxu1 %v18009_v55 }
 0x7f1   :  { %v16278_v20 = vpop.f32.mrf.mxu0 }
 0x7f2   :  { %16326 = vmatpush3.bf16.msra.mxu1 %v17938_v15 }
 0x7f3   :  { %v16279_v12 = vpop.f32.mrf.mxu0  ;;  %16331 = vmatprep.subr.bf16.mxu1 %v18009_v55 }
 0x7f4   :  { %v16280_v45 = vadd.f32 %v16279_v12, %v16278_v20 }
 0x7f5   :  { %v16281_v26 = vpop.f32.mrf.mxu0 }
 0x7f6   :  { %v14031_v8 = vadd.f32 %v16280_v45, %v16206_v50 }
 0x7f7   :  { %v16282_v63 = vpop.f32.mrf.mxu0 }
 0x8ad   :  { %v16300_v29 = vpop.f32.mrf.mxu1 }
 0x8af   :  { %v16301_v60 = vpop.f32.mrf.mxu1 }
 0x8b0   :  { %v16302_v11 = vadd.f32 %v16301_v60, %v16300_v29 }
 0x8b1   :  { %v16303_v51 = vpop.f32.mrf.mxu1 }
 0x8b2   :  { %v14071_v49 = vadd.f32 %v16302_v11, %v14031_v8 }
 0x8b3   :  { %v16304_v54 = vpop.f32.mrf.mxu1 }
 0x8b4   :  { %17959 = vtanh.f32 %v14071_v49 }
 0x8c1   :  { %v17960_v5 = vpop.eup %17959 }
 0x8c2   :  { %v14079_v14 = vpack.c.bf16 %v17960_v5, %v17960_v5  ;;  %14078 = vst.msk [vmem:[#allocation2] sm:$0xf] %vm14077_vm1, %v17960_v5 }
 0x8c4   :  { %16328 = vmatmul.mubr.msk.bf16.vlgmr.msra.gmra.mxu1 %vm14103_vm2, %v14079_v14 }
 0x8c5   :  { %16332 = vmatpush3.bf16.msra.mxu1 %v17939_v31  ;;  %16339 = vmatprep.mubr.msk.bf16.mxu1 %vm18010_vm0, %v18009_v55 }
 0x8c6   :  { %16333 = vmatprep.subr.bf16.mxu1 %v18009_v55 }
 0x8c9   :  { %16334 = vmatpush3.bf16.msra.mxu1 %v17940_v19 }
 0x8ca   :  { %16335 = vmatprep.subr.bf16.mxu1 %v18009_v55 }
 0x8cd   :  { %16336 = vmatpush3.bf16.msra.mxu1 %v17941_v22 }
 0x8ce   :  { %16337 = vmatprep.subr.bf16.mxu1 %v18009_v55 }
 0x8d1   :  { %16338 = vmatpush3.bf16.msra.mxu1 %v17942_v23 }
 0x984   :  { %v14141_v38 = vpop.f32.mrf.mxu1 }
 0x985   :  { %v14142_v21 = vadd.f32 %v16239_v2, %v14141_v38 }
 0x986   :  { %v16329_v30 = vpop.f32.mrf.mxu1 }
 0x987   :  { %vm14147_vm3 = vcmp.ge.f32.partialorder %v14142_v21, 0.0  ;;  %v14148_v61 = vmul.f32 0.2, %v14142_v21 }
 0x988   :  { %v14144_v13 = vpop.f32.mrf.mxu1 }
 0x989   :  { %v14149_v25 = vsel %vm14147_vm3, %v14142_v21, %v14148_v61 }
 0x98a   :  { %v14157_v7 = vmul.f32 %v16243_v46, %v14149_v25  ;;  %v16330_v0 = vpop.f32.mrf.mxu1 }
 0x98c   :  { %v14165_v41 = vadd.f32 %v16244_v28, %v14157_v7 }
 0x98e   :  { %v14166_v39 = vpack.c.bf16 %v14165_v41, %v14165_v41 }
 0x990   :  { %16340 = vmatmul.mubr.msk.bf16.vlgmr.msra.gmra.mxu1 %vm14206_vm4, %v14166_v39 }
 0xa50   :  { %v14244_v57 = vpop.f32.mrf.mxu1 }
 0xa51   :  { %v14245_v37 = vadd.f32 %v16245_v17, %v14244_v57 }
 0xa52   :  { %v16341_v33 = vpop.f32.mrf.mxu1 }
 0xa53   :  { %vm14250_vm5 = vcmp.ge.f32.partialorder %v14245_v37, 0.0  ;;  %v14251_v1 = vmul.f32 0.2, %v14245_v37 }
 0xa54   :  { %v14247_v35 = vpop.f32.mrf.mxu1 }
 0xa55   :  { %v14252_v40 = vsel %vm14250_vm5, %v14245_v37, %v14251_v1 }
 0xa56   :  { %v14260_v59 = vmul.f32 %v16251_v27, %v14252_v40  ;;  %v16342_v34 = vpop.f32.mrf.mxu1 }
 0xa58   :  { %v14268_v48 = vadd.f32 %v16252_v44, %v14260_v59 }
 0xa5a   :  { %v14269_v10 = vpack.c.bf16 %v14268_v48, %v14268_v48 }
 0xa5c   :  { %16360 = vmatmul.mubr.bf16.vlgmr.msra.gmra.mxu0 %v14269_v10 }
 0xa5d   :  { %17975 = shalt.err (!%p17972_p4)
}
 0xa5e   :  { %14395 = dma.vmem_to_hbm [thread:$0]  %s14393_s17, 64, %s24315_s19, [#allocation3]   ;;  %v16253_v18 = vld [vmem:[%s24314_s18] ss:$0 sm:$0xff]  ;;  %vm14384_vm7 = vcmask 199680  }
 0xa5f   :  { %s18012_s7 = smov [#allocation4]  }
 0xa60   :  { %s14402_s28 = sshll.u32 %s18012_s7, 4  ;;  %s14403_s28 = int_to_ptr.vmem [resolvable:$true] %s14402_s28 }
 0xa61   :  { %s17984_s30 = scalar_lea.vmem %s14403_s28, 64  ;;  %p17989_p6 = scmp.lt.s32.totalorder %s14403_s28, %s14403_s28 }
 0xa62   :  { %p17985_p5 = scmp.ne.s32.totalorder %s14403_s28, %s17984_s30  ;;  %p17990_p7 = scmp.lt.s32.totalorder %s17984_s30, %s17984_s30 }
 0xa64   :  { %p17991_p8 = por %p17990_p7, %p17989_p6 }
 0xa66   :  { %p17992_p9 = pnand %p17991_p8, %p17985_p5 }
 0xb1c   :  { %v14375_v32 = vpop.f32.mrf.mxu0 }
 0xb1d   :  { %v14376_v47 = vadd.f32 %v16253_v18, %v14375_v32 }
 0xb1e   :  { %v16361_v42 = vpop.f32.mrf.mxu0 }
 0xb1f   :  { %v14382_v4 = vmul.f32 0.2, %v14376_v47  ;;  %vm14381_vm6 = vcmp.ge.f32.partialorder %v14376_v47, 0.0 }
 0xb20   :  { %v14378_v52 = vpop.f32.mrf.mxu0 }
 0xb21   :  { %v14383_v9 = vsel %vm14381_vm6, %v14376_v47, %v14382_v4 }
 0xb22   :  { %v16362_v58 = vpop.f32.mrf.mxu0  ;;  %14385 = vst.msk [vmem:[#allocation4] sm:$0xf] %vm14384_vm7, %v14383_v9 }
 0xb23   :  { %17995 = shalt.err (!%p17992_p9)
}
 0xb24   :  { %14405 = dma.vmem_to_hbm [thread:$0]  %s14403_s28, 64, %s24316_s20, [#allocation5]  }
 0xb25   :  { %18004 = dma.done.wait [#allocation3], 64  }
 0xb26   :  { %18005 = vsyncadd [#allocation3], 4294967232 }
 0xb27   :  { %18006 = dma.done.wait [#allocation5], 64  }
 0xb28   :  { %18007 = vsyncadd [#allocation5], 4294967232 }
 0xb29   :  { %14412 = vsyncpa [#allocation3], 1 }
 0xb2a   :  { %14413 = vsyncpa [#allocation5], 1 }

</bundles_post_ra>
